<compile_context>
chip_gen: v6e
topology: v6e:2x2x1
jax: 0.10.0
libtpu: 0.0.40
codegen_flags: <defaults>
</compile_context>

<pallas_src>
import jax
import jax.numpy as jnp
import numpy as np
from jax.experimental import pallas as pl
from jax.experimental.pallas import tpu as pltpu

# Model hyperparameters (num_layers fixed to 2 in this synthetic instance).
VOCAB = 16      # input_size
EMB = 8         # embedding_size
HID = 32        # hidden_size
NUM_LAYERS = 2
OUT = 4         # output_size
BATCH = 2
SEQLEN = 8

LANE = 128          # TPU lane width; one gate slab per 128-lane block
KDIM = 2 * LANE     # fused [input | hidden] contraction dim (both layers)
NDIM = 4 * LANE     # four gate slabs: r | z | i_n | h_n


def gru_classifier_kernel(len_ref,      # SMEM (B,)   int32  (scalar prefetch)
                          x_ref,        # VMEM (B, T, LANE)   f32
                          w_ref,        # VMEM (2, KDIM, NDIM) packed GRU weights
                          b_ref,        # VMEM (2, 1, NDIM)   packed GRU biases
                          wout_ref,     # VMEM (LANE, OUT)    (rows >= HID zero)
                          bout_ref,     # VMEM (1, OUT)
                          logp_ref,     # out  (B, OUT)
                          hid_ref):     # out  (B, HID)
    B, T, _ = x_ref.shape
    G = LANE

    # lengths -> (B, 1) int vector, built once from SMEM scalars (no VMEM DMA).
    row_ids = jax.lax.broadcasted_iota(jnp.int32, (B, 1), 0)
    lens_vec = jnp.zeros((B, 1), jnp.int32)
    for b in range(B):
        lens_vec = jnp.where(row_ids == b, len_ref[b], lens_vec)

    def gru_cell(inp, h_prev, layer):
        # inp, h_prev: (B, G), zero-padded beyond their true width.
        cat = jnp.concatenate([inp, h_prev], axis=1)               # (B, 2G)
        g = jnp.dot(cat, w_ref[layer],
                    preferred_element_type=jnp.float32) + b_ref[layer]
        r = jax.nn.sigmoid(g[:, 0:G])                              # whole-vreg
        z = jax.nn.sigmoid(g[:, G:2 * G])
        n = jnp.tanh(g[:, 2 * G:3 * G] + r * g[:, 3 * G:4 * G])
        return (1.0 - z) * n + z * h_prev                          # pad lanes stay 0

    h0 = jnp.zeros((B, G), jnp.float32)
    h1 = jnp.zeros((B, G), jnp.float32)

    # T is small & static: fully unrolled loop (== fori_loop(..., unroll=True))
    # keeps every index/slice static inside one scheduling region.
    for t in range(T):
        mask = (lens_vec > t).astype(jnp.float32)                  # (B, 1)
        keep = 1.0 - mask
        x_t = x_ref[:, t, :]                                       # (B, G)
        h0 = mask * gru_cell(x_t, h0, 0) + keep * h0
        h1 = mask * gru_cell(h0, h1, 1) + keep * h1

    # Output head + log-softmax epilogue, fused in the same region.
    logits = jnp.dot(h1, wout_ref[...],
                     preferred_element_type=jnp.float32) + bout_ref[...]
    m = jnp.max(logits, axis=1, keepdims=True)
    lse = jnp.log(jnp.sum(jnp.exp(logits - m), axis=1, keepdims=True)) + m
    logp_ref[...] = logits - lse                                   # log_softmax(dim=1)
    hid_ref[...] = h1[:, :HID]


def classifier_rnn_forward(sequences, lengths, packed):
    """sequences: (B, T) int32 tokens; lengths: (B,) int32; packed: pack_params()."""
    B, T = sequences.shape
    # Embedding gather stays in the wrapper (XLA take); pad E -> 128 lanes so
    # both GRU layers share one K=256 fused contraction layout.
    emb = packed["embedding"][sequences].astype(jnp.float32)        # (B, T, E)
    x = jnp.zeros((B, T, LANE), jnp.float32).at[:, :, :EMB].set(emb)
    lens = lengths.astype(jnp.int32)                                # (B,)

    full3 = lambda i, lens_ref: (0, 0, 0)
    full2 = lambda i, lens_ref: (0, 0)

    grid_spec = pltpu.PrefetchScalarGridSpec(
        num_scalar_prefetch=1,                  # lengths -> SMEM
        grid=(1,),                              # single invocation; T unrolled inside
        in_specs=[
            pl.BlockSpec((B, T, LANE), full3),          # activations (whole block)
            pl.BlockSpec((2, KDIM, NDIM), full3),       # packed GRU weights
            pl.BlockSpec((2, 1, NDIM), full3),          # packed GRU biases
            pl.BlockSpec((LANE, OUT), full2),           # output weight (padded)
            pl.BlockSpec((1, OUT), full2),              # output bias
        ],
        out_specs=[
            pl.BlockSpec((B, OUT), full2),              # log-probs
            pl.BlockSpec((B, HID), full2),              # final hidden
        ],
    )

    logp, hidden = pl.pallas_call(
        gru_classifier_kernel,
        out_shape=(jax.ShapeDtypeStruct((B, OUT), jnp.float32),
                   jax.ShapeDtypeStruct((B, HID), jnp.float32)),
        grid_spec=grid_spec,
        compiler_params=pltpu.CompilerParams(
            dimension_semantics=("arbitrary",)),
    )(lens, x, packed["w_pack"], packed["b_pack"],
      packed["w_out_pad"], packed["b_out"])
    return logp, hidden


def init_params(key):
    """Deterministic parameter init mirroring the PyTorch module's shapes
    (weights kept transposed for right-multiplication)."""
    ks = jax.random.split(key, 12)
    u = lambda k, shape, s: jax.random.uniform(k, shape, jnp.float32, -s, s)
    s = 1.0 / np.sqrt(HID)
    return {
        "embedding": jax.random.normal(ks[0], (VOCAB, EMB), jnp.float32),
        # layer 0: torch weight_ih_l0 is (3H, E) -> store (E, 3H), gate order (r,z,n)
        "w_ih0": u(ks[1], (EMB, 3 * HID), s),
        "w_hh0": u(ks[2], (HID, 3 * HID), s),
        "b_ih0": u(ks[3], (1, 3 * HID), s),
        "b_hh0": u(ks[4], (1, 3 * HID), s),
        # layer 1: torch weight_ih_l1 is (3H, H) -> store (H, 3H)
        "w_ih1": u(ks[5], (HID, 3 * HID), s),
        "w_hh1": u(ks[6], (HID, 3 * HID), s),
        "b_ih1": u(ks[7], (1, 3 * HID), s),
        "b_hh1": u(ks[8], (1, 3 * HID), s),
        # output Linear: torch weight (O, H) -> store (H, O)
        "w_out": u(ks[9], (HID, OUT), 1.0 / np.sqrt(HID)),
        "b_out": u(ks[10], (1, OUT), 1.0 / np.sqrt(HID)),
    }


def pack_params(p):
    """One-time repack into lane-aligned fused slabs (done outside the kernel).

    Per layer: W (KDIM=256, NDIM=512).  Rows 0:128 = input rows (x or h0,
    lane-padded), rows 128:256 = hidden rows.  Column slabs of 128 lanes each:
      [ r: W_ir+W_hr | z: W_iz+W_hz | i_n: W_in only | h_n: W_hn only ]
    Biases: [ b_ir+b_hr | b_iz+b_hz | b_in | b_hn ]  (b_hn kept separate so it
    stays inside the r* term, matching PyTorch).
    """
    H, G = HID, LANE

    def pack_layer(w_ih_t, w_hh_t, b_ih, b_hh, din):
        W = jnp.zeros((KDIM, NDIM), jnp.float32)
        # r slab
        W = W.at[0:din, 0:H].set(w_ih_t[:, 0:H])
        W = W.at[G:G + H, 0:H].set(w_hh_t[:, 0:H])
        # z slab
        W = W.at[0:din, G:G + H].set(w_ih_t[:, H:2 * H])
        W = W.at[G:G + H, G:G + H].set(w_hh_t[:, H:2 * H])
        # i_n slab (input contribution only)
        W = W.at[0:din, 2 * G:2 * G + H].set(w_ih_t[:, 2 * H:3 * H])
        # h_n slab (hidden contribution only)
        W = W.at[G:G + H, 3 * G:3 * G + H].set(w_hh_t[:, 2 * H:3 * H])
        b = jnp.zeros((1, NDIM), jnp.float32)
        b = b.at[0, 0:H].set(b_ih[0, 0:H] + b_hh[0, 0:H])
        b = b.at[0, G:G + H].set(b_ih[0, H:2 * H] + b_hh[0, H:2 * H])
        b = b.at[0, 2 * G:2 * G + H].set(b_ih[0, 2 * H:3 * H])
        b = b.at[0, 3 * G:3 * G + H].set(b_hh[0, 2 * H:3 * H])
        return W, b

    W0, b0 = pack_layer(p["w_ih0"], p["w_hh0"], p["b_ih0"], p["b_hh0"], EMB)
    W1, b1 = pack_layer(p["w_ih1"], p["w_hh1"], p["b_ih1"], p["b_hh1"], HID)
    w_out_pad = jnp.zeros((LANE, OUT), jnp.float32).at[:HID, :].set(p["w_out"])
    return {
        "embedding": p["embedding"],
        "w_pack": jnp.stack([W0, W1]),        # (2, 256, 512)
        "b_pack": jnp.stack([b0, b1]),        # (2, 1, 512)
        "w_out_pad": w_out_pad,               # (128, OUT)
        "b_out": p["b_out"],                  # (1, OUT)
    }


def _gru_cell_ref(x, h, w_ih, w_hh, b_ih, b_hh, hidden_size):
    """PyTorch GRU cell reference. x:(B,Ein) h:(B,H) w_ih:(Ein,3H) w_hh:(H,3H)."""
    gi = jnp.dot(x, w_ih) + b_ih
    gh = jnp.dot(h, w_hh) + b_hh
    H = hidden_size
    i_r, i_z, i_n = gi[:, :H], gi[:, H:2 * H], gi[:, 2 * H:]
    h_r, h_z, h_n = gh[:, :H], gh[:, H:2 * H], gh[:, 2 * H:]
    r = jax.nn.sigmoid(i_r + h_r)
    z = jax.nn.sigmoid(i_z + h_z)
    n = jnp.tanh(i_n + r * h_n)
    return (1.0 - z) * n + z * h


def reference_forward(sequences, lengths, params):
    """Pure-JAX reference reproducing packed-GRU semantics (for validation)."""
    emb = params["embedding"][sequences].astype(jnp.float32)   # (B, T, E)
    B, T, _ = emb.shape
    h0 = jnp.zeros((B, HID), jnp.float32)
    h1 = jnp.zeros((B, HID), jnp.float32)
    for t in range(T):
        m = (lengths > t).astype(jnp.float32)[:, None]
        x_t = emb[:, t, :]
        h0n = _gru_cell_ref(x_t, h0, params["w_ih0"], params["w_hh0"],
                            params["b_ih0"], params["b_hh0"], HID)
        h0 = m * h0n + (1.0 - m) * h0
        h1n = _gru_cell_ref(h0, h1, params["w_ih1"], params["w_hh1"],
                            params["b_ih1"], params["b_hh1"], HID)
        h1 = m * h1n + (1.0 - m) * h1
    logits = h1 @ params["w_out"] + params["b_out"]
    return jax.nn.log_softmax(logits, axis=1), h1


if __name__ == "__main__":
    key = jax.random.PRNGKey(0)
    k_param, k_seq = jax.random.split(key)
    params = init_params(k_param)
    packed = pack_params(params)

    sequences = jax.random.randint(k_seq, (BATCH, SEQLEN), 0, VOCAB, jnp.int32)
    lengths = jnp.array([SEQLEN, 5], dtype=jnp.int32)   # variable-length seqs

    logp, hidden = classifier_rnn_forward(sequences, lengths, packed)
    logp, hidden = jax.block_until_ready((logp, hidden))

    ref_logp, ref_hidden = reference_forward(sequences, lengths, params)
    np.testing.assert_allclose(np.asarray(logp), np.asarray(ref_logp),
                               rtol=1e-5, atol=1e-5)
    np.testing.assert_allclose(np.asarray(hidden), np.asarray(ref_hidden),
                               rtol=1e-5, atol=1e-5)
    print("KERNEL_OK")
</pallas_src>

<mosaic_0001>
module attributes {stable_mosaic.version = 11 : i64} {
  func.func @gru_classifier_kernel(%arg0: i32, %arg1: memref<2xi32, #tpu.memory_space<smem>>, %arg2: memref<2x8x128xf32, #tpu.memory_space<vmem>>, %arg3: memref<2x256x512xf32, #tpu.memory_space<vmem>>, %arg4: memref<2x1x512xf32, #tpu.memory_space<vmem>>, %arg5: memref<128x4xf32, #tpu.memory_space<vmem>>, %arg6: memref<1x4xf32, #tpu.memory_space<vmem>>, %arg7: memref<2x4xf32, #tpu.memory_space<vmem>>, %arg8: memref<2x32xf32, #tpu.memory_space<vmem>>) attributes {dimension_semantics = [#tpu.dimension_semantics<arbitrary>], iteration_bounds = array<i64: 1>, scalar_prefetch = 1 : i64, scratch_operands = 0 : i64, tpu.core_type = #tpu.core_type<tc>, window_params = [{pipeline_mode = #tpu.pipeline_mode<synchronous>, transform_indices = @transform_0, window_bounds = array<i64: 2, 8, 128>}, {pipeline_mode = #tpu.pipeline_mode<synchronous>, transform_indices = @transform_1, window_bounds = array<i64: 2, 256, 512>}, {pipeline_mode = #tpu.pipeline_mode<synchronous>, transform_indices = @transform_2, window_bounds = array<i64: 2, 1, 512>}, {pipeline_mode = #tpu.pipeline_mode<synchronous>, transform_indices = @transform_3, window_bounds = array<i64: 128, 4>}, {pipeline_mode = #tpu.pipeline_mode<synchronous>, transform_indices = @transform_4, window_bounds = array<i64: 1, 4>}, {pipeline_mode = #tpu.pipeline_mode<synchronous>, transform_indices = @transform_5, window_bounds = array<i64: 2, 4>}, {pipeline_mode = #tpu.pipeline_mode<synchronous>, transform_indices = @transform_6, window_bounds = array<i64: 2, 32>}]} {
    %0 = tpu.iota {dimensions = array<i32: 0>} : vector<2x1xi32>
    %c0_i32 = arith.constant 0 : i32
    %1 = vector.broadcast %c0_i32 : i32 to vector<2x1xi32>
    %c0_i32_0 = arith.constant 0 : i32
    %2 = vector.broadcast %c0_i32_0 : i32 to vector<2x1xi32>
    %3 = arith.cmpi eq, %0, %2 : vector<2x1xi32>
    %c0 = arith.constant 0 : index
    %4 = memref.load %arg1[%c0] : memref<2xi32, #tpu.memory_space<smem>>
    %5 = vector.broadcast %4 : i32 to vector<2x1xi32>
    %6 = arith.select %3, %5, %1 : vector<2x1xi1>, vector<2x1xi32>
    %c1_i32 = arith.constant 1 : i32
    %7 = vector.broadcast %c1_i32 : i32 to vector<2x1xi32>
    %8 = arith.cmpi eq, %0, %7 : vector<2x1xi32>
    %c1 = arith.constant 1 : index
    %9 = memref.load %arg1[%c1] : memref<2xi32, #tpu.memory_space<smem>>
    %10 = vector.broadcast %9 : i32 to vector<2x1xi32>
    %11 = arith.select %8, %10, %6 : vector<2x1xi1>, vector<2x1xi32>
    %cst = arith.constant 0.000000e+00 : f32
    %12 = vector.broadcast %cst : f32 to vector<2x128xf32>
    %cst_1 = arith.constant 0.000000e+00 : f32
    %13 = vector.broadcast %cst_1 : f32 to vector<2x128xf32>
    %c0_i32_2 = arith.constant 0 : i32
    %14 = vector.broadcast %c0_i32_2 : i32 to vector<2x1xi32>
    %15 = arith.cmpi sgt, %11, %14 : vector<2x1xi32>
    %16 = arith.extui %15 : vector<2x1xi1> to vector<2x1xi32>
    %17 = arith.sitofp %16 : vector<2x1xi32> to vector<2x1xf32>
    %cst_3 = arith.constant 1.000000e+00 : f32
    %18 = vector.broadcast %cst_3 : f32 to vector<2x1xf32>
    %19 = arith.subf %18, %17 : vector<2x1xf32>
    %c0_4 = arith.constant 0 : index
    %c0_5 = arith.constant 0 : index
    %c0_6 = arith.constant 0 : index
    %20 = vector.load %arg2[%c0_4, %c0_5, %c0_6] : memref<2x8x128xf32, #tpu.memory_space<vmem>>, vector<2x1x128xf32>
    %21 = vector.shape_cast %20 : vector<2x1x128xf32> to vector<2x128xf32>
    %22 = tpu.concatenate %21, %12 in 1 : vector<2x128xf32>, vector<2x128xf32> -> vector<2x256xf32>
    %c0_7 = arith.constant 0 : index
    %c0_8 = arith.constant 0 : index
    %c0_9 = arith.constant 0 : index
    %23 = vector.load %arg3[%c0_7, %c0_8, %c0_9] : memref<2x256x512xf32, #tpu.memory_space<vmem>>, vector<1x256x512xf32>
    %24 = vector.shape_cast %23 : vector<1x256x512xf32> to vector<256x512xf32>
    %cst_10 = arith.constant dense<0.000000e+00> : vector<2x512xf32>
    %25 = tpu.matmul %22, %24, %cst_10 {dimension_numbers = #tpu.dot_dimension_numbers<[1], [0], [0], [1], [0, 0, 1, 1], [], []>} : vector<2x256xf32>, vector<256x512xf32>, vector<2x512xf32> -> vector<2x512xf32>
    %c0_11 = arith.constant 0 : index
    %c0_12 = arith.constant 0 : index
    %c0_13 = arith.constant 0 : index
    %26 = vector.load %arg4[%c0_11, %c0_12, %c0_13] : memref<2x1x512xf32, #tpu.memory_space<vmem>>, vector<1x1x512xf32>
    %27 = vector.shape_cast %26 : vector<1x1x512xf32> to vector<1x512xf32>
    %28 = vector.broadcast %27 : vector<1x512xf32> to vector<2x512xf32>
    %29 = arith.addf %25, %28 : vector<2x512xf32>
    %30 = vector.extract_strided_slice %29 {offsets = [0, 0], sizes = [2, 128], strides = [1, 1]} : vector<2x512xf32> to vector<2x128xf32>
    %31 = arith.negf %30 : vector<2x128xf32>
    %32 = math.exp %31 : vector<2x128xf32>
    %cst_14 = arith.constant 1.000000e+00 : f32
    %33 = vector.broadcast %cst_14 : f32 to vector<2x128xf32>
    %34 = arith.addf %33, %32 : vector<2x128xf32>
    %35 = arith.divf %33, %34 : vector<2x128xf32>
    %36 = vector.extract_strided_slice %29 {offsets = [0, 128], sizes = [2, 128], strides = [1, 1]} : vector<2x512xf32> to vector<2x128xf32>
    %37 = arith.negf %36 : vector<2x128xf32>
    %38 = math.exp %37 : vector<2x128xf32>
    %cst_15 = arith.constant 1.000000e+00 : f32
    %39 = vector.broadcast %cst_15 : f32 to vector<2x128xf32>
    %40 = arith.addf %39, %38 : vector<2x128xf32>
    %41 = arith.divf %39, %40 : vector<2x128xf32>
    %42 = vector.extract_strided_slice %29 {offsets = [0, 256], sizes = [2, 128], strides = [1, 1]} : vector<2x512xf32> to vector<2x128xf32>
    %43 = vector.extract_strided_slice %29 {offsets = [0, 384], sizes = [2, 128], strides = [1, 1]} : vector<2x512xf32> to vector<2x128xf32>
    %44 = arith.mulf %35, %43 : vector<2x128xf32>
    %45 = arith.addf %42, %44 : vector<2x128xf32>
    %46 = math.tanh %45 : vector<2x128xf32>
    %cst_16 = arith.constant 1.000000e+00 : f32
    %47 = vector.broadcast %cst_16 : f32 to vector<2x128xf32>
    %48 = arith.subf %47, %41 : vector<2x128xf32>
    %49 = arith.mulf %48, %46 : vector<2x128xf32>
    %50 = arith.mulf %41, %12 : vector<2x128xf32>
    %51 = arith.addf %49, %50 : vector<2x128xf32>
    %52 = vector.broadcast %17 : vector<2x1xf32> to vector<2x128xf32>
    %53 = arith.mulf %52, %51 : vector<2x128xf32>
    %54 = vector.broadcast %19 : vector<2x1xf32> to vector<2x128xf32>
    %55 = arith.mulf %54, %12 : vector<2x128xf32>
    %56 = arith.addf %53, %55 : vector<2x128xf32>
    %57 = tpu.concatenate %56, %13 in 1 : vector<2x128xf32>, vector<2x128xf32> -> vector<2x256xf32>
    %c1_17 = arith.constant 1 : index
    %c0_18 = arith.constant 0 : index
    %c0_19 = arith.constant 0 : index
    %58 = vector.load %arg3[%c1_17, %c0_18, %c0_19] : memref<2x256x512xf32, #tpu.memory_space<vmem>>, vector<1x256x512xf32>
    %59 = vector.shape_cast %58 : vector<1x256x512xf32> to vector<256x512xf32>
    %cst_20 = arith.constant dense<0.000000e+00> : vector<2x512xf32>
    %60 = tpu.matmul %57, %59, %cst_20 {dimension_numbers = #tpu.dot_dimension_numbers<[1], [0], [0], [1], [0, 0, 1, 1], [], []>} : vector<2x256xf32>, vector<256x512xf32>, vector<2x512xf32> -> vector<2x512xf32>
    %c1_21 = arith.constant 1 : index
    %c0_22 = arith.constant 0 : index
    %c0_23 = arith.constant 0 : index
    %61 = vector.load %arg4[%c1_21, %c0_22, %c0_23] : memref<2x1x512xf32, #tpu.memory_space<vmem>>, vector<1x1x512xf32>
    %62 = vector.shape_cast %61 : vector<1x1x512xf32> to vector<1x512xf32>
    %63 = vector.broadcast %62 : vector<1x512xf32> to vector<2x512xf32>
    %64 = arith.addf %60, %63 : vector<2x512xf32>
    %65 = vector.extract_strided_slice %64 {offsets = [0, 0], sizes = [2, 128], strides = [1, 1]} : vector<2x512xf32> to vector<2x128xf32>
    %66 = arith.negf %65 : vector<2x128xf32>
    %67 = math.exp %66 : vector<2x128xf32>
    %cst_24 = arith.constant 1.000000e+00 : f32
    %68 = vector.broadcast %cst_24 : f32 to vector<2x128xf32>
    %69 = arith.addf %68, %67 : vector<2x128xf32>
    %70 = arith.divf %68, %69 : vector<2x128xf32>
    %71 = vector.extract_strided_slice %64 {offsets = [0, 128], sizes = [2, 128], strides = [1, 1]} : vector<2x512xf32> to vector<2x128xf32>
    %72 = arith.negf %71 : vector<2x128xf32>
    %73 = math.exp %72 : vector<2x128xf32>
    %cst_25 = arith.constant 1.000000e+00 : f32
    %74 = vector.broadcast %cst_25 : f32 to vector<2x128xf32>
    %75 = arith.addf %74, %73 : vector<2x128xf32>
    %76 = arith.divf %74, %75 : vector<2x128xf32>
    %77 = vector.extract_strided_slice %64 {offsets = [0, 256], sizes = [2, 128], strides = [1, 1]} : vector<2x512xf32> to vector<2x128xf32>
    %78 = vector.extract_strided_slice %64 {offsets = [0, 384], sizes = [2, 128], strides = [1, 1]} : vector<2x512xf32> to vector<2x128xf32>
    %79 = arith.mulf %70, %78 : vector<2x128xf32>
    %80 = arith.addf %77, %79 : vector<2x128xf32>
    %81 = math.tanh %80 : vector<2x128xf32>
    %cst_26 = arith.constant 1.000000e+00 : f32
    %82 = vector.broadcast %cst_26 : f32 to vector<2x128xf32>
    %83 = arith.subf %82, %76 : vector<2x128xf32>
    %84 = arith.mulf %83, %81 : vector<2x128xf32>
    %85 = arith.mulf %76, %13 : vector<2x128xf32>
    %86 = arith.addf %84, %85 : vector<2x128xf32>
    %87 = vector.broadcast %17 : vector<2x1xf32> to vector<2x128xf32>
    %88 = arith.mulf %87, %86 : vector<2x128xf32>
    %89 = vector.broadcast %19 : vector<2x1xf32> to vector<2x128xf32>
    %90 = arith.mulf %89, %13 : vector<2x128xf32>
    %91 = arith.addf %88, %90 : vector<2x128xf32>
    %c1_i32_27 = arith.constant 1 : i32
    %92 = vector.broadcast %c1_i32_27 : i32 to vector<2x1xi32>
    %93 = arith.cmpi sgt, %11, %92 : vector<2x1xi32>
    %94 = arith.extui %93 : vector<2x1xi1> to vector<2x1xi32>
    %95 = arith.sitofp %94 : vector<2x1xi32> to vector<2x1xf32>
    %cst_28 = arith.constant 1.000000e+00 : f32
    %96 = vector.broadcast %cst_28 : f32 to vector<2x1xf32>
    %97 = arith.subf %96, %95 : vector<2x1xf32>
    %c0_29 = arith.constant 0 : index
    %c1_30 = arith.constant 1 : index
    %c0_31 = arith.constant 0 : index
    %98 = vector.load %arg2[%c0_29, %c1_30, %c0_31] : memref<2x8x128xf32, #tpu.memory_space<vmem>>, vector<2x1x128xf32>
    %99 = vector.shape_cast %98 : vector<2x1x128xf32> to vector<2x128xf32>
    %100 = tpu.concatenate %99, %56 in 1 : vector<2x128xf32>, vector<2x128xf32> -> vector<2x256xf32>
    %c0_32 = arith.constant 0 : index
    %c0_33 = arith.constant 0 : index
    %c0_34 = arith.constant 0 : index
    %101 = vector.load %arg3[%c0_32, %c0_33, %c0_34] : memref<2x256x512xf32, #tpu.memory_space<vmem>>, vector<1x256x512xf32>
    %102 = vector.shape_cast %101 : vector<1x256x512xf32> to vector<256x512xf32>
    %cst_35 = arith.constant dense<0.000000e+00> : vector<2x512xf32>
    %103 = tpu.matmul %100, %102, %cst_35 {dimension_numbers = #tpu.dot_dimension_numbers<[1], [0], [0], [1], [0, 0, 1, 1], [], []>} : vector<2x256xf32>, vector<256x512xf32>, vector<2x512xf32> -> vector<2x512xf32>
    %c0_36 = arith.constant 0 : index
    %c0_37 = arith.constant 0 : index
    %c0_38 = arith.constant 0 : index
    %104 = vector.load %arg4[%c0_36, %c0_37, %c0_38] : memref<2x1x512xf32, #tpu.memory_space<vmem>>, vector<1x1x512xf32>
    %105 = vector.shape_cast %104 : vector<1x1x512xf32> to vector<1x512xf32>
    %106 = vector.broadcast %105 : vector<1x512xf32> to vector<2x512xf32>
    %107 = arith.addf %103, %106 : vector<2x512xf32>
    %108 = vector.extract_strided_slice %107 {offsets = [0, 0], sizes = [2, 128], strides = [1, 1]} : vector<2x512xf32> to vector<2x128xf32>
    %109 = arith.negf %108 : vector<2x128xf32>
    %110 = math.exp %109 : vector<2x128xf32>
    %cst_39 = arith.constant 1.000000e+00 : f32
    %111 = vector.broadcast %cst_39 : f32 to vector<2x128xf32>
    %112 = arith.addf %111, %110 : vector<2x128xf32>
    %113 = arith.divf %111, %112 : vector<2x128xf32>
    %114 = vector.extract_strided_slice %107 {offsets = [0, 128], sizes = [2, 128], strides = [1, 1]} : vector<2x512xf32> to vector<2x128xf32>
    %115 = arith.negf %114 : vector<2x128xf32>
    %116 = math.exp %115 : vector<2x128xf32>
    %cst_40 = arith.constant 1.000000e+00 : f32
    %117 = vector.broadcast %cst_40 : f32 to vector<2x128xf32>
    %118 = arith.addf %117, %116 : vector<2x128xf32>
    %119 = arith.divf %117, %118 : vector<2x128xf32>
    %120 = vector.extract_strided_slice %107 {offsets = [0, 256], sizes = [2, 128], strides = [1, 1]} : vector<2x512xf32> to vector<2x128xf32>
    %121 = vector.extract_strided_slice %107 {offsets = [0, 384], sizes = [2, 128], strides = [1, 1]} : vector<2x512xf32> to vector<2x128xf32>
    %122 = arith.mulf %113, %121 : vector<2x128xf32>
    %123 = arith.addf %120, %122 : vector<2x128xf32>
    %124 = math.tanh %123 : vector<2x128xf32>
    %cst_41 = arith.constant 1.000000e+00 : f32
    %125 = vector.broadcast %cst_41 : f32 to vector<2x128xf32>
    %126 = arith.subf %125, %119 : vector<2x128xf32>
    %127 = arith.mulf %126, %124 : vector<2x128xf32>
    %128 = arith.mulf %119, %56 : vector<2x128xf32>
    %129 = arith.addf %127, %128 : vector<2x128xf32>
    %130 = vector.broadcast %95 : vector<2x1xf32> to vector<2x128xf32>
    %131 = arith.mulf %130, %129 : vector<2x128xf32>
    %132 = vector.broadcast %97 : vector<2x1xf32> to vector<2x128xf32>
    %133 = arith.mulf %132, %56 : vector<2x128xf32>
    %134 = arith.addf %131, %133 : vector<2x128xf32>
    %135 = tpu.concatenate %134, %91 in 1 : vector<2x128xf32>, vector<2x128xf32> -> vector<2x256xf32>
    %c1_42 = arith.constant 1 : index
    %c0_43 = arith.constant 0 : index
    %c0_44 = arith.constant 0 : index
    %136 = vector.load %arg3[%c1_42, %c0_43, %c0_44] : memref<2x256x512xf32, #tpu.memory_space<vmem>>, vector<1x256x512xf32>
    %137 = vector.shape_cast %136 : vector<1x256x512xf32> to vector<256x512xf32>
    %cst_45 = arith.constant dense<0.000000e+00> : vector<2x512xf32>
    %138 = tpu.matmul %135, %137, %cst_45 {dimension_numbers = #tpu.dot_dimension_numbers<[1], [0], [0], [1], [0, 0, 1, 1], [], []>} : vector<2x256xf32>, vector<256x512xf32>, vector<2x512xf32> -> vector<2x512xf32>
    %c1_46 = arith.constant 1 : index
    %c0_47 = arith.constant 0 : index
    %c0_48 = arith.constant 0 : index
    %139 = vector.load %arg4[%c1_46, %c0_47, %c0_48] : memref<2x1x512xf32, #tpu.memory_space<vmem>>, vector<1x1x512xf32>
    %140 = vector.shape_cast %139 : vector<1x1x512xf32> to vector<1x512xf32>
    %141 = vector.broadcast %140 : vector<1x512xf32> to vector<2x512xf32>
    %142 = arith.addf %138, %141 : vector<2x512xf32>
    %143 = vector.extract_strided_slice %142 {offsets = [0, 0], sizes = [2, 128], strides = [1, 1]} : vector<2x512xf32> to vector<2x128xf32>
    %144 = arith.negf %143 : vector<2x128xf32>
    %145 = math.exp %144 : vector<2x128xf32>
    %cst_49 = arith.constant 1.000000e+00 : f32
    %146 = vector.broadcast %cst_49 : f32 to vector<2x128xf32>
    %147 = arith.addf %146, %145 : vector<2x128xf32>
    %148 = arith.divf %146, %147 : vector<2x128xf32>
    %149 = vector.extract_strided_slice %142 {offsets = [0, 128], sizes = [2, 128], strides = [1, 1]} : vector<2x512xf32> to vector<2x128xf32>
    %150 = arith.negf %149 : vector<2x128xf32>
    %151 = math.exp %150 : vector<2x128xf32>
    %cst_50 = arith.constant 1.000000e+00 : f32
    %152 = vector.broadcast %cst_50 : f32 to vector<2x128xf32>
    %153 = arith.addf %152, %151 : vector<2x128xf32>
    %154 = arith.divf %152, %153 : vector<2x128xf32>
    %155 = vector.extract_strided_slice %142 {offsets = [0, 256], sizes = [2, 128], strides = [1, 1]} : vector<2x512xf32> to vector<2x128xf32>
    %156 = vector.extract_strided_slice %142 {offsets = [0, 384], sizes = [2, 128], strides = [1, 1]} : vector<2x512xf32> to vector<2x128xf32>
    %157 = arith.mulf %148, %156 : vector<2x128xf32>
    %158 = arith.addf %155, %157 : vector<2x128xf32>
    %159 = math.tanh %158 : vector<2x128xf32>
    %cst_51 = arith.constant 1.000000e+00 : f32
    %160 = vector.broadcast %cst_51 : f32 to vector<2x128xf32>
    %161 = arith.subf %160, %154 : vector<2x128xf32>
    %162 = arith.mulf %161, %159 : vector<2x128xf32>
    %163 = arith.mulf %154, %91 : vector<2x128xf32>
    %164 = arith.addf %162, %163 : vector<2x128xf32>
    %165 = vector.broadcast %95 : vector<2x1xf32> to vector<2x128xf32>
    %166 = arith.mulf %165, %164 : vector<2x128xf32>
    %167 = vector.broadcast %97 : vector<2x1xf32> to vector<2x128xf32>
    %168 = arith.mulf %167, %91 : vector<2x128xf32>
    %169 = arith.addf %166, %168 : vector<2x128xf32>
    %c2_i32 = arith.constant 2 : i32
    %170 = vector.broadcast %c2_i32 : i32 to vector<2x1xi32>
    %171 = arith.cmpi sgt, %11, %170 : vector<2x1xi32>
    %172 = arith.extui %171 : vector<2x1xi1> to vector<2x1xi32>
    %173 = arith.sitofp %172 : vector<2x1xi32> to vector<2x1xf32>
    %cst_52 = arith.constant 1.000000e+00 : f32
    %174 = vector.broadcast %cst_52 : f32 to vector<2x1xf32>
    %175 = arith.subf %174, %173 : vector<2x1xf32>
    %c0_53 = arith.constant 0 : index
    %c2 = arith.constant 2 : index
    %c0_54 = arith.constant 0 : index
    %176 = vector.load %arg2[%c0_53, %c2, %c0_54] : memref<2x8x128xf32, #tpu.memory_space<vmem>>, vector<2x1x128xf32>
    %177 = vector.shape_cast %176 : vector<2x1x128xf32> to vector<2x128xf32>
    %178 = tpu.concatenate %177, %134 in 1 : vector<2x128xf32>, vector<2x128xf32> -> vector<2x256xf32>
    %c0_55 = arith.constant 0 : index
    %c0_56 = arith.constant 0 : index
    %c0_57 = arith.constant 0 : index
    %179 = vector.load %arg3[%c0_55, %c0_56, %c0_57] : memref<2x256x512xf32, #tpu.memory_space<vmem>>, vector<1x256x512xf32>
    %180 = vector.shape_cast %179 : vector<1x256x512xf32> to vector<256x512xf32>
    %cst_58 = arith.constant dense<0.000000e+00> : vector<2x512xf32>
    %181 = tpu.matmul %178, %180, %cst_58 {dimension_numbers = #tpu.dot_dimension_numbers<[1], [0], [0], [1], [0, 0, 1, 1], [], []>} : vector<2x256xf32>, vector<256x512xf32>, vector<2x512xf32> -> vector<2x512xf32>
    %c0_59 = arith.constant 0 : index
    %c0_60 = arith.constant 0 : index
    %c0_61 = arith.constant 0 : index
    %182 = vector.load %arg4[%c0_59, %c0_60, %c0_61] : memref<2x1x512xf32, #tpu.memory_space<vmem>>, vector<1x1x512xf32>
    %183 = vector.shape_cast %182 : vector<1x1x512xf32> to vector<1x512xf32>
    %184 = vector.broadcast %183 : vector<1x512xf32> to vector<2x512xf32>
    %185 = arith.addf %181, %184 : vector<2x512xf32>
    %186 = vector.extract_strided_slice %185 {offsets = [0, 0], sizes = [2, 128], strides = [1, 1]} : vector<2x512xf32> to vector<2x128xf32>
    %187 = arith.negf %186 : vector<2x128xf32>
    %188 = math.exp %187 : vector<2x128xf32>
    %cst_62 = arith.constant 1.000000e+00 : f32
    %189 = vector.broadcast %cst_62 : f32 to vector<2x128xf32>
    %190 = arith.addf %189, %188 : vector<2x128xf32>
    %191 = arith.divf %189, %190 : vector<2x128xf32>
    %192 = vector.extract_strided_slice %185 {offsets = [0, 128], sizes = [2, 128], strides = [1, 1]} : vector<2x512xf32> to vector<2x128xf32>
    %193 = arith.negf %192 : vector<2x128xf32>
    %194 = math.exp %193 : vector<2x128xf32>
    %cst_63 = arith.constant 1.000000e+00 : f32
    %195 = vector.broadcast %cst_63 : f32 to vector<2x128xf32>
    %196 = arith.addf %195, %194 : vector<2x128xf32>
    %197 = arith.divf %195, %196 : vector<2x128xf32>
    %198 = vector.extract_strided_slice %185 {offsets = [0, 256], sizes = [2, 128], strides = [1, 1]} : vector<2x512xf32> to vector<2x128xf32>
    %199 = vector.extract_strided_slice %185 {offsets = [0, 384], sizes = [2, 128], strides = [1, 1]} : vector<2x512xf32> to vector<2x128xf32>
    %200 = arith.mulf %191, %199 : vector<2x128xf32>
    %201 = arith.addf %198, %200 : vector<2x128xf32>
    %202 = math.tanh %201 : vector<2x128xf32>
    %cst_64 = arith.constant 1.000000e+00 : f32
    %203 = vector.broadcast %cst_64 : f32 to vector<2x128xf32>
    %204 = arith.subf %203, %197 : vector<2x128xf32>
    %205 = arith.mulf %204, %202 : vector<2x128xf32>
    %206 = arith.mulf %197, %134 : vector<2x128xf32>
    %207 = arith.addf %205, %206 : vector<2x128xf32>
    %208 = vector.broadcast %173 : vector<2x1xf32> to vector<2x128xf32>
    %209 = arith.mulf %208, %207 : vector<2x128xf32>
    %210 = vector.broadcast %175 : vector<2x1xf32> to vector<2x128xf32>
    %211 = arith.mulf %210, %134 : vector<2x128xf32>
    %212 = arith.addf %209, %211 : vector<2x128xf32>
    %213 = tpu.concatenate %212, %169 in 1 : vector<2x128xf32>, vector<2x128xf32> -> vector<2x256xf32>
    %c1_65 = arith.constant 1 : index
    %c0_66 = arith.constant 0 : index
    %c0_67 = arith.constant 0 : index
    %214 = vector.load %arg3[%c1_65, %c0_66, %c0_67] : memref<2x256x512xf32, #tpu.memory_space<vmem>>, vector<1x256x512xf32>
    %215 = vector.shape_cast %214 : vector<1x256x512xf32> to vector<256x512xf32>
    %cst_68 = arith.constant dense<0.000000e+00> : vector<2x512xf32>
    %216 = tpu.matmul %213, %215, %cst_68 {dimension_numbers = #tpu.dot_dimension_numbers<[1], [0], [0], [1], [0, 0, 1, 1], [], []>} : vector<2x256xf32>, vector<256x512xf32>, vector<2x512xf32> -> vector<2x512xf32>
    %c1_69 = arith.constant 1 : index
    %c0_70 = arith.constant 0 : index
    %c0_71 = arith.constant 0 : index
    %217 = vector.load %arg4[%c1_69, %c0_70, %c0_71] : memref<2x1x512xf32, #tpu.memory_space<vmem>>, vector<1x1x512xf32>
    %218 = vector.shape_cast %217 : vector<1x1x512xf32> to vector<1x512xf32>
    %219 = vector.broadcast %218 : vector<1x512xf32> to vector<2x512xf32>
    %220 = arith.addf %216, %219 : vector<2x512xf32>
    %221 = vector.extract_strided_slice %220 {offsets = [0, 0], sizes = [2, 128], strides = [1, 1]} : vector<2x512xf32> to vector<2x128xf32>
    %222 = arith.negf %221 : vector<2x128xf32>
    %223 = math.exp %222 : vector<2x128xf32>
    %cst_72 = arith.constant 1.000000e+00 : f32
    %224 = vector.broadcast %cst_72 : f32 to vector<2x128xf32>
    %225 = arith.addf %224, %223 : vector<2x128xf32>
    %226 = arith.divf %224, %225 : vector<2x128xf32>
    %227 = vector.extract_strided_slice %220 {offsets = [0, 128], sizes = [2, 128], strides = [1, 1]} : vector<2x512xf32> to vector<2x128xf32>
    %228 = arith.negf %227 : vector<2x128xf32>
    %229 = math.exp %228 : vector<2x128xf32>
    %cst_73 = arith.constant 1.000000e+00 : f32
    %230 = vector.broadcast %cst_73 : f32 to vector<2x128xf32>
    %231 = arith.addf %230, %229 : vector<2x128xf32>
    %232 = arith.divf %230, %231 : vector<2x128xf32>
    %233 = vector.extract_strided_slice %220 {offsets = [0, 256], sizes = [2, 128], strides = [1, 1]} : vector<2x512xf32> to vector<2x128xf32>
    %234 = vector.extract_strided_slice %220 {offsets = [0, 384], sizes = [2, 128], strides = [1, 1]} : vector<2x512xf32> to vector<2x128xf32>
    %235 = arith.mulf %226, %234 : vector<2x128xf32>
    %236 = arith.addf %233, %235 : vector<2x128xf32>
    %237 = math.tanh %236 : vector<2x128xf32>
    %cst_74 = arith.constant 1.000000e+00 : f32
    %238 = vector.broadcast %cst_74 : f32 to vector<2x128xf32>
    %239 = arith.subf %238, %232 : vector<2x128xf32>
    %240 = arith.mulf %239, %237 : vector<2x128xf32>
    %241 = arith.mulf %232, %169 : vector<2x128xf32>
    %242 = arith.addf %240, %241 : vector<2x128xf32>
    %243 = vector.broadcast %173 : vector<2x1xf32> to vector<2x128xf32>
    %244 = arith.mulf %243, %242 : vector<2x128xf32>
    %245 = vector.broadcast %175 : vector<2x1xf32> to vector<2x128xf32>
    %246 = arith.mulf %245, %169 : vector<2x128xf32>
    %247 = arith.addf %244, %246 : vector<2x128xf32>
    %c3_i32 = arith.constant 3 : i32
    %248 = vector.broadcast %c3_i32 : i32 to vector<2x1xi32>
    %249 = arith.cmpi sgt, %11, %248 : vector<2x1xi32>
    %250 = arith.extui %249 : vector<2x1xi1> to vector<2x1xi32>
    %251 = arith.sitofp %250 : vector<2x1xi32> to vector<2x1xf32>
    %cst_75 = arith.constant 1.000000e+00 : f32
    %252 = vector.broadcast %cst_75 : f32 to vector<2x1xf32>
    %253 = arith.subf %252, %251 : vector<2x1xf32>
    %c0_76 = arith.constant 0 : index
    %c3 = arith.constant 3 : index
    %c0_77 = arith.constant 0 : index
    %254 = vector.load %arg2[%c0_76, %c3, %c0_77] : memref<2x8x128xf32, #tpu.memory_space<vmem>>, vector<2x1x128xf32>
    %255 = vector.shape_cast %254 : vector<2x1x128xf32> to vector<2x128xf32>
    %256 = tpu.concatenate %255, %212 in 1 : vector<2x128xf32>, vector<2x128xf32> -> vector<2x256xf32>
    %c0_78 = arith.constant 0 : index
    %c0_79 = arith.constant 0 : index
    %c0_80 = arith.constant 0 : index
    %257 = vector.load %arg3[%c0_78, %c0_79, %c0_80] : memref<2x256x512xf32, #tpu.memory_space<vmem>>, vector<1x256x512xf32>
    %258 = vector.shape_cast %257 : vector<1x256x512xf32> to vector<256x512xf32>
    %cst_81 = arith.constant dense<0.000000e+00> : vector<2x512xf32>
    %259 = tpu.matmul %256, %258, %cst_81 {dimension_numbers = #tpu.dot_dimension_numbers<[1], [0], [0], [1], [0, 0, 1, 1], [], []>} : vector<2x256xf32>, vector<256x512xf32>, vector<2x512xf32> -> vector<2x512xf32>
    %c0_82 = arith.constant 0 : index
    %c0_83 = arith.constant 0 : index
    %c0_84 = arith.constant 0 : index
    %260 = vector.load %arg4[%c0_82, %c0_83, %c0_84] : memref<2x1x512xf32, #tpu.memory_space<vmem>>, vector<1x1x512xf32>
    %261 = vector.shape_cast %260 : vector<1x1x512xf32> to vector<1x512xf32>
    %262 = vector.broadcast %261 : vector<1x512xf32> to vector<2x512xf32>
    %263 = arith.addf %259, %262 : vector<2x512xf32>
    %264 = vector.extract_strided_slice %263 {offsets = [0, 0], sizes = [2, 128], strides = [1, 1]} : vector<2x512xf32> to vector<2x128xf32>
    %265 = arith.negf %264 : vector<2x128xf32>
    %266 = math.exp %265 : vector<2x128xf32>
    %cst_85 = arith.constant 1.000000e+00 : f32
    %267 = vector.broadcast %cst_85 : f32 to vector<2x128xf32>
    %268 = arith.addf %267, %266 : vector<2x128xf32>
    %269 = arith.divf %267, %268 : vector<2x128xf32>
    %270 = vector.extract_strided_slice %263 {offsets = [0, 128], sizes = [2, 128], strides = [1, 1]} : vector<2x512xf32> to vector<2x128xf32>
    %271 = arith.negf %270 : vector<2x128xf32>
    %272 = math.exp %271 : vector<2x128xf32>
    %cst_86 = arith.constant 1.000000e+00 : f32
    %273 = vector.broadcast %cst_86 : f32 to vector<2x128xf32>
    %274 = arith.addf %273, %272 : vector<2x128xf32>
    %275 = arith.divf %273, %274 : vector<2x128xf32>
    %276 = vector.extract_strided_slice %263 {offsets = [0, 256], sizes = [2, 128], strides = [1, 1]} : vector<2x512xf32> to vector<2x128xf32>
    %277 = vector.extract_strided_slice %263 {offsets = [0, 384], sizes = [2, 128], strides = [1, 1]} : vector<2x512xf32> to vector<2x128xf32>
    %278 = arith.mulf %269, %277 : vector<2x128xf32>
    %279 = arith.addf %276, %278 : vector<2x128xf32>
    %280 = math.tanh %279 : vector<2x128xf32>
    %cst_87 = arith.constant 1.000000e+00 : f32
    %281 = vector.broadcast %cst_87 : f32 to vector<2x128xf32>
    %282 = arith.subf %281, %275 : vector<2x128xf32>
    %283 = arith.mulf %282, %280 : vector<2x128xf32>
    %284 = arith.mulf %275, %212 : vector<2x128xf32>
    %285 = arith.addf %283, %284 : vector<2x128xf32>
    %286 = vector.broadcast %251 : vector<2x1xf32> to vector<2x128xf32>
    %287 = arith.mulf %286, %285 : vector<2x128xf32>
    %288 = vector.broadcast %253 : vector<2x1xf32> to vector<2x128xf32>
    %289 = arith.mulf %288, %212 : vector<2x128xf32>
    %290 = arith.addf %287, %289 : vector<2x128xf32>
    %291 = tpu.concatenate %290, %247 in 1 : vector<2x128xf32>, vector<2x128xf32> -> vector<2x256xf32>
    %c1_88 = arith.constant 1 : index
    %c0_89 = arith.constant 0 : index
    %c0_90 = arith.constant 0 : index
    %292 = vector.load %arg3[%c1_88, %c0_89, %c0_90] : memref<2x256x512xf32, #tpu.memory_space<vmem>>, vector<1x256x512xf32>
    %293 = vector.shape_cast %292 : vector<1x256x512xf32> to vector<256x512xf32>
    %cst_91 = arith.constant dense<0.000000e+00> : vector<2x512xf32>
    %294 = tpu.matmul %291, %293, %cst_91 {dimension_numbers = #tpu.dot_dimension_numbers<[1], [0], [0], [1], [0, 0, 1, 1], [], []>} : vector<2x256xf32>, vector<256x512xf32>, vector<2x512xf32> -> vector<2x512xf32>
    %c1_92 = arith.constant 1 : index
    %c0_93 = arith.constant 0 : index
    %c0_94 = arith.constant 0 : index
    %295 = vector.load %arg4[%c1_92, %c0_93, %c0_94] : memref<2x1x512xf32, #tpu.memory_space<vmem>>, vector<1x1x512xf32>
    %296 = vector.shape_cast %295 : vector<1x1x512xf32> to vector<1x512xf32>
    %297 = vector.broadcast %296 : vector<1x512xf32> to vector<2x512xf32>
    %298 = arith.addf %294, %297 : vector<2x512xf32>
    %299 = vector.extract_strided_slice %298 {offsets = [0, 0], sizes = [2, 128], strides = [1, 1]} : vector<2x512xf32> to vector<2x128xf32>
    %300 = arith.negf %299 : vector<2x128xf32>
    %301 = math.exp %300 : vector<2x128xf32>
    %cst_95 = arith.constant 1.000000e+00 : f32
    %302 = vector.broadcast %cst_95 : f32 to vector<2x128xf32>
    %303 = arith.addf %302, %301 : vector<2x128xf32>
    %304 = arith.divf %302, %303 : vector<2x128xf32>
    %305 = vector.extract_strided_slice %298 {offsets = [0, 128], sizes = [2, 128], strides = [1, 1]} : vector<2x512xf32> to vector<2x128xf32>
    %306 = arith.negf %305 : vector<2x128xf32>
    %307 = math.exp %306 : vector<2x128xf32>
    %cst_96 = arith.constant 1.000000e+00 : f32
    %308 = vector.broadcast %cst_96 : f32 to vector<2x128xf32>
    %309 = arith.addf %308, %307 : vector<2x128xf32>
    %310 = arith.divf %308, %309 : vector<2x128xf32>
    %311 = vector.extract_strided_slice %298 {offsets = [0, 256], sizes = [2, 128], strides = [1, 1]} : vector<2x512xf32> to vector<2x128xf32>
    %312 = vector.extract_strided_slice %298 {offsets = [0, 384], sizes = [2, 128], strides = [1, 1]} : vector<2x512xf32> to vector<2x128xf32>
    %313 = arith.mulf %304, %312 : vector<2x128xf32>
    %314 = arith.addf %311, %313 : vector<2x128xf32>
    %315 = math.tanh %314 : vector<2x128xf32>
    %cst_97 = arith.constant 1.000000e+00 : f32
    %316 = vector.broadcast %cst_97 : f32 to vector<2x128xf32>
    %317 = arith.subf %316, %310 : vector<2x128xf32>
    %318 = arith.mulf %317, %315 : vector<2x128xf32>
    %319 = arith.mulf %310, %247 : vector<2x128xf32>
    %320 = arith.addf %318, %319 : vector<2x128xf32>
    %321 = vector.broadcast %251 : vector<2x1xf32> to vector<2x128xf32>
    %322 = arith.mulf %321, %320 : vector<2x128xf32>
    %323 = vector.broadcast %253 : vector<2x1xf32> to vector<2x128xf32>
    %324 = arith.mulf %323, %247 : vector<2x128xf32>
    %325 = arith.addf %322, %324 : vector<2x128xf32>
    %c4_i32 = arith.constant 4 : i32
    %326 = vector.broadcast %c4_i32 : i32 to vector<2x1xi32>
    %327 = arith.cmpi sgt, %11, %326 : vector<2x1xi32>
    %328 = arith.extui %327 : vector<2x1xi1> to vector<2x1xi32>
    %329 = arith.sitofp %328 : vector<2x1xi32> to vector<2x1xf32>
    %cst_98 = arith.constant 1.000000e+00 : f32
    %330 = vector.broadcast %cst_98 : f32 to vector<2x1xf32>
    %331 = arith.subf %330, %329 : vector<2x1xf32>
    %c0_99 = arith.constant 0 : index
    %c4 = arith.constant 4 : index
    %c0_100 = arith.constant 0 : index
    %332 = vector.load %arg2[%c0_99, %c4, %c0_100] : memref<2x8x128xf32, #tpu.memory_space<vmem>>, vector<2x1x128xf32>
    %333 = vector.shape_cast %332 : vector<2x1x128xf32> to vector<2x128xf32>
    %334 = tpu.concatenate %333, %290 in 1 : vector<2x128xf32>, vector<2x128xf32> -> vector<2x256xf32>
    %c0_101 = arith.constant 0 : index
    %c0_102 = arith.constant 0 : index
    %c0_103 = arith.constant 0 : index
    %335 = vector.load %arg3[%c0_101, %c0_102, %c0_103] : memref<2x256x512xf32, #tpu.memory_space<vmem>>, vector<1x256x512xf32>
    %336 = vector.shape_cast %335 : vector<1x256x512xf32> to vector<256x512xf32>
    %cst_104 = arith.constant dense<0.000000e+00> : vector<2x512xf32>
    %337 = tpu.matmul %334, %336, %cst_104 {dimension_numbers = #tpu.dot_dimension_numbers<[1], [0], [0], [1], [0, 0, 1, 1], [], []>} : vector<2x256xf32>, vector<256x512xf32>, vector<2x512xf32> -> vector<2x512xf32>
    %c0_105 = arith.constant 0 : index
    %c0_106 = arith.constant 0 : index
    %c0_107 = arith.constant 0 : index
    %338 = vector.load %arg4[%c0_105, %c0_106, %c0_107] : memref<2x1x512xf32, #tpu.memory_space<vmem>>, vector<1x1x512xf32>
    %339 = vector.shape_cast %338 : vector<1x1x512xf32> to vector<1x512xf32>
    %340 = vector.broadcast %339 : vector<1x512xf32> to vector<2x512xf32>
    %341 = arith.addf %337, %340 : vector<2x512xf32>
    %342 = vector.extract_strided_slice %341 {offsets = [0, 0], sizes = [2, 128], strides = [1, 1]} : vector<2x512xf32> to vector<2x128xf32>
    %343 = arith.negf %342 : vector<2x128xf32>
    %344 = math.exp %343 : vector<2x128xf32>
    %cst_108 = arith.constant 1.000000e+00 : f32
    %345 = vector.broadcast %cst_108 : f32 to vector<2x128xf32>
    %346 = arith.addf %345, %344 : vector<2x128xf32>
    %347 = arith.divf %345, %346 : vector<2x128xf32>
    %348 = vector.extract_strided_slice %341 {offsets = [0, 128], sizes = [2, 128], strides = [1, 1]} : vector<2x512xf32> to vector<2x128xf32>
    %349 = arith.negf %348 : vector<2x128xf32>
    %350 = math.exp %349 : vector<2x128xf32>
    %cst_109 = arith.constant 1.000000e+00 : f32
    %351 = vector.broadcast %cst_109 : f32 to vector<2x128xf32>
    %352 = arith.addf %351, %350 : vector<2x128xf32>
    %353 = arith.divf %351, %352 : vector<2x128xf32>
    %354 = vector.extract_strided_slice %341 {offsets = [0, 256], sizes = [2, 128], strides = [1, 1]} : vector<2x512xf32> to vector<2x128xf32>
    %355 = vector.extract_strided_slice %341 {offsets = [0, 384], sizes = [2, 128], strides = [1, 1]} : vector<2x512xf32> to vector<2x128xf32>
    %356 = arith.mulf %347, %355 : vector<2x128xf32>
    %357 = arith.addf %354, %356 : vector<2x128xf32>
    %358 = math.tanh %357 : vector<2x128xf32>
    %cst_110 = arith.constant 1.000000e+00 : f32
    %359 = vector.broadcast %cst_110 : f32 to vector<2x128xf32>
    %360 = arith.subf %359, %353 : vector<2x128xf32>
    %361 = arith.mulf %360, %358 : vector<2x128xf32>
    %362 = arith.mulf %353, %290 : vector<2x128xf32>
    %363 = arith.addf %361, %362 : vector<2x128xf32>
    %364 = vector.broadcast %329 : vector<2x1xf32> to vector<2x128xf32>
    %365 = arith.mulf %364, %363 : vector<2x128xf32>
    %366 = vector.broadcast %331 : vector<2x1xf32> to vector<2x128xf32>
    %367 = arith.mulf %366, %290 : vector<2x128xf32>
    %368 = arith.addf %365, %367 : vector<2x128xf32>
    %369 = tpu.concatenate %368, %325 in 1 : vector<2x128xf32>, vector<2x128xf32> -> vector<2x256xf32>
    %c1_111 = arith.constant 1 : index
    %c0_112 = arith.constant 0 : index
    %c0_113 = arith.constant 0 : index
    %370 = vector.load %arg3[%c1_111, %c0_112, %c0_113] : memref<2x256x512xf32, #tpu.memory_space<vmem>>, vector<1x256x512xf32>
    %371 = vector.shape_cast %370 : vector<1x256x512xf32> to vector<256x512xf32>
    %cst_114 = arith.constant dense<0.000000e+00> : vector<2x512xf32>
    %372 = tpu.matmul %369, %371, %cst_114 {dimension_numbers = #tpu.dot_dimension_numbers<[1], [0], [0], [1], [0, 0, 1, 1], [], []>} : vector<2x256xf32>, vector<256x512xf32>, vector<2x512xf32> -> vector<2x512xf32>
    %c1_115 = arith.constant 1 : index
    %c0_116 = arith.constant 0 : index
    %c0_117 = arith.constant 0 : index
    %373 = vector.load %arg4[%c1_115, %c0_116, %c0_117] : memref<2x1x512xf32, #tpu.memory_space<vmem>>, vector<1x1x512xf32>
    %374 = vector.shape_cast %373 : vector<1x1x512xf32> to vector<1x512xf32>
    %375 = vector.broadcast %374 : vector<1x512xf32> to vector<2x512xf32>
    %376 = arith.addf %372, %375 : vector<2x512xf32>
    %377 = vector.extract_strided_slice %376 {offsets = [0, 0], sizes = [2, 128], strides = [1, 1]} : vector<2x512xf32> to vector<2x128xf32>
    %378 = arith.negf %377 : vector<2x128xf32>
    %379 = math.exp %378 : vector<2x128xf32>
    %cst_118 = arith.constant 1.000000e+00 : f32
    %380 = vector.broadcast %cst_118 : f32 to vector<2x128xf32>
    %381 = arith.addf %380, %379 : vector<2x128xf32>
    %382 = arith.divf %380, %381 : vector<2x128xf32>
    %383 = vector.extract_strided_slice %376 {offsets = [0, 128], sizes = [2, 128], strides = [1, 1]} : vector<2x512xf32> to vector<2x128xf32>
    %384 = arith.negf %383 : vector<2x128xf32>
    %385 = math.exp %384 : vector<2x128xf32>
    %cst_119 = arith.constant 1.000000e+00 : f32
    %386 = vector.broadcast %cst_119 : f32 to vector<2x128xf32>
    %387 = arith.addf %386, %385 : vector<2x128xf32>
    %388 = arith.divf %386, %387 : vector<2x128xf32>
    %389 = vector.extract_strided_slice %376 {offsets = [0, 256], sizes = [2, 128], strides = [1, 1]} : vector<2x512xf32> to vector<2x128xf32>
    %390 = vector.extract_strided_slice %376 {offsets = [0, 384], sizes = [2, 128], strides = [1, 1]} : vector<2x512xf32> to vector<2x128xf32>
    %391 = arith.mulf %382, %390 : vector<2x128xf32>
    %392 = arith.addf %389, %391 : vector<2x128xf32>
    %393 = math.tanh %392 : vector<2x128xf32>
    %cst_120 = arith.constant 1.000000e+00 : f32
    %394 = vector.broadcast %cst_120 : f32 to vector<2x128xf32>
    %395 = arith.subf %394, %388 : vector<2x128xf32>
    %396 = arith.mulf %395, %393 : vector<2x128xf32>
    %397 = arith.mulf %388, %325 : vector<2x128xf32>
    %398 = arith.addf %396, %397 : vector<2x128xf32>
    %399 = vector.broadcast %329 : vector<2x1xf32> to vector<2x128xf32>
    %400 = arith.mulf %399, %398 : vector<2x128xf32>
    %401 = vector.broadcast %331 : vector<2x1xf32> to vector<2x128xf32>
    %402 = arith.mulf %401, %325 : vector<2x128xf32>
    %403 = arith.addf %400, %402 : vector<2x128xf32>
    %c5_i32 = arith.constant 5 : i32
    %404 = vector.broadcast %c5_i32 : i32 to vector<2x1xi32>
    %405 = arith.cmpi sgt, %11, %404 : vector<2x1xi32>
    %406 = arith.extui %405 : vector<2x1xi1> to vector<2x1xi32>
    %407 = arith.sitofp %406 : vector<2x1xi32> to vector<2x1xf32>
    %cst_121 = arith.constant 1.000000e+00 : f32
    %408 = vector.broadcast %cst_121 : f32 to vector<2x1xf32>
    %409 = arith.subf %408, %407 : vector<2x1xf32>
    %c0_122 = arith.constant 0 : index
    %c5 = arith.constant 5 : index
    %c0_123 = arith.constant 0 : index
    %410 = vector.load %arg2[%c0_122, %c5, %c0_123] : memref<2x8x128xf32, #tpu.memory_space<vmem>>, vector<2x1x128xf32>
    %411 = vector.shape_cast %410 : vector<2x1x128xf32> to vector<2x128xf32>
    %412 = tpu.concatenate %411, %368 in 1 : vector<2x128xf32>, vector<2x128xf32> -> vector<2x256xf32>
    %c0_124 = arith.constant 0 : index
    %c0_125 = arith.constant 0 : index
    %c0_126 = arith.constant 0 : index
    %413 = vector.load %arg3[%c0_124, %c0_125, %c0_126] : memref<2x256x512xf32, #tpu.memory_space<vmem>>, vector<1x256x512xf32>
    %414 = vector.shape_cast %413 : vector<1x256x512xf32> to vector<256x512xf32>
    %cst_127 = arith.constant dense<0.000000e+00> : vector<2x512xf32>
    %415 = tpu.matmul %412, %414, %cst_127 {dimension_numbers = #tpu.dot_dimension_numbers<[1], [0], [0], [1], [0, 0, 1, 1], [], []>} : vector<2x256xf32>, vector<256x512xf32>, vector<2x512xf32> -> vector<2x512xf32>
    %c0_128 = arith.constant 0 : index
    %c0_129 = arith.constant 0 : index
    %c0_130 = arith.constant 0 : index
    %416 = vector.load %arg4[%c0_128, %c0_129, %c0_130] : memref<2x1x512xf32, #tpu.memory_space<vmem>>, vector<1x1x512xf32>
    %417 = vector.shape_cast %416 : vector<1x1x512xf32> to vector<1x512xf32>
    %418 = vector.broadcast %417 : vector<1x512xf32> to vector<2x512xf32>
    %419 = arith.addf %415, %418 : vector<2x512xf32>
    %420 = vector.extract_strided_slice %419 {offsets = [0, 0], sizes = [2, 128], strides = [1, 1]} : vector<2x512xf32> to vector<2x128xf32>
    %421 = arith.negf %420 : vector<2x128xf32>
    %422 = math.exp %421 : vector<2x128xf32>
    %cst_131 = arith.constant 1.000000e+00 : f32
    %423 = vector.broadcast %cst_131 : f32 to vector<2x128xf32>
    %424 = arith.addf %423, %422 : vector<2x128xf32>
    %425 = arith.divf %423, %424 : vector<2x128xf32>
    %426 = vector.extract_strided_slice %419 {offsets = [0, 128], sizes = [2, 128], strides = [1, 1]} : vector<2x512xf32> to vector<2x128xf32>
    %427 = arith.negf %426 : vector<2x128xf32>
    %428 = math.exp %427 : vector<2x128xf32>
    %cst_132 = arith.constant 1.000000e+00 : f32
    %429 = vector.broadcast %cst_132 : f32 to vector<2x128xf32>
    %430 = arith.addf %429, %428 : vector<2x128xf32>
    %431 = arith.divf %429, %430 : vector<2x128xf32>
    %432 = vector.extract_strided_slice %419 {offsets = [0, 256], sizes = [2, 128], strides = [1, 1]} : vector<2x512xf32> to vector<2x128xf32>
    %433 = vector.extract_strided_slice %419 {offsets = [0, 384], sizes = [2, 128], strides = [1, 1]} : vector<2x512xf32> to vector<2x128xf32>
    %434 = arith.mulf %425, %433 : vector<2x128xf32>
    %435 = arith.addf %432, %434 : vector<2x128xf32>
    %436 = math.tanh %435 : vector<2x128xf32>
    %cst_133 = arith.constant 1.000000e+00 : f32
    %437 = vector.broadcast %cst_133 : f32 to vector<2x128xf32>
    %438 = arith.subf %437, %431 : vector<2x128xf32>
    %439 = arith.mulf %438, %436 : vector<2x128xf32>
    %440 = arith.mulf %431, %368 : vector<2x128xf32>
    %441 = arith.addf %439, %440 : vector<2x128xf32>
    %442 = vector.broadcast %407 : vector<2x1xf32> to vector<2x128xf32>
    %443 = arith.mulf %442, %441 : vector<2x128xf32>
    %444 = vector.broadcast %409 : vector<2x1xf32> to vector<2x128xf32>
    %445 = arith.mulf %444, %368 : vector<2x128xf32>
    %446 = arith.addf %443, %445 : vector<2x128xf32>
    %447 = tpu.concatenate %446, %403 in 1 : vector<2x128xf32>, vector<2x128xf32> -> vector<2x256xf32>
    %c1_134 = arith.constant 1 : index
    %c0_135 = arith.constant 0 : index
    %c0_136 = arith.constant 0 : index
    %448 = vector.load %arg3[%c1_134, %c0_135, %c0_136] : memref<2x256x512xf32, #tpu.memory_space<vmem>>, vector<1x256x512xf32>
    %449 = vector.shape_cast %448 : vector<1x256x512xf32> to vector<256x512xf32>
    %cst_137 = arith.constant dense<0.000000e+00> : vector<2x512xf32>
    %450 = tpu.matmul %447, %449, %cst_137 {dimension_numbers = #tpu.dot_dimension_numbers<[1], [0], [0], [1], [0, 0, 1, 1], [], []>} : vector<2x256xf32>, vector<256x512xf32>, vector<2x512xf32> -> vector<2x512xf32>
    %c1_138 = arith.constant 1 : index
    %c0_139 = arith.constant 0 : index
    %c0_140 = arith.constant 0 : index
    %451 = vector.load %arg4[%c1_138, %c0_139, %c0_140] : memref<2x1x512xf32, #tpu.memory_space<vmem>>, vector<1x1x512xf32>
    %452 = vector.shape_cast %451 : vector<1x1x512xf32> to vector<1x512xf32>
    %453 = vector.broadcast %452 : vector<1x512xf32> to vector<2x512xf32>
    %454 = arith.addf %450, %453 : vector<2x512xf32>
    %455 = vector.extract_strided_slice %454 {offsets = [0, 0], sizes = [2, 128], strides = [1, 1]} : vector<2x512xf32> to vector<2x128xf32>
    %456 = arith.negf %455 : vector<2x128xf32>
    %457 = math.exp %456 : vector<2x128xf32>
    %cst_141 = arith.constant 1.000000e+00 : f32
    %458 = vector.broadcast %cst_141 : f32 to vector<2x128xf32>
    %459 = arith.addf %458, %457 : vector<2x128xf32>
    %460 = arith.divf %458, %459 : vector<2x128xf32>
    %461 = vector.extract_strided_slice %454 {offsets = [0, 128], sizes = [2, 128], strides = [1, 1]} : vector<2x512xf32> to vector<2x128xf32>
    %462 = arith.negf %461 : vector<2x128xf32>
    %463 = math.exp %462 : vector<2x128xf32>
    %cst_142 = arith.constant 1.000000e+00 : f32
    %464 = vector.broadcast %cst_142 : f32 to vector<2x128xf32>
    %465 = arith.addf %464, %463 : vector<2x128xf32>
    %466 = arith.divf %464, %465 : vector<2x128xf32>
    %467 = vector.extract_strided_slice %454 {offsets = [0, 256], sizes = [2, 128], strides = [1, 1]} : vector<2x512xf32> to vector<2x128xf32>
    %468 = vector.extract_strided_slice %454 {offsets = [0, 384], sizes = [2, 128], strides = [1, 1]} : vector<2x512xf32> to vector<2x128xf32>
    %469 = arith.mulf %460, %468 : vector<2x128xf32>
    %470 = arith.addf %467, %469 : vector<2x128xf32>
    %471 = math.tanh %470 : vector<2x128xf32>
    %cst_143 = arith.constant 1.000000e+00 : f32
    %472 = vector.broadcast %cst_143 : f32 to vector<2x128xf32>
    %473 = arith.subf %472, %466 : vector<2x128xf32>
    %474 = arith.mulf %473, %471 : vector<2x128xf32>
    %475 = arith.mulf %466, %403 : vector<2x128xf32>
    %476 = arith.addf %474, %475 : vector<2x128xf32>
    %477 = vector.broadcast %407 : vector<2x1xf32> to vector<2x128xf32>
    %478 = arith.mulf %477, %476 : vector<2x128xf32>
    %479 = vector.broadcast %409 : vector<2x1xf32> to vector<2x128xf32>
    %480 = arith.mulf %479, %403 : vector<2x128xf32>
    %481 = arith.addf %478, %480 : vector<2x128xf32>
    %c6_i32 = arith.constant 6 : i32
    %482 = vector.broadcast %c6_i32 : i32 to vector<2x1xi32>
    %483 = arith.cmpi sgt, %11, %482 : vector<2x1xi32>
    %484 = arith.extui %483 : vector<2x1xi1> to vector<2x1xi32>
    %485 = arith.sitofp %484 : vector<2x1xi32> to vector<2x1xf32>
    %cst_144 = arith.constant 1.000000e+00 : f32
    %486 = vector.broadcast %cst_144 : f32 to vector<2x1xf32>
    %487 = arith.subf %486, %485 : vector<2x1xf32>
    %c0_145 = arith.constant 0 : index
    %c6 = arith.constant 6 : index
    %c0_146 = arith.constant 0 : index
    %488 = vector.load %arg2[%c0_145, %c6, %c0_146] : memref<2x8x128xf32, #tpu.memory_space<vmem>>, vector<2x1x128xf32>
    %489 = vector.shape_cast %488 : vector<2x1x128xf32> to vector<2x128xf32>
    %490 = tpu.concatenate %489, %446 in 1 : vector<2x128xf32>, vector<2x128xf32> -> vector<2x256xf32>
    %c0_147 = arith.constant 0 : index
    %c0_148 = arith.constant 0 : index
    %c0_149 = arith.constant 0 : index
    %491 = vector.load %arg3[%c0_147, %c0_148, %c0_149] : memref<2x256x512xf32, #tpu.memory_space<vmem>>, vector<1x256x512xf32>
    %492 = vector.shape_cast %491 : vector<1x256x512xf32> to vector<256x512xf32>
    %cst_150 = arith.constant dense<0.000000e+00> : vector<2x512xf32>
    %493 = tpu.matmul %490, %492, %cst_150 {dimension_numbers = #tpu.dot_dimension_numbers<[1], [0], [0], [1], [0, 0, 1, 1], [], []>} : vector<2x256xf32>, vector<256x512xf32>, vector<2x512xf32> -> vector<2x512xf32>
    %c0_151 = arith.constant 0 : index
    %c0_152 = arith.constant 0 : index
    %c0_153 = arith.constant 0 : index
    %494 = vector.load %arg4[%c0_151, %c0_152, %c0_153] : memref<2x1x512xf32, #tpu.memory_space<vmem>>, vector<1x1x512xf32>
    %495 = vector.shape_cast %494 : vector<1x1x512xf32> to vector<1x512xf32>
    %496 = vector.broadcast %495 : vector<1x512xf32> to vector<2x512xf32>
    %497 = arith.addf %493, %496 : vector<2x512xf32>
    %498 = vector.extract_strided_slice %497 {offsets = [0, 0], sizes = [2, 128], strides = [1, 1]} : vector<2x512xf32> to vector<2x128xf32>
    %499 = arith.negf %498 : vector<2x128xf32>
    %500 = math.exp %499 : vector<2x128xf32>
    %cst_154 = arith.constant 1.000000e+00 : f32
    %501 = vector.broadcast %cst_154 : f32 to vector<2x128xf32>
    %502 = arith.addf %501, %500 : vector<2x128xf32>
    %503 = arith.divf %501, %502 : vector<2x128xf32>
    %504 = vector.extract_strided_slice %497 {offsets = [0, 128], sizes = [2, 128], strides = [1, 1]} : vector<2x512xf32> to vector<2x128xf32>
    %505 = arith.negf %504 : vector<2x128xf32>
    %506 = math.exp %505 : vector<2x128xf32>
    %cst_155 = arith.constant 1.000000e+00 : f32
    %507 = vector.broadcast %cst_155 : f32 to vector<2x128xf32>
    %508 = arith.addf %507, %506 : vector<2x128xf32>
    %509 = arith.divf %507, %508 : vector<2x128xf32>
    %510 = vector.extract_strided_slice %497 {offsets = [0, 256], sizes = [2, 128], strides = [1, 1]} : vector<2x512xf32> to vector<2x128xf32>
    %511 = vector.extract_strided_slice %497 {offsets = [0, 384], sizes = [2, 128], strides = [1, 1]} : vector<2x512xf32> to vector<2x128xf32>
    %512 = arith.mulf %503, %511 : vector<2x128xf32>
    %513 = arith.addf %510, %512 : vector<2x128xf32>
    %514 = math.tanh %513 : vector<2x128xf32>
    %cst_156 = arith.constant 1.000000e+00 : f32
    %515 = vector.broadcast %cst_156 : f32 to vector<2x128xf32>
    %516 = arith.subf %515, %509 : vector<2x128xf32>
    %517 = arith.mulf %516, %514 : vector<2x128xf32>
    %518 = arith.mulf %509, %446 : vector<2x128xf32>
    %519 = arith.addf %517, %518 : vector<2x128xf32>
    %520 = vector.broadcast %485 : vector<2x1xf32> to vector<2x128xf32>
    %521 = arith.mulf %520, %519 : vector<2x128xf32>
    %522 = vector.broadcast %487 : vector<2x1xf32> to vector<2x128xf32>
    %523 = arith.mulf %522, %446 : vector<2x128xf32>
    %524 = arith.addf %521, %523 : vector<2x128xf32>
    %525 = tpu.concatenate %524, %481 in 1 : vector<2x128xf32>, vector<2x128xf32> -> vector<2x256xf32>
    %c1_157 = arith.constant 1 : index
    %c0_158 = arith.constant 0 : index
    %c0_159 = arith.constant 0 : index
    %526 = vector.load %arg3[%c1_157, %c0_158, %c0_159] : memref<2x256x512xf32, #tpu.memory_space<vmem>>, vector<1x256x512xf32>
    %527 = vector.shape_cast %526 : vector<1x256x512xf32> to vector<256x512xf32>
    %cst_160 = arith.constant dense<0.000000e+00> : vector<2x512xf32>
    %528 = tpu.matmul %525, %527, %cst_160 {dimension_numbers = #tpu.dot_dimension_numbers<[1], [0], [0], [1], [0, 0, 1, 1], [], []>} : vector<2x256xf32>, vector<256x512xf32>, vector<2x512xf32> -> vector<2x512xf32>
    %c1_161 = arith.constant 1 : index
    %c0_162 = arith.constant 0 : index
    %c0_163 = arith.constant 0 : index
    %529 = vector.load %arg4[%c1_161, %c0_162, %c0_163] : memref<2x1x512xf32, #tpu.memory_space<vmem>>, vector<1x1x512xf32>
    %530 = vector.shape_cast %529 : vector<1x1x512xf32> to vector<1x512xf32>
    %531 = vector.broadcast %530 : vector<1x512xf32> to vector<2x512xf32>
    %532 = arith.addf %528, %531 : vector<2x512xf32>
    %533 = vector.extract_strided_slice %532 {offsets = [0, 0], sizes = [2, 128], strides = [1, 1]} : vector<2x512xf32> to vector<2x128xf32>
    %534 = arith.negf %533 : vector<2x128xf32>
    %535 = math.exp %534 : vector<2x128xf32>
    %cst_164 = arith.constant 1.000000e+00 : f32
    %536 = vector.broadcast %cst_164 : f32 to vector<2x128xf32>
    %537 = arith.addf %536, %535 : vector<2x128xf32>
    %538 = arith.divf %536, %537 : vector<2x128xf32>
    %539 = vector.extract_strided_slice %532 {offsets = [0, 128], sizes = [2, 128], strides = [1, 1]} : vector<2x512xf32> to vector<2x128xf32>
    %540 = arith.negf %539 : vector<2x128xf32>
    %541 = math.exp %540 : vector<2x128xf32>
    %cst_165 = arith.constant 1.000000e+00 : f32
    %542 = vector.broadcast %cst_165 : f32 to vector<2x128xf32>
    %543 = arith.addf %542, %541 : vector<2x128xf32>
    %544 = arith.divf %542, %543 : vector<2x128xf32>
    %545 = vector.extract_strided_slice %532 {offsets = [0, 256], sizes = [2, 128], strides = [1, 1]} : vector<2x512xf32> to vector<2x128xf32>
    %546 = vector.extract_strided_slice %532 {offsets = [0, 384], sizes = [2, 128], strides = [1, 1]} : vector<2x512xf32> to vector<2x128xf32>
    %547 = arith.mulf %538, %546 : vector<2x128xf32>
    %548 = arith.addf %545, %547 : vector<2x128xf32>
    %549 = math.tanh %548 : vector<2x128xf32>
    %cst_166 = arith.constant 1.000000e+00 : f32
    %550 = vector.broadcast %cst_166 : f32 to vector<2x128xf32>
    %551 = arith.subf %550, %544 : vector<2x128xf32>
    %552 = arith.mulf %551, %549 : vector<2x128xf32>
    %553 = arith.mulf %544, %481 : vector<2x128xf32>
    %554 = arith.addf %552, %553 : vector<2x128xf32>
    %555 = vector.broadcast %485 : vector<2x1xf32> to vector<2x128xf32>
    %556 = arith.mulf %555, %554 : vector<2x128xf32>
    %557 = vector.broadcast %487 : vector<2x1xf32> to vector<2x128xf32>
    %558 = arith.mulf %557, %481 : vector<2x128xf32>
    %559 = arith.addf %556, %558 : vector<2x128xf32>
    %c7_i32 = arith.constant 7 : i32
    %560 = vector.broadcast %c7_i32 : i32 to vector<2x1xi32>
    %561 = arith.cmpi sgt, %11, %560 : vector<2x1xi32>
    %562 = arith.extui %561 : vector<2x1xi1> to vector<2x1xi32>
    %563 = arith.sitofp %562 : vector<2x1xi32> to vector<2x1xf32>
    %cst_167 = arith.constant 1.000000e+00 : f32
    %564 = vector.broadcast %cst_167 : f32 to vector<2x1xf32>
    %565 = arith.subf %564, %563 : vector<2x1xf32>
    %c0_168 = arith.constant 0 : index
    %c7 = arith.constant 7 : index
    %c0_169 = arith.constant 0 : index
    %566 = vector.load %arg2[%c0_168, %c7, %c0_169] : memref<2x8x128xf32, #tpu.memory_space<vmem>>, vector<2x1x128xf32>
    %567 = vector.shape_cast %566 : vector<2x1x128xf32> to vector<2x128xf32>
    %568 = tpu.concatenate %567, %524 in 1 : vector<2x128xf32>, vector<2x128xf32> -> vector<2x256xf32>
    %c0_170 = arith.constant 0 : index
    %c0_171 = arith.constant 0 : index
    %c0_172 = arith.constant 0 : index
    %569 = vector.load %arg3[%c0_170, %c0_171, %c0_172] : memref<2x256x512xf32, #tpu.memory_space<vmem>>, vector<1x256x512xf32>
    %570 = vector.shape_cast %569 : vector<1x256x512xf32> to vector<256x512xf32>
    %cst_173 = arith.constant dense<0.000000e+00> : vector<2x512xf32>
    %571 = tpu.matmul %568, %570, %cst_173 {dimension_numbers = #tpu.dot_dimension_numbers<[1], [0], [0], [1], [0, 0, 1, 1], [], []>} : vector<2x256xf32>, vector<256x512xf32>, vector<2x512xf32> -> vector<2x512xf32>
    %c0_174 = arith.constant 0 : index
    %c0_175 = arith.constant 0 : index
    %c0_176 = arith.constant 0 : index
    %572 = vector.load %arg4[%c0_174, %c0_175, %c0_176] : memref<2x1x512xf32, #tpu.memory_space<vmem>>, vector<1x1x512xf32>
    %573 = vector.shape_cast %572 : vector<1x1x512xf32> to vector<1x512xf32>
    %574 = vector.broadcast %573 : vector<1x512xf32> to vector<2x512xf32>
    %575 = arith.addf %571, %574 : vector<2x512xf32>
    %576 = vector.extract_strided_slice %575 {offsets = [0, 0], sizes = [2, 128], strides = [1, 1]} : vector<2x512xf32> to vector<2x128xf32>
    %577 = arith.negf %576 : vector<2x128xf32>
    %578 = math.exp %577 : vector<2x128xf32>
    %cst_177 = arith.constant 1.000000e+00 : f32
    %579 = vector.broadcast %cst_177 : f32 to vector<2x128xf32>
    %580 = arith.addf %579, %578 : vector<2x128xf32>
    %581 = arith.divf %579, %580 : vector<2x128xf32>
    %582 = vector.extract_strided_slice %575 {offsets = [0, 128], sizes = [2, 128], strides = [1, 1]} : vector<2x512xf32> to vector<2x128xf32>
    %583 = arith.negf %582 : vector<2x128xf32>
    %584 = math.exp %583 : vector<2x128xf32>
    %cst_178 = arith.constant 1.000000e+00 : f32
    %585 = vector.broadcast %cst_178 : f32 to vector<2x128xf32>
    %586 = arith.addf %585, %584 : vector<2x128xf32>
    %587 = arith.divf %585, %586 : vector<2x128xf32>
    %588 = vector.extract_strided_slice %575 {offsets = [0, 256], sizes = [2, 128], strides = [1, 1]} : vector<2x512xf32> to vector<2x128xf32>
    %589 = vector.extract_strided_slice %575 {offsets = [0, 384], sizes = [2, 128], strides = [1, 1]} : vector<2x512xf32> to vector<2x128xf32>
    %590 = arith.mulf %581, %589 : vector<2x128xf32>
    %591 = arith.addf %588, %590 : vector<2x128xf32>
    %592 = math.tanh %591 : vector<2x128xf32>
    %cst_179 = arith.constant 1.000000e+00 : f32
    %593 = vector.broadcast %cst_179 : f32 to vector<2x128xf32>
    %594 = arith.subf %593, %587 : vector<2x128xf32>
    %595 = arith.mulf %594, %592 : vector<2x128xf32>
    %596 = arith.mulf %587, %524 : vector<2x128xf32>
    %597 = arith.addf %595, %596 : vector<2x128xf32>
    %598 = vector.broadcast %563 : vector<2x1xf32> to vector<2x128xf32>
    %599 = arith.mulf %598, %597 : vector<2x128xf32>
    %600 = vector.broadcast %565 : vector<2x1xf32> to vector<2x128xf32>
    %601 = arith.mulf %600, %524 : vector<2x128xf32>
    %602 = arith.addf %599, %601 : vector<2x128xf32>
    %603 = tpu.concatenate %602, %559 in 1 : vector<2x128xf32>, vector<2x128xf32> -> vector<2x256xf32>
    %c1_180 = arith.constant 1 : index
    %c0_181 = arith.constant 0 : index
    %c0_182 = arith.constant 0 : index
    %604 = vector.load %arg3[%c1_180, %c0_181, %c0_182] : memref<2x256x512xf32, #tpu.memory_space<vmem>>, vector<1x256x512xf32>
    %605 = vector.shape_cast %604 : vector<1x256x512xf32> to vector<256x512xf32>
    %cst_183 = arith.constant dense<0.000000e+00> : vector<2x512xf32>
    %606 = tpu.matmul %603, %605, %cst_183 {dimension_numbers = #tpu.dot_dimension_numbers<[1], [0], [0], [1], [0, 0, 1, 1], [], []>} : vector<2x256xf32>, vector<256x512xf32>, vector<2x512xf32> -> vector<2x512xf32>
    %c1_184 = arith.constant 1 : index
    %c0_185 = arith.constant 0 : index
    %c0_186 = arith.constant 0 : index
    %607 = vector.load %arg4[%c1_184, %c0_185, %c0_186] : memref<2x1x512xf32, #tpu.memory_space<vmem>>, vector<1x1x512xf32>
    %608 = vector.shape_cast %607 : vector<1x1x512xf32> to vector<1x512xf32>
    %609 = vector.broadcast %608 : vector<1x512xf32> to vector<2x512xf32>
    %610 = arith.addf %606, %609 : vector<2x512xf32>
    %611 = vector.extract_strided_slice %610 {offsets = [0, 0], sizes = [2, 128], strides = [1, 1]} : vector<2x512xf32> to vector<2x128xf32>
    %612 = arith.negf %611 : vector<2x128xf32>
    %613 = math.exp %612 : vector<2x128xf32>
    %cst_187 = arith.constant 1.000000e+00 : f32
    %614 = vector.broadcast %cst_187 : f32 to vector<2x128xf32>
    %615 = arith.addf %614, %613 : vector<2x128xf32>
    %616 = arith.divf %614, %615 : vector<2x128xf32>
    %617 = vector.extract_strided_slice %610 {offsets = [0, 128], sizes = [2, 128], strides = [1, 1]} : vector<2x512xf32> to vector<2x128xf32>
    %618 = arith.negf %617 : vector<2x128xf32>
    %619 = math.exp %618 : vector<2x128xf32>
    %cst_188 = arith.constant 1.000000e+00 : f32
    %620 = vector.broadcast %cst_188 : f32 to vector<2x128xf32>
    %621 = arith.addf %620, %619 : vector<2x128xf32>
    %622 = arith.divf %620, %621 : vector<2x128xf32>
    %623 = vector.extract_strided_slice %610 {offsets = [0, 256], sizes = [2, 128], strides = [1, 1]} : vector<2x512xf32> to vector<2x128xf32>
    %624 = vector.extract_strided_slice %610 {offsets = [0, 384], sizes = [2, 128], strides = [1, 1]} : vector<2x512xf32> to vector<2x128xf32>
    %625 = arith.mulf %616, %624 : vector<2x128xf32>
    %626 = arith.addf %623, %625 : vector<2x128xf32>
    %627 = math.tanh %626 : vector<2x128xf32>
    %cst_189 = arith.constant 1.000000e+00 : f32
    %628 = vector.broadcast %cst_189 : f32 to vector<2x128xf32>
    %629 = arith.subf %628, %622 : vector<2x128xf32>
    %630 = arith.mulf %629, %627 : vector<2x128xf32>
    %631 = arith.mulf %622, %559 : vector<2x128xf32>
    %632 = arith.addf %630, %631 : vector<2x128xf32>
    %633 = vector.broadcast %563 : vector<2x1xf32> to vector<2x128xf32>
    %634 = arith.mulf %633, %632 : vector<2x128xf32>
    %635 = vector.broadcast %565 : vector<2x1xf32> to vector<2x128xf32>
    %636 = arith.mulf %635, %559 : vector<2x128xf32>
    %637 = arith.addf %634, %636 : vector<2x128xf32>
    %c0_190 = arith.constant 0 : index
    %c0_191 = arith.constant 0 : index
    %638 = vector.load %arg5[%c0_190, %c0_191] : memref<128x4xf32, #tpu.memory_space<vmem>>, vector<128x4xf32>
    %cst_192 = arith.constant dense<0.000000e+00> : vector<2x4xf32>
    %639 = tpu.matmul %637, %638, %cst_192 {dimension_numbers = #tpu.dot_dimension_numbers<[1], [0], [0], [1], [0, 0, 1, 1], [], []>} : vector<2x128xf32>, vector<128x4xf32>, vector<2x4xf32> -> vector<2x4xf32>
    %c0_193 = arith.constant 0 : index
    %c0_194 = arith.constant 0 : index
    %640 = vector.load %arg6[%c0_193, %c0_194] : memref<1x4xf32, #tpu.memory_space<vmem>>, vector<1x4xf32>
    %641 = vector.broadcast %640 : vector<1x4xf32> to vector<2x4xf32>
    %642 = arith.addf %639, %641 : vector<2x4xf32>
    %cst_195 = arith.constant dense<0xFF800000> : vector<2xf32>
    %643 = vector.multi_reduction <maximumf>, %642, %cst_195 [1] : vector<2x4xf32> to vector<2xf32>
    %644 = vector.shape_cast %643 : vector<2xf32> to vector<2x1xf32>
    %645 = vector.broadcast %644 : vector<2x1xf32> to vector<2x4xf32>
    %646 = arith.subf %642, %645 : vector<2x4xf32>
    %647 = math.exp %646 : vector<2x4xf32>
    %cst_196 = arith.constant dense<0.000000e+00> : vector<2xf32>
    %648 = vector.multi_reduction <add>, %647, %cst_196 [1] : vector<2x4xf32> to vector<2xf32>
    %649 = vector.shape_cast %648 : vector<2xf32> to vector<2x1xf32>
    %650 = math.log %649 : vector<2x1xf32>
    %651 = arith.addf %650, %644 : vector<2x1xf32>
    %652 = vector.broadcast %651 : vector<2x1xf32> to vector<2x4xf32>
    %653 = arith.subf %642, %652 : vector<2x4xf32>
    %c0_197 = arith.constant 0 : index
    %c0_198 = arith.constant 0 : index
    %654 = vector.load %arg7[%c0_197, %c0_198] : memref<2x4xf32, #tpu.memory_space<vmem>>, vector<2x4xf32>
    tpu.vector_store %arg7[%c0_197, %c0_198], %653 {strides = array<i32>} : memref<2x4xf32, #tpu.memory_space<vmem>>, vector<2x4xf32>,
    %655 = vector.extract_strided_slice %637 {offsets = [0, 0], sizes = [2, 32], strides = [1, 1]} : vector<2x128xf32> to vector<2x32xf32>
    %c0_199 = arith.constant 0 : index
    %c0_200 = arith.constant 0 : index
    %656 = vector.load %arg8[%c0_199, %c0_200] : memref<2x32xf32, #tpu.memory_space<vmem>>, vector<2x32xf32>
    tpu.vector_store %arg8[%c0_199, %c0_200], %655 {strides = array<i32>} : memref<2x32xf32, #tpu.memory_space<vmem>>, vector<2x32xf32>,
    return
  }
  func.func @transform_0(%arg0: i32, %arg1: memref<2xi32, #tpu.memory_space<smem>>) -> (i32, i32, i32) {
    %c0_i32 = arith.constant 0 : i32
    %c0_i32_0 = arith.constant 0 : i32
    %c0_i32_1 = arith.constant 0 : i32
    %c0_i32_2 = arith.constant 0 : i32
    return %c0_i32, %c0_i32_0, %c0_i32_1 : i32, i32, i32
  }
  func.func @transform_1(%arg0: i32, %arg1: memref<2xi32, #tpu.memory_space<smem>>) -> (i32, i32, i32) {
    %c0_i32 = arith.constant 0 : i32
    %c0_i32_0 = arith.constant 0 : i32
    %c0_i32_1 = arith.constant 0 : i32
    %c0_i32_2 = arith.constant 0 : i32
    return %c0_i32, %c0_i32_0, %c0_i32_1 : i32, i32, i32
  }
  func.func @transform_2(%arg0: i32, %arg1: memref<2xi32, #tpu.memory_space<smem>>) -> (i32, i32, i32) {
    %c0_i32 = arith.constant 0 : i32
    %c0_i32_0 = arith.constant 0 : i32
    %c0_i32_1 = arith.constant 0 : i32
    %c0_i32_2 = arith.constant 0 : i32
    return %c0_i32, %c0_i32_0, %c0_i32_1 : i32, i32, i32
  }
  func.func @transform_3(%arg0: i32, %arg1: memref<2xi32, #tpu.memory_space<smem>>) -> (i32, i32) {
    %c0_i32 = arith.constant 0 : i32
    %c0_i32_0 = arith.constant 0 : i32
    %c0_i32_1 = arith.constant 0 : i32
    return %c0_i32, %c0_i32_0 : i32, i32
  }
  func.func @transform_4(%arg0: i32, %arg1: memref<2xi32, #tpu.memory_space<smem>>) -> (i32, i32) {
    %c0_i32 = arith.constant 0 : i32
    %c0_i32_0 = arith.constant 0 : i32
    %c0_i32_1 = arith.constant 0 : i32
    return %c0_i32, %c0_i32_0 : i32, i32
  }
  func.func @transform_5(%arg0: i32, %arg1: memref<2xi32, #tpu.memory_space<smem>>) -> (i32, i32) {
    %c0_i32 = arith.constant 0 : i32
    %c0_i32_0 = arith.constant 0 : i32
    %c0_i32_1 = arith.constant 0 : i32
    return %c0_i32, %c0_i32_0 : i32, i32
  }
  func.func @transform_6(%arg0: i32, %arg1: memref<2xi32, #tpu.memory_space<smem>>) -> (i32, i32) {
    %c0_i32 = arith.constant 0 : i32
    %c0_i32_0 = arith.constant 0 : i32
    %c0_i32_1 = arith.constant 0 : i32
    return %c0_i32, %c0_i32_0 : i32, i32
  }
}

</mosaic_0001>

<bundles_post_ra>
// kernel: tpu_custom_call.1
= control target key start
LH: loop header
LB: loop body
LE: loop exit
PB: predicated region body
PF: predicated region fallthrough
CT: control target
= control target key end

     0   :  { %s8695_s0 = inlined_call_operand.vmem [shape: s32[2], index: 0, kind: input, shape index: {}]   ;;  %s8696_s1 = inlined_call_operand.vmem [shape: f32[2,8,128], index: 1, kind: input, shape index: {}]   ;;  %s8697_s2 = inlined_call_operand.hbm [shape: f32[2,256,512], index: 2, kind: input, shape index: {}]   ;;  %s8698_s3 = inlined_call_operand.vmem [shape: f32[2,1,512], index: 3, kind: input, shape index: {}]   ;;  %s8699_s4 = inlined_call_operand.vmem [shape: f32[128,4], index: 4, kind: input, shape index: {}]   ;;  %s8700_s5 = inlined_call_operand.vmem [shape: f32[1,4], index: 5, kind: input, shape index: {}]   ;;  %s8701_s6 = inlined_call_operand.hbm [shape: f32[2,4], index: 6, kind: output, shape index: {0}]   ;;  %s8702_s7 = inlined_call_operand.hbm [shape: f32[2,32], index: 7, kind: output, shape index: {1}]  }
   0x1   :  { %s13_s26 = sshll.u32 %s8695_s0, 4  ;;  %s14_s26 = int_to_ptr.vmem [resolvable:$true] %s13_s26 }
   0x2   :  { %s4314_s27 = scalar_lea.vmem %s14_s26, 16  ;;  %p4319_p1 = scmp.lt.s32.totalorder %s14_s26, %s14_s26 }
   0x3   :  { %p4315_p0 = scmp.ne.s32.totalorder %s14_s26, %s4314_s27  ;;  %p4320_p2 = scmp.lt.s32.totalorder %s4314_s27, %s4314_s27 }
   0x5   :  { %p4321_p3 = por %p4320_p2, %p4319_p1 }
   0x7   :  { %p4322_p4 = pnand %p4321_p3, %p4315_p0 }
   0x9   :  { %4325 = shalt.err (!%p4322_p4)  }
   0xa   :  { %s4394_s28 = smov [#allocation3]  }
   0xb   :  { %16 = dma.vmem_to_smem %s14_s26, 16, %s4394_s28, [#allocation2] }
   0xc   :  { %4386 = dma.done.wait [#allocation2], 16 }
   0xd   :  { %4387 = vsyncadd [#allocation2], 4294967280 }
   0xe   :  { %18 = sfence }
   0xf   :  { %19 = vsyncpa [#allocation5], 0 }
  0x10   :  { %20 = vsyncpa [#allocation6], 0 }
  0x11   :  { %21 = vsyncpa [#allocation9], 0  ;;  %s4395_s29 = smov [#allocation4]  }
  0x12   :  { %s29_s30 = sshll.u32 %s4395_s29, 4  ;;  %s30_s30 = int_to_ptr.vmem [resolvable:$true] %s29_s30 }
  0x13   :  { %s4334_s0 = scalar_lea.vmem %s30_s30, 32768  ;;  %p4339_p6 = scmp.lt.s32.totalorder %s30_s30, %s30_s30 }
  0x14   :  { %p4335_p5 = scmp.ne.s32.totalorder %s30_s30, %s4334_s0  ;;  %p4340_p7 = scmp.lt.s32.totalorder %s4334_s0, %s4334_s0 }
  0x16   :  { %p4341_p8 = por %p4340_p7, %p4339_p6 }
  0x18   :  { %p4342_p9 = pnand %p4341_p8, %p4335_p5 }
  0x1a   :  { %4345 = shalt.err (!%p4342_p9)
}
  0x1b   :  { %s4396_s8 = smov 512   ;;  %s4397_s9 = smov 32  }
  0x1c   :  { %35 = dma.hbm_to_vmem [thread:$0]  %s8697_s2, 32768, %s30_s30, [#allocation5], %s4396_s8, %s4396_s8, %s4397_s9  }
  0x1d   :  { %4388 = dma.done.wait [#allocation5], 32768  }
  0x1e   :  { %4389 = vsyncadd [#allocation5], 4294934528  ;;  %v8709_v0 = vmov 0.0   ;;  %v128_v1 = vld [vmem:[#allocation4 + $0x1e8] sm:$0xff]  ;;  %v127_v2 = vld [vmem:[#allocation4 + $0x1e0] sm:$0xff]  ;;  %vm64_vm0 = vcmask 1041409  }
  0x1f   :  { %281 = vmatprep.mubr.f32.mxu0 %v8709_v0  ;;  %352 = vmatprep.mubr.f32.mxu1 %v8709_v0  ;;  %v124_v3 = vld [vmem:[#allocation4 + $0x1c8] sm:$0xff]  ;;  %v123_v4 = vld [vmem:[#allocation4 + $0x1c0] sm:$0xff]  ;;  %v4450_v13 = vld [vmem:[#allocation4 + $0x1f8] sm:$0xff]  ;;  %s48_s17 = sld [smem:[#allocation3]]  ;;  %vm4399_vm11 = vmmov 0   ;;  %vm3177_vm12 = vcmask 254976  }
  0x20   :  { %217 = vmatprep.subr.mxu0 %v128_v1  ;;  %v120_v5 = vld [vmem:[#allocation4 + $0x1a8] sm:$0xff]  ;;  %v119_v6 = vld [vmem:[#allocation4 + $0x1a0] sm:$0xff]  ;;  %288 = vmatprep.subr.mxu1 %v4450_v13  ;;  %v129_v15 = vld [vmem:[#allocation4 + $0x1f0] sm:$0xff]  ;;  %s3208_s18 = sld [smem:[#allocation3 + $0x1]]  ;;  %vm3162_vm13 = vcmask 25600   ;;  %s4400_s27 = smov [#allocation8]  }
  0x21   :  { %218 = vmatpush1.msra.mxu0 %v127_v2  ;;  %v116_v7 = vld [vmem:[#allocation4 + $0x188] sm:$0xff]  ;;  %v115_v8 = vld [vmem:[#allocation4 + $0x180] sm:$0xff]  ;;  %289 = vmatpush1.msra.mxu1 %v129_v15  ;;  %v126_v17 = vld [vmem:[#allocation4 + $0x1d8] sm:$0xff]  ;;  %s3195_s28 = sshll.u32 %s4400_s27, 4  ;;  %s3196_s28 = int_to_ptr.vmem [resolvable:$true] %s3195_s28 }
  0x22   :  { %219 = vmatprep.subr.mxu0 %v124_v3  ;;  %v112_v9 = vld [vmem:[#allocation4 + $0x168] sm:$0xff]  ;;  %v111_v10 = vld [vmem:[#allocation4 + $0x160] sm:$0xff]  ;;  %v125_v18 = vld [vmem:[#allocation4 + $0x1d0] sm:$0xff]  ;;  %290 = vmatprep.subr.mxu1 %v126_v17  ;;  %s4346_s29 = scalar_lea.vmem %s3196_s28, 32  ;;  %p4351_p11 = scmp.lt.s32.totalorder %s3196_s28, %s3196_s28 }
  0x23   :  { %220 = vmatpush1.msra.mxu0 %v123_v4  ;;  %v108_v11 = vld [vmem:[#allocation4 + $0x148] sm:$0xff]  ;;  %v107_v12 = vld [vmem:[#allocation4 + $0x140] sm:$0xff]  ;;  %v122_v20 = vld [vmem:[#allocation4 + $0x1b8] sm:$0xff]  ;;  %291 = vmatpush1.msra.mxu1 %v125_v18  ;;  %p4347_p10 = scmp.ne.s32.totalorder %s3196_s28, %s4346_s29  ;;  %p4352_p12 = scmp.lt.s32.totalorder %s4346_s29, %s4346_s29 }
  0x24   :  { %221 = vmatprep.subr.mxu0 %v120_v5  ;;  %v104_v14 = vld [vmem:[#allocation4 + $0x128] sm:$0xff]  ;;  %v103_v16 = vld [vmem:[#allocation4 + $0x120] sm:$0xff]  ;;  %v121_v22 = vld [vmem:[#allocation4 + $0x1b0] sm:$0xff]  ;;  %292 = vmatprep.subr.mxu1 %v122_v20 }
  0x25   :  { %222 = vmatpush1.msra.mxu0 %v119_v6  ;;  %v100_v19 = vld [vmem:[#allocation4 + $0x108] sm:$0xff]  ;;  %v99_v21 = vld [vmem:[#allocation4 + $0x100] sm:$0xff]  ;;  %v118_v23 = vld [vmem:[#allocation4 + $0x198] sm:$0xff]  ;;  %293 = vmatpush1.msra.mxu1 %v121_v22  ;;  %p4353_p13 = por %p4352_p12, %p4351_p11 }
  0x26   :  { %223 = vmatprep.subr.mxu0 %v116_v7  ;;  %v96_v24 = vld [vmem:[#allocation4 + $0xe8] sm:$0xff]  ;;  %v117_v25 = vld [vmem:[#allocation4 + $0x190] sm:$0xff]  ;;  %v95_v26 = vld [vmem:[#allocation4 + $0xe0] sm:$0xff]  ;;  %294 = vmatprep.subr.mxu1 %v118_v23 }
  0x27   :  { %224 = vmatpush1.msra.mxu0 %v115_v8  ;;  %v114_v27 = vld [vmem:[#allocation4 + $0x178] sm:$0xff]  ;;  %v92_v28 = vld [vmem:[#allocation4 + $0xc8] sm:$0xff]  ;;  %v113_v29 = vld [vmem:[#allocation4 + $0x170] sm:$0xff]  ;;  %295 = vmatpush1.msra.mxu1 %v117_v25  ;;  %p4354_p0 = pnand %p4353_p13, %p4347_p10 }
  0x28   :  { %225 = vmatprep.subr.mxu0 %v112_v9  ;;  %v91_v30 = vld [vmem:[#allocation4 + $0xc0] sm:$0xff]  ;;  %v110_v31 = vld [vmem:[#allocation4 + $0x158] sm:$0xff]  ;;  %v88_v32 = vld [vmem:[#allocation4 + $0xa8] sm:$0xff]  ;;  %296 = vmatprep.subr.mxu1 %v114_v27 }
  0x29   :  { %226 = vmatpush1.msra.mxu0 %v111_v10  ;;  %v109_v33 = vld [vmem:[#allocation4 + $0x150] sm:$0xff]  ;;  %v87_v34 = vld [vmem:[#allocation4 + $0xa0] sm:$0xff]  ;;  %297 = vmatpush1.msra.mxu1 %v113_v29  ;;  %v106_v35 = vld [vmem:[#allocation4 + $0x138] sm:$0xff] }
  0x2a   :  { %227 = vmatprep.subr.mxu0 %v108_v11  ;;  %v84_v36 = vld [vmem:[#allocation4 + $0x88] sm:$0xff]  ;;  %298 = vmatprep.subr.mxu1 %v110_v31  ;;  %v105_v37 = vld [vmem:[#allocation4 + $0x130] sm:$0xff]  ;;  %v83_v38 = vld [vmem:[#allocation4 + $0x80] sm:$0xff] }
  0x2b   :  { %228 = vmatpush1.msra.mxu0 %v107_v12  ;;  %299 = vmatpush1.msra.mxu1 %v109_v33  ;;  %v102_v39 = vld [vmem:[#allocation4 + $0x118] sm:$0xff]  ;;  %v80_v40 = vld [vmem:[#allocation4 + $0x68] sm:$0xff]  ;;  %v101_v41 = vld [vmem:[#allocation4 + $0x110] sm:$0xff] }
  0x2c   :  { %229 = vmatprep.subr.mxu0 %v104_v14  ;;  %300 = vmatprep.subr.mxu1 %v106_v35  ;;  %v79_v42 = vld [vmem:[#allocation4 + $0x60] sm:$0xff]  ;;  %v98_v43 = vld [vmem:[#allocation4 + $0xf8] sm:$0xff]  ;;  %v76_v44 = vld [vmem:[#allocation4 + $0x48] sm:$0xff] }
  0x2d   :  { %230 = vmatpush1.msra.mxu0 %v103_v16  ;;  %301 = vmatpush1.msra.mxu1 %v105_v37  ;;  %v97_v45 = vld [vmem:[#allocation4 + $0xf0] sm:$0xff]  ;;  %v75_v46 = vld [vmem:[#allocation4 + $0x40] sm:$0xff]  ;;  %v94_v47 = vld [vmem:[#allocation4 + $0xd8] sm:$0xff] }
  0x2e   :  { %231 = vmatprep.subr.mxu0 %v100_v19  ;;  %302 = vmatprep.subr.mxu1 %v102_v39  ;;  %v72_v48 = vld [vmem:[#allocation4 + $0x28] sm:$0xff]  ;;  %v93_v49 = vld [vmem:[#allocation4 + $0xd0] sm:$0xff]  ;;  %v71_v50 = vld [vmem:[#allocation4 + $0x20] sm:$0xff] }
  0x2f   :  { %232 = vmatpush1.msra.mxu0 %v99_v21  ;;  %303 = vmatpush1.msra.mxu1 %v101_v41  ;;  %v90_v51 = vld [vmem:[#allocation4 + $0xb8] sm:$0xff]  ;;  %v68_v52 = vld [vmem:[#allocation4 + $0x8] sm:$0xff]  ;;  %v89_v53 = vld [vmem:[#allocation4 + $0xb0] sm:$0xff] }
  0x30   :  { %233 = vmatprep.subr.mxu0 %v96_v24  ;;  %304 = vmatprep.subr.mxu1 %v98_v43  ;;  %v67_v54 = vld [vmem:[#allocation4] sm:$0xff]  ;;  %v86_v55 = vld [vmem:[#allocation4 + $0x98] sm:$0xff]  ;;  %v192_v56 = vld [vmem:[#allocation4 + $0x3e8] sm:$0xff] }
  0x31   :  { %234 = vmatpush1.msra.mxu0 %v95_v26  ;;  %305 = vmatpush1.msra.mxu1 %v97_v45  ;;  %v85_v57 = vld [vmem:[#allocation4 + $0x90] sm:$0xff]  ;;  %v191_v58 = vld [vmem:[#allocation4 + $0x3e0] sm:$0xff]  ;;  %v82_v59 = vld [vmem:[#allocation4 + $0x78] sm:$0xff] }
  0x32   :  { %235 = vmatprep.subr.mxu0 %v92_v28  ;;  %306 = vmatprep.subr.mxu1 %v94_v47  ;;  %v188_v60 = vld [vmem:[#allocation4 + $0x3c8] sm:$0xff]  ;;  %v81_v61 = vld [vmem:[#allocation4 + $0x70] sm:$0xff]  ;;  %v187_v62 = vld [vmem:[#allocation4 + $0x3c0] sm:$0xff] }
  0x33   :  { %236 = vmatpush1.msra.mxu0 %v91_v30  ;;  %307 = vmatpush1.msra.mxu1 %v93_v49  ;;  %v78_v63 = vld [vmem:[#allocation4 + $0x58] sm:$0xff]  ;;  %v184_v1 = vld [vmem:[#allocation4 + $0x3a8] sm:$0xff]  ;;  %v77_v2 = vld [vmem:[#allocation4 + $0x50] sm:$0xff] }
  0x34   :  { %237 = vmatprep.subr.mxu0 %v88_v32  ;;  %308 = vmatprep.subr.mxu1 %v90_v51  ;;  %v183_v3 = vld [vmem:[#allocation4 + $0x3a0] sm:$0xff]  ;;  %v4453_v4 = vld [vmem:[#allocation4 + $0x38] sm:$0xff]  ;;  %v180_v5 = vld [vmem:[#allocation4 + $0x388] sm:$0xff] }
  0x35   :  { %238 = vmatpush1.msra.mxu0 %v87_v34  ;;  %309 = vmatpush1.msra.mxu1 %v89_v53  ;;  %v4455_v6 = vld [vmem:[#allocation4 + $0x30] sm:$0xff]  ;;  %v179_v7 = vld [vmem:[#allocation4 + $0x380] sm:$0xff]  ;;  %v4457_v8 = vld [vmem:[#allocation4 + $0x18] sm:$0xff] }
  0x36   :  { %239 = vmatprep.subr.mxu0 %v84_v36  ;;  %310 = vmatprep.subr.mxu1 %v86_v55  ;;  %v176_v9 = vld [vmem:[#allocation4 + $0x368] sm:$0xff]  ;;  %v4460_v10 = vld [vmem:[#allocation4 + $0x10] sm:$0xff]  ;;  %v175_v11 = vld [vmem:[#allocation4 + $0x360] sm:$0xff] }
  0x37   :  { %240 = vmatpush1.msra.mxu0 %v83_v38  ;;  %311 = vmatpush1.msra.mxu1 %v85_v57  ;;  %v4463_v12 = vld [vmem:[#allocation4 + $0x3f8] sm:$0xff]  ;;  %v172_v14 = vld [vmem:[#allocation4 + $0x348] sm:$0xff]  ;;  %v4466_v15 = vld [vmem:[#allocation4 + $0x3f0] sm:$0xff] }
  0x38   :  { %241 = vmatprep.subr.mxu0 %v80_v40  ;;  %312 = vmatprep.subr.mxu1 %v82_v59  ;;  %v171_v16 = vld [vmem:[#allocation4 + $0x340] sm:$0xff]  ;;  %v4469_v17 = vld [vmem:[#allocation4 + $0x3d8] sm:$0xff]  ;;  %v4471_v18 = vld [vmem:[#allocation4 + $0x328] sm:$0xff] }
  0x39   :  { %242 = vmatpush1.msra.mxu0 %v79_v42  ;;  %313 = vmatpush1.msra.mxu1 %v81_v61  ;;  %v4474_v19 = vld [vmem:[#allocation4 + $0x3d0] sm:$0xff]  ;;  %v4476_v20 = vld [vmem:[#allocation4 + $0x320] sm:$0xff]  ;;  %v4479_v21 = vld [vmem:[#allocation4 + $0x3b8] sm:$0xff] }
  0x3a   :  { %243 = vmatprep.subr.mxu0 %v76_v44  ;;  %314 = vmatprep.subr.mxu1 %v78_v63  ;;  %v4481_v22 = vld [vmem:[#allocation4 + $0x308] sm:$0xff]  ;;  %v4484_v23 = vld [vmem:[#allocation4 + $0x3b0] sm:$0xff]  ;;  %v4487_v24 = vld [vmem:[#allocation4 + $0x300] sm:$0xff] }
  0x3b   :  { %244 = vmatpush1.msra.mxu0 %v75_v46  ;;  %315 = vmatpush1.msra.mxu1 %v77_v2  ;;  %v4490_v25 = vld [vmem:[#allocation4 + $0x398] sm:$0xff]  ;;  %v4493_v26 = vld [vmem:[#allocation4 + $0x2e8] sm:$0xff]  ;;  %v4496_v27 = vld [vmem:[#allocation4 + $0x390] sm:$0xff] }
  0x3c   :  { %245 = vmatprep.subr.mxu0 %v72_v48  ;;  %316 = vmatprep.subr.mxu1 %v4453_v4  ;;  %v4499_v28 = vld [vmem:[#allocation4 + $0x2e0] sm:$0xff]  ;;  %v4502_v29 = vld [vmem:[#allocation4 + $0x378] sm:$0xff]  ;;  %v4505_v30 = vld [vmem:[#allocation4 + $0x2c8] sm:$0xff] }
  0x3d   :  { %246 = vmatpush1.msra.mxu0 %v71_v50  ;;  %317 = vmatpush1.msra.mxu1 %v4455_v6  ;;  %v4508_v31 = vld [vmem:[#allocation4 + $0x370] sm:$0xff]  ;;  %v4511_v32 = vld [vmem:[#allocation4 + $0x2c0] sm:$0xff]  ;;  %v4514_v33 = vld [vmem:[#allocation4 + $0x358] sm:$0xff] }
  0x3e   :  { %247 = vmatprep.subr.mxu0 %v68_v52  ;;  %318 = vmatprep.subr.mxu1 %v4457_v8  ;;  %v4517_v34 = vld [vmem:[#allocation4 + $0x2a8] sm:$0xff]  ;;  %v4520_v35 = vld [vmem:[#allocation4 + $0x350] sm:$0xff]  ;;  %v4523_v36 = vld [vmem:[#allocation4 + $0x2a0] sm:$0xff] }
  0x3f   :  { %248 = vmatpush1.msra.mxu0 %v67_v54  ;;  %319 = vmatpush1.msra.mxu1 %v4460_v10  ;;  %v4526_v37 = vld [vmem:[#allocation4 + $0x338] sm:$0xff]  ;;  %v4529_v38 = vld [vmem:[#allocation4 + $0x288] sm:$0xff]  ;;  %v4532_v39 = vld [vmem:[#allocation4 + $0x330] sm:$0xff] }
  0x40   :  { %249 = vmatprep.subr.mxu0 %v192_v56  ;;  %320 = vmatprep.subr.mxu1 %v4463_v12  ;;  %v4535_v40 = vld [vmem:[#allocation4 + $0x280] sm:$0xff]  ;;  %v4538_v41 = vld [vmem:[#allocation4 + $0x318] sm:$0xff]  ;;  %v4541_v42 = vld [vmem:[#allocation4 + $0x268] sm:$0xff] }
  0x41   :  { %250 = vmatpush2.msra.mxu0 %v191_v58  ;;  %321 = vmatpush2.msra.mxu1 %v4466_v15  ;;  %v4544_v43 = vld [vmem:[#allocation4 + $0x310] sm:$0xff]  ;;  %v4547_v44 = vld [vmem:[#allocation4 + $0x260] sm:$0xff]  ;;  %v60_v45 = vld [vmem:[%s8696_s1 + $0x8] sm:$0x1] }
  0x42   :  { %251 = vmatprep.subr.mxu0 %v188_v60  ;;  %322 = vmatprep.subr.mxu1 %v4469_v17  ;;  %v4553_v46 = vld [vmem:[#allocation4 + $0x2f8] sm:$0xff]  ;;  %v4556_v47 = vld [vmem:[#allocation4 + $0x248] sm:$0xff]  ;;  %v4559_v48 = vld [vmem:[#allocation4 + $0x2f0] sm:$0xff]  ;;  %v63_v52 = vrot.slane %v60_v45, 7 }
  0x43   :  { %252 = vmatpush2.msra.mxu0 %v187_v62  ;;  %323 = vmatpush2.msra.mxu1 %v4474_v19  ;;  %v4562_v49 = vld [vmem:[#allocation4 + $0x240] sm:$0xff]  ;;  %v4565_v50 = vld [vmem:[#allocation4 + $0x2d8] sm:$0xff]  ;;  %v4568_v51 = vld [vmem:[#allocation4 + $0x228] sm:$0xff] }
  0x44   :  { %253 = vmatprep.subr.mxu0 %v184_v1  ;;  %324 = vmatprep.subr.mxu1 %v4479_v21  ;;  %v4571_v53 = vld [vmem:[#allocation4 + $0x2d0] sm:$0xff]  ;;  %v4574_v54 = vld [vmem:[#allocation4 + $0x220] sm:$0xff]  ;;  %v4580_v56 = vld [vmem:[#allocation4 + $0x2b8] sm:$0xff] }
  0x45   :  { %254 = vmatpush2.msra.mxu0 %v183_v3  ;;  %325 = vmatpush2.msra.mxu1 %v4484_v23  ;;  %9451 = vst [vmem:[#allocation14_spill] sm:$0xff] %v4574_v54  ;;  %v59_v55 = vld [vmem:[%s8696_s1] sm:$0x1]  ;;  %v4583_v57 = vld [vmem:[#allocation4 + $0x208] sm:$0xff]  ;;  %v4586_v58 = vld [vmem:[#allocation4 + $0x2b0] sm:$0xff] }
  0x46   :  { %255 = vmatprep.subr.mxu0 %v180_v5  ;;  %326 = vmatprep.subr.mxu1 %v4490_v25  ;;  %9452 = vst [vmem:[#allocation15_spill] sm:$0xff] %v4583_v57  ;;  %v4589_v59 = vld [vmem:[#allocation4 + $0x200] sm:$0xff]  ;;  %v4592_v60 = vld [vmem:[#allocation4 + $0x298] sm:$0xff]  ;;  %v65_v61 = vsel %vm64_vm0, %v63_v52, %v59_v55  ;;  %v4597_v62 = vld [vmem:[#allocation4 + $0x290] sm:$0xff] }
  0x47   :  { %256 = vmatpush2.msra.mxu0 %v179_v7  ;;  %327 = vmatpush2.msra.mxu1 %v4496_v27  ;;  %9453 = vst [vmem:[#allocation16_spill] sm:$0xff] %v4589_v59  ;;  %v4601_v63 = vld [vmem:[#allocation4 + $0x278] sm:$0xff]  ;;  %v4603_v1 = vld [vmem:[#allocation4 + $0x5e8] sm:$0xff]  ;;  %v4607_v2 = vld [vmem:[#allocation4 + $0x270] sm:$0xff] }
  0x48   :  { %257 = vmatprep.subr.mxu0 %v176_v9  ;;  %328 = vmatprep.subr.mxu1 %v4502_v29  ;;  %9454 = vst [vmem:[#allocation17_spill] sm:$0xff] %v4603_v1  ;;  %v4609_v3 = vld [vmem:[#allocation4 + $0x5e0] sm:$0xff]  ;;  %v4612_v5 = vld [vmem:[#allocation4 + $0x258] sm:$0xff]  ;;  %v4614_v7 = vld [vmem:[#allocation4 + $0x5c8] sm:$0xff] }
  0x49   :  { %258 = vmatpush2.msra.mxu0 %v175_v11  ;;  %329 = vmatpush2.msra.mxu1 %v4508_v31  ;;  %9455 = vst [vmem:[#allocation18_spill] sm:$0xff] %v4609_v3  ;;  %9456 = vst [vmem:[#allocation19_spill] sm:$0xff] %v4612_v5  ;;  %v4617_v9 = vld [vmem:[#allocation4 + $0x250] sm:$0xff]  ;;  %v4620_v11 = vld [vmem:[#allocation4 + $0x5c0] sm:$0xff] }
  0x4a   :  { %259 = vmatprep.subr.mxu0 %v172_v14  ;;  %330 = vmatprep.subr.mxu1 %v4514_v33  ;;  %9457 = vst [vmem:[#allocation20_spill] sm:$0xff] %v4614_v7  ;;  %9458 = vst [vmem:[#allocation21_spill] sm:$0xff] %v4617_v9  ;;  %v4623_v14 = vld [vmem:[#allocation4 + $0x238] sm:$0xff]  ;;  %v4635_v52 = vld [vmem:[#allocation4 + $0x210] sm:$0xff] }
  0x4b   :  { %260 = vmatpush2.msra.mxu0 %v171_v16  ;;  %331 = vmatpush2.msra.mxu1 %v4520_v35  ;;  %9459 = vst [vmem:[#allocation22_spill] sm:$0xff] %v4620_v11  ;;  %9460 = vst [vmem:[#allocation23_spill] sm:$0xff] %v4623_v14  ;;  %v4627_v16 = vld [vmem:[#allocation4 + $0x230] sm:$0xff]  ;;  %v4631_v45 = vld [vmem:[#allocation4 + $0x218] sm:$0xff] }
  0x4c   :  { %261 = vmatprep.subr.mxu0 %v4471_v18  ;;  %332 = vmatprep.subr.mxu1 %v4526_v37  ;;  %9461 = vst [vmem:[#allocation24_spill] sm:$0xff] %v4627_v16  ;;  %9462 = vst [vmem:[#allocation25_spill] sm:$0xff] %v4631_v45  ;;  %v4639_v55 = vld [vmem:[#allocation4 + $0x5f8] sm:$0xff] }
  0x4d   :  { %262 = vmatpush2.msra.mxu0 %v4476_v20  ;;  %333 = vmatpush2.msra.mxu1 %v4532_v39  ;;  %9463 = vst [vmem:[#allocation26_spill] sm:$0xff] %v4635_v52  ;;  %9464 = vst [vmem:[#allocation27_spill] sm:$0xff] %v4639_v55 }
  0x4e   :  { %263 = vmatprep.subr.mxu0 %v4481_v22  ;;  %334 = vmatprep.subr.mxu1 %v4538_v41 }
  0x4f   :  { %264 = vmatpush2.msra.mxu0 %v4487_v24  ;;  %335 = vmatpush2.msra.mxu1 %v4544_v43 }
  0x50   :  { %265 = vmatprep.subr.mxu0 %v4493_v26  ;;  %336 = vmatprep.subr.mxu1 %v4553_v46 }
  0x51   :  { %266 = vmatpush2.msra.mxu0 %v4499_v28  ;;  %337 = vmatpush2.msra.mxu1 %v4559_v48 }
  0x52   :  { %267 = vmatprep.subr.mxu0 %v4505_v30  ;;  %338 = vmatprep.subr.mxu1 %v4565_v50 }
  0x53   :  { %268 = vmatpush2.msra.mxu0 %v4511_v32  ;;  %339 = vmatpush2.msra.mxu1 %v4571_v53 }
  0x54   :  { %269 = vmatprep.subr.mxu0 %v4517_v34  ;;  %340 = vmatprep.subr.mxu1 %v4580_v56 }
  0x55   :  { %270 = vmatpush2.msra.mxu0 %v4523_v36  ;;  %341 = vmatpush2.msra.mxu1 %v4586_v58 }
  0x56   :  { %271 = vmatprep.subr.mxu0 %v4529_v38  ;;  %342 = vmatprep.subr.mxu1 %v4592_v60 }
  0x57   :  { %272 = vmatpush2.msra.mxu0 %v4535_v40  ;;  %343 = vmatpush2.msra.mxu1 %v4597_v62 }
  0x58   :  { %273 = vmatprep.subr.mxu0 %v4541_v42  ;;  %344 = vmatprep.subr.mxu1 %v4601_v63 }
  0x59   :  { %274 = vmatpush2.msra.mxu0 %v4547_v44  ;;  %345 = vmatpush2.msra.mxu1 %v4607_v2 }
  0x5a   :  { %275 = vmatprep.subr.mxu0 %v4556_v47  ;;  %346 = vmatprep.subr.mxu1 %v4612_v5 }
  0x5b   :  { %276 = vmatpush2.msra.mxu0 %v4562_v49  ;;  %347 = vmatpush2.msra.mxu1 %v4617_v9 }
  0x5c   :  { %277 = vmatprep.subr.mxu0 %v4568_v51  ;;  %348 = vmatprep.subr.mxu1 %v4623_v14 }
  0x5d   :  { %278 = vmatpush2.msra.mxu0 %v4574_v54  ;;  %349 = vmatpush2.msra.mxu1 %v4627_v16 }
  0x5e   :  { %279 = vmatprep.subr.mxu0 %v4583_v57  ;;  %350 = vmatprep.subr.mxu1 %v4631_v45  ;;  %v4659_v45 = vld [vmem:[#allocation4 + $0x5b8] sm:$0xff] }
  0x5f   :  { %280 = vmatpush2.msra.mxu0 %v4589_v59  ;;  %351 = vmatpush2.msra.mxu1 %v4635_v52  ;;  %v4657_v52 = vld [vmem:[#allocation4 + $0x5a0] sm:$0xff]  ;;  %9470 = vst [vmem:[#allocation33_spill] sm:$0xff] %v4659_v45 }
  0x60   :  { %282 = vmatmul.mubr.f32.vlgmr.msra.gmra.mxu0 %v65_v61  ;;  %533 = vmatprep.subr.mxu0 %v4603_v1  ;;  %v4653_v1 = vld [vmem:[#allocation4 + $0x5d0] sm:$0xff]  ;;  %9469 = vst [vmem:[#allocation32_spill] sm:$0xff] %v4657_v52 }
  0x61   :  { %534 = vmatpush1.msra.mxu0 %v4609_v3  ;;  %597 = vmatprep.mubr.f32.mxu0 %v8709_v0  ;;  %v4642_v3 = vld [vmem:[#allocation4 + $0x5f0] sm:$0xff]  ;;  %9468 = vst [vmem:[#allocation31_spill] sm:$0xff] %v4653_v1 }
  0x62   :  { %535 = vmatprep.subr.mxu0 %v4614_v7  ;;  %9465 = vst [vmem:[#allocation28_spill] sm:$0xff] %v4642_v3  ;;  %v4645_v7 = vld [vmem:[#allocation4 + $0x5d8] sm:$0xff]  ;;  %353 = vmatmul.mubr.f32.vlgmr.msra.gmra.mxu1 %v65_v61  ;;  %v4663_v61 = vld [vmem:[#allocation4 + $0x588] sm:$0xff] }
  0x63   :  { %536 = vmatpush1.msra.mxu0 %v4620_v11  ;;  %9466 = vst [vmem:[#allocation29_spill] sm:$0xff] %v4645_v7  ;;  %604 = vmatprep.subr.mxu1 %v4639_v55  ;;  %v4651_v11 = vld [vmem:[#allocation4 + $0x5a8] sm:$0xff]  ;;  %9471 = vst [vmem:[#allocation34_spill] sm:$0xff] %v4663_v61  ;;  %v5007_v55 = vld [vmem:[#allocation4 + $0x610] sm:$0xff] }
  0x64   :  { %605 = vmatpush1.msra.mxu1 %v4642_v3  ;;  %668 = vmatprep.mubr.f32.mxu1 %v8709_v0  ;;  %9467 = vst [vmem:[#allocation30_spill] sm:$0xff] %v4651_v11  ;;  %v4665_v0 = vld [vmem:[#allocation4 + $0x5b0] sm:$0xff]  ;;  %9587 = vst [vmem:[#allocation150_spill] sm:$0xff] %v5007_v55 }
  0x65   :  { %606 = vmatprep.subr.mxu1 %v4645_v7  ;;  %537 = vmatprep.subr.mxu0 %v4651_v11  ;;  %9472 = vst [vmem:[#allocation35_spill] sm:$0xff] %v4665_v0  ;;  %v4669_v7 = vld [vmem:[#allocation4 + $0x580] sm:$0xff]  ;;  %v4671_v11 = vld [vmem:[#allocation4 + $0x598] sm:$0xff]  ;;  %v4999_v3 = vld [vmem:[#allocation4 + $0x630] sm:$0xff] }
  0x66   :  { %607 = vmatpush1.msra.mxu1 %v4653_v1  ;;  %538 = vmatpush1.msra.mxu0 %v4657_v52  ;;  %9473 = vst [vmem:[#allocation36_spill] sm:$0xff] %v4669_v7  ;;  %9474 = vst [vmem:[#allocation37_spill] sm:$0xff] %v4671_v11  ;;  %v4675_v1 = vld [vmem:[#allocation4 + $0x568] sm:$0xff]  ;;  %v4677_v52 = vld [vmem:[#allocation4 + $0x590] sm:$0xff] }
  0x67   :  { %608 = vmatprep.subr.mxu1 %v4659_v45  ;;  %539 = vmatprep.subr.mxu0 %v4663_v61  ;;  %9475 = vst [vmem:[#allocation38_spill] sm:$0xff] %v4675_v1  ;;  %9476 = vst [vmem:[#allocation39_spill] sm:$0xff] %v4677_v52  ;;  %v4681_v45 = vld [vmem:[#allocation4 + $0x560] sm:$0xff]  ;;  %v4683_v61 = vld [vmem:[#allocation4 + $0x578] sm:$0xff] }
  0x68   :  { %609 = vmatpush1.msra.mxu1 %v4665_v0  ;;  %540 = vmatpush1.msra.mxu0 %v4669_v7  ;;  %9477 = vst [vmem:[#allocation40_spill] sm:$0xff] %v4681_v45  ;;  %9478 = vst [vmem:[#allocation41_spill] sm:$0xff] %v4683_v61  ;;  %v4687_v0 = vld [vmem:[#allocation4 + $0x548] sm:$0xff]  ;;  %v4689_v7 = vld [vmem:[#allocation4 + $0x570] sm:$0xff] }
  0x69   :  { %610 = vmatprep.subr.mxu1 %v4671_v11  ;;  %541 = vmatprep.subr.mxu0 %v4675_v1  ;;  %9479 = vst [vmem:[#allocation42_spill] sm:$0xff] %v4687_v0  ;;  %9480 = vst [vmem:[#allocation43_spill] sm:$0xff] %v4689_v7  ;;  %v4693_v11 = vld [vmem:[#allocation4 + $0x540] sm:$0xff]  ;;  %v4695_v1 = vld [vmem:[#allocation4 + $0x558] sm:$0xff] }
  0x6a   :  { %611 = vmatpush1.msra.mxu1 %v4677_v52  ;;  %542 = vmatpush1.msra.mxu0 %v4681_v45  ;;  %9481 = vst [vmem:[#allocation44_spill] sm:$0xff] %v4693_v11  ;;  %9482 = vst [vmem:[#allocation45_spill] sm:$0xff] %v4695_v1  ;;  %v4699_v52 = vld [vmem:[#allocation4 + $0x528] sm:$0xff]  ;;  %v4701_v45 = vld [vmem:[#allocation4 + $0x550] sm:$0xff] }
  0x6b   :  { %612 = vmatprep.subr.mxu1 %v4683_v61  ;;  %543 = vmatprep.subr.mxu0 %v4687_v0  ;;  %9483 = vst [vmem:[#allocation46_spill] sm:$0xff] %v4699_v52  ;;  %9484 = vst [vmem:[#allocation47_spill] sm:$0xff] %v4701_v45  ;;  %v4705_v61 = vld [vmem:[#allocation4 + $0x520] sm:$0xff]  ;;  %v4707_v0 = vld [vmem:[#allocation4 + $0x538] sm:$0xff] }
  0x6c   :  { %613 = vmatpush1.msra.mxu1 %v4689_v7  ;;  %544 = vmatpush1.msra.mxu0 %v4693_v11  ;;  %9485 = vst [vmem:[#allocation48_spill] sm:$0xff] %v4705_v61  ;;  %9486 = vst [vmem:[#allocation49_spill] sm:$0xff] %v4707_v0  ;;  %v4711_v7 = vld [vmem:[#allocation4 + $0x508] sm:$0xff]  ;;  %v4713_v11 = vld [vmem:[#allocation4 + $0x530] sm:$0xff] }
  0x6d   :  { %614 = vmatprep.subr.mxu1 %v4695_v1  ;;  %545 = vmatprep.subr.mxu0 %v4699_v52  ;;  %9487 = vst [vmem:[#allocation50_spill] sm:$0xff] %v4711_v7  ;;  %9488 = vst [vmem:[#allocation51_spill] sm:$0xff] %v4713_v11  ;;  %v4717_v1 = vld [vmem:[#allocation4 + $0x500] sm:$0xff]  ;;  %v4719_v52 = vld [vmem:[#allocation4 + $0x518] sm:$0xff] }
  0x6e   :  { %615 = vmatpush1.msra.mxu1 %v4701_v45  ;;  %546 = vmatpush1.msra.mxu0 %v4705_v61  ;;  %9489 = vst [vmem:[#allocation52_spill] sm:$0xff] %v4717_v1  ;;  %9490 = vst [vmem:[#allocation53_spill] sm:$0xff] %v4719_v52  ;;  %v4723_v45 = vld [vmem:[#allocation4 + $0x4e8] sm:$0xff]  ;;  %v4725_v61 = vld [vmem:[#allocation4 + $0x510] sm:$0xff] }
  0x6f   :  { %616 = vmatprep.subr.mxu1 %v4707_v0  ;;  %547 = vmatprep.subr.mxu0 %v4711_v7  ;;  %9491 = vst [vmem:[#allocation54_spill] sm:$0xff] %v4723_v45  ;;  %9492 = vst [vmem:[#allocation55_spill] sm:$0xff] %v4725_v61  ;;  %v4729_v0 = vld [vmem:[#allocation4 + $0x4e0] sm:$0xff]  ;;  %v4731_v7 = vld [vmem:[#allocation4 + $0x4f8] sm:$0xff] }
  0x70   :  { %617 = vmatpush1.msra.mxu1 %v4713_v11  ;;  %548 = vmatpush1.msra.mxu0 %v4717_v1  ;;  %9493 = vst [vmem:[#allocation56_spill] sm:$0xff] %v4729_v0  ;;  %9494 = vst [vmem:[#allocation57_spill] sm:$0xff] %v4731_v7  ;;  %v4735_v11 = vld [vmem:[#allocation4 + $0x4c8] sm:$0xff]  ;;  %v4737_v1 = vld [vmem:[#allocation4 + $0x4f0] sm:$0xff] }
  0x71   :  { %618 = vmatprep.subr.mxu1 %v4719_v52  ;;  %549 = vmatprep.subr.mxu0 %v4723_v45  ;;  %9495 = vst [vmem:[#allocation58_spill] sm:$0xff] %v4735_v11  ;;  %9496 = vst [vmem:[#allocation59_spill] sm:$0xff] %v4737_v1  ;;  %v4741_v52 = vld [vmem:[#allocation4 + $0x4c0] sm:$0xff]  ;;  %v4743_v45 = vld [vmem:[#allocation4 + $0x4d8] sm:$0xff] }
  0x72   :  { %619 = vmatpush1.msra.mxu1 %v4725_v61  ;;  %550 = vmatpush1.msra.mxu0 %v4729_v0  ;;  %9497 = vst [vmem:[#allocation60_spill] sm:$0xff] %v4741_v52  ;;  %9498 = vst [vmem:[#allocation61_spill] sm:$0xff] %v4743_v45  ;;  %v4747_v61 = vld [vmem:[#allocation4 + $0x4a8] sm:$0xff]  ;;  %v4749_v0 = vld [vmem:[#allocation4 + $0x4d0] sm:$0xff] }
  0x73   :  { %620 = vmatprep.subr.mxu1 %v4731_v7  ;;  %551 = vmatprep.subr.mxu0 %v4735_v11  ;;  %9499 = vst [vmem:[#allocation62_spill] sm:$0xff] %v4747_v61  ;;  %9500 = vst [vmem:[#allocation63_spill] sm:$0xff] %v4749_v0  ;;  %v4753_v7 = vld [vmem:[#allocation4 + $0x4a0] sm:$0xff]  ;;  %v4755_v11 = vld [vmem:[#allocation4 + $0x4b8] sm:$0xff] }
  0x74   :  { %621 = vmatpush1.msra.mxu1 %v4737_v1  ;;  %552 = vmatpush1.msra.mxu0 %v4741_v52  ;;  %9501 = vst [vmem:[#allocation64_spill] sm:$0xff] %v4753_v7  ;;  %9502 = vst [vmem:[#allocation65_spill] sm:$0xff] %v4755_v11  ;;  %v4759_v1 = vld [vmem:[#allocation4 + $0x488] sm:$0xff]  ;;  %v4761_v52 = vld [vmem:[#allocation4 + $0x4b0] sm:$0xff] }
  0x75   :  { %622 = vmatprep.subr.mxu1 %v4743_v45  ;;  %553 = vmatprep.subr.mxu0 %v4747_v61  ;;  %9503 = vst [vmem:[#allocation66_spill] sm:$0xff] %v4759_v1  ;;  %9504 = vst [vmem:[#allocation67_spill] sm:$0xff] %v4761_v52  ;;  %v4765_v45 = vld [vmem:[#allocation4 + $0x480] sm:$0xff]  ;;  %v4767_v61 = vld [vmem:[#allocation4 + $0x498] sm:$0xff] }
  0x76   :  { %623 = vmatpush1.msra.mxu1 %v4749_v0  ;;  %554 = vmatpush1.msra.mxu0 %v4753_v7  ;;  %9505 = vst [vmem:[#allocation68_spill] sm:$0xff] %v4765_v45  ;;  %9506 = vst [vmem:[#allocation69_spill] sm:$0xff] %v4767_v61  ;;  %v4771_v0 = vld [vmem:[#allocation4 + $0x468] sm:$0xff]  ;;  %v4773_v7 = vld [vmem:[#allocation4 + $0x490] sm:$0xff] }
  0x77   :  { %624 = vmatprep.subr.mxu1 %v4755_v11  ;;  %555 = vmatprep.subr.mxu0 %v4759_v1  ;;  %9507 = vst [vmem:[#allocation70_spill] sm:$0xff] %v4771_v0  ;;  %9508 = vst [vmem:[#allocation71_spill] sm:$0xff] %v4773_v7  ;;  %v4777_v11 = vld [vmem:[#allocation4 + $0x460] sm:$0xff]  ;;  %v4779_v1 = vld [vmem:[#allocation4 + $0x478] sm:$0xff] }
  0x78   :  { %625 = vmatpush1.msra.mxu1 %v4761_v52  ;;  %556 = vmatpush1.msra.mxu0 %v4765_v45  ;;  %9509 = vst [vmem:[#allocation72_spill] sm:$0xff] %v4777_v11  ;;  %9510 = vst [vmem:[#allocation73_spill] sm:$0xff] %v4779_v1  ;;  %v4783_v52 = vld [vmem:[#allocation4 + $0x448] sm:$0xff]  ;;  %v4785_v45 = vld [vmem:[#allocation4 + $0x470] sm:$0xff] }
  0x79   :  { %626 = vmatprep.subr.mxu1 %v4767_v61  ;;  %557 = vmatprep.subr.mxu0 %v4771_v0  ;;  %9511 = vst [vmem:[#allocation74_spill] sm:$0xff] %v4783_v52  ;;  %9512 = vst [vmem:[#allocation75_spill] sm:$0xff] %v4785_v45  ;;  %v4789_v61 = vld [vmem:[#allocation4 + $0x440] sm:$0xff]  ;;  %v4791_v0 = vld [vmem:[#allocation4 + $0x458] sm:$0xff] }
  0x7a   :  { %627 = vmatpush1.msra.mxu1 %v4773_v7  ;;  %558 = vmatpush1.msra.mxu0 %v4777_v11  ;;  %9513 = vst [vmem:[#allocation76_spill] sm:$0xff] %v4789_v61  ;;  %9514 = vst [vmem:[#allocation77_spill] sm:$0xff] %v4791_v0  ;;  %v4795_v7 = vld [vmem:[#allocation4 + $0x428] sm:$0xff]  ;;  %v4797_v11 = vld [vmem:[#allocation4 + $0x450] sm:$0xff] }
  0x7b   :  { %628 = vmatprep.subr.mxu1 %v4779_v1  ;;  %559 = vmatprep.subr.mxu0 %v4783_v52  ;;  %9515 = vst [vmem:[#allocation78_spill] sm:$0xff] %v4795_v7  ;;  %9516 = vst [vmem:[#allocation79_spill] sm:$0xff] %v4797_v11  ;;  %v4801_v1 = vld [vmem:[#allocation4 + $0x420] sm:$0xff]  ;;  %v4803_v52 = vld [vmem:[#allocation4 + $0x438] sm:$0xff] }
  0x7c   :  { %629 = vmatpush1.msra.mxu1 %v4785_v45  ;;  %560 = vmatpush1.msra.mxu0 %v4789_v61  ;;  %9517 = vst [vmem:[#allocation80_spill] sm:$0xff] %v4801_v1  ;;  %9518 = vst [vmem:[#allocation81_spill] sm:$0xff] %v4803_v52  ;;  %v4807_v45 = vld [vmem:[#allocation4 + $0x408] sm:$0xff]  ;;  %v4809_v61 = vld [vmem:[#allocation4 + $0x430] sm:$0xff] }
  0x7d   :  { %630 = vmatprep.subr.mxu1 %v4791_v0  ;;  %561 = vmatprep.subr.mxu0 %v4795_v7  ;;  %9519 = vst [vmem:[#allocation82_spill] sm:$0xff] %v4807_v45  ;;  %9520 = vst [vmem:[#allocation83_spill] sm:$0xff] %v4809_v61  ;;  %v4813_v0 = vld [vmem:[#allocation4 + $0x400] sm:$0xff]  ;;  %v4815_v7 = vld [vmem:[#allocation4 + $0x418] sm:$0xff] }
  0x7e   :  { %631 = vmatpush1.msra.mxu1 %v4797_v11  ;;  %562 = vmatpush1.msra.mxu0 %v4801_v1  ;;  %9521 = vst [vmem:[#allocation84_spill] sm:$0xff] %v4813_v0  ;;  %9522 = vst [vmem:[#allocation85_spill] sm:$0xff] %v4815_v7  ;;  %v4819_v11 = vld [vmem:[#allocation4 + $0x7e8] sm:$0xff]  ;;  %v4821_v1 = vld [vmem:[#allocation4 + $0x410] sm:$0xff] }
  0x7f   :  { %632 = vmatprep.subr.mxu1 %v4803_v52  ;;  %563 = vmatprep.subr.mxu0 %v4807_v45  ;;  %9523 = vst [vmem:[#allocation86_spill] sm:$0xff] %v4819_v11  ;;  %9524 = vst [vmem:[#allocation87_spill] sm:$0xff] %v4821_v1  ;;  %v4825_v52 = vld [vmem:[#allocation4 + $0x7e0] sm:$0xff]  ;;  %v4827_v45 = vld [vmem:[#allocation4 + $0x7f8] sm:$0xff] }
  0x80   :  { %633 = vmatpush1.msra.mxu1 %v4809_v61  ;;  %564 = vmatpush1.msra.mxu0 %v4813_v0  ;;  %9525 = vst [vmem:[#allocation88_spill] sm:$0xff] %v4825_v52  ;;  %9526 = vst [vmem:[#allocation89_spill] sm:$0xff] %v4827_v45  ;;  %v4831_v61 = vld [vmem:[#allocation4 + $0x7c8] sm:$0xff]  ;;  %v4833_v0 = vld [vmem:[#allocation4 + $0x7f0] sm:$0xff] }
  0x81   :  { %634 = vmatprep.subr.mxu1 %v4815_v7  ;;  %565 = vmatprep.subr.mxu0 %v4819_v11  ;;  %9527 = vst [vmem:[#allocation90_spill] sm:$0xff] %v4831_v61  ;;  %9528 = vst [vmem:[#allocation91_spill] sm:$0xff] %v4833_v0  ;;  %v4837_v7 = vld [vmem:[#allocation4 + $0x7c0] sm:$0xff]  ;;  %v4839_v11 = vld [vmem:[#allocation4 + $0x7d8] sm:$0xff] }
  0x82   :  { %635 = vmatpush1.msra.mxu1 %v4821_v1  ;;  %566 = vmatpush2.msra.mxu0 %v4825_v52  ;;  %9529 = vst [vmem:[#allocation92_spill] sm:$0xff] %v4837_v7  ;;  %9530 = vst [vmem:[#allocation93_spill] sm:$0xff] %v4839_v11  ;;  %v4843_v1 = vld [vmem:[#allocation4 + $0x7a8] sm:$0xff]  ;;  %v4845_v52 = vld [vmem:[#allocation4 + $0x7d0] sm:$0xff] }
  0x83   :  { %636 = vmatprep.subr.mxu1 %v4827_v45  ;;  %567 = vmatprep.subr.mxu0 %v4831_v61  ;;  %9531 = vst [vmem:[#allocation94_spill] sm:$0xff] %v4843_v1  ;;  %9532 = vst [vmem:[#allocation95_spill] sm:$0xff] %v4845_v52  ;;  %v4849_v45 = vld [vmem:[#allocation4 + $0x7a0] sm:$0xff]  ;;  %v4851_v61 = vld [vmem:[#allocation4 + $0x7b8] sm:$0xff] }
  0x84   :  { %637 = vmatpush2.msra.mxu1 %v4833_v0  ;;  %568 = vmatpush2.msra.mxu0 %v4837_v7  ;;  %9533 = vst [vmem:[#allocation96_spill] sm:$0xff] %v4849_v45  ;;  %9534 = vst [vmem:[#allocation97_spill] sm:$0xff] %v4851_v61  ;;  %v4855_v0 = vld [vmem:[#allocation4 + $0x788] sm:$0xff]  ;;  %v4857_v7 = vld [vmem:[#allocation4 + $0x7b0] sm:$0xff] }
  0x85   :  { %638 = vmatprep.subr.mxu1 %v4839_v11  ;;  %569 = vmatprep.subr.mxu0 %v4843_v1  ;;  %9535 = vst [vmem:[#allocation98_spill] sm:$0xff] %v4855_v0  ;;  %9536 = vst [vmem:[#allocation99_spill] sm:$0xff] %v4857_v7  ;;  %v4861_v11 = vld [vmem:[#allocation4 + $0x780] sm:$0xff]  ;;  %v4863_v1 = vld [vmem:[#allocation4 + $0x798] sm:$0xff] }
  0x86   :  { %639 = vmatpush2.msra.mxu1 %v4845_v52  ;;  %570 = vmatpush2.msra.mxu0 %v4849_v45  ;;  %9537 = vst [vmem:[#allocation100_spill] sm:$0xff] %v4861_v11  ;;  %9538 = vst [vmem:[#allocation101_spill] sm:$0xff] %v4863_v1  ;;  %v4867_v52 = vld [vmem:[#allocation4 + $0x768] sm:$0xff]  ;;  %v4869_v45 = vld [vmem:[#allocation4 + $0x790] sm:$0xff] }
  0x87   :  { %640 = vmatprep.subr.mxu1 %v4851_v61  ;;  %571 = vmatprep.subr.mxu0 %v4855_v0  ;;  %9539 = vst [vmem:[#allocation102_spill] sm:$0xff] %v4867_v52  ;;  %9540 = vst [vmem:[#allocation103_spill] sm:$0xff] %v4869_v45  ;;  %v4873_v61 = vld [vmem:[#allocation4 + $0x760] sm:$0xff]  ;;  %v4875_v0 = vld [vmem:[#allocation4 + $0x778] sm:$0xff] }
  0x88   :  { %641 = vmatpush2.msra.mxu1 %v4857_v7  ;;  %572 = vmatpush2.msra.mxu0 %v4861_v11  ;;  %9541 = vst [vmem:[#allocation104_spill] sm:$0xff] %v4873_v61  ;;  %9542 = vst [vmem:[#allocation105_spill] sm:$0xff] %v4875_v0  ;;  %v4879_v7 = vld [vmem:[#allocation4 + $0x748] sm:$0xff]  ;;  %v4881_v11 = vld [vmem:[#allocation4 + $0x770] sm:$0xff] }
  0x89   :  { %642 = vmatprep.subr.mxu1 %v4863_v1  ;;  %573 = vmatprep.subr.mxu0 %v4867_v52  ;;  %9543 = vst [vmem:[#allocation106_spill] sm:$0xff] %v4879_v7  ;;  %9544 = vst [vmem:[#allocation107_spill] sm:$0xff] %v4881_v11  ;;  %v4885_v1 = vld [vmem:[#allocation4 + $0x740] sm:$0xff]  ;;  %v4887_v52 = vld [vmem:[#allocation4 + $0x758] sm:$0xff] }
  0x8a   :  { %643 = vmatpush2.msra.mxu1 %v4869_v45  ;;  %574 = vmatpush2.msra.mxu0 %v4873_v61  ;;  %9545 = vst [vmem:[#allocation108_spill] sm:$0xff] %v4885_v1  ;;  %9546 = vst [vmem:[#allocation109_spill] sm:$0xff] %v4887_v52  ;;  %v4891_v45 = vld [vmem:[#allocation4 + $0x728] sm:$0xff]  ;;  %v4893_v61 = vld [vmem:[#allocation4 + $0x750] sm:$0xff] }
  0x8b   :  { %644 = vmatprep.subr.mxu1 %v4875_v0  ;;  %575 = vmatprep.subr.mxu0 %v4879_v7  ;;  %9547 = vst [vmem:[#allocation110_spill] sm:$0xff] %v4891_v45  ;;  %9548 = vst [vmem:[#allocation111_spill] sm:$0xff] %v4893_v61  ;;  %v4897_v0 = vld [vmem:[#allocation4 + $0x720] sm:$0xff]  ;;  %v4899_v7 = vld [vmem:[#allocation4 + $0x738] sm:$0xff] }
  0x8c   :  { %645 = vmatpush2.msra.mxu1 %v4881_v11  ;;  %576 = vmatpush2.msra.mxu0 %v4885_v1  ;;  %9549 = vst [vmem:[#allocation112_spill] sm:$0xff] %v4897_v0  ;;  %9550 = vst [vmem:[#allocation113_spill] sm:$0xff] %v4899_v7  ;;  %v4903_v11 = vld [vmem:[#allocation4 + $0x708] sm:$0xff]  ;;  %v4905_v1 = vld [vmem:[#allocation4 + $0x730] sm:$0xff] }
  0x8d   :  { %646 = vmatprep.subr.mxu1 %v4887_v52  ;;  %577 = vmatprep.subr.mxu0 %v4891_v45  ;;  %9551 = vst [vmem:[#allocation114_spill] sm:$0xff] %v4903_v11  ;;  %9552 = vst [vmem:[#allocation115_spill] sm:$0xff] %v4905_v1  ;;  %v4909_v52 = vld [vmem:[#allocation4 + $0x700] sm:$0xff]  ;;  %v4911_v45 = vld [vmem:[#allocation4 + $0x718] sm:$0xff] }
  0x8e   :  { %647 = vmatpush2.msra.mxu1 %v4893_v61  ;;  %578 = vmatpush2.msra.mxu0 %v4897_v0  ;;  %9553 = vst [vmem:[#allocation116_spill] sm:$0xff] %v4909_v52  ;;  %9554 = vst [vmem:[#allocation117_spill] sm:$0xff] %v4911_v45  ;;  %v4915_v61 = vld [vmem:[#allocation4 + $0x6e8] sm:$0xff]  ;;  %v4917_v0 = vld [vmem:[#allocation4 + $0x710] sm:$0xff] }
  0x8f   :  { %648 = vmatprep.subr.mxu1 %v4899_v7  ;;  %579 = vmatprep.subr.mxu0 %v4903_v11  ;;  %9555 = vst [vmem:[#allocation118_spill] sm:$0xff] %v4915_v61  ;;  %9556 = vst [vmem:[#allocation119_spill] sm:$0xff] %v4917_v0  ;;  %v4921_v7 = vld [vmem:[#allocation4 + $0x6e0] sm:$0xff]  ;;  %v4923_v11 = vld [vmem:[#allocation4 + $0x6f8] sm:$0xff] }
  0x90   :  { %649 = vmatpush2.msra.mxu1 %v4905_v1  ;;  %580 = vmatpush2.msra.mxu0 %v4909_v52  ;;  %9557 = vst [vmem:[#allocation120_spill] sm:$0xff] %v4921_v7  ;;  %9558 = vst [vmem:[#allocation121_spill] sm:$0xff] %v4923_v11  ;;  %v4927_v1 = vld [vmem:[#allocation4 + $0x6c8] sm:$0xff]  ;;  %v4929_v52 = vld [vmem:[#allocation4 + $0x6f0] sm:$0xff] }
  0x91   :  { %650 = vmatprep.subr.mxu1 %v4911_v45  ;;  %581 = vmatprep.subr.mxu0 %v4915_v61  ;;  %9559 = vst [vmem:[#allocation122_spill] sm:$0xff] %v4927_v1  ;;  %9560 = vst [vmem:[#allocation123_spill] sm:$0xff] %v4929_v52  ;;  %v4933_v45 = vld [vmem:[#allocation4 + $0x6c0] sm:$0xff]  ;;  %v4935_v61 = vld [vmem:[#allocation4 + $0x6d8] sm:$0xff] }
  0x92   :  { %651 = vmatpush2.msra.mxu1 %v4917_v0  ;;  %582 = vmatpush2.msra.mxu0 %v4921_v7  ;;  %9561 = vst [vmem:[#allocation124_spill] sm:$0xff] %v4933_v45  ;;  %9562 = vst [vmem:[#allocation125_spill] sm:$0xff] %v4935_v61  ;;  %v4939_v0 = vld [vmem:[#allocation4 + $0x6a8] sm:$0xff]  ;;  %v4941_v7 = vld [vmem:[#allocation4 + $0x6d0] sm:$0xff] }
  0x93   :  { %652 = vmatprep.subr.mxu1 %v4923_v11  ;;  %583 = vmatprep.subr.mxu0 %v4927_v1  ;;  %9563 = vst [vmem:[#allocation126_spill] sm:$0xff] %v4939_v0  ;;  %9564 = vst [vmem:[#allocation127_spill] sm:$0xff] %v4941_v7  ;;  %v4945_v11 = vld [vmem:[#allocation4 + $0x6a0] sm:$0xff]  ;;  %v4947_v1 = vld [vmem:[#allocation4 + $0x6b8] sm:$0xff] }
  0x94   :  { %653 = vmatpush2.msra.mxu1 %v4929_v52  ;;  %584 = vmatpush2.msra.mxu0 %v4933_v45  ;;  %9565 = vst [vmem:[#allocation128_spill] sm:$0xff] %v4945_v11  ;;  %9566 = vst [vmem:[#allocation129_spill] sm:$0xff] %v4947_v1  ;;  %v4951_v52 = vld [vmem:[#allocation4 + $0x688] sm:$0xff]  ;;  %v4953_v45 = vld [vmem:[#allocation4 + $0x6b0] sm:$0xff] }
  0x95   :  { %654 = vmatprep.subr.mxu1 %v4935_v61  ;;  %585 = vmatprep.subr.mxu0 %v4939_v0  ;;  %9567 = vst [vmem:[#allocation130_spill] sm:$0xff] %v4951_v52  ;;  %9568 = vst [vmem:[#allocation131_spill] sm:$0xff] %v4953_v45  ;;  %v4957_v61 = vld [vmem:[#allocation4 + $0x680] sm:$0xff]  ;;  %v4959_v0 = vld [vmem:[#allocation4 + $0x698] sm:$0xff] }
  0x96   :  { %655 = vmatpush2.msra.mxu1 %v4941_v7  ;;  %586 = vmatpush2.msra.mxu0 %v4945_v11  ;;  %9569 = vst [vmem:[#allocation132_spill] sm:$0xff] %v4957_v61  ;;  %9570 = vst [vmem:[#allocation133_spill] sm:$0xff] %v4959_v0  ;;  %v4963_v7 = vld [vmem:[#allocation4 + $0x668] sm:$0xff]  ;;  %v4965_v11 = vld [vmem:[#allocation4 + $0x690] sm:$0xff] }
  0x97   :  { %656 = vmatprep.subr.mxu1 %v4947_v1  ;;  %587 = vmatprep.subr.mxu0 %v4951_v52  ;;  %9571 = vst [vmem:[#allocation134_spill] sm:$0xff] %v4963_v7  ;;  %9572 = vst [vmem:[#allocation135_spill] sm:$0xff] %v4965_v11  ;;  %v4969_v1 = vld [vmem:[#allocation4 + $0x660] sm:$0xff]  ;;  %v4971_v52 = vld [vmem:[#allocation4 + $0x678] sm:$0xff] }
  0x98   :  { %657 = vmatpush2.msra.mxu1 %v4953_v45  ;;  %588 = vmatpush2.msra.mxu0 %v4957_v61  ;;  %9573 = vst [vmem:[#allocation136_spill] sm:$0xff] %v4969_v1  ;;  %9574 = vst [vmem:[#allocation137_spill] sm:$0xff] %v4971_v52  ;;  %v4975_v45 = vld [vmem:[#allocation4 + $0x648] sm:$0xff]  ;;  %v4977_v61 = vld [vmem:[#allocation4 + $0x670] sm:$0xff] }
  0x99   :  { %658 = vmatprep.subr.mxu1 %v4959_v0  ;;  %589 = vmatprep.subr.mxu0 %v4963_v7  ;;  %9575 = vst [vmem:[#allocation138_spill] sm:$0xff] %v4975_v45  ;;  %9576 = vst [vmem:[#allocation139_spill] sm:$0xff] %v4977_v61  ;;  %v4981_v0 = vld [vmem:[#allocation4 + $0x640] sm:$0xff]  ;;  %v4983_v7 = vld [vmem:[#allocation4 + $0x658] sm:$0xff] }
  0x9a   :  { %659 = vmatpush2.msra.mxu1 %v4965_v11  ;;  %590 = vmatpush2.msra.mxu0 %v4969_v1  ;;  %9577 = vst [vmem:[#allocation140_spill] sm:$0xff] %v4981_v0  ;;  %9578 = vst [vmem:[#allocation141_spill] sm:$0xff] %v4983_v7  ;;  %v4987_v11 = vld [vmem:[#allocation4 + $0x628] sm:$0xff]  ;;  %v4989_v1 = vld [vmem:[#allocation4 + $0x650] sm:$0xff] }
  0x9b   :  { %660 = vmatprep.subr.mxu1 %v4971_v52  ;;  %591 = vmatprep.subr.mxu0 %v4975_v45  ;;  %9579 = vst [vmem:[#allocation142_spill] sm:$0xff] %v4987_v11  ;;  %9580 = vst [vmem:[#allocation143_spill] sm:$0xff] %v4989_v1  ;;  %v4991_v52 = vld [vmem:[#allocation4 + $0x620] sm:$0xff]  ;;  %v4995_v45 = vld [vmem:[#allocation4 + $0x638] sm:$0xff] }
  0x9c   :  { %661 = vmatpush2.msra.mxu1 %v4977_v61  ;;  %592 = vmatpush2.msra.mxu0 %v4981_v0  ;;  %9581 = vst [vmem:[#allocation144_spill] sm:$0xff] %v4991_v52  ;;  %9582 = vst [vmem:[#allocation145_spill] sm:$0xff] %v4995_v45  ;;  %v4997_v61 = vld [vmem:[#allocation4 + $0x608] sm:$0xff]  ;;  %v5005_v0 = vld [vmem:[#allocation4 + $0x618] sm:$0xff] }
  0x9d   :  { %662 = vmatprep.subr.mxu1 %v4983_v7  ;;  %593 = vmatprep.subr.mxu0 %v4987_v11  ;;  %9583 = vst [vmem:[#allocation146_spill] sm:$0xff] %v4997_v61  ;;  %9584 = vst [vmem:[#allocation147_spill] sm:$0xff] %v4999_v3  ;;  %v5003_v7 = vld [vmem:[#allocation4 + $0x600] sm:$0xff] }
  0x9e   :  { %663 = vmatpush2.msra.mxu1 %v4989_v1  ;;  %594 = vmatpush2.msra.mxu0 %v4991_v52  ;;  %9585 = vst [vmem:[#allocation148_spill] sm:$0xff] %v5003_v7  ;;  %9586 = vst [vmem:[#allocation149_spill] sm:$0xff] %v5005_v0  ;;  %v5014_v1 = vld [vmem:[#allocation4 + $0x1e8] sm:$0xff] }
  0x9f   :  { %664 = vmatprep.subr.mxu1 %v4995_v45  ;;  %595 = vmatprep.subr.mxu0 %v4997_v61  ;;  %9588 = vst [vmem:[#allocation151_spill] sm:$0xff] %v5014_v1  ;;  %v45_v45 = vlaneseq }
  0xa0   :  { %665 = vmatpush2.msra.mxu1 %v4999_v3  ;;  %596 = vmatpush2.msra.mxu0 %v5003_v7  ;;  %v195_v3 = vld [vmem:[%s8698_s3] sm:$0xf] }
  0xa1   :  { %666 = vmatprep.subr.mxu1 %v5005_v0  ;;  %707 = vmatprep.subr.mxu0 %v5014_v1  ;;  %v5018_v52 = vshrl.u32 %v45_v45, 7 }
  0xa2   :  { %667 = vmatpush2.msra.mxu1 %v5007_v55 }
  0xa3   :  { %778 = vmatprep.subr.mxu1 %v4450_v13  ;;  %v8840_v11 = vsub.s32 0, %v5018_v52  ;;  %v8843_v55 = vsub.s32 1, %v5018_v52  ;;  %v8850_v54 = vsub.s32 2, %v5018_v52  ;;  %vm47_vm1 = vcmp.eq.s32.totalorder %v5018_v52, 0 }
  0xa4   :  { %vm51_vm2 = vcmp.eq.s32.totalorder %v5018_v52, 1 }
  0xa5   :  { %v5026_v0 = vrot.slane %v195_v3, %v8840_v11  ;;  %v5032_v13 = vrot.slane %v195_v3, %v8843_v55  ;;  %v8848_v11 = vsub.s32 3, %v5018_v52 }
  0xa7   :  { %9589 = vst [vmem:[#allocation152_spill] sm:$0xff] %v5026_v0  ;;  %9590 = vst [vmem:[#allocation153_spill] sm:$0xff] %v5032_v13 }
 0x120   :  { %v283_v7 = vpop.f32.mrf.mxu0 }
 0x121   :  { %v284_v1 = vadd.f32 %v283_v7, %v5026_v0 }
 0x122   :  { %v285_v45 = vpop.f32.mrf.mxu0  ;;  %v354_v9 = vpop.f32.mrf.mxu1 }
 0x123   :  { %v3210_v61 = vmul.f32 -1.442695, %v284_v1  ;;  %v286_v16 = vadd.f32 %v285_v45, %v5032_v13  ;;  %v5039_v1 = vrot.slane %v195_v3, %v8848_v11  ;;  %v49_v13 = vstv %s48_s17 }
 0x124   :  { %v356_v55 = vpop.f32.mrf.mxu1  ;;  %v50_v11 = vsel %vm47_vm1, %v49_v13, 0 }
 0x125   :  { %3311 = vpow2.f32 %v3210_v61  ;;  %v3211_v59 = vmul.f32 -1.442695, %v286_v16  ;;  %v5043_v16 = vrot.slane %v195_v3, %v8850_v54 }
 0x127   :  { %3313 = vpow2.f32 %v3211_v59  ;;  %9591 = vst [vmem:[#allocation154_spill] sm:$0xff] %v5043_v16 }
 0x132   :  { %v3312_v14 = vpop.eup %3311 }
 0x133   :  { %v362_v57 = vadd.f32 1.0, %v3312_v14  ;;  %v355_v14 = vadd.f32 %v354_v9, %v5043_v16 }
 0x134   :  { %v3314_v7 = vpop.eup %3313 }
 0x135   :  { %3315 = vrcp.f32 %v362_v57  ;;  %v368_v61 = vadd.f32 1.0, %v3314_v7  ;;  %v357_v57 = vadd.f32 %v356_v55, %v5039_v1  ;;  %v53_v7 = vstv %s3208_s18 }
 0x136   :  { %v5049_v5 = vsel %vm51_vm2, %v53_v7, %v50_v11  ;;  %v9592_v55 = vmov 0.0   ;;  %v5068_v7 = vld [vmem:[#allocation4 + $0x1c8] sm:$0xff] }
 0x137   :  { %3317 = vrcp.f32 %v368_v61  ;;  %vm55_vm3 = vcmp.gt.s32.totalorder %v5049_v5, 0  ;;  %vm696_vm4 = vcmp.gt.s32.totalorder %v5049_v5, 1  ;;  %vm1035_vm5 = vcmp.gt.s32.totalorder %v5049_v5, 2 }
 0x138   :  { %v5053_v54 = vsel %vm55_vm3, 1.0, %v9592_v55  ;;  %vm1374_vm6 = vcmp.gt.s32.totalorder %v5049_v5, 3  ;;  %vm1713_vm7 = vcmp.gt.s32.totalorder %v5049_v5, 4  ;;  %vm2052_vm8 = vcmp.gt.s32.totalorder %v5049_v5, 5 }
 0x139   :  { %v58_v9 = vsub.f32 1.0, %v5053_v54  ;;  %vm2391_vm9 = vcmp.gt.s32.totalorder %v5049_v5, 6  ;;  %vm2730_vm10 = vcmp.gt.s32.totalorder %v5049_v5, 7  ;;  %v3084_v5 = vld [vmem:[%s8699_s4 + $0x78] sm:$0xff] }
 0x142   :  { %v3316_v59 = vpop.eup %3315 }
 0x143   :  { %v371_v45 = vmul.f32 %v3316_v59, %v357_v57 }
 0x144   :  { %v3318_v3 = vpop.eup %3317 }
 0x145   :  { %v372_v0 = vadd.f32 %v371_v45, %v355_v14  ;;  %v374_v61 = vsub.f32 1.0, %v3318_v3  ;;  %v376_v59 = vmul.f32 0.0, %v3318_v3  ;;  %v5064_v45 = vld [vmem:[#allocation4 + $0x1e0] sm:$0xff]  ;;  %v5075_v3 = vld [vmem:[#allocation4 + $0x1f0] sm:$0xff] }
 0x147   :  { %3319 = vtanh.f32 %v372_v0  ;;  %v5056_v0 = vmul.f32 0.0, %v58_v9  ;;  %v5081_v9 = vld [vmem:[#allocation4 + $0x1d8] sm:$0xff] }
 0x148   :  { %9594 = vst [vmem:[#allocation156_spill] sm:$0xff] %v5081_v9 }
 0x154   :  { %v3320_v57 = vpop.eup %3319 }
 0x155   :  { %v375_v16 = vmul.f32 %v3320_v57, %v374_v61  ;;  %v5078_v61 = vld [vmem:[#allocation4 + $0x1a8] sm:$0xff]  ;;  %v5084_v57 = vld [vmem:[#allocation4 + $0x1a0] sm:$0xff] }
 0x156   :  { %9593 = vst [vmem:[#allocation155_spill] sm:$0xff] %v5078_v61  ;;  %9595 = vst [vmem:[#allocation157_spill] sm:$0xff] %v5084_v57 }
 0x157   :  { %v377_v14 = vadd.f32 %v376_v59, %v375_v16  ;;  %v5072_v16 = vld [vmem:[#allocation4 + $0x1c0] sm:$0xff]  ;;  %v5087_v59 = vld [vmem:[#allocation4 + $0x1d0] sm:$0xff] }
 0x158   :  { %9596 = vst [vmem:[#allocation158_spill] sm:$0xff] %v5087_v59 }
 0x159   :  { %v378_v13 = vmul.f32 %v5053_v54, %v377_v14  ;;  %v5090_v14 = vld [vmem:[#allocation4 + $0x188] sm:$0xff] }
 0x15a   :  { %9597 = vst [vmem:[#allocation159_spill] sm:$0xff] %v5090_v14 }
 0x15b   :  { %v5060_v11 = vadd.f32 %v5056_v0, %v378_v13  ;;  %v5093_v13 = vld [vmem:[#allocation4 + $0x1b8] sm:$0xff] }
 0x15c   :  { %9598 = vst [vmem:[#allocation160_spill] sm:$0xff] %v5093_v13 }
 0x15d   :  { %598 = vmatmul.mubr.f32.vlgmr.msra.gmra.mxu0 %v5060_v11  ;;  %669 = vmatmul.mubr.f32.vlgmr.msra.gmra.mxu1 %v5060_v11 }
 0x15e   :  { %708 = vmatpush1.msra.mxu0 %v5064_v45  ;;  %771 = vmatprep.mubr.f32.mxu0 %v5060_v11 }
 0x15f   :  { %709 = vmatprep.subr.mxu0 %v5068_v7  ;;  %842 = vmatprep.mubr.f32.mxu1 %v5060_v11 }
 0x160   :  { %710 = vmatpush1.msra.mxu0 %v5072_v16  ;;  %779 = vmatpush1.msra.mxu1 %v5075_v3 }
 0x161   :  { %711 = vmatprep.subr.mxu0 %v5078_v61  ;;  %780 = vmatprep.subr.mxu1 %v5081_v9  ;;  %v5096_v61 = vld [vmem:[#allocation4 + $0x180] sm:$0xff]  ;;  %v5099_v9 = vld [vmem:[#allocation4 + $0x1b0] sm:$0xff] }
 0x162   :  { %712 = vmatpush1.msra.mxu0 %v5084_v57  ;;  %781 = vmatpush1.msra.mxu1 %v5087_v59  ;;  %9599 = vst [vmem:[#allocation161_spill] sm:$0xff] %v5096_v61  ;;  %9600 = vst [vmem:[#allocation162_spill] sm:$0xff] %v5099_v9  ;;  %v5102_v57 = vld [vmem:[#allocation4 + $0x168] sm:$0xff]  ;;  %v5105_v59 = vld [vmem:[#allocation4 + $0x198] sm:$0xff] }
 0x163   :  { %713 = vmatprep.subr.mxu0 %v5090_v14  ;;  %782 = vmatprep.subr.mxu1 %v5093_v13  ;;  %9601 = vst [vmem:[#allocation163_spill] sm:$0xff] %v5102_v57  ;;  %9602 = vst [vmem:[#allocation164_spill] sm:$0xff] %v5105_v59  ;;  %v5108_v14 = vld [vmem:[#allocation4 + $0x160] sm:$0xff]  ;;  %v5111_v13 = vld [vmem:[#allocation4 + $0x190] sm:$0xff] }
 0x164   :  { %714 = vmatpush1.msra.mxu0 %v5096_v61  ;;  %783 = vmatpush1.msra.mxu1 %v5099_v9  ;;  %9603 = vst [vmem:[#allocation165_spill] sm:$0xff] %v5108_v14  ;;  %9604 = vst [vmem:[#allocation166_spill] sm:$0xff] %v5111_v13  ;;  %v5114_v61 = vld [vmem:[#allocation4 + $0x148] sm:$0xff]  ;;  %v5117_v9 = vld [vmem:[#allocation4 + $0x178] sm:$0xff] }
 0x165   :  { %715 = vmatprep.subr.mxu0 %v5102_v57  ;;  %784 = vmatprep.subr.mxu1 %v5105_v59  ;;  %9605 = vst [vmem:[#allocation167_spill] sm:$0xff] %v5114_v61  ;;  %9606 = vst [vmem:[#allocation168_spill] sm:$0xff] %v5117_v9  ;;  %v5120_v57 = vld [vmem:[#allocation4 + $0x140] sm:$0xff]  ;;  %v5123_v59 = vld [vmem:[#allocation4 + $0x170] sm:$0xff] }
 0x166   :  { %716 = vmatpush1.msra.mxu0 %v5108_v14  ;;  %785 = vmatpush1.msra.mxu1 %v5111_v13  ;;  %9607 = vst [vmem:[#allocation169_spill] sm:$0xff] %v5120_v57  ;;  %9608 = vst [vmem:[#allocation170_spill] sm:$0xff] %v5123_v59  ;;  %v5126_v14 = vld [vmem:[#allocation4 + $0x128] sm:$0xff]  ;;  %v5129_v13 = vld [vmem:[#allocation4 + $0x158] sm:$0xff] }
 0x167   :  { %717 = vmatprep.subr.mxu0 %v5114_v61  ;;  %786 = vmatprep.subr.mxu1 %v5117_v9  ;;  %9609 = vst [vmem:[#allocation171_spill] sm:$0xff] %v5126_v14  ;;  %9610 = vst [vmem:[#allocation172_spill] sm:$0xff] %v5129_v13  ;;  %v5132_v61 = vld [vmem:[#allocation4 + $0x120] sm:$0xff]  ;;  %v5135_v9 = vld [vmem:[#allocation4 + $0x150] sm:$0xff] }
 0x168   :  { %718 = vmatpush1.msra.mxu0 %v5120_v57  ;;  %787 = vmatpush1.msra.mxu1 %v5123_v59  ;;  %9611 = vst [vmem:[#allocation173_spill] sm:$0xff] %v5132_v61  ;;  %9612 = vst [vmem:[#allocation174_spill] sm:$0xff] %v5135_v9  ;;  %v5138_v57 = vld [vmem:[#allocation4 + $0x108] sm:$0xff]  ;;  %v5141_v59 = vld [vmem:[#allocation4 + $0x138] sm:$0xff] }
 0x169   :  { %719 = vmatprep.subr.mxu0 %v5126_v14  ;;  %788 = vmatprep.subr.mxu1 %v5129_v13  ;;  %9613 = vst [vmem:[#allocation175_spill] sm:$0xff] %v5138_v57  ;;  %9614 = vst [vmem:[#allocation176_spill] sm:$0xff] %v5141_v59  ;;  %v5144_v14 = vld [vmem:[#allocation4 + $0x100] sm:$0xff]  ;;  %v5147_v13 = vld [vmem:[#allocation4 + $0x130] sm:$0xff] }
 0x16a   :  { %720 = vmatpush1.msra.mxu0 %v5132_v61  ;;  %789 = vmatpush1.msra.mxu1 %v5135_v9  ;;  %9615 = vst [vmem:[#allocation177_spill] sm:$0xff] %v5144_v14  ;;  %9616 = vst [vmem:[#allocation178_spill] sm:$0xff] %v5147_v13  ;;  %v5150_v61 = vld [vmem:[#allocation4 + $0xe8] sm:$0xff]  ;;  %v5153_v9 = vld [vmem:[#allocation4 + $0x118] sm:$0xff] }
 0x16b   :  { %721 = vmatprep.subr.mxu0 %v5138_v57  ;;  %790 = vmatprep.subr.mxu1 %v5141_v59  ;;  %9617 = vst [vmem:[#allocation179_spill] sm:$0xff] %v5150_v61  ;;  %9618 = vst [vmem:[#allocation180_spill] sm:$0xff] %v5153_v9  ;;  %v5156_v57 = vld [vmem:[#allocation4 + $0xe0] sm:$0xff]  ;;  %v5159_v59 = vld [vmem:[#allocation4 + $0x110] sm:$0xff] }
 0x16c   :  { %722 = vmatpush1.msra.mxu0 %v5144_v14  ;;  %791 = vmatpush1.msra.mxu1 %v5147_v13  ;;  %9619 = vst [vmem:[#allocation181_spill] sm:$0xff] %v5156_v57  ;;  %9620 = vst [vmem:[#allocation182_spill] sm:$0xff] %v5159_v59  ;;  %v5162_v14 = vld [vmem:[#allocation4 + $0xc8] sm:$0xff]  ;;  %v5165_v13 = vld [vmem:[#allocation4 + $0xf8] sm:$0xff] }
 0x16d   :  { %723 = vmatprep.subr.mxu0 %v5150_v61  ;;  %792 = vmatprep.subr.mxu1 %v5153_v9  ;;  %9621 = vst [vmem:[#allocation183_spill] sm:$0xff] %v5162_v14  ;;  %9622 = vst [vmem:[#allocation184_spill] sm:$0xff] %v5165_v13  ;;  %v5168_v61 = vld [vmem:[#allocation4 + $0xc0] sm:$0xff]  ;;  %v5171_v9 = vld [vmem:[#allocation4 + $0xf0] sm:$0xff] }
 0x16e   :  { %724 = vmatpush1.msra.mxu0 %v5156_v57  ;;  %793 = vmatpush1.msra.mxu1 %v5159_v59  ;;  %9623 = vst [vmem:[#allocation185_spill] sm:$0xff] %v5168_v61  ;;  %9624 = vst [vmem:[#allocation186_spill] sm:$0xff] %v5171_v9  ;;  %v5174_v57 = vld [vmem:[#allocation4 + $0xa8] sm:$0xff]  ;;  %v5177_v59 = vld [vmem:[#allocation4 + $0xd8] sm:$0xff] }
 0x16f   :  { %725 = vmatprep.subr.mxu0 %v5162_v14  ;;  %794 = vmatprep.subr.mxu1 %v5165_v13  ;;  %9625 = vst [vmem:[#allocation187_spill] sm:$0xff] %v5174_v57  ;;  %9626 = vst [vmem:[#allocation188_spill] sm:$0xff] %v5177_v59  ;;  %v5180_v14 = vld [vmem:[#allocation4 + $0xa0] sm:$0xff]  ;;  %v5183_v13 = vld [vmem:[#allocation4 + $0xd0] sm:$0xff] }
 0x170   :  { %726 = vmatpush1.msra.mxu0 %v5168_v61  ;;  %795 = vmatpush1.msra.mxu1 %v5171_v9  ;;  %9627 = vst [vmem:[#allocation189_spill] sm:$0xff] %v5180_v14  ;;  %9628 = vst [vmem:[#allocation190_spill] sm:$0xff] %v5183_v13  ;;  %v5186_v61 = vld [vmem:[#allocation4 + $0x88] sm:$0xff]  ;;  %v5189_v9 = vld [vmem:[#allocation4 + $0xb8] sm:$0xff] }
 0x171   :  { %727 = vmatprep.subr.mxu0 %v5174_v57  ;;  %796 = vmatprep.subr.mxu1 %v5177_v59  ;;  %9629 = vst [vmem:[#allocation191_spill] sm:$0xff] %v5186_v61  ;;  %9630 = vst [vmem:[#allocation192_spill] sm:$0xff] %v5189_v9  ;;  %v5192_v57 = vld [vmem:[#allocation4 + $0x80] sm:$0xff]  ;;  %v5195_v59 = vld [vmem:[#allocation4 + $0xb0] sm:$0xff] }
 0x172   :  { %728 = vmatpush1.msra.mxu0 %v5180_v14  ;;  %797 = vmatpush1.msra.mxu1 %v5183_v13  ;;  %9631 = vst [vmem:[#allocation193_spill] sm:$0xff] %v5192_v57  ;;  %9632 = vst [vmem:[#allocation194_spill] sm:$0xff] %v5195_v59  ;;  %v5198_v14 = vld [vmem:[#allocation4 + $0x68] sm:$0xff]  ;;  %v5201_v13 = vld [vmem:[#allocation4 + $0x98] sm:$0xff] }
 0x173   :  { %729 = vmatprep.subr.mxu0 %v5186_v61  ;;  %798 = vmatprep.subr.mxu1 %v5189_v9  ;;  %9633 = vst [vmem:[#allocation195_spill] sm:$0xff] %v5198_v14  ;;  %9634 = vst [vmem:[#allocation196_spill] sm:$0xff] %v5201_v13  ;;  %v5204_v61 = vld [vmem:[#allocation4 + $0x60] sm:$0xff]  ;;  %v5207_v9 = vld [vmem:[#allocation4 + $0x90] sm:$0xff] }
 0x174   :  { %730 = vmatpush1.msra.mxu0 %v5192_v57  ;;  %799 = vmatpush1.msra.mxu1 %v5195_v59  ;;  %9635 = vst [vmem:[#allocation197_spill] sm:$0xff] %v5204_v61  ;;  %9636 = vst [vmem:[#allocation198_spill] sm:$0xff] %v5207_v9  ;;  %v5210_v57 = vld [vmem:[#allocation4 + $0x48] sm:$0xff]  ;;  %v5213_v59 = vld [vmem:[#allocation4 + $0x78] sm:$0xff] }
 0x175   :  { %731 = vmatprep.subr.mxu0 %v5198_v14  ;;  %800 = vmatprep.subr.mxu1 %v5201_v13  ;;  %9637 = vst [vmem:[#allocation199_spill] sm:$0xff] %v5210_v57  ;;  %9638 = vst [vmem:[#allocation200_spill] sm:$0xff] %v5213_v59  ;;  %v5216_v14 = vld [vmem:[#allocation4 + $0x40] sm:$0xff]  ;;  %v5219_v13 = vld [vmem:[#allocation4 + $0x70] sm:$0xff] }
 0x176   :  { %732 = vmatpush1.msra.mxu0 %v5204_v61  ;;  %801 = vmatpush1.msra.mxu1 %v5207_v9  ;;  %9639 = vst [vmem:[#allocation201_spill] sm:$0xff] %v5216_v14  ;;  %9640 = vst [vmem:[#allocation202_spill] sm:$0xff] %v5219_v13  ;;  %v5222_v61 = vld [vmem:[#allocation4 + $0x28] sm:$0xff]  ;;  %v5225_v9 = vld [vmem:[#allocation4 + $0x58] sm:$0xff] }
 0x177   :  { %733 = vmatprep.subr.mxu0 %v5210_v57  ;;  %802 = vmatprep.subr.mxu1 %v5213_v59  ;;  %9641 = vst [vmem:[#allocation203_spill] sm:$0xff] %v5225_v9  ;;  %v5228_v57 = vld [vmem:[#allocation4 + $0x20] sm:$0xff]  ;;  %v5231_v59 = vld [vmem:[#allocation4 + $0x50] sm:$0xff] }
 0x178   :  { %734 = vmatpush1.msra.mxu0 %v5216_v14  ;;  %803 = vmatpush1.msra.mxu1 %v5219_v13  ;;  %9642 = vst [vmem:[#allocation204_spill] sm:$0xff] %v5228_v57  ;;  %v5234_v14 = vld [vmem:[#allocation4 + $0x8] sm:$0xff]  ;;  %v5238_v13 = vld [vmem:[#allocation4] sm:$0xff] }
 0x179   :  { %735 = vmatprep.subr.mxu0 %v5222_v61  ;;  %804 = vmatprep.subr.mxu1 %v5225_v9  ;;  %9643 = vst [vmem:[#allocation205_spill] sm:$0xff] %v5234_v14  ;;  %v5242_v9 = vld [vmem:[#allocation4 + $0x3e8] sm:$0xff] }
 0x17a   :  { %736 = vmatpush1.msra.mxu0 %v5228_v57  ;;  %805 = vmatpush1.msra.mxu1 %v5231_v59  ;;  %v5246_v57 = vld [vmem:[#allocation4 + $0x3e0] sm:$0xff] }
 0x17b   :  { %737 = vmatprep.subr.mxu0 %v5234_v14  ;;  %806 = vmatprep.subr.mxu1 %v4453_v4  ;;  %v5250_v14 = vld [vmem:[#allocation4 + $0x3c8] sm:$0xff]  ;;  %v5254_v4 = vld [vmem:[#allocation4 + $0x3c0] sm:$0xff] }
 0x17c   :  { %738 = vmatpush1.msra.mxu0 %v5238_v13  ;;  %807 = vmatpush1.msra.mxu1 %v4455_v6  ;;  %v5258_v6 = vld [vmem:[#allocation4 + $0x3a8] sm:$0xff] }
 0x17d   :  { %739 = vmatprep.subr.mxu0 %v5242_v9  ;;  %808 = vmatprep.subr.mxu1 %v4457_v8  ;;  %v5262_v8 = vld [vmem:[#allocation4 + $0x3a0] sm:$0xff] }
 0x17e   :  { %740 = vmatpush2.msra.mxu0 %v5246_v57  ;;  %809 = vmatpush1.msra.mxu1 %v4460_v10  ;;  %v5266_v10 = vld [vmem:[#allocation4 + $0x388] sm:$0xff] }
 0x17f   :  { %741 = vmatprep.subr.mxu0 %v5250_v14  ;;  %810 = vmatprep.subr.mxu1 %v4463_v12  ;;  %v5270_v12 = vld [vmem:[#allocation4 + $0x380] sm:$0xff] }
 0x180   :  { %742 = vmatpush2.msra.mxu0 %v5254_v4  ;;  %811 = vmatpush2.msra.mxu1 %v4466_v15  ;;  %v5274_v15 = vld [vmem:[#allocation4 + $0x368] sm:$0xff] }
 0x181   :  { %743 = vmatprep.subr.mxu0 %v5258_v6  ;;  %812 = vmatprep.subr.mxu1 %v4469_v17  ;;  %v5278_v17 = vld [vmem:[#allocation4 + $0x360] sm:$0xff] }
 0x182   :  { %744 = vmatpush2.msra.mxu0 %v5262_v8  ;;  %813 = vmatpush2.msra.mxu1 %v4474_v19  ;;  %v5282_v19 = vld [vmem:[#allocation4 + $0x348] sm:$0xff] }
 0x183   :  { %745 = vmatprep.subr.mxu0 %v5266_v10  ;;  %814 = vmatprep.subr.mxu1 %v4479_v21  ;;  %v5286_v21 = vld [vmem:[#allocation4 + $0x340] sm:$0xff] }
 0x184   :  { %746 = vmatpush2.msra.mxu0 %v5270_v12  ;;  %815 = vmatpush2.msra.mxu1 %v4484_v23  ;;  %v9644_v23 = vld [vmem:[#allocation19_spill] sm:$0xff] }
 0x185   :  { %747 = vmatprep.subr.mxu0 %v5274_v15  ;;  %816 = vmatprep.subr.mxu1 %v4490_v25 }
 0x186   :  { %748 = vmatpush2.msra.mxu0 %v5278_v17  ;;  %817 = vmatpush2.msra.mxu1 %v4496_v27  ;;  %v9647_v27 = vld [vmem:[#allocation15_spill] sm:$0xff] }
 0x187   :  { %749 = vmatprep.subr.mxu0 %v5282_v19  ;;  %818 = vmatprep.subr.mxu1 %v4502_v29  ;;  %v9649_v29 = vld [vmem:[#allocation16_spill] sm:$0xff] }
 0x188   :  { %750 = vmatpush2.msra.mxu0 %v5286_v21  ;;  %819 = vmatpush2.msra.mxu1 %v4508_v31  ;;  %v9651_v31 = vld [vmem:[#allocation25_spill] sm:$0xff] }
 0x189   :  { %751 = vmatprep.subr.mxu0 %v4471_v18  ;;  %820 = vmatprep.subr.mxu1 %v4514_v33  ;;  %v701_v18 = vld [vmem:[%s8696_s1 + $0x9] sm:$0x1]  ;;  %v9653_v33 = vld [vmem:[#allocation17_spill] sm:$0xff] }
 0x18a   :  { %752 = vmatpush2.msra.mxu0 %v4476_v20  ;;  %821 = vmatpush2.msra.mxu1 %v4520_v35  ;;  %v704_v20 = vrot.slane %v701_v18, 7  ;;  %v9655_v35 = vld [vmem:[#allocation27_spill] sm:$0xff]  ;;  %v9678_v18 = vld [vmem:[#allocation48_spill] sm:$0xff] }
 0x18b   :  { %753 = vmatprep.subr.mxu0 %v4481_v22  ;;  %822 = vmatprep.subr.mxu1 %v4526_v37  ;;  %v700_v22 = vld [vmem:[%s8696_s1 + $0x1] sm:$0x1]  ;;  %v9657_v37 = vld [vmem:[#allocation28_spill] sm:$0xff] }
 0x18c   :  { %754 = vmatpush2.msra.mxu0 %v4487_v24  ;;  %823 = vmatpush2.msra.mxu1 %v4532_v39  ;;  %v9645_v24 = vld [vmem:[#allocation14_spill] sm:$0xff]  ;;  %v705_v25 = vsel %vm64_vm0, %v704_v20, %v700_v22  ;;  %v9659_v39 = vld [vmem:[#allocation29_spill] sm:$0xff] }
 0x18d   :  { %755 = vmatprep.subr.mxu0 %v4493_v26  ;;  %824 = vmatprep.subr.mxu1 %v4538_v41  ;;  %v9646_v26 = vld [vmem:[#allocation21_spill] sm:$0xff]  ;;  %v9661_v41 = vld [vmem:[#allocation31_spill] sm:$0xff]  ;;  %v9680_v22 = vld [vmem:[#allocation50_spill] sm:$0xff] }
 0x18e   :  { %756 = vmatpush2.msra.mxu0 %v4499_v28  ;;  %825 = vmatpush2.msra.mxu1 %v4544_v43  ;;  %v9648_v28 = vld [vmem:[#allocation23_spill] sm:$0xff]  ;;  %v9663_v43 = vld [vmem:[#allocation33_spill] sm:$0xff] }
 0x18f   :  { %757 = vmatprep.subr.mxu0 %v4505_v30  ;;  %826 = vmatprep.subr.mxu1 %v4553_v46  ;;  %v9650_v30 = vld [vmem:[#allocation24_spill] sm:$0xff]  ;;  %v9665_v46 = vld [vmem:[#allocation35_spill] sm:$0xff]  ;;  %v9679_v20 = vld [vmem:[#allocation49_spill] sm:$0xff] }
 0x190   :  { %758 = vmatpush2.msra.mxu0 %v4511_v32  ;;  %827 = vmatpush2.msra.mxu1 %v4559_v48  ;;  %v9652_v32 = vld [vmem:[#allocation26_spill] sm:$0xff]  ;;  %v9667_v48 = vld [vmem:[#allocation37_spill] sm:$0xff] }
 0x191   :  { %759 = vmatprep.subr.mxu0 %v4517_v34  ;;  %828 = vmatprep.subr.mxu1 %v4565_v50  ;;  %v9654_v34 = vld [vmem:[#allocation18_spill] sm:$0xff]  ;;  %v9669_v50 = vld [vmem:[#allocation39_spill] sm:$0xff] }
 0x192   :  { %760 = vmatpush2.msra.mxu0 %v4523_v36  ;;  %829 = vmatpush2.msra.mxu1 %v4571_v53  ;;  %v9656_v36 = vld [vmem:[#allocation20_spill] sm:$0xff]  ;;  %v9671_v53 = vld [vmem:[#allocation41_spill] sm:$0xff] }
 0x193   :  { %761 = vmatprep.subr.mxu0 %v4529_v38  ;;  %830 = vmatprep.subr.mxu1 %v4580_v56  ;;  %v9658_v38 = vld [vmem:[#allocation22_spill] sm:$0xff] }
 0x194   :  { %762 = vmatpush2.msra.mxu0 %v4535_v40  ;;  %831 = vmatpush2.msra.mxu1 %v4586_v58  ;;  %v9660_v40 = vld [vmem:[#allocation30_spill] sm:$0xff]  ;;  %v9673_v58 = vld [vmem:[#allocation43_spill] sm:$0xff] }
 0x195   :  { %763 = vmatprep.subr.mxu0 %v4541_v42  ;;  %832 = vmatprep.subr.mxu1 %v4592_v60  ;;  %v9662_v42 = vld [vmem:[#allocation32_spill] sm:$0xff]  ;;  %v9672_v56 = vld [vmem:[#allocation42_spill] sm:$0xff] }
 0x196   :  { %764 = vmatpush2.msra.mxu0 %v4547_v44  ;;  %833 = vmatpush2.msra.mxu1 %v4597_v62  ;;  %v9664_v44 = vld [vmem:[#allocation34_spill] sm:$0xff]  ;;  %v9674_v60 = vld [vmem:[#allocation44_spill] sm:$0xff]  ;;  %v9675_v62 = vld [vmem:[#allocation45_spill] sm:$0xff] }
 0x197   :  { %765 = vmatprep.subr.mxu0 %v4556_v47  ;;  %834 = vmatprep.subr.mxu1 %v4601_v63  ;;  %v9666_v47 = vld [vmem:[#allocation36_spill] sm:$0xff]  ;;  %v9676_v63 = vld [vmem:[#allocation46_spill] sm:$0xff] }
 0x198   :  { %766 = vmatpush2.msra.mxu0 %v4562_v49  ;;  %835 = vmatpush2.msra.mxu1 %v4607_v2  ;;  %v9668_v49 = vld [vmem:[#allocation38_spill] sm:$0xff]  ;;  %v9677_v2 = vld [vmem:[#allocation47_spill] sm:$0xff] }
 0x199   :  { %767 = vmatprep.subr.mxu0 %v4568_v51  ;;  %836 = vmatprep.subr.mxu1 %v9644_v23  ;;  %v9670_v51 = vld [vmem:[#allocation40_spill] sm:$0xff]  ;;  %v9681_v23 = vld [vmem:[#allocation51_spill] sm:$0xff] }
 0x19a   :  { %768 = vmatpush2.msra.mxu0 %v9645_v24  ;;  %837 = vmatpush2.msra.mxu1 %v9646_v26  ;;  %v9682_v24 = vld [vmem:[#allocation52_spill] sm:$0xff]  ;;  %v9684_v26 = vld [vmem:[#allocation54_spill] sm:$0xff] }
 0x19b   :  { %769 = vmatprep.subr.mxu0 %v9647_v27  ;;  %838 = vmatprep.subr.mxu1 %v9648_v28  ;;  %v9685_v27 = vld [vmem:[#allocation55_spill] sm:$0xff]  ;;  %v9686_v28 = vld [vmem:[#allocation56_spill] sm:$0xff] }
 0x19c   :  { %770 = vmatpush2.msra.mxu0 %v9649_v29  ;;  %839 = vmatpush2.msra.mxu1 %v9650_v30  ;;  %v9687_v29 = vld [vmem:[#allocation57_spill] sm:$0xff]  ;;  %v9688_v30 = vld [vmem:[#allocation58_spill] sm:$0xff] }
 0x19d   :  { %772 = vmatmul.mubr.f32.vlgmr.msra.gmra.mxu0 %v705_v25  ;;  %840 = vmatprep.subr.mxu1 %v9651_v31  ;;  %v9689_v31 = vld [vmem:[#allocation59_spill] sm:$0xff] }
 0x19e   :  { %841 = vmatpush2.msra.mxu1 %v9652_v32  ;;  %871 = vmatprep.subr.mxu0 %v9653_v33  ;;  %v9690_v32 = vld [vmem:[#allocation60_spill] sm:$0xff]  ;;  %v9691_v33 = vld [vmem:[#allocation61_spill] sm:$0xff] }
 0x19f   :  { %843 = vmatmul.mubr.f32.vlgmr.msra.gmra.mxu1 %v705_v25  ;;  %872 = vmatpush1.msra.mxu0 %v9654_v34  ;;  %v9683_v25 = vld [vmem:[#allocation53_spill] sm:$0xff]  ;;  %v9692_v34 = vld [vmem:[#allocation62_spill] sm:$0xff] }
 0x1a0   :  { %942 = vmatprep.subr.mxu1 %v9655_v35  ;;  %873 = vmatprep.subr.mxu0 %v9656_v36  ;;  %v9693_v35 = vld [vmem:[#allocation63_spill] sm:$0xff]  ;;  %v9694_v36 = vld [vmem:[#allocation64_spill] sm:$0xff] }
 0x1a1   :  { %943 = vmatpush1.msra.mxu1 %v9657_v37  ;;  %874 = vmatpush1.msra.mxu0 %v9658_v38  ;;  %v9695_v37 = vld [vmem:[#allocation65_spill] sm:$0xff]  ;;  %v9696_v38 = vld [vmem:[#allocation66_spill] sm:$0xff] }
 0x1a2   :  { %944 = vmatprep.subr.mxu1 %v9659_v39  ;;  %875 = vmatprep.subr.mxu0 %v9660_v40  ;;  %v9697_v39 = vld [vmem:[#allocation67_spill] sm:$0xff]  ;;  %v9698_v40 = vld [vmem:[#allocation68_spill] sm:$0xff] }
 0x1a3   :  { %945 = vmatpush1.msra.mxu1 %v9661_v41  ;;  %876 = vmatpush1.msra.mxu0 %v9662_v42  ;;  %v9699_v41 = vld [vmem:[#allocation69_spill] sm:$0xff]  ;;  %v9700_v42 = vld [vmem:[#allocation70_spill] sm:$0xff] }
 0x1a4   :  { %946 = vmatprep.subr.mxu1 %v9663_v43  ;;  %877 = vmatprep.subr.mxu0 %v9664_v44  ;;  %v9701_v43 = vld [vmem:[#allocation71_spill] sm:$0xff]  ;;  %v9702_v44 = vld [vmem:[#allocation72_spill] sm:$0xff] }
 0x1a5   :  { %947 = vmatpush1.msra.mxu1 %v9665_v46  ;;  %878 = vmatpush1.msra.mxu0 %v9666_v47  ;;  %v9703_v46 = vld [vmem:[#allocation73_spill] sm:$0xff]  ;;  %v9704_v47 = vld [vmem:[#allocation74_spill] sm:$0xff] }
 0x1a6   :  { %948 = vmatprep.subr.mxu1 %v9667_v48  ;;  %879 = vmatprep.subr.mxu0 %v9668_v49  ;;  %v9705_v48 = vld [vmem:[#allocation75_spill] sm:$0xff]  ;;  %v9706_v49 = vld [vmem:[#allocation76_spill] sm:$0xff] }
 0x1a7   :  { %949 = vmatpush1.msra.mxu1 %v9669_v50  ;;  %880 = vmatpush1.msra.mxu0 %v9670_v51  ;;  %v9707_v50 = vld [vmem:[#allocation77_spill] sm:$0xff]  ;;  %v9708_v51 = vld [vmem:[#allocation78_spill] sm:$0xff] }
 0x1a8   :  { %950 = vmatprep.subr.mxu1 %v9671_v53  ;;  %881 = vmatprep.subr.mxu0 %v9672_v56  ;;  %v9709_v53 = vld [vmem:[#allocation79_spill] sm:$0xff]  ;;  %v9710_v56 = vld [vmem:[#allocation80_spill] sm:$0xff] }
 0x1a9   :  { %951 = vmatpush1.msra.mxu1 %v9673_v58  ;;  %882 = vmatpush1.msra.mxu0 %v9674_v60  ;;  %v9711_v58 = vld [vmem:[#allocation81_spill] sm:$0xff]  ;;  %v9712_v60 = vld [vmem:[#allocation82_spill] sm:$0xff] }
 0x1aa   :  { %952 = vmatprep.subr.mxu1 %v9675_v62  ;;  %883 = vmatprep.subr.mxu0 %v9676_v63  ;;  %v9713_v62 = vld [vmem:[#allocation83_spill] sm:$0xff]  ;;  %v9714_v63 = vld [vmem:[#allocation84_spill] sm:$0xff] }
 0x1ab   :  { %953 = vmatpush1.msra.mxu1 %v9677_v2  ;;  %884 = vmatpush1.msra.mxu0 %v9678_v18  ;;  %v9715_v2 = vld [vmem:[#allocation85_spill] sm:$0xff]  ;;  %v9716_v18 = vld [vmem:[#allocation86_spill] sm:$0xff] }
 0x1ac   :  { %954 = vmatprep.subr.mxu1 %v9679_v20  ;;  %885 = vmatprep.subr.mxu0 %v9680_v22  ;;  %v9717_v20 = vld [vmem:[#allocation87_spill] sm:$0xff]  ;;  %v9718_v22 = vld [vmem:[#allocation88_spill] sm:$0xff] }
 0x1ad   :  { %955 = vmatpush1.msra.mxu1 %v9681_v23  ;;  %886 = vmatpush1.msra.mxu0 %v9682_v24  ;;  %v9719_v23 = vld [vmem:[#allocation89_spill] sm:$0xff]  ;;  %v9720_v24 = vld [vmem:[#allocation90_spill] sm:$0xff] }
 0x1ae   :  { %956 = vmatprep.subr.mxu1 %v9683_v25  ;;  %887 = vmatprep.subr.mxu0 %v9684_v26  ;;  %v9721_v25 = vld [vmem:[#allocation91_spill] sm:$0xff]  ;;  %v9722_v26 = vld [vmem:[#allocation92_spill] sm:$0xff] }
 0x1af   :  { %957 = vmatpush1.msra.mxu1 %v9685_v27  ;;  %888 = vmatpush1.msra.mxu0 %v9686_v28  ;;  %v9723_v27 = vld [vmem:[#allocation93_spill] sm:$0xff]  ;;  %v9724_v28 = vld [vmem:[#allocation94_spill] sm:$0xff] }
 0x1b0   :  { %958 = vmatprep.subr.mxu1 %v9687_v29  ;;  %889 = vmatprep.subr.mxu0 %v9688_v30  ;;  %v9725_v29 = vld [vmem:[#allocation95_spill] sm:$0xff]  ;;  %v9726_v30 = vld [vmem:[#allocation96_spill] sm:$0xff] }
 0x1b1   :  { %959 = vmatpush1.msra.mxu1 %v9689_v31  ;;  %890 = vmatpush1.msra.mxu0 %v9690_v32  ;;  %v9727_v31 = vld [vmem:[#allocation97_spill] sm:$0xff]  ;;  %v9728_v32 = vld [vmem:[#allocation98_spill] sm:$0xff] }
 0x1b2   :  { %960 = vmatprep.subr.mxu1 %v9691_v33  ;;  %891 = vmatprep.subr.mxu0 %v9692_v34  ;;  %v9729_v33 = vld [vmem:[#allocation99_spill] sm:$0xff]  ;;  %v9730_v34 = vld [vmem:[#allocation100_spill] sm:$0xff] }
 0x1b3   :  { %961 = vmatpush1.msra.mxu1 %v9693_v35  ;;  %892 = vmatpush1.msra.mxu0 %v9694_v36  ;;  %v9731_v35 = vld [vmem:[#allocation101_spill] sm:$0xff]  ;;  %v9732_v36 = vld [vmem:[#allocation102_spill] sm:$0xff] }
 0x1b4   :  { %962 = vmatprep.subr.mxu1 %v9695_v37  ;;  %893 = vmatprep.subr.mxu0 %v9696_v38  ;;  %v9733_v37 = vld [vmem:[#allocation103_spill] sm:$0xff]  ;;  %v9734_v38 = vld [vmem:[#allocation104_spill] sm:$0xff] }
 0x1b5   :  { %963 = vmatpush1.msra.mxu1 %v9697_v39  ;;  %894 = vmatpush1.msra.mxu0 %v9698_v40  ;;  %v9735_v39 = vld [vmem:[#allocation105_spill] sm:$0xff]  ;;  %v9736_v40 = vld [vmem:[#allocation106_spill] sm:$0xff] }
 0x1b6   :  { %964 = vmatprep.subr.mxu1 %v9699_v41  ;;  %895 = vmatprep.subr.mxu0 %v9700_v42  ;;  %v9737_v41 = vld [vmem:[#allocation107_spill] sm:$0xff]  ;;  %v9738_v42 = vld [vmem:[#allocation108_spill] sm:$0xff] }
 0x1b7   :  { %965 = vmatpush1.msra.mxu1 %v9701_v43  ;;  %896 = vmatpush1.msra.mxu0 %v9702_v44  ;;  %v9739_v43 = vld [vmem:[#allocation109_spill] sm:$0xff]  ;;  %v9740_v44 = vld [vmem:[#allocation110_spill] sm:$0xff] }
 0x1b8   :  { %966 = vmatprep.subr.mxu1 %v9703_v46  ;;  %897 = vmatprep.subr.mxu0 %v9704_v47  ;;  %v9741_v46 = vld [vmem:[#allocation111_spill] sm:$0xff]  ;;  %v9742_v47 = vld [vmem:[#allocation112_spill] sm:$0xff] }
 0x1b9   :  { %967 = vmatpush1.msra.mxu1 %v9705_v48  ;;  %898 = vmatpush1.msra.mxu0 %v9706_v49  ;;  %v9743_v48 = vld [vmem:[#allocation113_spill] sm:$0xff]  ;;  %v9744_v49 = vld [vmem:[#allocation114_spill] sm:$0xff] }
 0x1ba   :  { %968 = vmatprep.subr.mxu1 %v9707_v50  ;;  %899 = vmatprep.subr.mxu0 %v9708_v51  ;;  %v9745_v50 = vld [vmem:[#allocation115_spill] sm:$0xff]  ;;  %v9746_v51 = vld [vmem:[#allocation116_spill] sm:$0xff] }
 0x1bb   :  { %969 = vmatpush1.msra.mxu1 %v9709_v53  ;;  %900 = vmatpush1.msra.mxu0 %v9710_v56  ;;  %v9747_v53 = vld [vmem:[#allocation117_spill] sm:$0xff]  ;;  %v9748_v56 = vld [vmem:[#allocation118_spill] sm:$0xff] }
 0x1bc   :  { %970 = vmatprep.subr.mxu1 %v9711_v58  ;;  %901 = vmatprep.subr.mxu0 %v9712_v60  ;;  %v9749_v58 = vld [vmem:[#allocation119_spill] sm:$0xff]  ;;  %v9750_v60 = vld [vmem:[#allocation120_spill] sm:$0xff] }
 0x1bd   :  { %971 = vmatpush1.msra.mxu1 %v9713_v62  ;;  %902 = vmatpush1.msra.mxu0 %v9714_v63  ;;  %v9751_v62 = vld [vmem:[#allocation121_spill] sm:$0xff]  ;;  %v9752_v63 = vld [vmem:[#allocation122_spill] sm:$0xff] }
 0x1be   :  { %972 = vmatprep.subr.mxu1 %v9715_v2  ;;  %903 = vmatprep.subr.mxu0 %v9716_v18  ;;  %v9753_v2 = vld [vmem:[#allocation123_spill] sm:$0xff]  ;;  %v9754_v18 = vld [vmem:[#allocation124_spill] sm:$0xff] }
 0x1bf   :  { %973 = vmatpush1.msra.mxu1 %v9717_v20  ;;  %904 = vmatpush2.msra.mxu0 %v9718_v22  ;;  %v9755_v20 = vld [vmem:[#allocation125_spill] sm:$0xff]  ;;  %v9756_v22 = vld [vmem:[#allocation126_spill] sm:$0xff] }
 0x1c0   :  { %974 = vmatprep.subr.mxu1 %v9719_v23  ;;  %905 = vmatprep.subr.mxu0 %v9720_v24  ;;  %v9757_v23 = vld [vmem:[#allocation127_spill] sm:$0xff]  ;;  %v9758_v24 = vld [vmem:[#allocation128_spill] sm:$0xff] }
 0x1c1   :  { %975 = vmatpush2.msra.mxu1 %v9721_v25  ;;  %906 = vmatpush2.msra.mxu0 %v9722_v26  ;;  %v9759_v25 = vld [vmem:[#allocation129_spill] sm:$0xff]  ;;  %v9760_v26 = vld [vmem:[#allocation130_spill] sm:$0xff] }
 0x1c2   :  { %976 = vmatprep.subr.mxu1 %v9723_v27  ;;  %907 = vmatprep.subr.mxu0 %v9724_v28  ;;  %v9761_v27 = vld [vmem:[#allocation131_spill] sm:$0xff]  ;;  %v9762_v28 = vld [vmem:[#allocation132_spill] sm:$0xff] }
 0x1c3   :  { %977 = vmatpush2.msra.mxu1 %v9725_v29  ;;  %908 = vmatpush2.msra.mxu0 %v9726_v30  ;;  %v9763_v29 = vld [vmem:[#allocation133_spill] sm:$0xff]  ;;  %v9764_v30 = vld [vmem:[#allocation134_spill] sm:$0xff] }
 0x1c4   :  { %978 = vmatprep.subr.mxu1 %v9727_v31  ;;  %909 = vmatprep.subr.mxu0 %v9728_v32  ;;  %v9765_v31 = vld [vmem:[#allocation135_spill] sm:$0xff]  ;;  %v9766_v32 = vld [vmem:[#allocation136_spill] sm:$0xff] }
 0x1c5   :  { %979 = vmatpush2.msra.mxu1 %v9729_v33  ;;  %910 = vmatpush2.msra.mxu0 %v9730_v34  ;;  %v9767_v33 = vld [vmem:[#allocation137_spill] sm:$0xff]  ;;  %v9768_v34 = vld [vmem:[#allocation138_spill] sm:$0xff] }
 0x1c6   :  { %980 = vmatprep.subr.mxu1 %v9731_v35  ;;  %911 = vmatprep.subr.mxu0 %v9732_v36  ;;  %v9769_v35 = vld [vmem:[#allocation139_spill] sm:$0xff]  ;;  %v9770_v36 = vld [vmem:[#allocation140_spill] sm:$0xff] }
 0x1c7   :  { %981 = vmatpush2.msra.mxu1 %v9733_v37  ;;  %912 = vmatpush2.msra.mxu0 %v9734_v38  ;;  %v9771_v37 = vld [vmem:[#allocation141_spill] sm:$0xff]  ;;  %v9772_v38 = vld [vmem:[#allocation142_spill] sm:$0xff] }
 0x1c8   :  { %982 = vmatprep.subr.mxu1 %v9735_v39  ;;  %913 = vmatprep.subr.mxu0 %v9736_v40  ;;  %v9773_v39 = vld [vmem:[#allocation143_spill] sm:$0xff]  ;;  %v9774_v40 = vld [vmem:[#allocation144_spill] sm:$0xff] }
 0x1c9   :  { %983 = vmatpush2.msra.mxu1 %v9737_v41  ;;  %914 = vmatpush2.msra.mxu0 %v9738_v42  ;;  %v9775_v41 = vld [vmem:[#allocation145_spill] sm:$0xff]  ;;  %v9776_v42 = vld [vmem:[#allocation146_spill] sm:$0xff] }
 0x1ca   :  { %984 = vmatprep.subr.mxu1 %v9739_v43  ;;  %915 = vmatprep.subr.mxu0 %v9740_v44  ;;  %v9777_v43 = vld [vmem:[#allocation147_spill] sm:$0xff]  ;;  %v9778_v44 = vld [vmem:[#allocation148_spill] sm:$0xff] }
 0x1cb   :  { %985 = vmatpush2.msra.mxu1 %v9741_v46  ;;  %916 = vmatpush2.msra.mxu0 %v9742_v47  ;;  %v9779_v46 = vld [vmem:[#allocation149_spill] sm:$0xff]  ;;  %v9780_v47 = vld [vmem:[#allocation151_spill] sm:$0xff] }
 0x1cc   :  { %986 = vmatprep.subr.mxu1 %v9743_v48  ;;  %917 = vmatprep.subr.mxu0 %v9744_v49  ;;  %v9781_v48 = vld [vmem:[#allocation150_spill] sm:$0xff]  ;;  %v5468_v49 = vld [vmem:[#allocation4 + $0x1f8] sm:$0xff] }
 0x1cd   :  { %987 = vmatpush2.msra.mxu1 %v9745_v50  ;;  %918 = vmatpush2.msra.mxu0 %v9746_v51  ;;  %v3212_v50 = vld [vmem:[%s8698_s3 + $0x4] sm:$0xf]  ;;  %v9782_v51 = vsub.s32 0, %v5018_v52 }
 0x1ce   :  { %988 = vmatprep.subr.mxu1 %v9747_v53  ;;  %919 = vmatprep.subr.mxu0 %v9748_v56 }
 0x1cf   :  { %989 = vmatpush2.msra.mxu1 %v9749_v58  ;;  %920 = vmatpush2.msra.mxu0 %v9750_v60  ;;  %v5476_v53 = vrot.slane %v3212_v50, %v9782_v51  ;;  %v9789_v51 = vld [vmem:[#allocation153_spill] sm:$0xff] }
 0x1d0   :  { %990 = vmatprep.subr.mxu1 %v9751_v62  ;;  %921 = vmatprep.subr.mxu0 %v9752_v63  ;;  %v9783_v62 = vsub.s32 1, %v5018_v52 }
 0x1d1   :  { %991 = vmatpush2.msra.mxu1 %v9753_v2  ;;  %922 = vmatpush2.msra.mxu0 %v9754_v18 }
 0x1d2   :  { %992 = vmatprep.subr.mxu1 %v9755_v20  ;;  %923 = vmatprep.subr.mxu0 %v9756_v22  ;;  %v5481_v63 = vrot.slane %v3212_v50, %v9783_v62 }
 0x1d3   :  { %993 = vmatpush2.msra.mxu1 %v9757_v23  ;;  %924 = vmatpush2.msra.mxu0 %v9758_v24 }
 0x1d4   :  { %994 = vmatprep.subr.mxu1 %v9759_v25  ;;  %925 = vmatprep.subr.mxu0 %v9760_v26  ;;  %9784 = vst [vmem:[#allocation19_spill] sm:$0xff] %v5481_v63  ;;  %v9785_v26 = vsub.s32 3, %v5018_v52 }
 0x1d5   :  { %995 = vmatpush2.msra.mxu1 %v9761_v27  ;;  %926 = vmatpush2.msra.mxu0 %v9762_v28 }
 0x1d6   :  { %996 = vmatprep.subr.mxu1 %v9763_v29  ;;  %927 = vmatprep.subr.mxu0 %v9764_v30  ;;  %v5486_v27 = vrot.slane %v3212_v50, %v9785_v26  ;;  %v9787_v29 = vsub.s32 2, %v5018_v52 }
 0x1d7   :  { %997 = vmatpush2.msra.mxu1 %v9765_v31  ;;  %928 = vmatpush2.msra.mxu0 %v9766_v32 }
 0x1d8   :  { %998 = vmatprep.subr.mxu1 %v9767_v33  ;;  %929 = vmatprep.subr.mxu0 %v9768_v34  ;;  %9786 = vst [vmem:[#allocation14_spill] sm:$0xff] %v5486_v27  ;;  %v5490_v30 = vrot.slane %v3212_v50, %v9787_v29  ;;  %v5506_v29 = vsel %vm696_vm4, 1.0, %v9592_v55 }
 0x1d9   :  { %999 = vmatpush2.msra.mxu1 %v9769_v35  ;;  %930 = vmatpush2.msra.mxu0 %v9770_v36 }
 0x1da   :  { %1000 = vmatprep.subr.mxu1 %v9771_v37  ;;  %931 = vmatprep.subr.mxu0 %v9772_v38 }
 0x1db   :  { %1001 = vmatpush2.msra.mxu1 %v9773_v39  ;;  %932 = vmatpush2.msra.mxu0 %v9774_v40 }
 0x1dc   :  { %1002 = vmatprep.subr.mxu1 %v9775_v41  ;;  %933 = vmatprep.subr.mxu0 %v9776_v42 }
 0x1dd   :  { %1003 = vmatpush2.msra.mxu1 %v9777_v43  ;;  %934 = vmatpush2.msra.mxu0 %v9778_v44 }
 0x1de   :  { %1004 = vmatprep.subr.mxu1 %v9779_v46  ;;  %1046 = vmatprep.subr.mxu0 %v9780_v47  ;;  %v9788_v46 = vld [vmem:[#allocation152_spill] sm:$0xff] }
 0x1df   :  { %1005 = vmatpush2.msra.mxu1 %v9781_v48 }
 0x1e0   :  { %1117 = vmatprep.subr.mxu1 %v5468_v49 }
 0x21d   :  { %v599_v56 = vpop.f32.mrf.mxu0  ;;  %v670_v24 = vpop.f32.mrf.mxu1 }
 0x21e   :  { %v600_v58 = vadd.f32 %v599_v56, %v5476_v53  ;;  %v671_v34 = vadd.f32 %v670_v24, %v5490_v30 }
 0x21f   :  { %v601_v2 = vpop.f32.mrf.mxu0  ;;  %v672_v28 = vpop.f32.mrf.mxu1 }
 0x220   :  { %v3213_v60 = vmul.f32 -1.442695, %v600_v58  ;;  %v602_v18 = vadd.f32 %v601_v2, %v5481_v63  ;;  %v673_v32 = vadd.f32 %v672_v28, %v5486_v27 }
 0x222   :  { %3321 = vpow2.f32 %v3213_v60  ;;  %v3214_v20 = vmul.f32 -1.442695, %v602_v18 }
 0x224   :  { %3323 = vpow2.f32 %v3214_v20 }
 0x22f   :  { %v3322_v22 = vpop.eup %3321 }
 0x230   :  { %v678_v23 = vadd.f32 1.0, %v3322_v22 }
 0x231   :  { %v3324_v25 = vpop.eup %3323 }
 0x232   :  { %3325 = vrcp.f32 %v678_v23  ;;  %v684_v31 = vadd.f32 1.0, %v3324_v25  ;;  %v9790_v23 = vld [vmem:[#allocation154_spill] sm:$0xff] }
 0x234   :  { %3327 = vrcp.f32 %v684_v31 }
 0x23f   :  { %v3326_v33 = vpop.eup %3325 }
 0x240   :  { %v687_v35 = vmul.f32 %v3326_v33, %v673_v32 }
 0x241   :  { %v3328_v37 = vpop.eup %3327 }
 0x242   :  { %v688_v36 = vadd.f32 %v687_v35, %v671_v34  ;;  %v690_v38 = vsub.f32 1.0, %v3328_v37  ;;  %v692_v41 = vmul.f32 0.0, %v3328_v37  ;;  %v8904_v35 = vsub.f32 1.0, %v5506_v29 }
 0x244   :  { %3329 = vtanh.f32 %v688_v36 }
 0x251   :  { %v3330_v39 = vpop.eup %3329 }
 0x252   :  { %v691_v40 = vmul.f32 %v3330_v39, %v690_v38  ;;  %v869_v38 = vmul.f32 %v8904_v35, %v5060_v11  ;;  %v5737_v35 = vld [vmem:[#allocation4 + $0x258] sm:$0xff] }
 0x253   :  { %9853 = vst [vmem:[#allocation28_spill] sm:$0xff] %v5737_v35 }
 0x254   :  { %v693_v42 = vadd.f32 %v692_v41, %v691_v40  ;;  %v9791_v40 = vld [vmem:[#allocation155_spill] sm:$0xff]  ;;  %v9793_v41 = vld [vmem:[#allocation157_spill] sm:$0xff] }
 0x256   :  { %v694_v52 = vmul.f32 %v5053_v54, %v693_v42  ;;  %v9794_v42 = vld [vmem:[#allocation158_spill] sm:$0xff] }
 0x258   :  { %v5496_v43 = vadd.f32 %v694_v52, %v5056_v0  ;;  %v9795_v52 = vld [vmem:[#allocation159_spill] sm:$0xff] }
 0x25a   :  { %935 = vmatprep.mubr.f32.mxu0 %v5496_v43  ;;  %1006 = vmatprep.mubr.f32.mxu1 %v5496_v43 }
 0x25d   :  { %v773_v44 = vpop.f32.mrf.mxu0 }
 0x25e   :  { %v774_v47 = vadd.f32 %v773_v44, %v9788_v46  ;;  %v9797_v44 = vld [vmem:[#allocation161_spill] sm:$0xff] }
 0x25f   :  { %v775_v50 = vpop.f32.mrf.mxu0  ;;  %v844_v54 = vpop.f32.mrf.mxu1 }
 0x260   :  { %v3216_v48 = vmul.f32 -1.442695, %v774_v47  ;;  %v776_v56 = vadd.f32 %v775_v50, %v9789_v51  ;;  %v845_v24 = vadd.f32 %v844_v54, %v9790_v23  ;;  %v9799_v47 = vld [vmem:[#allocation163_spill] sm:$0xff]  ;;  %v9808_v54 = vld [vmem:[#allocation172_spill] sm:$0xff] }
 0x261   :  { %v846_v2 = vpop.f32.mrf.mxu1  ;;  %v9803_v50 = vld [vmem:[#allocation167_spill] sm:$0xff] }
 0x262   :  { %3331 = vpow2.f32 %v3216_v48  ;;  %v3217_v58 = vmul.f32 -1.442695, %v776_v56  ;;  %v847_v20 = vadd.f32 %v846_v2, %v5039_v1  ;;  %v9802_v48 = vld [vmem:[#allocation166_spill] sm:$0xff]  ;;  %v9804_v56 = vld [vmem:[#allocation168_spill] sm:$0xff] }
 0x263   :  { %v9810_v2 = vld [vmem:[#allocation174_spill] sm:$0xff] }
 0x264   :  { %3333 = vpow2.f32 %v3217_v58  ;;  %v9805_v58 = vld [vmem:[#allocation169_spill] sm:$0xff] }
 0x26f   :  { %v3332_v60 = vpop.eup %3331 }
 0x270   :  { %v852_v62 = vadd.f32 1.0, %v3332_v60  ;;  %v9806_v60 = vld [vmem:[#allocation170_spill] sm:$0xff] }
 0x271   :  { %v3334_v0 = vpop.eup %3333 }
 0x272   :  { %3335 = vrcp.f32 %v852_v62  ;;  %v858_v18 = vadd.f32 1.0, %v3334_v0  ;;  %v9807_v62 = vld [vmem:[#allocation171_spill] sm:$0xff]  ;;  %v9809_v0 = vld [vmem:[#allocation173_spill] sm:$0xff] }
 0x274   :  { %3337 = vrcp.f32 %v858_v18  ;;  %v9811_v18 = vld [vmem:[#allocation175_spill] sm:$0xff] }
 0x27f   :  { %v3336_v22 = vpop.eup %3335 }
 0x280   :  { %v861_v25 = vmul.f32 %v3336_v22, %v847_v20  ;;  %v9812_v20 = vld [vmem:[#allocation176_spill] sm:$0xff]  ;;  %v9813_v22 = vld [vmem:[#allocation177_spill] sm:$0xff] }
 0x281   :  { %v3338_v28 = vpop.eup %3337 }
 0x282   :  { %v862_v26 = vadd.f32 %v861_v25, %v845_v24  ;;  %v864_v31 = vsub.f32 1.0, %v3338_v28  ;;  %v866_v33 = vmul.f32 %v3338_v28, %v5060_v11  ;;  %v9792_v11 = vld [vmem:[#allocation156_spill] sm:$0xff]  ;;  %v9814_v24 = vld [vmem:[#allocation178_spill] sm:$0xff]  ;;  %v9815_v25 = vld [vmem:[#allocation179_spill] sm:$0xff] }
 0x283   :  { %v9817_v28 = vld [vmem:[#allocation181_spill] sm:$0xff] }
 0x284   :  { %3339 = vtanh.f32 %v862_v26  ;;  %v9816_v26 = vld [vmem:[#allocation180_spill] sm:$0xff] }
 0x291   :  { %v3340_v32 = vpop.eup %3339 }
 0x292   :  { %v865_v34 = vmul.f32 %v3340_v32, %v864_v31  ;;  %v9818_v31 = vld [vmem:[#allocation182_spill] sm:$0xff]  ;;  %v9819_v32 = vld [vmem:[#allocation183_spill] sm:$0xff] }
 0x294   :  { %v867_v36 = vadd.f32 %v866_v33, %v865_v34  ;;  %v9820_v33 = vld [vmem:[#allocation184_spill] sm:$0xff]  ;;  %v9821_v34 = vld [vmem:[#allocation185_spill] sm:$0xff] }
 0x296   :  { %v868_v37 = vmul.f32 %v5506_v29, %v867_v36  ;;  %v9822_v36 = vld [vmem:[#allocation186_spill] sm:$0xff] }
 0x298   :  { %v5514_v39 = vadd.f32 %v869_v38, %v868_v37  ;;  %v9823_v37 = vld [vmem:[#allocation187_spill] sm:$0xff]  ;;  %v9824_v38 = vld [vmem:[#allocation188_spill] sm:$0xff] }
 0x29a   :  { %936 = vmatmul.mubr.f32.vlgmr.msra.gmra.mxu0 %v5514_v39  ;;  %1007 = vmatmul.mubr.f32.vlgmr.msra.gmra.mxu1 %v5514_v39 }
 0x29b   :  { %1047 = vmatpush1.msra.mxu0 %v5064_v45  ;;  %1110 = vmatprep.mubr.f32.mxu0 %v5514_v39  ;;  %v9796_v45 = vld [vmem:[#allocation160_spill] sm:$0xff] }
 0x29c   :  { %1048 = vmatprep.subr.mxu0 %v5068_v7  ;;  %1181 = vmatprep.mubr.f32.mxu1 %v5514_v39  ;;  %v9798_v7 = vld [vmem:[#allocation162_spill] sm:$0xff] }
 0x29d   :  { %1049 = vmatpush1.msra.mxu0 %v5072_v16  ;;  %1118 = vmatpush1.msra.mxu1 %v5075_v3  ;;  %v9800_v16 = vld [vmem:[#allocation164_spill] sm:$0xff]  ;;  %v9801_v3 = vld [vmem:[#allocation165_spill] sm:$0xff] }
 0x29e   :  { %1050 = vmatprep.subr.mxu0 %v9791_v40  ;;  %1119 = vmatprep.subr.mxu1 %v9792_v11  ;;  %v9825_v40 = vld [vmem:[#allocation189_spill] sm:$0xff]  ;;  %v9826_v11 = vld [vmem:[#allocation190_spill] sm:$0xff] }
 0x29f   :  { %1051 = vmatpush1.msra.mxu0 %v9793_v41  ;;  %1120 = vmatpush1.msra.mxu1 %v9794_v42  ;;  %v9827_v41 = vld [vmem:[#allocation191_spill] sm:$0xff]  ;;  %v9828_v42 = vld [vmem:[#allocation192_spill] sm:$0xff] }
 0x2a0   :  { %1052 = vmatprep.subr.mxu0 %v9795_v52  ;;  %1121 = vmatprep.subr.mxu1 %v9796_v45  ;;  %v9829_v52 = vld [vmem:[#allocation193_spill] sm:$0xff]  ;;  %v9830_v45 = vld [vmem:[#allocation194_spill] sm:$0xff] }
 0x2a1   :  { %1053 = vmatpush1.msra.mxu0 %v9797_v44  ;;  %1122 = vmatpush1.msra.mxu1 %v9798_v7  ;;  %v9831_v44 = vld [vmem:[#allocation195_spill] sm:$0xff]  ;;  %v9832_v7 = vld [vmem:[#allocation196_spill] sm:$0xff] }
 0x2a2   :  { %1054 = vmatprep.subr.mxu0 %v9799_v47  ;;  %1123 = vmatprep.subr.mxu1 %v9800_v16  ;;  %v9833_v47 = vld [vmem:[#allocation197_spill] sm:$0xff]  ;;  %v9834_v16 = vld [vmem:[#allocation198_spill] sm:$0xff] }
 0x2a3   :  { %1055 = vmatpush1.msra.mxu0 %v9801_v3  ;;  %1124 = vmatpush1.msra.mxu1 %v9802_v48  ;;  %v9835_v3 = vld [vmem:[#allocation199_spill] sm:$0xff]  ;;  %v9836_v48 = vld [vmem:[#allocation200_spill] sm:$0xff] }
 0x2a4   :  { %1056 = vmatprep.subr.mxu0 %v9803_v50  ;;  %1125 = vmatprep.subr.mxu1 %v9804_v56  ;;  %v9837_v50 = vld [vmem:[#allocation201_spill] sm:$0xff]  ;;  %v9838_v56 = vld [vmem:[#allocation202_spill] sm:$0xff] }
 0x2a5   :  { %1057 = vmatpush1.msra.mxu0 %v9805_v58  ;;  %1126 = vmatpush1.msra.mxu1 %v9806_v60  ;;  %v9839_v58 = vld [vmem:[#allocation203_spill] sm:$0xff]  ;;  %v9840_v60 = vld [vmem:[#allocation204_spill] sm:$0xff] }
 0x2a6   :  { %1058 = vmatprep.subr.mxu0 %v9807_v62  ;;  %1127 = vmatprep.subr.mxu1 %v9808_v54  ;;  %v9841_v62 = vld [vmem:[#allocation205_spill] sm:$0xff] }
 0x2a7   :  { %1059 = vmatpush1.msra.mxu0 %v9809_v0  ;;  %1128 = vmatpush1.msra.mxu1 %v9810_v2  ;;  %v5577_v54 = vld [vmem:[#allocation4 + $0x38] sm:$0xff]  ;;  %v5581_v0 = vld [vmem:[#allocation4 + $0x30] sm:$0xff] }
 0x2a8   :  { %1060 = vmatprep.subr.mxu0 %v9811_v18  ;;  %1129 = vmatprep.subr.mxu1 %v9812_v20  ;;  %v5593_v2 = vld [vmem:[#allocation4 + $0x3f8] sm:$0xff]  ;;  %v5638_v18 = vld [vmem:[#allocation4 + $0x320] sm:$0xff] }
 0x2a9   :  { %1061 = vmatpush1.msra.mxu0 %v9813_v22  ;;  %1130 = vmatpush1.msra.mxu1 %v9814_v24  ;;  %v5647_v20 = vld [vmem:[#allocation4 + $0x338] sm:$0xff]  ;;  %v5650_v22 = vld [vmem:[#allocation4 + $0x300] sm:$0xff]  ;;  %v5653_v24 = vld [vmem:[#allocation4 + $0x330] sm:$0xff] }
 0x2aa   :  { %1062 = vmatprep.subr.mxu0 %v9815_v25  ;;  %1131 = vmatprep.subr.mxu1 %v9816_v26  ;;  %v5656_v25 = vld [vmem:[#allocation4 + $0x2e8] sm:$0xff]  ;;  %v5659_v26 = vld [vmem:[#allocation4 + $0x318] sm:$0xff] }
 0x2ab   :  { %1063 = vmatpush1.msra.mxu0 %v9817_v28  ;;  %1132 = vmatpush1.msra.mxu1 %v9818_v31  ;;  %v5662_v28 = vld [vmem:[#allocation4 + $0x2e0] sm:$0xff]  ;;  %v5665_v31 = vld [vmem:[#allocation4 + $0x310] sm:$0xff] }
 0x2ac   :  { %1064 = vmatprep.subr.mxu0 %v9819_v32  ;;  %1133 = vmatprep.subr.mxu1 %v9820_v33  ;;  %v5668_v32 = vld [vmem:[#allocation4 + $0x2c8] sm:$0xff]  ;;  %v5671_v33 = vld [vmem:[#allocation4 + $0x2f8] sm:$0xff] }
 0x2ad   :  { %1065 = vmatpush1.msra.mxu0 %v9821_v34  ;;  %1134 = vmatpush1.msra.mxu1 %v9822_v36  ;;  %v5674_v34 = vld [vmem:[#allocation4 + $0x2c0] sm:$0xff]  ;;  %v5677_v36 = vld [vmem:[#allocation4 + $0x2f0] sm:$0xff] }
 0x2ae   :  { %1066 = vmatprep.subr.mxu0 %v9823_v37  ;;  %1135 = vmatprep.subr.mxu1 %v9824_v38  ;;  %v5680_v37 = vld [vmem:[#allocation4 + $0x2a8] sm:$0xff]  ;;  %v5683_v38 = vld [vmem:[#allocation4 + $0x2d8] sm:$0xff] }
 0x2af   :  { %1067 = vmatpush1.msra.mxu0 %v9825_v40  ;;  %1136 = vmatpush1.msra.mxu1 %v9826_v11  ;;  %v5686_v40 = vld [vmem:[#allocation4 + $0x2a0] sm:$0xff]  ;;  %v5689_v11 = vld [vmem:[#allocation4 + $0x2d0] sm:$0xff] }
 0x2b0   :  { %1068 = vmatprep.subr.mxu0 %v9827_v41  ;;  %1137 = vmatprep.subr.mxu1 %v9828_v42  ;;  %v5692_v41 = vld [vmem:[#allocation4 + $0x288] sm:$0xff] }
 0x2b1   :  { %1069 = vmatpush1.msra.mxu0 %v9829_v52  ;;  %1138 = vmatpush1.msra.mxu1 %v9830_v45  ;;  %v1040_v42 = vld [vmem:[%s8696_s1 + $0xa] sm:$0x1]  ;;  %v5698_v52 = vld [vmem:[#allocation4 + $0x2b8] sm:$0xff]  ;;  %v5701_v45 = vld [vmem:[#allocation4 + $0x280] sm:$0xff] }
 0x2b2   :  { %1070 = vmatprep.subr.mxu0 %v9831_v44  ;;  %1139 = vmatprep.subr.mxu1 %v9832_v7  ;;  %9842 = vst [vmem:[#allocation21_spill] sm:$0xff] %v5701_v45  ;;  %v5704_v44 = vld [vmem:[#allocation4 + $0x2b0] sm:$0xff]  ;;  %v5707_v7 = vld [vmem:[#allocation4 + $0x268] sm:$0xff] }
 0x2b3   :  { %1071 = vmatpush1.msra.mxu0 %v9833_v47  ;;  %1140 = vmatpush1.msra.mxu1 %v9834_v16  ;;  %9843 = vst [vmem:[#allocation15_spill] sm:$0xff] %v5704_v44  ;;  %9844 = vst [vmem:[#allocation23_spill] sm:$0xff] %v5707_v7  ;;  %v5710_v47 = vld [vmem:[#allocation4 + $0x298] sm:$0xff]  ;;  %v5713_v16 = vld [vmem:[#allocation4 + $0x260] sm:$0xff] }
 0x2b4   :  { %1072 = vmatprep.subr.mxu0 %v9835_v3  ;;  %1141 = vmatprep.subr.mxu1 %v9836_v48  ;;  %9845 = vst [vmem:[#allocation16_spill] sm:$0xff] %v5710_v47  ;;  %9846 = vst [vmem:[#allocation24_spill] sm:$0xff] %v5713_v16  ;;  %v1043_v3 = vrot.slane %v1040_v42, 7  ;;  %v5716_v48 = vld [vmem:[#allocation4 + $0x290] sm:$0xff]  ;;  %v5734_v42 = vld [vmem:[#allocation4 + $0x228] sm:$0xff] }
 0x2b5   :  { %1073 = vmatpush1.msra.mxu0 %v9837_v50  ;;  %1142 = vmatpush1.msra.mxu1 %v9838_v56  ;;  %9847 = vst [vmem:[#allocation25_spill] sm:$0xff] %v5716_v48  ;;  %v5719_v50 = vld [vmem:[#allocation4 + $0x248] sm:$0xff]  ;;  %v1039_v56 = vld [vmem:[%s8696_s1 + $0x2] sm:$0x1]  ;;  %9852 = vst [vmem:[#allocation20_spill] sm:$0xff] %v5734_v42 }
 0x2b6   :  { %1074 = vmatprep.subr.mxu0 %v5222_v61  ;;  %1143 = vmatprep.subr.mxu1 %v9839_v58  ;;  %v5585_v61 = vld [vmem:[#allocation4 + $0x18] sm:$0xff]  ;;  %9848 = vst [vmem:[#allocation26_spill] sm:$0xff] %v5719_v50 }
 0x2b7   :  { %1075 = vmatpush1.msra.mxu0 %v9840_v60  ;;  %1144 = vmatpush1.msra.mxu1 %v5231_v59  ;;  %v5589_v59 = vld [vmem:[#allocation4 + $0x10] sm:$0xff]  ;;  %v5725_v58 = vld [vmem:[#allocation4 + $0x278] sm:$0xff]  ;;  %v5728_v60 = vld [vmem:[#allocation4 + $0x240] sm:$0xff] }
 0x2b8   :  { %1076 = vmatprep.subr.mxu0 %v9841_v62  ;;  %1145 = vmatprep.subr.mxu1 %v5577_v54  ;;  %9849 = vst [vmem:[#allocation17_spill] sm:$0xff] %v5725_v58  ;;  %9850 = vst [vmem:[#allocation18_spill] sm:$0xff] %v5728_v60  ;;  %v5731_v62 = vld [vmem:[#allocation4 + $0x270] sm:$0xff] }
 0x2b9   :  { %1077 = vmatpush1.msra.mxu0 %v5238_v13  ;;  %1146 = vmatpush1.msra.mxu1 %v5581_v0  ;;  %v5597_v13 = vld [vmem:[#allocation4 + $0x3f0] sm:$0xff]  ;;  %9851 = vst [vmem:[#allocation27_spill] sm:$0xff] %v5731_v62 }
 0x2ba   :  { %1078 = vmatprep.subr.mxu0 %v5242_v9  ;;  %1147 = vmatprep.subr.mxu1 %v5585_v61  ;;  %v5601_v9 = vld [vmem:[#allocation4 + $0x3d8] sm:$0xff] }
 0x2bb   :  { %1079 = vmatpush2.msra.mxu0 %v5246_v57  ;;  %1148 = vmatpush1.msra.mxu1 %v5589_v59  ;;  %v5605_v57 = vld [vmem:[#allocation4 + $0x3d0] sm:$0xff] }
 0x2bc   :  { %1080 = vmatprep.subr.mxu0 %v5250_v14  ;;  %1149 = vmatprep.subr.mxu1 %v5593_v2  ;;  %v5609_v14 = vld [vmem:[#allocation4 + $0x3b8] sm:$0xff] }
 0x2bd   :  { %1081 = vmatpush2.msra.mxu0 %v5254_v4  ;;  %1150 = vmatpush2.msra.mxu1 %v5597_v13  ;;  %v5613_v4 = vld [vmem:[#allocation4 + $0x3b0] sm:$0xff] }
 0x2be   :  { %1082 = vmatprep.subr.mxu0 %v5258_v6  ;;  %1151 = vmatprep.subr.mxu1 %v5601_v9  ;;  %v5617_v6 = vld [vmem:[#allocation4 + $0x398] sm:$0xff] }
 0x2bf   :  { %1083 = vmatpush2.msra.mxu0 %v5262_v8  ;;  %1152 = vmatpush2.msra.mxu1 %v5605_v57  ;;  %v5621_v8 = vld [vmem:[#allocation4 + $0x390] sm:$0xff] }
 0x2c0   :  { %1084 = vmatprep.subr.mxu0 %v5266_v10  ;;  %1153 = vmatprep.subr.mxu1 %v5609_v14  ;;  %v5625_v10 = vld [vmem:[#allocation4 + $0x378] sm:$0xff] }
 0x2c1   :  { %1085 = vmatpush2.msra.mxu0 %v5270_v12  ;;  %1154 = vmatpush2.msra.mxu1 %v5613_v4  ;;  %v5629_v12 = vld [vmem:[#allocation4 + $0x370] sm:$0xff] }
 0x2c2   :  { %1086 = vmatprep.subr.mxu0 %v5274_v15  ;;  %1155 = vmatprep.subr.mxu1 %v5617_v6  ;;  %v5632_v15 = vld [vmem:[#allocation4 + $0x328] sm:$0xff] }
 0x2c3   :  { %1087 = vmatpush2.msra.mxu0 %v5278_v17  ;;  %1156 = vmatpush2.msra.mxu1 %v5621_v8  ;;  %v5635_v17 = vld [vmem:[#allocation4 + $0x358] sm:$0xff] }
 0x2c4   :  { %1088 = vmatprep.subr.mxu0 %v5282_v19  ;;  %1157 = vmatprep.subr.mxu1 %v5625_v10  ;;  %v5641_v19 = vld [vmem:[#allocation4 + $0x350] sm:$0xff] }
 0x2c5   :  { %1089 = vmatpush2.msra.mxu0 %v5286_v21  ;;  %1158 = vmatpush2.msra.mxu1 %v5629_v12  ;;  %v5644_v21 = vld [vmem:[#allocation4 + $0x308] sm:$0xff] }
 0x2c6   :  { %1090 = vmatprep.subr.mxu0 %v5632_v15  ;;  %1159 = vmatprep.subr.mxu1 %v5635_v17 }
 0x2c7   :  { %1091 = vmatpush2.msra.mxu0 %v5638_v18  ;;  %1160 = vmatpush2.msra.mxu1 %v5641_v19 }
 0x2c8   :  { %1092 = vmatprep.subr.mxu0 %v5644_v21  ;;  %1161 = vmatprep.subr.mxu1 %v5647_v20 }
 0x2c9   :  { %1093 = vmatpush2.msra.mxu0 %v5650_v22  ;;  %1162 = vmatpush2.msra.mxu1 %v5653_v24 }
 0x2ca   :  { %1094 = vmatprep.subr.mxu0 %v5656_v25  ;;  %1163 = vmatprep.subr.mxu1 %v5659_v26 }
 0x2cb   :  { %1095 = vmatpush2.msra.mxu0 %v5662_v28  ;;  %1164 = vmatpush2.msra.mxu1 %v5665_v31 }
 0x2cc   :  { %1096 = vmatprep.subr.mxu0 %v5668_v32  ;;  %1165 = vmatprep.subr.mxu1 %v5671_v33 }
 0x2cd   :  { %1097 = vmatpush2.msra.mxu0 %v5674_v34  ;;  %1166 = vmatpush2.msra.mxu1 %v5677_v36 }
 0x2ce   :  { %1098 = vmatprep.subr.mxu0 %v5680_v37  ;;  %1167 = vmatprep.subr.mxu1 %v5683_v38 }
 0x2cf   :  { %1099 = vmatpush2.msra.mxu0 %v5686_v40  ;;  %1168 = vmatpush2.msra.mxu1 %v5689_v11 }
 0x2d0   :  { %1100 = vmatprep.subr.mxu0 %v5692_v41  ;;  %1169 = vmatprep.subr.mxu1 %v5698_v52 }
 0x2d1   :  { %1101 = vmatpush2.msra.mxu0 %v5701_v45  ;;  %1170 = vmatpush2.msra.mxu1 %v5704_v44 }
 0x2d2   :  { %1102 = vmatprep.subr.mxu0 %v5707_v7  ;;  %1171 = vmatprep.subr.mxu1 %v5710_v47 }
 0x2d3   :  { %1103 = vmatpush2.msra.mxu0 %v5713_v16  ;;  %1172 = vmatpush2.msra.mxu1 %v5716_v48  ;;  %v5744_v48 = vld [vmem:[#allocation4 + $0x250] sm:$0xff] }
 0x2d4   :  { %1104 = vmatprep.subr.mxu0 %v5719_v50  ;;  %1173 = vmatprep.subr.mxu1 %v5725_v58  ;;  %v5740_v50 = vld [vmem:[#allocation4 + $0x220] sm:$0xff]  ;;  %v1044_v58 = vsel %vm64_vm0, %v1043_v3, %v1039_v56  ;;  %9855 = vst [vmem:[#allocation29_spill] sm:$0xff] %v5744_v48  ;;  %v5759_v3 = vld [vmem:[#allocation4 + $0x218] sm:$0xff]  ;;  %v5762_v56 = vld [vmem:[#allocation4 + $0x210] sm:$0xff] }
 0x2d5   :  { %1105 = vmatpush2.msra.mxu0 %v5728_v60  ;;  %1174 = vmatpush2.msra.mxu1 %v5731_v62  ;;  %9854 = vst [vmem:[#allocation22_spill] sm:$0xff] %v5740_v50  ;;  %v5747_v60 = vld [vmem:[#allocation4 + $0x208] sm:$0xff]  ;;  %v5750_v62 = vld [vmem:[#allocation4 + $0x238] sm:$0xff]  ;;  %9860 = vst [vmem:[#allocation34_spill] sm:$0xff] %v5759_v3 }
 0x2d6   :  { %1106 = vmatprep.subr.mxu0 %v5734_v42  ;;  %1175 = vmatprep.subr.mxu1 %v5737_v35  ;;  %9856 = vst [vmem:[#allocation30_spill] sm:$0xff] %v5747_v60  ;;  %9857 = vst [vmem:[#allocation31_spill] sm:$0xff] %v5750_v62  ;;  %v5753_v42 = vld [vmem:[#allocation4 + $0x200] sm:$0xff]  ;;  %v5756_v35 = vld [vmem:[#allocation4 + $0x230] sm:$0xff] }
 0x2d7   :  { %1107 = vmatpush2.msra.mxu0 %v5740_v50  ;;  %1176 = vmatpush2.msra.mxu1 %v5744_v48  ;;  %9858 = vst [vmem:[#allocation32_spill] sm:$0xff] %v5753_v42  ;;  %9859 = vst [vmem:[#allocation33_spill] sm:$0xff] %v5756_v35 }
 0x2d8   :  { %1108 = vmatprep.subr.mxu0 %v5747_v60  ;;  %1177 = vmatprep.subr.mxu1 %v5750_v62  ;;  %9861 = vst [vmem:[#allocation35_spill] sm:$0xff] %v5762_v56  ;;  %v5765_v60 = vld [vmem:[#allocation4 + $0x5e8] sm:$0xff]  ;;  %v5768_v62 = vld [vmem:[#allocation4 + $0x5e0] sm:$0xff] }
 0x2d9   :  { %1109 = vmatpush2.msra.mxu0 %v5753_v42  ;;  %1178 = vmatpush2.msra.mxu1 %v5756_v35  ;;  %9862 = vst [vmem:[#allocation36_spill] sm:$0xff] %v5765_v60  ;;  %9863 = vst [vmem:[#allocation37_spill] sm:$0xff] %v5768_v62  ;;  %v5771_v42 = vld [vmem:[#allocation4 + $0x5f8] sm:$0xff]  ;;  %v5774_v35 = vld [vmem:[#allocation4 + $0x5c8] sm:$0xff] }
 0x2da   :  { %1111 = vmatmul.mubr.f32.vlgmr.msra.gmra.mxu0 %v1044_v58  ;;  %1179 = vmatprep.subr.mxu1 %v5759_v3  ;;  %9864 = vst [vmem:[#allocation38_spill] sm:$0xff] %v5771_v42  ;;  %9865 = vst [vmem:[#allocation39_spill] sm:$0xff] %v5774_v35  ;;  %v5777_v3 = vld [vmem:[#allocation4 + $0x5f0] sm:$0xff] }
 0x2db   :  { %1180 = vmatpush2.msra.mxu1 %v5762_v56  ;;  %1210 = vmatprep.subr.mxu0 %v5765_v60  ;;  %9866 = vst [vmem:[#allocation40_spill] sm:$0xff] %v5777_v3  ;;  %v5780_v56 = vld [vmem:[#allocation4 + $0x5c0] sm:$0xff] }
 0x2dc   :  { %1182 = vmatmul.mubr.f32.vlgmr.msra.gmra.mxu1 %v1044_v58  ;;  %1211 = vmatpush1.msra.mxu0 %v5768_v62  ;;  %9867 = vst [vmem:[#allocation41_spill] sm:$0xff] %v5780_v56  ;;  %v5783_v58 = vld [vmem:[#allocation4 + $0x5d8] sm:$0xff]  ;;  %v5786_v62 = vld [vmem:[#allocation4 + $0x5a8] sm:$0xff] }
 0x2dd   :  { %1281 = vmatprep.subr.mxu1 %v5771_v42  ;;  %1212 = vmatprep.subr.mxu0 %v5774_v35  ;;  %9868 = vst [vmem:[#allocation42_spill] sm:$0xff] %v5783_v58  ;;  %9869 = vst [vmem:[#allocation43_spill] sm:$0xff] %v5786_v62  ;;  %v5789_v42 = vld [vmem:[#allocation4 + $0x5d0] sm:$0xff]  ;;  %v5792_v35 = vld [vmem:[#allocation4 + $0x5a0] sm:$0xff] }
 0x2de   :  { %1282 = vmatpush1.msra.mxu1 %v5777_v3  ;;  %1213 = vmatpush1.msra.mxu0 %v5780_v56  ;;  %9870 = vst [vmem:[#allocation44_spill] sm:$0xff] %v5789_v42  ;;  %9871 = vst [vmem:[#allocation45_spill] sm:$0xff] %v5792_v35  ;;  %v5795_v3 = vld [vmem:[#allocation4 + $0x5b8] sm:$0xff]  ;;  %v5798_v56 = vld [vmem:[#allocation4 + $0x588] sm:$0xff] }
 0x2df   :  { %1283 = vmatprep.subr.mxu1 %v5783_v58  ;;  %1214 = vmatprep.subr.mxu0 %v5786_v62  ;;  %9872 = vst [vmem:[#allocation46_spill] sm:$0xff] %v5795_v3  ;;  %9873 = vst [vmem:[#allocation47_spill] sm:$0xff] %v5798_v56  ;;  %v5801_v58 = vld [vmem:[#allocation4 + $0x5b0] sm:$0xff]  ;;  %v5804_v62 = vld [vmem:[#allocation4 + $0x580] sm:$0xff] }
 0x2e0   :  { %1284 = vmatpush1.msra.mxu1 %v5789_v42  ;;  %1215 = vmatpush1.msra.mxu0 %v5792_v35  ;;  %9874 = vst [vmem:[#allocation48_spill] sm:$0xff] %v5801_v58  ;;  %9875 = vst [vmem:[#allocation49_spill] sm:$0xff] %v5804_v62  ;;  %v5807_v42 = vld [vmem:[#allocation4 + $0x598] sm:$0xff]  ;;  %v5810_v35 = vld [vmem:[#allocation4 + $0x568] sm:$0xff] }
 0x2e1   :  { %1285 = vmatprep.subr.mxu1 %v5795_v3  ;;  %1216 = vmatprep.subr.mxu0 %v5798_v56  ;;  %9876 = vst [vmem:[#allocation50_spill] sm:$0xff] %v5807_v42  ;;  %9877 = vst [vmem:[#allocation51_spill] sm:$0xff] %v5810_v35  ;;  %v5813_v3 = vld [vmem:[#allocation4 + $0x590] sm:$0xff]  ;;  %v5816_v56 = vld [vmem:[#allocation4 + $0x560] sm:$0xff] }
 0x2e2   :  { %1286 = vmatpush1.msra.mxu1 %v5801_v58  ;;  %1217 = vmatpush1.msra.mxu0 %v5804_v62  ;;  %9878 = vst [vmem:[#allocation52_spill] sm:$0xff] %v5813_v3  ;;  %9879 = vst [vmem:[#allocation53_spill] sm:$0xff] %v5816_v56  ;;  %v5819_v58 = vld [vmem:[#allocation4 + $0x578] sm:$0xff]  ;;  %v5822_v62 = vld [vmem:[#allocation4 + $0x548] sm:$0xff] }
 0x2e3   :  { %1287 = vmatprep.subr.mxu1 %v5807_v42  ;;  %1218 = vmatprep.subr.mxu0 %v5810_v35  ;;  %9880 = vst [vmem:[#allocation54_spill] sm:$0xff] %v5819_v58  ;;  %9881 = vst [vmem:[#allocation55_spill] sm:$0xff] %v5822_v62  ;;  %v5825_v42 = vld [vmem:[#allocation4 + $0x570] sm:$0xff]  ;;  %v5828_v35 = vld [vmem:[#allocation4 + $0x540] sm:$0xff] }
 0x2e4   :  { %1288 = vmatpush1.msra.mxu1 %v5813_v3  ;;  %1219 = vmatpush1.msra.mxu0 %v5816_v56  ;;  %9882 = vst [vmem:[#allocation56_spill] sm:$0xff] %v5825_v42  ;;  %9883 = vst [vmem:[#allocation57_spill] sm:$0xff] %v5828_v35  ;;  %v5831_v3 = vld [vmem:[#allocation4 + $0x558] sm:$0xff]  ;;  %v5834_v56 = vld [vmem:[#allocation4 + $0x528] sm:$0xff] }
 0x2e5   :  { %1289 = vmatprep.subr.mxu1 %v5819_v58  ;;  %1220 = vmatprep.subr.mxu0 %v5822_v62  ;;  %9884 = vst [vmem:[#allocation58_spill] sm:$0xff] %v5831_v3  ;;  %9885 = vst [vmem:[#allocation59_spill] sm:$0xff] %v5834_v56  ;;  %v5837_v58 = vld [vmem:[#allocation4 + $0x550] sm:$0xff]  ;;  %v5840_v62 = vld [vmem:[#allocation4 + $0x520] sm:$0xff] }
 0x2e6   :  { %1290 = vmatpush1.msra.mxu1 %v5825_v42  ;;  %1221 = vmatpush1.msra.mxu0 %v5828_v35  ;;  %9886 = vst [vmem:[#allocation60_spill] sm:$0xff] %v5837_v58  ;;  %9887 = vst [vmem:[#allocation61_spill] sm:$0xff] %v5840_v62  ;;  %v5843_v42 = vld [vmem:[#allocation4 + $0x538] sm:$0xff]  ;;  %v5846_v35 = vld [vmem:[#allocation4 + $0x508] sm:$0xff] }
 0x2e7   :  { %1291 = vmatprep.subr.mxu1 %v5831_v3  ;;  %1222 = vmatprep.subr.mxu0 %v5834_v56  ;;  %9888 = vst [vmem:[#allocation62_spill] sm:$0xff] %v5843_v42  ;;  %9889 = vst [vmem:[#allocation63_spill] sm:$0xff] %v5846_v35  ;;  %v5849_v3 = vld [vmem:[#allocation4 + $0x530] sm:$0xff]  ;;  %v5852_v56 = vld [vmem:[#allocation4 + $0x500] sm:$0xff] }
 0x2e8   :  { %1292 = vmatpush1.msra.mxu1 %v5837_v58  ;;  %1223 = vmatpush1.msra.mxu0 %v5840_v62  ;;  %9890 = vst [vmem:[#allocation64_spill] sm:$0xff] %v5849_v3  ;;  %9891 = vst [vmem:[#allocation65_spill] sm:$0xff] %v5852_v56  ;;  %v5855_v58 = vld [vmem:[#allocation4 + $0x518] sm:$0xff]  ;;  %v5858_v62 = vld [vmem:[#allocation4 + $0x4e8] sm:$0xff] }
 0x2e9   :  { %1293 = vmatprep.subr.mxu1 %v5843_v42  ;;  %1224 = vmatprep.subr.mxu0 %v5846_v35  ;;  %9892 = vst [vmem:[#allocation66_spill] sm:$0xff] %v5855_v58  ;;  %9893 = vst [vmem:[#allocation67_spill] sm:$0xff] %v5858_v62  ;;  %v5861_v42 = vld [vmem:[#allocation4 + $0x510] sm:$0xff]  ;;  %v5864_v35 = vld [vmem:[#allocation4 + $0x4e0] sm:$0xff] }
 0x2ea   :  { %1294 = vmatpush1.msra.mxu1 %v5849_v3  ;;  %1225 = vmatpush1.msra.mxu0 %v5852_v56  ;;  %9894 = vst [vmem:[#allocation68_spill] sm:$0xff] %v5861_v42  ;;  %9895 = vst [vmem:[#allocation69_spill] sm:$0xff] %v5864_v35  ;;  %v5867_v3 = vld [vmem:[#allocation4 + $0x4f8] sm:$0xff]  ;;  %v5870_v56 = vld [vmem:[#allocation4 + $0x4c8] sm:$0xff] }
 0x2eb   :  { %1295 = vmatprep.subr.mxu1 %v5855_v58  ;;  %1226 = vmatprep.subr.mxu0 %v5858_v62  ;;  %9896 = vst [vmem:[#allocation70_spill] sm:$0xff] %v5867_v3  ;;  %9897 = vst [vmem:[#allocation71_spill] sm:$0xff] %v5870_v56  ;;  %v5873_v58 = vld [vmem:[#allocation4 + $0x4f0] sm:$0xff]  ;;  %v5876_v62 = vld [vmem:[#allocation4 + $0x4c0] sm:$0xff] }
 0x2ec   :  { %1296 = vmatpush1.msra.mxu1 %v5861_v42  ;;  %1227 = vmatpush1.msra.mxu0 %v5864_v35  ;;  %9898 = vst [vmem:[#allocation72_spill] sm:$0xff] %v5873_v58  ;;  %9899 = vst [vmem:[#allocation73_spill] sm:$0xff] %v5876_v62  ;;  %v5879_v42 = vld [vmem:[#allocation4 + $0x4d8] sm:$0xff]  ;;  %v5882_v35 = vld [vmem:[#allocation4 + $0x4a8] sm:$0xff] }
 0x2ed   :  { %1297 = vmatprep.subr.mxu1 %v5867_v3  ;;  %1228 = vmatprep.subr.mxu0 %v5870_v56  ;;  %9900 = vst [vmem:[#allocation74_spill] sm:$0xff] %v5879_v42  ;;  %9901 = vst [vmem:[#allocation75_spill] sm:$0xff] %v5882_v35  ;;  %v5885_v3 = vld [vmem:[#allocation4 + $0x4d0] sm:$0xff]  ;;  %v5888_v56 = vld [vmem:[#allocation4 + $0x4a0] sm:$0xff] }
 0x2ee   :  { %1298 = vmatpush1.msra.mxu1 %v5873_v58  ;;  %1229 = vmatpush1.msra.mxu0 %v5876_v62  ;;  %9902 = vst [vmem:[#allocation76_spill] sm:$0xff] %v5885_v3  ;;  %9903 = vst [vmem:[#allocation77_spill] sm:$0xff] %v5888_v56  ;;  %v5891_v58 = vld [vmem:[#allocation4 + $0x4b8] sm:$0xff]  ;;  %v5894_v62 = vld [vmem:[#allocation4 + $0x488] sm:$0xff] }
 0x2ef   :  { %1299 = vmatprep.subr.mxu1 %v5879_v42  ;;  %1230 = vmatprep.subr.mxu0 %v5882_v35  ;;  %9904 = vst [vmem:[#allocation78_spill] sm:$0xff] %v5891_v58  ;;  %9905 = vst [vmem:[#allocation79_spill] sm:$0xff] %v5894_v62  ;;  %v5897_v42 = vld [vmem:[#allocation4 + $0x4b0] sm:$0xff]  ;;  %v5900_v35 = vld [vmem:[#allocation4 + $0x480] sm:$0xff] }
 0x2f0   :  { %1300 = vmatpush1.msra.mxu1 %v5885_v3  ;;  %1231 = vmatpush1.msra.mxu0 %v5888_v56  ;;  %9906 = vst [vmem:[#allocation80_spill] sm:$0xff] %v5897_v42  ;;  %9907 = vst [vmem:[#allocation81_spill] sm:$0xff] %v5900_v35  ;;  %v5903_v3 = vld [vmem:[#allocation4 + $0x498] sm:$0xff]  ;;  %v5906_v56 = vld [vmem:[#allocation4 + $0x468] sm:$0xff] }
 0x2f1   :  { %1301 = vmatprep.subr.mxu1 %v5891_v58  ;;  %1232 = vmatprep.subr.mxu0 %v5894_v62  ;;  %9908 = vst [vmem:[#allocation82_spill] sm:$0xff] %v5903_v3  ;;  %9909 = vst [vmem:[#allocation83_spill] sm:$0xff] %v5906_v56  ;;  %v5909_v58 = vld [vmem:[#allocation4 + $0x490] sm:$0xff]  ;;  %v5912_v62 = vld [vmem:[#allocation4 + $0x460] sm:$0xff] }
 0x2f2   :  { %1302 = vmatpush1.msra.mxu1 %v5897_v42  ;;  %1233 = vmatpush1.msra.mxu0 %v5900_v35  ;;  %9910 = vst [vmem:[#allocation84_spill] sm:$0xff] %v5909_v58  ;;  %9911 = vst [vmem:[#allocation85_spill] sm:$0xff] %v5912_v62  ;;  %v5915_v42 = vld [vmem:[#allocation4 + $0x478] sm:$0xff]  ;;  %v5918_v35 = vld [vmem:[#allocation4 + $0x448] sm:$0xff] }
 0x2f3   :  { %1303 = vmatprep.subr.mxu1 %v5903_v3  ;;  %1234 = vmatprep.subr.mxu0 %v5906_v56  ;;  %9912 = vst [vmem:[#allocation86_spill] sm:$0xff] %v5915_v42  ;;  %9913 = vst [vmem:[#allocation87_spill] sm:$0xff] %v5918_v35  ;;  %v5921_v3 = vld [vmem:[#allocation4 + $0x470] sm:$0xff]  ;;  %v5924_v56 = vld [vmem:[#allocation4 + $0x440] sm:$0xff] }
 0x2f4   :  { %1304 = vmatpush1.msra.mxu1 %v5909_v58  ;;  %1235 = vmatpush1.msra.mxu0 %v5912_v62  ;;  %9914 = vst [vmem:[#allocation88_spill] sm:$0xff] %v5921_v3  ;;  %9915 = vst [vmem:[#allocation89_spill] sm:$0xff] %v5924_v56  ;;  %v5927_v58 = vld [vmem:[#allocation4 + $0x458] sm:$0xff]  ;;  %v5930_v62 = vld [vmem:[#allocation4 + $0x428] sm:$0xff] }
 0x2f5   :  { %1305 = vmatprep.subr.mxu1 %v5915_v42  ;;  %1236 = vmatprep.subr.mxu0 %v5918_v35  ;;  %9916 = vst [vmem:[#allocation90_spill] sm:$0xff] %v5927_v58  ;;  %9917 = vst [vmem:[#allocation91_spill] sm:$0xff] %v5930_v62  ;;  %v5933_v42 = vld [vmem:[#allocation4 + $0x450] sm:$0xff]  ;;  %v5936_v35 = vld [vmem:[#allocation4 + $0x420] sm:$0xff] }
 0x2f6   :  { %1306 = vmatpush1.msra.mxu1 %v5921_v3  ;;  %1237 = vmatpush1.msra.mxu0 %v5924_v56  ;;  %9918 = vst [vmem:[#allocation92_spill] sm:$0xff] %v5933_v42  ;;  %9919 = vst [vmem:[#allocation93_spill] sm:$0xff] %v5936_v35  ;;  %v5939_v3 = vld [vmem:[#allocation4 + $0x438] sm:$0xff]  ;;  %v5942_v56 = vld [vmem:[#allocation4 + $0x408] sm:$0xff] }
 0x2f7   :  { %1307 = vmatprep.subr.mxu1 %v5927_v58  ;;  %1238 = vmatprep.subr.mxu0 %v5930_v62  ;;  %9920 = vst [vmem:[#allocation94_spill] sm:$0xff] %v5939_v3  ;;  %9921 = vst [vmem:[#allocation95_spill] sm:$0xff] %v5942_v56  ;;  %v5945_v58 = vld [vmem:[#allocation4 + $0x430] sm:$0xff]  ;;  %v5948_v62 = vld [vmem:[#allocation4 + $0x400] sm:$0xff] }
 0x2f8   :  { %1308 = vmatpush1.msra.mxu1 %v5933_v42  ;;  %1239 = vmatpush1.msra.mxu0 %v5936_v35  ;;  %9922 = vst [vmem:[#allocation96_spill] sm:$0xff] %v5945_v58  ;;  %9923 = vst [vmem:[#allocation97_spill] sm:$0xff] %v5948_v62  ;;  %v5951_v42 = vld [vmem:[#allocation4 + $0x418] sm:$0xff]  ;;  %v5954_v35 = vld [vmem:[#allocation4 + $0x7e8] sm:$0xff] }
 0x2f9   :  { %1309 = vmatprep.subr.mxu1 %v5939_v3  ;;  %1240 = vmatprep.subr.mxu0 %v5942_v56  ;;  %9924 = vst [vmem:[#allocation98_spill] sm:$0xff] %v5951_v42  ;;  %9925 = vst [vmem:[#allocation99_spill] sm:$0xff] %v5954_v35  ;;  %v5957_v3 = vld [vmem:[#allocation4 + $0x410] sm:$0xff]  ;;  %v5960_v56 = vld [vmem:[#allocation4 + $0x7e0] sm:$0xff] }
 0x2fa   :  { %1310 = vmatpush1.msra.mxu1 %v5945_v58  ;;  %1241 = vmatpush1.msra.mxu0 %v5948_v62  ;;  %9926 = vst [vmem:[#allocation100_spill] sm:$0xff] %v5957_v3  ;;  %9927 = vst [vmem:[#allocation101_spill] sm:$0xff] %v5960_v56  ;;  %v5963_v58 = vld [vmem:[#allocation4 + $0x7f8] sm:$0xff]  ;;  %v5966_v62 = vld [vmem:[#allocation4 + $0x7c8] sm:$0xff] }
 0x2fb   :  { %1311 = vmatprep.subr.mxu1 %v5951_v42  ;;  %1242 = vmatprep.subr.mxu0 %v5954_v35  ;;  %9928 = vst [vmem:[#allocation102_spill] sm:$0xff] %v5963_v58  ;;  %9929 = vst [vmem:[#allocation103_spill] sm:$0xff] %v5966_v62  ;;  %v5969_v42 = vld [vmem:[#allocation4 + $0x7f0] sm:$0xff]  ;;  %v5972_v35 = vld [vmem:[#allocation4 + $0x7c0] sm:$0xff] }
 0x2fc   :  { %1312 = vmatpush1.msra.mxu1 %v5957_v3  ;;  %1243 = vmatpush2.msra.mxu0 %v5960_v56  ;;  %9930 = vst [vmem:[#allocation104_spill] sm:$0xff] %v5969_v42  ;;  %9931 = vst [vmem:[#allocation105_spill] sm:$0xff] %v5972_v35  ;;  %v5975_v3 = vld [vmem:[#allocation4 + $0x7d8] sm:$0xff]  ;;  %v5978_v56 = vld [vmem:[#allocation4 + $0x7a8] sm:$0xff] }
 0x2fd   :  { %1313 = vmatprep.subr.mxu1 %v5963_v58  ;;  %1244 = vmatprep.subr.mxu0 %v5966_v62  ;;  %9932 = vst [vmem:[#allocation106_spill] sm:$0xff] %v5975_v3  ;;  %9933 = vst [vmem:[#allocation107_spill] sm:$0xff] %v5978_v56  ;;  %v5981_v58 = vld [vmem:[#allocation4 + $0x7d0] sm:$0xff]  ;;  %v5984_v62 = vld [vmem:[#allocation4 + $0x7a0] sm:$0xff] }
 0x2fe   :  { %1314 = vmatpush2.msra.mxu1 %v5969_v42  ;;  %1245 = vmatpush2.msra.mxu0 %v5972_v35  ;;  %9934 = vst [vmem:[#allocation108_spill] sm:$0xff] %v5981_v58  ;;  %9935 = vst [vmem:[#allocation109_spill] sm:$0xff] %v5984_v62  ;;  %v5987_v42 = vld [vmem:[#allocation4 + $0x7b8] sm:$0xff]  ;;  %v5990_v35 = vld [vmem:[#allocation4 + $0x788] sm:$0xff] }
 0x2ff   :  { %1315 = vmatprep.subr.mxu1 %v5975_v3  ;;  %1246 = vmatprep.subr.mxu0 %v5978_v56  ;;  %9936 = vst [vmem:[#allocation110_spill] sm:$0xff] %v5987_v42  ;;  %9937 = vst [vmem:[#allocation111_spill] sm:$0xff] %v5990_v35  ;;  %v5993_v3 = vld [vmem:[#allocation4 + $0x7b0] sm:$0xff]  ;;  %v5996_v56 = vld [vmem:[#allocation4 + $0x780] sm:$0xff] }
 0x300   :  { %1316 = vmatpush2.msra.mxu1 %v5981_v58  ;;  %1247 = vmatpush2.msra.mxu0 %v5984_v62  ;;  %9938 = vst [vmem:[#allocation112_spill] sm:$0xff] %v5993_v3  ;;  %9939 = vst [vmem:[#allocation113_spill] sm:$0xff] %v5996_v56  ;;  %v5999_v58 = vld [vmem:[#allocation4 + $0x798] sm:$0xff]  ;;  %v6002_v62 = vld [vmem:[#allocation4 + $0x768] sm:$0xff] }
 0x301   :  { %1317 = vmatprep.subr.mxu1 %v5987_v42  ;;  %1248 = vmatprep.subr.mxu0 %v5990_v35  ;;  %9940 = vst [vmem:[#allocation114_spill] sm:$0xff] %v5999_v58  ;;  %9941 = vst [vmem:[#allocation115_spill] sm:$0xff] %v6002_v62  ;;  %v6005_v42 = vld [vmem:[#allocation4 + $0x790] sm:$0xff]  ;;  %v6008_v35 = vld [vmem:[#allocation4 + $0x760] sm:$0xff] }
 0x302   :  { %1318 = vmatpush2.msra.mxu1 %v5993_v3  ;;  %1249 = vmatpush2.msra.mxu0 %v5996_v56  ;;  %9942 = vst [vmem:[#allocation116_spill] sm:$0xff] %v6005_v42  ;;  %9943 = vst [vmem:[#allocation117_spill] sm:$0xff] %v6008_v35  ;;  %v6011_v3 = vld [vmem:[#allocation4 + $0x778] sm:$0xff]  ;;  %v6014_v56 = vld [vmem:[#allocation4 + $0x748] sm:$0xff] }
 0x303   :  { %1319 = vmatprep.subr.mxu1 %v5999_v58  ;;  %1250 = vmatprep.subr.mxu0 %v6002_v62  ;;  %9944 = vst [vmem:[#allocation118_spill] sm:$0xff] %v6011_v3  ;;  %9945 = vst [vmem:[#allocation119_spill] sm:$0xff] %v6014_v56  ;;  %v6017_v58 = vld [vmem:[#allocation4 + $0x770] sm:$0xff]  ;;  %v6020_v62 = vld [vmem:[#allocation4 + $0x740] sm:$0xff] }
 0x304   :  { %1320 = vmatpush2.msra.mxu1 %v6005_v42  ;;  %1251 = vmatpush2.msra.mxu0 %v6008_v35  ;;  %9946 = vst [vmem:[#allocation120_spill] sm:$0xff] %v6017_v58  ;;  %9947 = vst [vmem:[#allocation121_spill] sm:$0xff] %v6020_v62  ;;  %v6023_v42 = vld [vmem:[#allocation4 + $0x758] sm:$0xff]  ;;  %v6026_v35 = vld [vmem:[#allocation4 + $0x728] sm:$0xff] }
 0x305   :  { %1321 = vmatprep.subr.mxu1 %v6011_v3  ;;  %1252 = vmatprep.subr.mxu0 %v6014_v56  ;;  %9948 = vst [vmem:[#allocation122_spill] sm:$0xff] %v6023_v42  ;;  %9949 = vst [vmem:[#allocation123_spill] sm:$0xff] %v6026_v35  ;;  %v6029_v3 = vld [vmem:[#allocation4 + $0x750] sm:$0xff]  ;;  %v6032_v56 = vld [vmem:[#allocation4 + $0x720] sm:$0xff] }
 0x306   :  { %1322 = vmatpush2.msra.mxu1 %v6017_v58  ;;  %1253 = vmatpush2.msra.mxu0 %v6020_v62  ;;  %9950 = vst [vmem:[#allocation124_spill] sm:$0xff] %v6029_v3  ;;  %9951 = vst [vmem:[#allocation125_spill] sm:$0xff] %v6032_v56  ;;  %v6035_v58 = vld [vmem:[#allocation4 + $0x738] sm:$0xff]  ;;  %v6038_v62 = vld [vmem:[#allocation4 + $0x708] sm:$0xff] }
 0x307   :  { %1323 = vmatprep.subr.mxu1 %v6023_v42  ;;  %1254 = vmatprep.subr.mxu0 %v6026_v35  ;;  %9952 = vst [vmem:[#allocation126_spill] sm:$0xff] %v6035_v58  ;;  %9953 = vst [vmem:[#allocation127_spill] sm:$0xff] %v6038_v62  ;;  %v6041_v42 = vld [vmem:[#allocation4 + $0x730] sm:$0xff]  ;;  %v6044_v35 = vld [vmem:[#allocation4 + $0x700] sm:$0xff] }
 0x308   :  { %1324 = vmatpush2.msra.mxu1 %v6029_v3  ;;  %1255 = vmatpush2.msra.mxu0 %v6032_v56  ;;  %9954 = vst [vmem:[#allocation128_spill] sm:$0xff] %v6041_v42  ;;  %9955 = vst [vmem:[#allocation129_spill] sm:$0xff] %v6044_v35  ;;  %v6047_v3 = vld [vmem:[#allocation4 + $0x718] sm:$0xff]  ;;  %v6050_v56 = vld [vmem:[#allocation4 + $0x6e8] sm:$0xff] }
 0x309   :  { %1325 = vmatprep.subr.mxu1 %v6035_v58  ;;  %1256 = vmatprep.subr.mxu0 %v6038_v62  ;;  %9956 = vst [vmem:[#allocation130_spill] sm:$0xff] %v6047_v3  ;;  %9957 = vst [vmem:[#allocation131_spill] sm:$0xff] %v6050_v56  ;;  %v6053_v58 = vld [vmem:[#allocation4 + $0x710] sm:$0xff]  ;;  %v6056_v62 = vld [vmem:[#allocation4 + $0x6e0] sm:$0xff] }
 0x30a   :  { %1326 = vmatpush2.msra.mxu1 %v6041_v42  ;;  %1257 = vmatpush2.msra.mxu0 %v6044_v35  ;;  %9958 = vst [vmem:[#allocation132_spill] sm:$0xff] %v6053_v58  ;;  %9959 = vst [vmem:[#allocation133_spill] sm:$0xff] %v6056_v62  ;;  %v6059_v42 = vld [vmem:[#allocation4 + $0x6f8] sm:$0xff]  ;;  %v6062_v35 = vld [vmem:[#allocation4 + $0x6c8] sm:$0xff] }
 0x30b   :  { %1327 = vmatprep.subr.mxu1 %v6047_v3  ;;  %1258 = vmatprep.subr.mxu0 %v6050_v56  ;;  %9960 = vst [vmem:[#allocation134_spill] sm:$0xff] %v6059_v42  ;;  %9961 = vst [vmem:[#allocation135_spill] sm:$0xff] %v6062_v35  ;;  %v6065_v3 = vld [vmem:[#allocation4 + $0x6f0] sm:$0xff]  ;;  %v6068_v56 = vld [vmem:[#allocation4 + $0x6c0] sm:$0xff] }
 0x30c   :  { %1328 = vmatpush2.msra.mxu1 %v6053_v58  ;;  %1259 = vmatpush2.msra.mxu0 %v6056_v62  ;;  %9962 = vst [vmem:[#allocation136_spill] sm:$0xff] %v6065_v3  ;;  %9963 = vst [vmem:[#allocation137_spill] sm:$0xff] %v6068_v56  ;;  %v6071_v58 = vld [vmem:[#allocation4 + $0x6d8] sm:$0xff]  ;;  %v6074_v62 = vld [vmem:[#allocation4 + $0x6a8] sm:$0xff] }
 0x30d   :  { %1329 = vmatprep.subr.mxu1 %v6059_v42  ;;  %1260 = vmatprep.subr.mxu0 %v6062_v35  ;;  %9964 = vst [vmem:[#allocation138_spill] sm:$0xff] %v6071_v58  ;;  %9965 = vst [vmem:[#allocation139_spill] sm:$0xff] %v6074_v62  ;;  %v6077_v42 = vld [vmem:[#allocation4 + $0x6d0] sm:$0xff]  ;;  %v6080_v35 = vld [vmem:[#allocation4 + $0x6a0] sm:$0xff] }
 0x30e   :  { %1330 = vmatpush2.msra.mxu1 %v6065_v3  ;;  %1261 = vmatpush2.msra.mxu0 %v6068_v56  ;;  %9966 = vst [vmem:[#allocation140_spill] sm:$0xff] %v6077_v42  ;;  %9967 = vst [vmem:[#allocation141_spill] sm:$0xff] %v6080_v35  ;;  %v6083_v3 = vld [vmem:[#allocation4 + $0x6b8] sm:$0xff]  ;;  %v6086_v56 = vld [vmem:[#allocation4 + $0x688] sm:$0xff] }
 0x30f   :  { %1331 = vmatprep.subr.mxu1 %v6071_v58  ;;  %1262 = vmatprep.subr.mxu0 %v6074_v62  ;;  %9968 = vst [vmem:[#allocation142_spill] sm:$0xff] %v6083_v3  ;;  %9969 = vst [vmem:[#allocation143_spill] sm:$0xff] %v6086_v56  ;;  %v6089_v58 = vld [vmem:[#allocation4 + $0x6b0] sm:$0xff]  ;;  %v6092_v62 = vld [vmem:[#allocation4 + $0x680] sm:$0xff] }
 0x310   :  { %1332 = vmatpush2.msra.mxu1 %v6077_v42  ;;  %1263 = vmatpush2.msra.mxu0 %v6080_v35  ;;  %9970 = vst [vmem:[#allocation144_spill] sm:$0xff] %v6089_v58  ;;  %9971 = vst [vmem:[#allocation145_spill] sm:$0xff] %v6092_v62  ;;  %v6095_v42 = vld [vmem:[#allocation4 + $0x698] sm:$0xff]  ;;  %v6098_v35 = vld [vmem:[#allocation4 + $0x668] sm:$0xff] }
 0x311   :  { %1333 = vmatprep.subr.mxu1 %v6083_v3  ;;  %1264 = vmatprep.subr.mxu0 %v6086_v56  ;;  %9972 = vst [vmem:[#allocation146_spill] sm:$0xff] %v6095_v42  ;;  %9973 = vst [vmem:[#allocation147_spill] sm:$0xff] %v6098_v35  ;;  %v6101_v3 = vld [vmem:[#allocation4 + $0x690] sm:$0xff]  ;;  %v6104_v56 = vld [vmem:[#allocation4 + $0x660] sm:$0xff] }
 0x312   :  { %1334 = vmatpush2.msra.mxu1 %v6089_v58  ;;  %1265 = vmatpush2.msra.mxu0 %v6092_v62  ;;  %9974 = vst [vmem:[#allocation148_spill] sm:$0xff] %v6101_v3  ;;  %9975 = vst [vmem:[#allocation149_spill] sm:$0xff] %v6104_v56  ;;  %v6107_v58 = vld [vmem:[#allocation4 + $0x678] sm:$0xff]  ;;  %v6110_v62 = vld [vmem:[#allocation4 + $0x648] sm:$0xff] }
 0x313   :  { %1335 = vmatprep.subr.mxu1 %v6095_v42  ;;  %1266 = vmatprep.subr.mxu0 %v6098_v35  ;;  %9976 = vst [vmem:[#allocation151_spill] sm:$0xff] %v6107_v58  ;;  %9977 = vst [vmem:[#allocation150_spill] sm:$0xff] %v6110_v62  ;;  %v6113_v42 = vld [vmem:[#allocation4 + $0x670] sm:$0xff]  ;;  %v6116_v35 = vld [vmem:[#allocation4 + $0x640] sm:$0xff] }
 0x314   :  { %1336 = vmatpush2.msra.mxu1 %v6101_v3  ;;  %1267 = vmatpush2.msra.mxu0 %v6104_v56  ;;  %9978 = vst [vmem:[#allocation152_spill] sm:$0xff] %v6113_v42  ;;  %9979 = vst [vmem:[#allocation153_spill] sm:$0xff] %v6116_v35  ;;  %v6119_v3 = vld [vmem:[#allocation4 + $0x658] sm:$0xff]  ;;  %v6122_v56 = vld [vmem:[#allocation4 + $0x628] sm:$0xff] }
 0x315   :  { %1337 = vmatprep.subr.mxu1 %v6107_v58  ;;  %1268 = vmatprep.subr.mxu0 %v6110_v62  ;;  %9980 = vst [vmem:[#allocation154_spill] sm:$0xff] %v6119_v3  ;;  %9981 = vst [vmem:[#allocation155_spill] sm:$0xff] %v6122_v56  ;;  %v6125_v58 = vld [vmem:[#allocation4 + $0x650] sm:$0xff]  ;;  %v6128_v62 = vld [vmem:[#allocation4 + $0x620] sm:$0xff] }
 0x316   :  { %1338 = vmatpush2.msra.mxu1 %v6113_v42  ;;  %1269 = vmatpush2.msra.mxu0 %v6116_v35  ;;  %9982 = vst [vmem:[#allocation156_spill] sm:$0xff] %v6125_v58  ;;  %9983 = vst [vmem:[#allocation157_spill] sm:$0xff] %v6128_v62  ;;  %v6131_v42 = vld [vmem:[#allocation4 + $0x638] sm:$0xff]  ;;  %v6134_v35 = vld [vmem:[#allocation4 + $0x608] sm:$0xff] }
 0x317   :  { %1339 = vmatprep.subr.mxu1 %v6119_v3  ;;  %1270 = vmatprep.subr.mxu0 %v6122_v56  ;;  %9984 = vst [vmem:[#allocation158_spill] sm:$0xff] %v6131_v42  ;;  %9985 = vst [vmem:[#allocation159_spill] sm:$0xff] %v6134_v35  ;;  %v6137_v3 = vld [vmem:[#allocation4 + $0x630] sm:$0xff]  ;;  %v6140_v56 = vld [vmem:[#allocation4 + $0x600] sm:$0xff] }
 0x318   :  { %1340 = vmatpush2.msra.mxu1 %v6125_v58  ;;  %1271 = vmatpush2.msra.mxu0 %v6128_v62  ;;  %9986 = vst [vmem:[#allocation160_spill] sm:$0xff] %v6137_v3  ;;  %9987 = vst [vmem:[#allocation161_spill] sm:$0xff] %v6140_v56  ;;  %v6143_v58 = vld [vmem:[#allocation4 + $0x618] sm:$0xff]  ;;  %v6146_v62 = vld [vmem:[#allocation4 + $0x1e8] sm:$0xff] }
 0x319   :  { %1341 = vmatprep.subr.mxu1 %v6131_v42  ;;  %1272 = vmatprep.subr.mxu0 %v6134_v35  ;;  %9988 = vst [vmem:[#allocation162_spill] sm:$0xff] %v6143_v58  ;;  %9989 = vst [vmem:[#allocation163_spill] sm:$0xff] %v6146_v62  ;;  %v6149_v42 = vld [vmem:[#allocation4 + $0x610] sm:$0xff] }
 0x31a   :  { %1342 = vmatpush2.msra.mxu1 %v6137_v3  ;;  %1273 = vmatpush2.msra.mxu0 %v6140_v56  ;;  %9990 = vst [vmem:[#allocation164_spill] sm:$0xff] %v6149_v42 }
 0x31b   :  { %1343 = vmatprep.subr.mxu1 %v6143_v58  ;;  %1385 = vmatprep.subr.mxu0 %v6146_v62 }
 0x31c   :  { %1344 = vmatpush2.msra.mxu1 %v6149_v42 }
 0x31d   :  { %1456 = vmatprep.subr.mxu1 %v5468_v49 }
 0x35a   :  { %v937_v35 = vpop.f32.mrf.mxu0  ;;  %v1008_v62 = vpop.f32.mrf.mxu1 }
 0x35b   :  { %v938_v3 = vadd.f32 %v937_v35, %v5476_v53  ;;  %v1009_v45 = vadd.f32 %v1008_v62, %v5490_v30 }
 0x35c   :  { %v939_v48 = vpop.f32.mrf.mxu0  ;;  %v1010_v7 = vpop.f32.mrf.mxu1 }
 0x35d   :  { %v3218_v60 = vmul.f32 -1.442695, %v938_v3  ;;  %v940_v56 = vadd.f32 %v939_v48, %v5481_v63  ;;  %v1011_v42 = vadd.f32 %v1010_v7, %v5486_v27 }
 0x35f   :  { %3341 = vpow2.f32 %v3218_v60  ;;  %v3219_v50 = vmul.f32 -1.442695, %v940_v56 }
 0x361   :  { %3343 = vpow2.f32 %v3219_v50 }
 0x36c   :  { %v3342_v58 = vpop.eup %3341 }
 0x36d   :  { %v1016_v16 = vadd.f32 1.0, %v3342_v58 }
 0x36e   :  { %v3344_v47 = vpop.eup %3343 }
 0x36f   :  { %3345 = vrcp.f32 %v1016_v16  ;;  %v1022_v44 = vadd.f32 1.0, %v3344_v47  ;;  %v9991_v47 = vsub.f32 1.0, %v5506_v29 }
 0x371   :  { %3347 = vrcp.f32 %v1022_v44  ;;  %v1033_v7 = vmul.f32 %v9991_v47, %v5496_v43 }
 0x37c   :  { %v3346_v49 = vpop.eup %3345 }
 0x37d   :  { %v1025_v35 = vmul.f32 %v3346_v49, %v1011_v42 }
 0x37e   :  { %v3348_v60 = vpop.eup %3347 }
 0x37f   :  { %v1026_v3 = vadd.f32 %v1025_v35, %v1009_v45  ;;  %v1028_v48 = vsub.f32 1.0, %v3348_v60  ;;  %v1030_v58 = vmul.f32 %v3348_v60, %v5496_v43 }
 0x381   :  { %3349 = vtanh.f32 %v1026_v3 }
 0x38e   :  { %v3350_v56 = vpop.eup %3349 }
 0x38f   :  { %v1029_v50 = vmul.f32 %v3350_v56, %v1028_v48 }
 0x391   :  { %v1031_v16 = vadd.f32 %v1030_v58, %v1029_v50 }
 0x393   :  { %v1032_v63 = vmul.f32 %v5506_v29, %v1031_v16 }
 0x395   :  { %v6162_v27 = vadd.f32 %v1033_v7, %v1032_v63 }
 0x397   :  { %1274 = vmatprep.mubr.f32.mxu0 %v6162_v27  ;;  %1345 = vmatprep.mubr.f32.mxu1 %v6162_v27 }
 0x39a   :  { %v1112_v45 = vpop.f32.mrf.mxu0 }
 0x39b   :  { %v1113_v44 = vadd.f32 %v1112_v45, %v9788_v46  ;;  %v6172_v45 = vsel %vm1035_vm5, 1.0, %v9592_v55 }
 0x39c   :  { %v1114_v42 = vpop.f32.mrf.mxu0  ;;  %v1183_v43 = vpop.f32.mrf.mxu1 }
 0x39d   :  { %v3221_v62 = vmul.f32 -1.442695, %v1113_v44  ;;  %v1115_v49 = vadd.f32 %v1114_v42, %v9789_v51  ;;  %v1184_v58 = vadd.f32 %v1183_v43, %v9790_v23 }
 0x39e   :  { %v1185_v29 = vpop.f32.mrf.mxu1 }
 0x39f   :  { %3351 = vpow2.f32 %v3221_v62  ;;  %v3222_v35 = vmul.f32 -1.442695, %v1115_v49  ;;  %v1186_v56 = vadd.f32 %v1185_v29, %v5039_v1  ;;  %v6184_v29 = vld [vmem:[#allocation4 + $0x1e0] sm:$0xff] }
 0x3a1   :  { %3353 = vpow2.f32 %v3222_v35  ;;  %v9058_v35 = vsub.f32 1.0, %v6172_v45 }
 0x3a3   :  { %v1208_v43 = vmul.f32 %v9058_v35, %v5514_v39  ;;  %v6234_v35 = vld [vmem:[#allocation4 + $0x148] sm:$0xff] }
 0x3a4   :  { %9997 = vst [vmem:[#allocation170_spill] sm:$0xff] %v6234_v35 }
 0x3ac   :  { %v3352_v3 = vpop.eup %3351 }
 0x3ad   :  { %v1191_v60 = vadd.f32 1.0, %v3352_v3 }
 0x3ae   :  { %v3354_v63 = vpop.eup %3353 }
 0x3af   :  { %3355 = vrcp.f32 %v1191_v60  ;;  %v1197_v48 = vadd.f32 1.0, %v3354_v63 }
 0x3b1   :  { %3357 = vrcp.f32 %v1197_v48  ;;  %v6188_v48 = vld [vmem:[#allocation4 + $0x1c8] sm:$0xff] }
 0x3bc   :  { %v3356_v50 = vpop.eup %3355 }
 0x3bd   :  { %v1200_v16 = vmul.f32 %v3356_v50, %v1186_v56  ;;  %v6192_v56 = vld [vmem:[#allocation4 + $0x1c0] sm:$0xff]  ;;  %v6198_v50 = vld [vmem:[#allocation4 + $0x1a8] sm:$0xff] }
 0x3be   :  { %v3358_v7 = vpop.eup %3357 }
 0x3bf   :  { %v1201_v47 = vadd.f32 %v1200_v16, %v1184_v58  ;;  %v1203_v44 = vsub.f32 1.0, %v3358_v7  ;;  %v1205_v42 = vmul.f32 %v3358_v7, %v5514_v39  ;;  %v6195_v39 = vld [vmem:[#allocation4 + $0x1f0] sm:$0xff]  ;;  %v6201_v58 = vld [vmem:[#allocation4 + $0x1d8] sm:$0xff]  ;;  %v6204_v16 = vld [vmem:[#allocation4 + $0x1a0] sm:$0xff] }
 0x3c0   :  { %v6210_v7 = vld [vmem:[#allocation4 + $0x188] sm:$0xff] }
 0x3c1   :  { %3359 = vtanh.f32 %v1201_v47  ;;  %v6207_v47 = vld [vmem:[#allocation4 + $0x1d0] sm:$0xff] }
 0x3ce   :  { %v3360_v62 = vpop.eup %3359 }
 0x3cf   :  { %v1204_v49 = vmul.f32 %v3360_v62, %v1203_v44  ;;  %v6213_v44 = vld [vmem:[#allocation4 + $0x1b8] sm:$0xff]  ;;  %v6216_v62 = vld [vmem:[#allocation4 + $0x180] sm:$0xff] }
 0x3d1   :  { %v1206_v3 = vadd.f32 %v1205_v42, %v1204_v49  ;;  %v6219_v42 = vld [vmem:[#allocation4 + $0x1b0] sm:$0xff]  ;;  %v6222_v49 = vld [vmem:[#allocation4 + $0x168] sm:$0xff] }
 0x3d2   :  { %9992 = vst [vmem:[#allocation165_spill] sm:$0xff] %v6219_v42  ;;  %9993 = vst [vmem:[#allocation166_spill] sm:$0xff] %v6222_v49 }
 0x3d3   :  { %v1207_v60 = vmul.f32 %v6172_v45, %v1206_v3  ;;  %v6225_v3 = vld [vmem:[#allocation4 + $0x198] sm:$0xff] }
 0x3d4   :  { %9994 = vst [vmem:[#allocation167_spill] sm:$0xff] %v6225_v3 }
 0x3d5   :  { %v6180_v63 = vadd.f32 %v1208_v43, %v1207_v60  ;;  %v6228_v60 = vld [vmem:[#allocation4 + $0x160] sm:$0xff]  ;;  %v6231_v43 = vld [vmem:[#allocation4 + $0x190] sm:$0xff] }
 0x3d6   :  { %9995 = vst [vmem:[#allocation168_spill] sm:$0xff] %v6228_v60  ;;  %9996 = vst [vmem:[#allocation169_spill] sm:$0xff] %v6231_v43 }
 0x3d7   :  { %1275 = vmatmul.mubr.f32.vlgmr.msra.gmra.mxu0 %v6180_v63  ;;  %1346 = vmatmul.mubr.f32.vlgmr.msra.gmra.mxu1 %v6180_v63 }
 0x3d8   :  { %1386 = vmatpush1.msra.mxu0 %v6184_v29  ;;  %1449 = vmatprep.mubr.f32.mxu0 %v6180_v63 }
 0x3d9   :  { %1387 = vmatprep.subr.mxu0 %v6188_v48  ;;  %1520 = vmatprep.mubr.f32.mxu1 %v6180_v63 }
 0x3da   :  { %1388 = vmatpush1.msra.mxu0 %v6192_v56  ;;  %1457 = vmatpush1.msra.mxu1 %v6195_v39 }
 0x3db   :  { %1389 = vmatprep.subr.mxu0 %v6198_v50  ;;  %1458 = vmatprep.subr.mxu1 %v6201_v58 }
 0x3dc   :  { %1390 = vmatpush1.msra.mxu0 %v6204_v16  ;;  %1459 = vmatpush1.msra.mxu1 %v6207_v47 }
 0x3dd   :  { %1391 = vmatprep.subr.mxu0 %v6210_v7  ;;  %1460 = vmatprep.subr.mxu1 %v6213_v44 }
 0x3de   :  { %1392 = vmatpush1.msra.mxu0 %v6216_v62  ;;  %1461 = vmatpush1.msra.mxu1 %v6219_v42  ;;  %v6237_v42 = vld [vmem:[#allocation4 + $0x178] sm:$0xff] }
 0x3df   :  { %1393 = vmatprep.subr.mxu0 %v6222_v49  ;;  %1462 = vmatprep.subr.mxu1 %v6225_v3  ;;  %9998 = vst [vmem:[#allocation171_spill] sm:$0xff] %v6237_v42  ;;  %v6240_v49 = vld [vmem:[#allocation4 + $0x140] sm:$0xff]  ;;  %v6243_v3 = vld [vmem:[#allocation4 + $0x170] sm:$0xff] }
 0x3e0   :  { %1394 = vmatpush1.msra.mxu0 %v6228_v60  ;;  %1463 = vmatpush1.msra.mxu1 %v6231_v43  ;;  %9999 = vst [vmem:[#allocation172_spill] sm:$0xff] %v6240_v49  ;;  %10000 = vst [vmem:[#allocation173_spill] sm:$0xff] %v6243_v3  ;;  %v6246_v60 = vld [vmem:[#allocation4 + $0x128] sm:$0xff]  ;;  %v6249_v43 = vld [vmem:[#allocation4 + $0x158] sm:$0xff] }
 0x3e1   :  { %1395 = vmatprep.subr.mxu0 %v6234_v35  ;;  %1464 = vmatprep.subr.mxu1 %v6237_v42  ;;  %10001 = vst [vmem:[#allocation174_spill] sm:$0xff] %v6246_v60  ;;  %10002 = vst [vmem:[#allocation175_spill] sm:$0xff] %v6249_v43  ;;  %v6252_v35 = vld [vmem:[#allocation4 + $0x120] sm:$0xff]  ;;  %v6255_v42 = vld [vmem:[#allocation4 + $0x150] sm:$0xff] }
 0x3e2   :  { %1396 = vmatpush1.msra.mxu0 %v6240_v49  ;;  %1465 = vmatpush1.msra.mxu1 %v6243_v3  ;;  %10003 = vst [vmem:[#allocation176_spill] sm:$0xff] %v6252_v35  ;;  %10004 = vst [vmem:[#allocation177_spill] sm:$0xff] %v6255_v42  ;;  %v6258_v49 = vld [vmem:[#allocation4 + $0x108] sm:$0xff]  ;;  %v6261_v3 = vld [vmem:[#allocation4 + $0x138] sm:$0xff] }
 0x3e3   :  { %1397 = vmatprep.subr.mxu0 %v6246_v60  ;;  %1466 = vmatprep.subr.mxu1 %v6249_v43  ;;  %10005 = vst [vmem:[#allocation178_spill] sm:$0xff] %v6258_v49  ;;  %10006 = vst [vmem:[#allocation179_spill] sm:$0xff] %v6261_v3  ;;  %v6264_v60 = vld [vmem:[#allocation4 + $0x100] sm:$0xff]  ;;  %v6267_v43 = vld [vmem:[#allocation4 + $0x130] sm:$0xff] }
 0x3e4   :  { %1398 = vmatpush1.msra.mxu0 %v6252_v35  ;;  %1467 = vmatpush1.msra.mxu1 %v6255_v42  ;;  %10007 = vst [vmem:[#allocation180_spill] sm:$0xff] %v6264_v60  ;;  %10008 = vst [vmem:[#allocation181_spill] sm:$0xff] %v6267_v43  ;;  %v6270_v35 = vld [vmem:[#allocation4 + $0xe8] sm:$0xff]  ;;  %v6273_v42 = vld [vmem:[#allocation4 + $0x118] sm:$0xff] }
 0x3e5   :  { %1399 = vmatprep.subr.mxu0 %v6258_v49  ;;  %1468 = vmatprep.subr.mxu1 %v6261_v3  ;;  %10009 = vst [vmem:[#allocation182_spill] sm:$0xff] %v6270_v35  ;;  %10010 = vst [vmem:[#allocation183_spill] sm:$0xff] %v6273_v42  ;;  %v6276_v49 = vld [vmem:[#allocation4 + $0xe0] sm:$0xff]  ;;  %v6279_v3 = vld [vmem:[#allocation4 + $0x110] sm:$0xff] }
 0x3e6   :  { %1400 = vmatpush1.msra.mxu0 %v6264_v60  ;;  %1469 = vmatpush1.msra.mxu1 %v6267_v43  ;;  %10011 = vst [vmem:[#allocation184_spill] sm:$0xff] %v6276_v49  ;;  %10012 = vst [vmem:[#allocation185_spill] sm:$0xff] %v6279_v3  ;;  %v6282_v60 = vld [vmem:[#allocation4 + $0xc8] sm:$0xff]  ;;  %v6285_v43 = vld [vmem:[#allocation4 + $0xf8] sm:$0xff] }
 0x3e7   :  { %1401 = vmatprep.subr.mxu0 %v6270_v35  ;;  %1470 = vmatprep.subr.mxu1 %v6273_v42  ;;  %10013 = vst [vmem:[#allocation186_spill] sm:$0xff] %v6282_v60  ;;  %10014 = vst [vmem:[#allocation187_spill] sm:$0xff] %v6285_v43  ;;  %v6288_v35 = vld [vmem:[#allocation4 + $0xc0] sm:$0xff]  ;;  %v6291_v42 = vld [vmem:[#allocation4 + $0xf0] sm:$0xff] }
 0x3e8   :  { %1402 = vmatpush1.msra.mxu0 %v6276_v49  ;;  %1471 = vmatpush1.msra.mxu1 %v6279_v3  ;;  %10015 = vst [vmem:[#allocation188_spill] sm:$0xff] %v6288_v35  ;;  %10016 = vst [vmem:[#allocation189_spill] sm:$0xff] %v6291_v42  ;;  %v6294_v49 = vld [vmem:[#allocation4 + $0xa8] sm:$0xff]  ;;  %v6297_v3 = vld [vmem:[#allocation4 + $0xd8] sm:$0xff] }
 0x3e9   :  { %1403 = vmatprep.subr.mxu0 %v6282_v60  ;;  %1472 = vmatprep.subr.mxu1 %v6285_v43  ;;  %10017 = vst [vmem:[#allocation190_spill] sm:$0xff] %v6294_v49  ;;  %10018 = vst [vmem:[#allocation191_spill] sm:$0xff] %v6297_v3  ;;  %v6300_v60 = vld [vmem:[#allocation4 + $0xa0] sm:$0xff]  ;;  %v6303_v43 = vld [vmem:[#allocation4 + $0xd0] sm:$0xff] }
 0x3ea   :  { %1404 = vmatpush1.msra.mxu0 %v6288_v35  ;;  %1473 = vmatpush1.msra.mxu1 %v6291_v42  ;;  %10019 = vst [vmem:[#allocation192_spill] sm:$0xff] %v6300_v60  ;;  %10020 = vst [vmem:[#allocation193_spill] sm:$0xff] %v6303_v43  ;;  %v6306_v35 = vld [vmem:[#allocation4 + $0x88] sm:$0xff]  ;;  %v6309_v42 = vld [vmem:[#allocation4 + $0xb8] sm:$0xff] }
 0x3eb   :  { %1405 = vmatprep.subr.mxu0 %v6294_v49  ;;  %1474 = vmatprep.subr.mxu1 %v6297_v3  ;;  %10021 = vst [vmem:[#allocation194_spill] sm:$0xff] %v6306_v35  ;;  %10022 = vst [vmem:[#allocation195_spill] sm:$0xff] %v6309_v42  ;;  %v6312_v49 = vld [vmem:[#allocation4 + $0x80] sm:$0xff]  ;;  %v6315_v3 = vld [vmem:[#allocation4 + $0xb0] sm:$0xff] }
 0x3ec   :  { %1406 = vmatpush1.msra.mxu0 %v6300_v60  ;;  %1475 = vmatpush1.msra.mxu1 %v6303_v43  ;;  %10023 = vst [vmem:[#allocation196_spill] sm:$0xff] %v6312_v49  ;;  %10024 = vst [vmem:[#allocation197_spill] sm:$0xff] %v6315_v3  ;;  %v6318_v60 = vld [vmem:[#allocation4 + $0x68] sm:$0xff]  ;;  %v6321_v43 = vld [vmem:[#allocation4 + $0x98] sm:$0xff] }
 0x3ed   :  { %1407 = vmatprep.subr.mxu0 %v6306_v35  ;;  %1476 = vmatprep.subr.mxu1 %v6309_v42  ;;  %10025 = vst [vmem:[#allocation198_spill] sm:$0xff] %v6318_v60  ;;  %10026 = vst [vmem:[#allocation199_spill] sm:$0xff] %v6321_v43  ;;  %v6324_v35 = vld [vmem:[#allocation4 + $0x60] sm:$0xff]  ;;  %v6327_v42 = vld [vmem:[#allocation4 + $0x90] sm:$0xff] }
 0x3ee   :  { %1408 = vmatpush1.msra.mxu0 %v6312_v49  ;;  %1477 = vmatpush1.msra.mxu1 %v6315_v3  ;;  %10027 = vst [vmem:[#allocation200_spill] sm:$0xff] %v6324_v35  ;;  %10028 = vst [vmem:[#allocation201_spill] sm:$0xff] %v6327_v42  ;;  %v6330_v49 = vld [vmem:[#allocation4 + $0x48] sm:$0xff]  ;;  %v6333_v3 = vld [vmem:[#allocation4 + $0x78] sm:$0xff] }
 0x3ef   :  { %1409 = vmatprep.subr.mxu0 %v6318_v60  ;;  %1478 = vmatprep.subr.mxu1 %v6321_v43  ;;  %10029 = vst [vmem:[#allocation202_spill] sm:$0xff] %v6330_v49  ;;  %10030 = vst [vmem:[#allocation203_spill] sm:$0xff] %v6333_v3  ;;  %v6336_v60 = vld [vmem:[#allocation4 + $0x40] sm:$0xff]  ;;  %v6339_v43 = vld [vmem:[#allocation4 + $0x70] sm:$0xff] }
 0x3f0   :  { %1410 = vmatpush1.msra.mxu0 %v6324_v35  ;;  %1479 = vmatpush1.msra.mxu1 %v6327_v42  ;;  %10031 = vst [vmem:[#allocation204_spill] sm:$0xff] %v6336_v60  ;;  %10032 = vst [vmem:[#allocation205_spill] sm:$0xff] %v6339_v43  ;;  %v6342_v35 = vld [vmem:[#allocation4 + $0x28] sm:$0xff]  ;;  %v6345_v42 = vld [vmem:[#allocation4 + $0x58] sm:$0xff] }
 0x3f1   :  { %1411 = vmatprep.subr.mxu0 %v6330_v49  ;;  %1480 = vmatprep.subr.mxu1 %v6333_v3  ;;  %10033 = vst [vmem:[#allocation206_spill] sm:$0xff] %v6345_v42  ;;  %v6348_v49 = vld [vmem:[#allocation4 + $0x20] sm:$0xff]  ;;  %v6351_v3 = vld [vmem:[#allocation4 + $0x50] sm:$0xff] }
 0x3f2   :  { %1412 = vmatpush1.msra.mxu0 %v6336_v60  ;;  %1481 = vmatpush1.msra.mxu1 %v6339_v43  ;;  %10034 = vst [vmem:[#allocation207_spill] sm:$0xff] %v6348_v49  ;;  %v6354_v60 = vld [vmem:[#allocation4 + $0x8] sm:$0xff]  ;;  %v6358_v43 = vld [vmem:[#allocation4] sm:$0xff] }
 0x3f3   :  { %1413 = vmatprep.subr.mxu0 %v6342_v35  ;;  %1482 = vmatprep.subr.mxu1 %v6345_v42  ;;  %10035 = vst [vmem:[#allocation208_spill] sm:$0xff] %v6354_v60  ;;  %v6362_v42 = vld [vmem:[#allocation4 + $0x3e8] sm:$0xff] }
 0x3f4   :  { %1414 = vmatpush1.msra.mxu0 %v6348_v49  ;;  %1483 = vmatpush1.msra.mxu1 %v6351_v3  ;;  %v6366_v49 = vld [vmem:[#allocation4 + $0x3e0] sm:$0xff] }
 0x3f5   :  { %1415 = vmatprep.subr.mxu0 %v6354_v60  ;;  %1484 = vmatprep.subr.mxu1 %v5577_v54  ;;  %v6370_v60 = vld [vmem:[#allocation4 + $0x3c8] sm:$0xff]  ;;  %v6374_v54 = vld [vmem:[#allocation4 + $0x3c0] sm:$0xff] }
 0x3f6   :  { %1416 = vmatpush1.msra.mxu0 %v6358_v43  ;;  %1485 = vmatpush1.msra.mxu1 %v5581_v0  ;;  %v6378_v0 = vld [vmem:[#allocation4 + $0x3a8] sm:$0xff] }
 0x3f7   :  { %1417 = vmatprep.subr.mxu0 %v6362_v42  ;;  %1486 = vmatprep.subr.mxu1 %v5585_v61  ;;  %v6382_v61 = vld [vmem:[#allocation4 + $0x3a0] sm:$0xff] }
 0x3f8   :  { %1418 = vmatpush2.msra.mxu0 %v6366_v49  ;;  %1487 = vmatpush1.msra.mxu1 %v5589_v59  ;;  %v6386_v59 = vld [vmem:[#allocation4 + $0x388] sm:$0xff] }
 0x3f9   :  { %1419 = vmatprep.subr.mxu0 %v6370_v60  ;;  %1488 = vmatprep.subr.mxu1 %v5593_v2  ;;  %v6390_v2 = vld [vmem:[#allocation4 + $0x380] sm:$0xff] }
 0x3fa   :  { %1420 = vmatpush2.msra.mxu0 %v6374_v54  ;;  %1489 = vmatpush2.msra.mxu1 %v5597_v13  ;;  %v6394_v13 = vld [vmem:[#allocation4 + $0x368] sm:$0xff] }
 0x3fb   :  { %1421 = vmatprep.subr.mxu0 %v6378_v0  ;;  %1490 = vmatprep.subr.mxu1 %v5601_v9  ;;  %v6398_v9 = vld [vmem:[#allocation4 + $0x360] sm:$0xff] }
 0x3fc   :  { %1422 = vmatpush2.msra.mxu0 %v6382_v61  ;;  %1491 = vmatpush2.msra.mxu1 %v5605_v57  ;;  %v6402_v57 = vld [vmem:[#allocation4 + $0x348] sm:$0xff] }
 0x3fd   :  { %1423 = vmatprep.subr.mxu0 %v6386_v59  ;;  %1492 = vmatprep.subr.mxu1 %v5609_v14  ;;  %v6406_v14 = vld [vmem:[#allocation4 + $0x340] sm:$0xff] }
 0x3fe   :  { %1424 = vmatpush2.msra.mxu0 %v6390_v2  ;;  %1493 = vmatpush2.msra.mxu1 %v5613_v4  ;;  %v1379_v4 = vld [vmem:[%s8696_s1 + $0xb] sm:$0x1] }
 0x3ff   :  { %1425 = vmatprep.subr.mxu0 %v6394_v13  ;;  %1494 = vmatprep.subr.mxu1 %v5617_v6  ;;  %v10036_v6 = vld [vmem:[#allocation21_spill] sm:$0xff] }
 0x400   :  { %1426 = vmatpush2.msra.mxu0 %v6398_v9  ;;  %1495 = vmatpush2.msra.mxu1 %v5621_v8  ;;  %v10037_v8 = vld [vmem:[#allocation15_spill] sm:$0xff] }
 0x401   :  { %1427 = vmatprep.subr.mxu0 %v6402_v57  ;;  %1496 = vmatprep.subr.mxu1 %v5625_v10  ;;  %v10038_v10 = vld [vmem:[#allocation23_spill] sm:$0xff] }
 0x402   :  { %1428 = vmatpush2.msra.mxu0 %v6406_v14  ;;  %1497 = vmatpush2.msra.mxu1 %v5629_v12  ;;  %v10039_v12 = vld [vmem:[#allocation16_spill] sm:$0xff] }
 0x403   :  { %1429 = vmatprep.subr.mxu0 %v5632_v15  ;;  %1498 = vmatprep.subr.mxu1 %v5635_v17  ;;  %v10040_v15 = vld [vmem:[#allocation24_spill] sm:$0xff]  ;;  %v1382_v17 = vrot.slane %v1379_v4, 7  ;;  %v10059_v4 = vld [vmem:[#allocation39_spill] sm:$0xff] }
 0x404   :  { %1430 = vmatpush2.msra.mxu0 %v5638_v18  ;;  %1499 = vmatpush2.msra.mxu1 %v5641_v19  ;;  %v10041_v18 = vld [vmem:[#allocation25_spill] sm:$0xff]  ;;  %v10042_v19 = vld [vmem:[#allocation26_spill] sm:$0xff] }
 0x405   :  { %1431 = vmatprep.subr.mxu0 %v5644_v21  ;;  %1500 = vmatprep.subr.mxu1 %v5647_v20  ;;  %v1378_v21 = vld [vmem:[%s8696_s1 + $0x3] sm:$0x1] }
 0x406   :  { %1432 = vmatpush2.msra.mxu0 %v5650_v22  ;;  %1501 = vmatpush2.msra.mxu1 %v5653_v24  ;;  %v10043_v20 = vld [vmem:[#allocation17_spill] sm:$0xff]  ;;  %v10044_v22 = vld [vmem:[#allocation18_spill] sm:$0xff]  ;;  %v10045_v24 = vld [vmem:[#allocation27_spill] sm:$0xff] }
 0x407   :  { %1433 = vmatprep.subr.mxu0 %v5656_v25  ;;  %1502 = vmatprep.subr.mxu1 %v5659_v26  ;;  %v10046_v25 = vld [vmem:[#allocation20_spill] sm:$0xff] }
 0x408   :  { %1434 = vmatpush2.msra.mxu0 %v5662_v28  ;;  %1503 = vmatpush2.msra.mxu1 %v5665_v31  ;;  %v10047_v26 = vld [vmem:[#allocation28_spill] sm:$0xff]  ;;  %v10048_v28 = vld [vmem:[#allocation22_spill] sm:$0xff]  ;;  %v1383_v31 = vsel %vm64_vm0, %v1382_v17, %v1378_v21  ;;  %v10065_v17 = vld [vmem:[#allocation45_spill] sm:$0xff] }
 0x409   :  { %1435 = vmatprep.subr.mxu0 %v5668_v32  ;;  %1504 = vmatprep.subr.mxu1 %v5671_v33  ;;  %v10049_v32 = vld [vmem:[#allocation29_spill] sm:$0xff]  ;;  %v10050_v33 = vld [vmem:[#allocation30_spill] sm:$0xff]  ;;  %v10068_v21 = vld [vmem:[#allocation48_spill] sm:$0xff] }
 0x40a   :  { %1436 = vmatpush2.msra.mxu0 %v5674_v34  ;;  %1505 = vmatpush2.msra.mxu1 %v5677_v36  ;;  %v10051_v34 = vld [vmem:[#allocation31_spill] sm:$0xff]  ;;  %v10052_v36 = vld [vmem:[#allocation32_spill] sm:$0xff] }
 0x40b   :  { %1437 = vmatprep.subr.mxu0 %v5680_v37  ;;  %1506 = vmatprep.subr.mxu1 %v5683_v38  ;;  %v10053_v37 = vld [vmem:[#allocation33_spill] sm:$0xff]  ;;  %v10054_v38 = vld [vmem:[#allocation34_spill] sm:$0xff] }
 0x40c   :  { %1438 = vmatpush2.msra.mxu0 %v5686_v40  ;;  %1507 = vmatpush2.msra.mxu1 %v5689_v11  ;;  %v10055_v40 = vld [vmem:[#allocation35_spill] sm:$0xff]  ;;  %v10056_v11 = vld [vmem:[#allocation36_spill] sm:$0xff] }
 0x40d   :  { %1439 = vmatprep.subr.mxu0 %v5692_v41  ;;  %1508 = vmatprep.subr.mxu1 %v5698_v52  ;;  %v10057_v41 = vld [vmem:[#allocation37_spill] sm:$0xff]  ;;  %v10058_v52 = vld [vmem:[#allocation38_spill] sm:$0xff] }
 0x40e   :  { %1440 = vmatpush2.msra.mxu0 %v10036_v6  ;;  %1509 = vmatpush2.msra.mxu1 %v10037_v8  ;;  %v10060_v6 = vld [vmem:[#allocation40_spill] sm:$0xff]  ;;  %v10061_v8 = vld [vmem:[#allocation41_spill] sm:$0xff] }
 0x40f   :  { %1441 = vmatprep.subr.mxu0 %v10038_v10  ;;  %1510 = vmatprep.subr.mxu1 %v10039_v12  ;;  %v10062_v10 = vld [vmem:[#allocation42_spill] sm:$0xff]  ;;  %v10063_v12 = vld [vmem:[#allocation43_spill] sm:$0xff] }
 0x410   :  { %1442 = vmatpush2.msra.mxu0 %v10040_v15  ;;  %1511 = vmatpush2.msra.mxu1 %v10041_v18  ;;  %v10064_v15 = vld [vmem:[#allocation44_spill] sm:$0xff]  ;;  %v10066_v18 = vld [vmem:[#allocation46_spill] sm:$0xff] }
 0x411   :  { %1443 = vmatprep.subr.mxu0 %v10042_v19  ;;  %1512 = vmatprep.subr.mxu1 %v10043_v20  ;;  %v10067_v19 = vld [vmem:[#allocation47_spill] sm:$0xff]  ;;  %v10069_v20 = vld [vmem:[#allocation49_spill] sm:$0xff] }
 0x412   :  { %1444 = vmatpush2.msra.mxu0 %v10044_v22  ;;  %1513 = vmatpush2.msra.mxu1 %v10045_v24  ;;  %v10070_v22 = vld [vmem:[#allocation50_spill] sm:$0xff]  ;;  %v10071_v24 = vld [vmem:[#allocation51_spill] sm:$0xff] }
 0x413   :  { %1445 = vmatprep.subr.mxu0 %v10046_v25  ;;  %1514 = vmatprep.subr.mxu1 %v10047_v26  ;;  %v10072_v25 = vld [vmem:[#allocation52_spill] sm:$0xff]  ;;  %v10073_v26 = vld [vmem:[#allocation53_spill] sm:$0xff] }
 0x414   :  { %1446 = vmatpush2.msra.mxu0 %v10048_v28  ;;  %1515 = vmatpush2.msra.mxu1 %v10049_v32  ;;  %v10074_v28 = vld [vmem:[#allocation54_spill] sm:$0xff]  ;;  %v10076_v32 = vld [vmem:[#allocation56_spill] sm:$0xff] }
 0x415   :  { %1447 = vmatprep.subr.mxu0 %v10050_v33  ;;  %1516 = vmatprep.subr.mxu1 %v10051_v34  ;;  %v10077_v33 = vld [vmem:[#allocation57_spill] sm:$0xff]  ;;  %v10078_v34 = vld [vmem:[#allocation58_spill] sm:$0xff] }
 0x416   :  { %1448 = vmatpush2.msra.mxu0 %v10052_v36  ;;  %1517 = vmatpush2.msra.mxu1 %v10053_v37  ;;  %v10079_v36 = vld [vmem:[#allocation59_spill] sm:$0xff]  ;;  %v10080_v37 = vld [vmem:[#allocation60_spill] sm:$0xff] }
 0x417   :  { %1450 = vmatmul.mubr.f32.vlgmr.msra.gmra.mxu0 %v1383_v31  ;;  %1518 = vmatprep.subr.mxu1 %v10054_v38  ;;  %v10081_v38 = vld [vmem:[#allocation61_spill] sm:$0xff] }
 0x418   :  { %1519 = vmatpush2.msra.mxu1 %v10055_v40  ;;  %1549 = vmatprep.subr.mxu0 %v10056_v11  ;;  %v10082_v40 = vld [vmem:[#allocation62_spill] sm:$0xff]  ;;  %v10083_v11 = vld [vmem:[#allocation63_spill] sm:$0xff] }
 0x419   :  { %1521 = vmatmul.mubr.f32.vlgmr.msra.gmra.mxu1 %v1383_v31  ;;  %1550 = vmatpush1.msra.mxu0 %v10057_v41  ;;  %v10075_v31 = vld [vmem:[#allocation55_spill] sm:$0xff]  ;;  %v10084_v41 = vld [vmem:[#allocation64_spill] sm:$0xff] }
 0x41a   :  { %1620 = vmatprep.subr.mxu1 %v10058_v52  ;;  %1551 = vmatprep.subr.mxu0 %v10059_v4  ;;  %v10085_v52 = vld [vmem:[#allocation65_spill] sm:$0xff]  ;;  %v10086_v4 = vld [vmem:[#allocation66_spill] sm:$0xff] }
 0x41b   :  { %1621 = vmatpush1.msra.mxu1 %v10060_v6  ;;  %1552 = vmatpush1.msra.mxu0 %v10061_v8  ;;  %v10087_v6 = vld [vmem:[#allocation67_spill] sm:$0xff]  ;;  %v10088_v8 = vld [vmem:[#allocation68_spill] sm:$0xff] }
 0x41c   :  { %1622 = vmatprep.subr.mxu1 %v10062_v10  ;;  %1553 = vmatprep.subr.mxu0 %v10063_v12  ;;  %v10089_v10 = vld [vmem:[#allocation69_spill] sm:$0xff]  ;;  %v10090_v12 = vld [vmem:[#allocation70_spill] sm:$0xff] }
 0x41d   :  { %1623 = vmatpush1.msra.mxu1 %v10064_v15  ;;  %1554 = vmatpush1.msra.mxu0 %v10065_v17  ;;  %v10091_v15 = vld [vmem:[#allocation71_spill] sm:$0xff]  ;;  %v10092_v17 = vld [vmem:[#allocation72_spill] sm:$0xff] }
 0x41e   :  { %1624 = vmatprep.subr.mxu1 %v10066_v18  ;;  %1555 = vmatprep.subr.mxu0 %v10067_v19  ;;  %v10093_v18 = vld [vmem:[#allocation73_spill] sm:$0xff]  ;;  %v10094_v19 = vld [vmem:[#allocation74_spill] sm:$0xff] }
 0x41f   :  { %1625 = vmatpush1.msra.mxu1 %v10068_v21  ;;  %1556 = vmatpush1.msra.mxu0 %v10069_v20  ;;  %v10095_v21 = vld [vmem:[#allocation75_spill] sm:$0xff]  ;;  %v10096_v20 = vld [vmem:[#allocation76_spill] sm:$0xff] }
 0x420   :  { %1626 = vmatprep.subr.mxu1 %v10070_v22  ;;  %1557 = vmatprep.subr.mxu0 %v10071_v24  ;;  %v10097_v22 = vld [vmem:[#allocation77_spill] sm:$0xff]  ;;  %v10098_v24 = vld [vmem:[#allocation78_spill] sm:$0xff] }
 0x421   :  { %1627 = vmatpush1.msra.mxu1 %v10072_v25  ;;  %1558 = vmatpush1.msra.mxu0 %v10073_v26  ;;  %v10099_v25 = vld [vmem:[#allocation79_spill] sm:$0xff]  ;;  %v10100_v26 = vld [vmem:[#allocation80_spill] sm:$0xff] }
 0x422   :  { %1628 = vmatprep.subr.mxu1 %v10074_v28  ;;  %1559 = vmatprep.subr.mxu0 %v10075_v31  ;;  %v10101_v28 = vld [vmem:[#allocation81_spill] sm:$0xff]  ;;  %v10102_v31 = vld [vmem:[#allocation82_spill] sm:$0xff] }
 0x423   :  { %1629 = vmatpush1.msra.mxu1 %v10076_v32  ;;  %1560 = vmatpush1.msra.mxu0 %v10077_v33  ;;  %v10103_v32 = vld [vmem:[#allocation83_spill] sm:$0xff]  ;;  %v10104_v33 = vld [vmem:[#allocation84_spill] sm:$0xff] }
 0x424   :  { %1630 = vmatprep.subr.mxu1 %v10078_v34  ;;  %1561 = vmatprep.subr.mxu0 %v10079_v36  ;;  %v10105_v34 = vld [vmem:[#allocation85_spill] sm:$0xff]  ;;  %v10106_v36 = vld [vmem:[#allocation86_spill] sm:$0xff] }
 0x425   :  { %1631 = vmatpush1.msra.mxu1 %v10080_v37  ;;  %1562 = vmatpush1.msra.mxu0 %v10081_v38  ;;  %v10107_v37 = vld [vmem:[#allocation87_spill] sm:$0xff]  ;;  %v10108_v38 = vld [vmem:[#allocation88_spill] sm:$0xff] }
 0x426   :  { %1632 = vmatprep.subr.mxu1 %v10082_v40  ;;  %1563 = vmatprep.subr.mxu0 %v10083_v11  ;;  %v10109_v40 = vld [vmem:[#allocation89_spill] sm:$0xff]  ;;  %v10110_v11 = vld [vmem:[#allocation90_spill] sm:$0xff] }
 0x427   :  { %1633 = vmatpush1.msra.mxu1 %v10084_v41  ;;  %1564 = vmatpush1.msra.mxu0 %v10085_v52  ;;  %v10111_v41 = vld [vmem:[#allocation91_spill] sm:$0xff]  ;;  %v10112_v52 = vld [vmem:[#allocation92_spill] sm:$0xff] }
 0x428   :  { %1634 = vmatprep.subr.mxu1 %v10086_v4  ;;  %1565 = vmatprep.subr.mxu0 %v10087_v6  ;;  %v10113_v4 = vld [vmem:[#allocation93_spill] sm:$0xff]  ;;  %v10114_v6 = vld [vmem:[#allocation94_spill] sm:$0xff] }
 0x429   :  { %1635 = vmatpush1.msra.mxu1 %v10088_v8  ;;  %1566 = vmatpush1.msra.mxu0 %v10089_v10  ;;  %v10115_v8 = vld [vmem:[#allocation95_spill] sm:$0xff]  ;;  %v10116_v10 = vld [vmem:[#allocation96_spill] sm:$0xff] }
 0x42a   :  { %1636 = vmatprep.subr.mxu1 %v10090_v12  ;;  %1567 = vmatprep.subr.mxu0 %v10091_v15  ;;  %v10117_v12 = vld [vmem:[#allocation97_spill] sm:$0xff]  ;;  %v10118_v15 = vld [vmem:[#allocation98_spill] sm:$0xff] }
 0x42b   :  { %1637 = vmatpush1.msra.mxu1 %v10092_v17  ;;  %1568 = vmatpush1.msra.mxu0 %v10093_v18  ;;  %v10119_v17 = vld [vmem:[#allocation99_spill] sm:$0xff]  ;;  %v10120_v18 = vld [vmem:[#allocation100_spill] sm:$0xff] }
 0x42c   :  { %1638 = vmatprep.subr.mxu1 %v10094_v19  ;;  %1569 = vmatprep.subr.mxu0 %v10095_v21  ;;  %v10121_v19 = vld [vmem:[#allocation101_spill] sm:$0xff]  ;;  %v10122_v21 = vld [vmem:[#allocation102_spill] sm:$0xff] }
 0x42d   :  { %1639 = vmatpush1.msra.mxu1 %v10096_v20  ;;  %1570 = vmatpush1.msra.mxu0 %v10097_v22  ;;  %v10123_v20 = vld [vmem:[#allocation103_spill] sm:$0xff]  ;;  %v10124_v22 = vld [vmem:[#allocation104_spill] sm:$0xff] }
 0x42e   :  { %1640 = vmatprep.subr.mxu1 %v10098_v24  ;;  %1571 = vmatprep.subr.mxu0 %v10099_v25  ;;  %v10125_v24 = vld [vmem:[#allocation105_spill] sm:$0xff]  ;;  %v10126_v25 = vld [vmem:[#allocation106_spill] sm:$0xff] }
 0x42f   :  { %1641 = vmatpush1.msra.mxu1 %v10100_v26  ;;  %1572 = vmatpush1.msra.mxu0 %v10101_v28  ;;  %v10127_v26 = vld [vmem:[#allocation107_spill] sm:$0xff]  ;;  %v10128_v28 = vld [vmem:[#allocation108_spill] sm:$0xff] }
 0x430   :  { %1642 = vmatprep.subr.mxu1 %v10102_v31  ;;  %1573 = vmatprep.subr.mxu0 %v10103_v32  ;;  %v10129_v31 = vld [vmem:[#allocation109_spill] sm:$0xff]  ;;  %v10130_v32 = vld [vmem:[#allocation110_spill] sm:$0xff] }
 0x431   :  { %1643 = vmatpush1.msra.mxu1 %v10104_v33  ;;  %1574 = vmatpush1.msra.mxu0 %v10105_v34  ;;  %v10131_v33 = vld [vmem:[#allocation111_spill] sm:$0xff]  ;;  %v10132_v34 = vld [vmem:[#allocation112_spill] sm:$0xff] }
 0x432   :  { %1644 = vmatprep.subr.mxu1 %v10106_v36  ;;  %1575 = vmatprep.subr.mxu0 %v10107_v37  ;;  %v10133_v36 = vld [vmem:[#allocation113_spill] sm:$0xff]  ;;  %v10134_v37 = vld [vmem:[#allocation114_spill] sm:$0xff] }
 0x433   :  { %1645 = vmatpush1.msra.mxu1 %v10108_v38  ;;  %1576 = vmatpush1.msra.mxu0 %v10109_v40  ;;  %v10135_v38 = vld [vmem:[#allocation115_spill] sm:$0xff]  ;;  %v10136_v40 = vld [vmem:[#allocation116_spill] sm:$0xff] }
 0x434   :  { %1646 = vmatprep.subr.mxu1 %v10110_v11  ;;  %1577 = vmatprep.subr.mxu0 %v10111_v41  ;;  %v10137_v11 = vld [vmem:[#allocation117_spill] sm:$0xff]  ;;  %v10138_v41 = vld [vmem:[#allocation118_spill] sm:$0xff] }
 0x435   :  { %1647 = vmatpush1.msra.mxu1 %v10112_v52  ;;  %1578 = vmatpush1.msra.mxu0 %v10113_v4  ;;  %v10139_v52 = vld [vmem:[#allocation119_spill] sm:$0xff]  ;;  %v10140_v4 = vld [vmem:[#allocation120_spill] sm:$0xff] }
 0x436   :  { %1648 = vmatprep.subr.mxu1 %v10114_v6  ;;  %1579 = vmatprep.subr.mxu0 %v10115_v8  ;;  %v10141_v6 = vld [vmem:[#allocation121_spill] sm:$0xff]  ;;  %v10142_v8 = vld [vmem:[#allocation122_spill] sm:$0xff] }
 0x437   :  { %1649 = vmatpush1.msra.mxu1 %v10116_v10  ;;  %1580 = vmatpush1.msra.mxu0 %v10117_v12  ;;  %v10143_v10 = vld [vmem:[#allocation123_spill] sm:$0xff]  ;;  %v10144_v12 = vld [vmem:[#allocation124_spill] sm:$0xff] }
 0x438   :  { %1650 = vmatprep.subr.mxu1 %v10118_v15  ;;  %1581 = vmatprep.subr.mxu0 %v10119_v17  ;;  %v10145_v15 = vld [vmem:[#allocation125_spill] sm:$0xff]  ;;  %v10146_v17 = vld [vmem:[#allocation126_spill] sm:$0xff] }
 0x439   :  { %1651 = vmatpush1.msra.mxu1 %v10120_v18  ;;  %1582 = vmatpush2.msra.mxu0 %v10121_v19  ;;  %v10147_v18 = vld [vmem:[#allocation127_spill] sm:$0xff]  ;;  %v10148_v19 = vld [vmem:[#allocation128_spill] sm:$0xff] }
 0x43a   :  { %1652 = vmatprep.subr.mxu1 %v10122_v21  ;;  %1583 = vmatprep.subr.mxu0 %v10123_v20  ;;  %v10149_v21 = vld [vmem:[#allocation129_spill] sm:$0xff]  ;;  %v10150_v20 = vld [vmem:[#allocation130_spill] sm:$0xff] }
 0x43b   :  { %1653 = vmatpush2.msra.mxu1 %v10124_v22  ;;  %1584 = vmatpush2.msra.mxu0 %v10125_v24  ;;  %v10151_v22 = vld [vmem:[#allocation131_spill] sm:$0xff]  ;;  %v10152_v24 = vld [vmem:[#allocation132_spill] sm:$0xff] }
 0x43c   :  { %1654 = vmatprep.subr.mxu1 %v10126_v25  ;;  %1585 = vmatprep.subr.mxu0 %v10127_v26  ;;  %v10153_v25 = vld [vmem:[#allocation133_spill] sm:$0xff]  ;;  %v10154_v26 = vld [vmem:[#allocation134_spill] sm:$0xff] }
 0x43d   :  { %1655 = vmatpush2.msra.mxu1 %v10128_v28  ;;  %1586 = vmatpush2.msra.mxu0 %v10129_v31  ;;  %v10155_v28 = vld [vmem:[#allocation135_spill] sm:$0xff]  ;;  %v10156_v31 = vld [vmem:[#allocation136_spill] sm:$0xff] }
 0x43e   :  { %1656 = vmatprep.subr.mxu1 %v10130_v32  ;;  %1587 = vmatprep.subr.mxu0 %v10131_v33  ;;  %v10157_v32 = vld [vmem:[#allocation137_spill] sm:$0xff]  ;;  %v10158_v33 = vld [vmem:[#allocation138_spill] sm:$0xff] }
 0x43f   :  { %1657 = vmatpush2.msra.mxu1 %v10132_v34  ;;  %1588 = vmatpush2.msra.mxu0 %v10133_v36  ;;  %v10159_v34 = vld [vmem:[#allocation139_spill] sm:$0xff]  ;;  %v10160_v36 = vld [vmem:[#allocation140_spill] sm:$0xff] }
 0x440   :  { %1658 = vmatprep.subr.mxu1 %v10134_v37  ;;  %1589 = vmatprep.subr.mxu0 %v10135_v38  ;;  %v10161_v37 = vld [vmem:[#allocation141_spill] sm:$0xff]  ;;  %v10162_v38 = vld [vmem:[#allocation142_spill] sm:$0xff] }
 0x441   :  { %1659 = vmatpush2.msra.mxu1 %v10136_v40  ;;  %1590 = vmatpush2.msra.mxu0 %v10137_v11  ;;  %v10163_v40 = vld [vmem:[#allocation143_spill] sm:$0xff]  ;;  %v10164_v11 = vld [vmem:[#allocation144_spill] sm:$0xff] }
 0x442   :  { %1660 = vmatprep.subr.mxu1 %v10138_v41  ;;  %1591 = vmatprep.subr.mxu0 %v10139_v52  ;;  %v10165_v41 = vld [vmem:[#allocation145_spill] sm:$0xff]  ;;  %v10166_v52 = vld [vmem:[#allocation146_spill] sm:$0xff] }
 0x443   :  { %1661 = vmatpush2.msra.mxu1 %v10140_v4  ;;  %1592 = vmatpush2.msra.mxu0 %v10141_v6  ;;  %v10167_v4 = vld [vmem:[#allocation147_spill] sm:$0xff]  ;;  %v10168_v6 = vld [vmem:[#allocation148_spill] sm:$0xff] }
 0x444   :  { %1662 = vmatprep.subr.mxu1 %v10142_v8  ;;  %1593 = vmatprep.subr.mxu0 %v10143_v10  ;;  %v10169_v8 = vld [vmem:[#allocation149_spill] sm:$0xff]  ;;  %v10170_v10 = vld [vmem:[#allocation151_spill] sm:$0xff] }
 0x445   :  { %1663 = vmatpush2.msra.mxu1 %v10144_v12  ;;  %1594 = vmatpush2.msra.mxu0 %v10145_v15  ;;  %v10171_v12 = vld [vmem:[#allocation150_spill] sm:$0xff]  ;;  %v10172_v15 = vld [vmem:[#allocation152_spill] sm:$0xff] }
 0x446   :  { %1664 = vmatprep.subr.mxu1 %v10146_v17  ;;  %1595 = vmatprep.subr.mxu0 %v10147_v18  ;;  %v10173_v17 = vld [vmem:[#allocation153_spill] sm:$0xff]  ;;  %v10174_v18 = vld [vmem:[#allocation154_spill] sm:$0xff] }
 0x447   :  { %1665 = vmatpush2.msra.mxu1 %v10148_v19  ;;  %1596 = vmatpush2.msra.mxu0 %v10149_v21  ;;  %v10175_v19 = vld [vmem:[#allocation155_spill] sm:$0xff]  ;;  %v10176_v21 = vld [vmem:[#allocation156_spill] sm:$0xff] }
 0x448   :  { %1666 = vmatprep.subr.mxu1 %v10150_v20  ;;  %1597 = vmatprep.subr.mxu0 %v10151_v22  ;;  %v10177_v20 = vld [vmem:[#allocation157_spill] sm:$0xff]  ;;  %v10178_v22 = vld [vmem:[#allocation158_spill] sm:$0xff] }
 0x449   :  { %1667 = vmatpush2.msra.mxu1 %v10152_v24  ;;  %1598 = vmatpush2.msra.mxu0 %v10153_v25  ;;  %v10179_v24 = vld [vmem:[#allocation159_spill] sm:$0xff]  ;;  %v10180_v25 = vld [vmem:[#allocation160_spill] sm:$0xff] }
 0x44a   :  { %1668 = vmatprep.subr.mxu1 %v10154_v26  ;;  %1599 = vmatprep.subr.mxu0 %v10155_v28  ;;  %v10181_v26 = vld [vmem:[#allocation161_spill] sm:$0xff]  ;;  %v10182_v28 = vld [vmem:[#allocation162_spill] sm:$0xff] }
 0x44b   :  { %1669 = vmatpush2.msra.mxu1 %v10156_v31  ;;  %1600 = vmatpush2.msra.mxu0 %v10157_v32  ;;  %v10183_v31 = vld [vmem:[#allocation163_spill] sm:$0xff]  ;;  %v10184_v32 = vld [vmem:[#allocation164_spill] sm:$0xff] }
 0x44c   :  { %1670 = vmatprep.subr.mxu1 %v10158_v33  ;;  %1601 = vmatprep.subr.mxu0 %v10159_v34  ;;  %v6588_v33 = vld [vmem:[#allocation4 + $0x1f8] sm:$0xff] }
 0x44d   :  { %1671 = vmatpush2.msra.mxu1 %v10160_v36  ;;  %1602 = vmatpush2.msra.mxu0 %v10161_v37 }
 0x44e   :  { %1672 = vmatprep.subr.mxu1 %v10162_v38  ;;  %1603 = vmatprep.subr.mxu0 %v10163_v40  ;;  %v10185_v40 = vld [vmem:[#allocation19_spill] sm:$0xff] }
 0x44f   :  { %1673 = vmatpush2.msra.mxu1 %v10164_v11  ;;  %1604 = vmatpush2.msra.mxu0 %v10165_v41 }
 0x450   :  { %1674 = vmatprep.subr.mxu1 %v10166_v52  ;;  %1605 = vmatprep.subr.mxu0 %v10167_v4 }
 0x451   :  { %1675 = vmatpush2.msra.mxu1 %v10168_v6  ;;  %1606 = vmatpush2.msra.mxu0 %v10169_v8 }
 0x452   :  { %1676 = vmatprep.subr.mxu1 %v10170_v10  ;;  %1607 = vmatprep.subr.mxu0 %v10171_v12 }
 0x453   :  { %1677 = vmatpush2.msra.mxu1 %v10172_v15  ;;  %1608 = vmatpush2.msra.mxu0 %v10173_v17  ;;  %v10186_v15 = vld [vmem:[#allocation14_spill] sm:$0xff] }
 0x454   :  { %1678 = vmatprep.subr.mxu1 %v10174_v18  ;;  %1609 = vmatprep.subr.mxu0 %v10175_v19 }
 0x455   :  { %1679 = vmatpush2.msra.mxu1 %v10176_v21  ;;  %1610 = vmatpush2.msra.mxu0 %v10177_v20 }
 0x456   :  { %1680 = vmatprep.subr.mxu1 %v10178_v22  ;;  %1611 = vmatprep.subr.mxu0 %v10179_v24 }
 0x457   :  { %1681 = vmatpush2.msra.mxu1 %v10180_v25  ;;  %1612 = vmatpush2.msra.mxu0 %v10181_v26 }
 0x458   :  { %1682 = vmatprep.subr.mxu1 %v10182_v28  ;;  %1724 = vmatprep.subr.mxu0 %v10183_v31 }
 0x459   :  { %1683 = vmatpush2.msra.mxu1 %v10184_v32 }
 0x45a   :  { %1795 = vmatprep.subr.mxu1 %v6588_v33 }
 0x497   :  { %v1276_v34 = vpop.f32.mrf.mxu0  ;;  %v1347_v6 = vpop.f32.mrf.mxu1 }
 0x498   :  { %v1277_v36 = vadd.f32 %v1276_v34, %v5476_v53  ;;  %v1348_v19 = vadd.f32 %v1347_v6, %v5490_v30  ;;  %v10187_v34 = vsub.f32 1.0, %v6172_v45 }
 0x499   :  { %v1278_v38 = vpop.f32.mrf.mxu0  ;;  %v1349_v10 = vpop.f32.mrf.mxu1 }
 0x49a   :  { %v3223_v37 = vmul.f32 -1.442695, %v1277_v36  ;;  %v1279_v11 = vadd.f32 %v1278_v38, %v10185_v40  ;;  %v1350_v17 = vadd.f32 %v1349_v10, %v10186_v15  ;;  %v1372_v36 = vmul.f32 %v10187_v34, %v6162_v27 }
 0x49c   :  { %3361 = vpow2.f32 %v3223_v37  ;;  %v3224_v41 = vmul.f32 -1.442695, %v1279_v11 }
 0x49e   :  { %3363 = vpow2.f32 %v3224_v41 }
 0x4a9   :  { %v3362_v52 = vpop.eup %3361 }
 0x4aa   :  { %v1355_v4 = vadd.f32 1.0, %v3362_v52 }
 0x4ab   :  { %v3364_v8 = vpop.eup %3363 }
 0x4ac   :  { %3365 = vrcp.f32 %v1355_v4  ;;  %v1361_v12 = vadd.f32 1.0, %v3364_v8 }
 0x4ae   :  { %3367 = vrcp.f32 %v1361_v12 }
 0x4b9   :  { %v3366_v18 = vpop.eup %3365 }
 0x4ba   :  { %v1364_v21 = vmul.f32 %v3366_v18, %v1350_v17 }
 0x4bb   :  { %v3368_v22 = vpop.eup %3367 }
 0x4bc   :  { %v1365_v20 = vadd.f32 %v1364_v21, %v1348_v19  ;;  %v1367_v24 = vsub.f32 1.0, %v3368_v22  ;;  %v1369_v28 = vmul.f32 %v3368_v22, %v6162_v27 }
 0x4be   :  { %3369 = vtanh.f32 %v1365_v20 }
 0x4cb   :  { %v3370_v25 = vpop.eup %3369 }
 0x4cc   :  { %v1368_v26 = vmul.f32 %v3370_v25, %v1367_v24  ;;  %v6610_v25 = vsel %vm1374_vm6, 1.0, %v9592_v55 }
 0x4cd   :  { %v9103_v34 = vsub.f32 1.0, %v6610_v25 }
 0x4ce   :  { %v1370_v31 = vadd.f32 %v1369_v28, %v1368_v26 }
 0x4d0   :  { %v1371_v32 = vmul.f32 %v6172_v45, %v1370_v31 }
 0x4d2   :  { %v6600_v37 = vadd.f32 %v1372_v36, %v1371_v32 }
 0x4d4   :  { %1613 = vmatprep.mubr.f32.mxu0 %v6600_v37  ;;  %1684 = vmatprep.mubr.f32.mxu1 %v6600_v37 }
 0x4d7   :  { %v1451_v38 = vpop.f32.mrf.mxu0 }
 0x4d8   :  { %v1452_v11 = vadd.f32 %v1451_v38, %v9788_v46 }
 0x4d9   :  { %v1453_v52 = vpop.f32.mrf.mxu0  ;;  %v1522_v27 = vpop.f32.mrf.mxu1 }
 0x4da   :  { %v3226_v41 = vmul.f32 -1.442695, %v1452_v11  ;;  %v1454_v4 = vadd.f32 %v1453_v52, %v9789_v51  ;;  %v1523_v21 = vadd.f32 %v1522_v27, %v9790_v23  ;;  %v1547_v11 = vmul.f32 %v9103_v34, %v6180_v63  ;;  %v10200_v52 = vld [vmem:[#allocation177_spill] sm:$0xff]  ;;  %v10205_v27 = vld [vmem:[#allocation182_spill] sm:$0xff] }
 0x4db   :  { %v1524_v12 = vpop.f32.mrf.mxu1  ;;  %v6841_v34 = vld [vmem:[#allocation4 + $0x258] sm:$0xff] }
 0x4dc   :  { %3371 = vpow2.f32 %v3226_v41  ;;  %v3227_v6 = vmul.f32 -1.442695, %v1454_v4  ;;  %v1525_v18 = vadd.f32 %v1524_v12, %v5039_v1  ;;  %v10201_v4 = vld [vmem:[#allocation178_spill] sm:$0xff]  ;;  %v10207_v12 = vld [vmem:[#allocation184_spill] sm:$0xff]  ;;  %10243 = vst [vmem:[#allocation28_spill] sm:$0xff] %v6841_v34 }
 0x4de   :  { %3373 = vpow2.f32 %v3227_v6  ;;  %v10202_v6 = vld [vmem:[#allocation179_spill] sm:$0xff] }
 0x4e9   :  { %v3372_v8 = vpop.eup %3371 }
 0x4ea   :  { %v1530_v10 = vadd.f32 1.0, %v3372_v8  ;;  %v10203_v8 = vld [vmem:[#allocation180_spill] sm:$0xff] }
 0x4eb   :  { %v3374_v45 = vpop.eup %3373 }
 0x4ec   :  { %3375 = vrcp.f32 %v1530_v10  ;;  %v1536_v17 = vadd.f32 1.0, %v3374_v45  ;;  %v10204_v10 = vld [vmem:[#allocation181_spill] sm:$0xff]  ;;  %v10206_v45 = vld [vmem:[#allocation183_spill] sm:$0xff] }
 0x4ee   :  { %3377 = vrcp.f32 %v1536_v17  ;;  %v10208_v17 = vld [vmem:[#allocation185_spill] sm:$0xff] }
 0x4f9   :  { %v3376_v19 = vpop.eup %3375 }
 0x4fa   :  { %v1539_v20 = vmul.f32 %v3376_v19, %v1525_v18  ;;  %v10209_v18 = vld [vmem:[#allocation186_spill] sm:$0xff]  ;;  %v10210_v19 = vld [vmem:[#allocation187_spill] sm:$0xff] }
 0x4fb   :  { %v3378_v24 = vpop.eup %3377 }
 0x4fc   :  { %v1540_v22 = vadd.f32 %v1539_v20, %v1523_v21  ;;  %v1542_v26 = vsub.f32 1.0, %v3378_v24  ;;  %v1544_v31 = vmul.f32 %v3378_v24, %v6180_v63  ;;  %v10188_v63 = vld [vmem:[#allocation165_spill] sm:$0xff]  ;;  %v10211_v21 = vld [vmem:[#allocation188_spill] sm:$0xff]  ;;  %v10214_v24 = vld [vmem:[#allocation191_spill] sm:$0xff] }
 0x4fd   :  { %v10212_v20 = vld [vmem:[#allocation189_spill] sm:$0xff] }
 0x4fe   :  { %3379 = vtanh.f32 %v1540_v22  ;;  %v10213_v22 = vld [vmem:[#allocation190_spill] sm:$0xff] }
 0x50b   :  { %v3380_v28 = vpop.eup %3379 }
 0x50c   :  { %v1543_v32 = vmul.f32 %v3380_v28, %v1542_v26  ;;  %v10215_v26 = vld [vmem:[#allocation192_spill] sm:$0xff]  ;;  %v10216_v28 = vld [vmem:[#allocation193_spill] sm:$0xff] }
 0x50e   :  { %v1545_v36 = vadd.f32 %v1544_v31, %v1543_v32  ;;  %v10217_v31 = vld [vmem:[#allocation194_spill] sm:$0xff]  ;;  %v10218_v32 = vld [vmem:[#allocation195_spill] sm:$0xff] }
 0x510   :  { %v1546_v38 = vmul.f32 %v6610_v25, %v1545_v36  ;;  %v10219_v36 = vld [vmem:[#allocation196_spill] sm:$0xff] }
 0x512   :  { %v6618_v41 = vadd.f32 %v1547_v11, %v1546_v38  ;;  %v10220_v38 = vld [vmem:[#allocation197_spill] sm:$0xff]  ;;  %v10221_v11 = vld [vmem:[#allocation198_spill] sm:$0xff] }
 0x514   :  { %1614 = vmatmul.mubr.f32.vlgmr.msra.gmra.mxu0 %v6618_v41  ;;  %1685 = vmatmul.mubr.f32.vlgmr.msra.gmra.mxu1 %v6618_v41 }
 0x515   :  { %1725 = vmatpush1.msra.mxu0 %v6184_v29  ;;  %1788 = vmatprep.mubr.f32.mxu0 %v6618_v41  ;;  %v10189_v29 = vld [vmem:[#allocation166_spill] sm:$0xff] }
 0x516   :  { %1726 = vmatprep.subr.mxu0 %v6188_v48  ;;  %1859 = vmatprep.mubr.f32.mxu1 %v6618_v41  ;;  %v10190_v48 = vld [vmem:[#allocation167_spill] sm:$0xff] }
 0x517   :  { %1727 = vmatpush1.msra.mxu0 %v6192_v56  ;;  %1796 = vmatpush1.msra.mxu1 %v6195_v39  ;;  %v10191_v56 = vld [vmem:[#allocation168_spill] sm:$0xff]  ;;  %v10192_v39 = vld [vmem:[#allocation169_spill] sm:$0xff] }
 0x518   :  { %1728 = vmatprep.subr.mxu0 %v6198_v50  ;;  %1797 = vmatprep.subr.mxu1 %v6201_v58  ;;  %v10193_v50 = vld [vmem:[#allocation170_spill] sm:$0xff]  ;;  %v10194_v58 = vld [vmem:[#allocation171_spill] sm:$0xff] }
 0x519   :  { %1729 = vmatpush1.msra.mxu0 %v6204_v16  ;;  %1798 = vmatpush1.msra.mxu1 %v6207_v47  ;;  %v10195_v16 = vld [vmem:[#allocation172_spill] sm:$0xff]  ;;  %v10196_v47 = vld [vmem:[#allocation173_spill] sm:$0xff] }
 0x51a   :  { %1730 = vmatprep.subr.mxu0 %v6210_v7  ;;  %1799 = vmatprep.subr.mxu1 %v6213_v44  ;;  %v10197_v7 = vld [vmem:[#allocation174_spill] sm:$0xff]  ;;  %v10198_v44 = vld [vmem:[#allocation175_spill] sm:$0xff] }
 0x51b   :  { %1731 = vmatpush1.msra.mxu0 %v6216_v62  ;;  %1800 = vmatpush1.msra.mxu1 %v10188_v63  ;;  %v10199_v62 = vld [vmem:[#allocation176_spill] sm:$0xff]  ;;  %v10222_v63 = vld [vmem:[#allocation199_spill] sm:$0xff] }
 0x51c   :  { %1732 = vmatprep.subr.mxu0 %v10189_v29  ;;  %1801 = vmatprep.subr.mxu1 %v10190_v48  ;;  %v10223_v29 = vld [vmem:[#allocation200_spill] sm:$0xff]  ;;  %v10224_v48 = vld [vmem:[#allocation201_spill] sm:$0xff] }
 0x51d   :  { %1733 = vmatpush1.msra.mxu0 %v10191_v56  ;;  %1802 = vmatpush1.msra.mxu1 %v10192_v39  ;;  %v10225_v56 = vld [vmem:[#allocation202_spill] sm:$0xff]  ;;  %v10226_v39 = vld [vmem:[#allocation203_spill] sm:$0xff] }
 0x51e   :  { %1734 = vmatprep.subr.mxu0 %v10193_v50  ;;  %1803 = vmatprep.subr.mxu1 %v10194_v58  ;;  %v10227_v50 = vld [vmem:[#allocation204_spill] sm:$0xff]  ;;  %v10228_v58 = vld [vmem:[#allocation205_spill] sm:$0xff] }
 0x51f   :  { %1735 = vmatpush1.msra.mxu0 %v10195_v16  ;;  %1804 = vmatpush1.msra.mxu1 %v10196_v47  ;;  %v10229_v16 = vld [vmem:[#allocation206_spill] sm:$0xff]  ;;  %v10230_v47 = vld [vmem:[#allocation207_spill] sm:$0xff] }
 0x520   :  { %1736 = vmatprep.subr.mxu0 %v10197_v7  ;;  %1805 = vmatprep.subr.mxu1 %v10198_v44  ;;  %v10231_v7 = vld [vmem:[#allocation208_spill] sm:$0xff] }
 0x521   :  { %1737 = vmatpush1.msra.mxu0 %v10199_v62  ;;  %1806 = vmatpush1.msra.mxu1 %v10200_v52  ;;  %v6681_v44 = vld [vmem:[#allocation4 + $0x38] sm:$0xff]  ;;  %v6685_v62 = vld [vmem:[#allocation4 + $0x30] sm:$0xff] }
 0x522   :  { %1738 = vmatprep.subr.mxu0 %v10201_v4  ;;  %1807 = vmatprep.subr.mxu1 %v10202_v6  ;;  %v6697_v52 = vld [vmem:[#allocation4 + $0x3f8] sm:$0xff]  ;;  %v6742_v4 = vld [vmem:[#allocation4 + $0x320] sm:$0xff] }
 0x523   :  { %1739 = vmatpush1.msra.mxu0 %v10203_v8  ;;  %1808 = vmatpush1.msra.mxu1 %v10204_v10  ;;  %v6751_v6 = vld [vmem:[#allocation4 + $0x338] sm:$0xff]  ;;  %v6754_v8 = vld [vmem:[#allocation4 + $0x300] sm:$0xff]  ;;  %v6757_v10 = vld [vmem:[#allocation4 + $0x330] sm:$0xff] }
 0x524   :  { %1740 = vmatprep.subr.mxu0 %v10205_v27  ;;  %1809 = vmatprep.subr.mxu1 %v10206_v45  ;;  %v6760_v27 = vld [vmem:[#allocation4 + $0x2e8] sm:$0xff]  ;;  %v6763_v45 = vld [vmem:[#allocation4 + $0x318] sm:$0xff] }
 0x525   :  { %1741 = vmatpush1.msra.mxu0 %v10207_v12  ;;  %1810 = vmatpush1.msra.mxu1 %v10208_v17  ;;  %v6766_v12 = vld [vmem:[#allocation4 + $0x2e0] sm:$0xff]  ;;  %v6769_v17 = vld [vmem:[#allocation4 + $0x310] sm:$0xff] }
 0x526   :  { %1742 = vmatprep.subr.mxu0 %v10209_v18  ;;  %1811 = vmatprep.subr.mxu1 %v10210_v19  ;;  %v6772_v18 = vld [vmem:[#allocation4 + $0x2c8] sm:$0xff]  ;;  %v6775_v19 = vld [vmem:[#allocation4 + $0x2f8] sm:$0xff] }
 0x527   :  { %1743 = vmatpush1.msra.mxu0 %v10211_v21  ;;  %1812 = vmatpush1.msra.mxu1 %v10212_v20  ;;  %v6778_v21 = vld [vmem:[#allocation4 + $0x2c0] sm:$0xff]  ;;  %v6781_v20 = vld [vmem:[#allocation4 + $0x2f0] sm:$0xff] }
 0x528   :  { %1744 = vmatprep.subr.mxu0 %v10213_v22  ;;  %1813 = vmatprep.subr.mxu1 %v10214_v24  ;;  %v6784_v22 = vld [vmem:[#allocation4 + $0x2a8] sm:$0xff]  ;;  %v6787_v24 = vld [vmem:[#allocation4 + $0x2d8] sm:$0xff] }
 0x529   :  { %1745 = vmatpush1.msra.mxu0 %v10215_v26  ;;  %1814 = vmatpush1.msra.mxu1 %v10216_v28  ;;  %v6790_v26 = vld [vmem:[#allocation4 + $0x2a0] sm:$0xff]  ;;  %v6793_v28 = vld [vmem:[#allocation4 + $0x2d0] sm:$0xff] }
 0x52a   :  { %1746 = vmatprep.subr.mxu0 %v10217_v31  ;;  %1815 = vmatprep.subr.mxu1 %v10218_v32  ;;  %v6796_v31 = vld [vmem:[#allocation4 + $0x288] sm:$0xff] }
 0x52b   :  { %1747 = vmatpush1.msra.mxu0 %v10219_v36  ;;  %1816 = vmatpush1.msra.mxu1 %v10220_v38  ;;  %v1718_v32 = vld [vmem:[%s8696_s1 + $0xc] sm:$0x1]  ;;  %v6802_v36 = vld [vmem:[#allocation4 + $0x2b8] sm:$0xff]  ;;  %v6805_v38 = vld [vmem:[#allocation4 + $0x280] sm:$0xff] }
 0x52c   :  { %1748 = vmatprep.subr.mxu0 %v10221_v11  ;;  %1817 = vmatprep.subr.mxu1 %v10222_v63  ;;  %10232 = vst [vmem:[#allocation21_spill] sm:$0xff] %v6805_v38  ;;  %v6808_v11 = vld [vmem:[#allocation4 + $0x2b0] sm:$0xff]  ;;  %v6811_v63 = vld [vmem:[#allocation4 + $0x268] sm:$0xff] }
 0x52d   :  { %1749 = vmatpush1.msra.mxu0 %v10223_v29  ;;  %1818 = vmatpush1.msra.mxu1 %v10224_v48  ;;  %10233 = vst [vmem:[#allocation15_spill] sm:$0xff] %v6808_v11  ;;  %10234 = vst [vmem:[#allocation23_spill] sm:$0xff] %v6811_v63  ;;  %v6814_v29 = vld [vmem:[#allocation4 + $0x298] sm:$0xff]  ;;  %v6817_v48 = vld [vmem:[#allocation4 + $0x260] sm:$0xff] }
 0x52e   :  { %1750 = vmatprep.subr.mxu0 %v10225_v56  ;;  %1819 = vmatprep.subr.mxu1 %v10226_v39  ;;  %10235 = vst [vmem:[#allocation16_spill] sm:$0xff] %v6814_v29  ;;  %10236 = vst [vmem:[#allocation24_spill] sm:$0xff] %v6817_v48  ;;  %v1721_v56 = vrot.slane %v1718_v32, 7  ;;  %v6820_v39 = vld [vmem:[#allocation4 + $0x290] sm:$0xff]  ;;  %v6838_v32 = vld [vmem:[#allocation4 + $0x228] sm:$0xff] }
 0x52f   :  { %1751 = vmatpush1.msra.mxu0 %v10227_v50  ;;  %1820 = vmatpush1.msra.mxu1 %v10228_v58  ;;  %10237 = vst [vmem:[#allocation25_spill] sm:$0xff] %v6820_v39  ;;  %v6823_v50 = vld [vmem:[#allocation4 + $0x248] sm:$0xff]  ;;  %v1717_v58 = vld [vmem:[%s8696_s1 + $0x4] sm:$0x1]  ;;  %10242 = vst [vmem:[#allocation20_spill] sm:$0xff] %v6838_v32 }
 0x530   :  { %1752 = vmatprep.subr.mxu0 %v6342_v35  ;;  %1821 = vmatprep.subr.mxu1 %v10229_v16  ;;  %v6689_v35 = vld [vmem:[#allocation4 + $0x18] sm:$0xff]  ;;  %10238 = vst [vmem:[#allocation26_spill] sm:$0xff] %v6823_v50 }
 0x531   :  { %1753 = vmatpush1.msra.mxu0 %v10230_v47  ;;  %1822 = vmatpush1.msra.mxu1 %v6351_v3  ;;  %v6693_v3 = vld [vmem:[#allocation4 + $0x10] sm:$0xff]  ;;  %v6829_v16 = vld [vmem:[#allocation4 + $0x278] sm:$0xff]  ;;  %v6832_v47 = vld [vmem:[#allocation4 + $0x240] sm:$0xff] }
 0x532   :  { %1754 = vmatprep.subr.mxu0 %v10231_v7  ;;  %1823 = vmatprep.subr.mxu1 %v6681_v44  ;;  %10239 = vst [vmem:[#allocation17_spill] sm:$0xff] %v6829_v16  ;;  %10240 = vst [vmem:[#allocation18_spill] sm:$0xff] %v6832_v47  ;;  %v6835_v7 = vld [vmem:[#allocation4 + $0x270] sm:$0xff] }
 0x533   :  { %1755 = vmatpush1.msra.mxu0 %v6358_v43  ;;  %1824 = vmatpush1.msra.mxu1 %v6685_v62  ;;  %v6701_v43 = vld [vmem:[#allocation4 + $0x3f0] sm:$0xff]  ;;  %10241 = vst [vmem:[#allocation27_spill] sm:$0xff] %v6835_v7 }
 0x534   :  { %1756 = vmatprep.subr.mxu0 %v6362_v42  ;;  %1825 = vmatprep.subr.mxu1 %v6689_v35  ;;  %v6705_v42 = vld [vmem:[#allocation4 + $0x3d8] sm:$0xff] }
 0x535   :  { %1757 = vmatpush2.msra.mxu0 %v6366_v49  ;;  %1826 = vmatpush1.msra.mxu1 %v6693_v3  ;;  %v6709_v49 = vld [vmem:[#allocation4 + $0x3d0] sm:$0xff] }
 0x536   :  { %1758 = vmatprep.subr.mxu0 %v6370_v60  ;;  %1827 = vmatprep.subr.mxu1 %v6697_v52  ;;  %v6713_v60 = vld [vmem:[#allocation4 + $0x3b8] sm:$0xff] }
 0x537   :  { %1759 = vmatpush2.msra.mxu0 %v6374_v54  ;;  %1828 = vmatpush2.msra.mxu1 %v6701_v43  ;;  %v6717_v54 = vld [vmem:[#allocation4 + $0x3b0] sm:$0xff] }
 0x538   :  { %1760 = vmatprep.subr.mxu0 %v6378_v0  ;;  %1829 = vmatprep.subr.mxu1 %v6705_v42  ;;  %v6721_v0 = vld [vmem:[#allocation4 + $0x398] sm:$0xff] }
 0x539   :  { %1761 = vmatpush2.msra.mxu0 %v6382_v61  ;;  %1830 = vmatpush2.msra.mxu1 %v6709_v49  ;;  %v6725_v61 = vld [vmem:[#allocation4 + $0x390] sm:$0xff] }
 0x53a   :  { %1762 = vmatprep.subr.mxu0 %v6386_v59  ;;  %1831 = vmatprep.subr.mxu1 %v6713_v60  ;;  %v6729_v59 = vld [vmem:[#allocation4 + $0x378] sm:$0xff] }
 0x53b   :  { %1763 = vmatpush2.msra.mxu0 %v6390_v2  ;;  %1832 = vmatpush2.msra.mxu1 %v6717_v54  ;;  %v6733_v2 = vld [vmem:[#allocation4 + $0x370] sm:$0xff] }
 0x53c   :  { %1764 = vmatprep.subr.mxu0 %v6394_v13  ;;  %1833 = vmatprep.subr.mxu1 %v6721_v0  ;;  %v6736_v13 = vld [vmem:[#allocation4 + $0x328] sm:$0xff] }
 0x53d   :  { %1765 = vmatpush2.msra.mxu0 %v6398_v9  ;;  %1834 = vmatpush2.msra.mxu1 %v6725_v61  ;;  %v6739_v9 = vld [vmem:[#allocation4 + $0x358] sm:$0xff] }
 0x53e   :  { %1766 = vmatprep.subr.mxu0 %v6402_v57  ;;  %1835 = vmatprep.subr.mxu1 %v6729_v59  ;;  %v6745_v57 = vld [vmem:[#allocation4 + $0x350] sm:$0xff] }
 0x53f   :  { %1767 = vmatpush2.msra.mxu0 %v6406_v14  ;;  %1836 = vmatpush2.msra.mxu1 %v6733_v2  ;;  %v6748_v14 = vld [vmem:[#allocation4 + $0x308] sm:$0xff] }
 0x540   :  { %1768 = vmatprep.subr.mxu0 %v6736_v13  ;;  %1837 = vmatprep.subr.mxu1 %v6739_v9 }
 0x541   :  { %1769 = vmatpush2.msra.mxu0 %v6742_v4  ;;  %1838 = vmatpush2.msra.mxu1 %v6745_v57 }
 0x542   :  { %1770 = vmatprep.subr.mxu0 %v6748_v14  ;;  %1839 = vmatprep.subr.mxu1 %v6751_v6 }
 0x543   :  { %1771 = vmatpush2.msra.mxu0 %v6754_v8  ;;  %1840 = vmatpush2.msra.mxu1 %v6757_v10 }
 0x544   :  { %1772 = vmatprep.subr.mxu0 %v6760_v27  ;;  %1841 = vmatprep.subr.mxu1 %v6763_v45 }
 0x545   :  { %1773 = vmatpush2.msra.mxu0 %v6766_v12  ;;  %1842 = vmatpush2.msra.mxu1 %v6769_v17 }
 0x546   :  { %1774 = vmatprep.subr.mxu0 %v6772_v18  ;;  %1843 = vmatprep.subr.mxu1 %v6775_v19 }
 0x547   :  { %1775 = vmatpush2.msra.mxu0 %v6778_v21  ;;  %1844 = vmatpush2.msra.mxu1 %v6781_v20 }
 0x548   :  { %1776 = vmatprep.subr.mxu0 %v6784_v22  ;;  %1845 = vmatprep.subr.mxu1 %v6787_v24 }
 0x549   :  { %1777 = vmatpush2.msra.mxu0 %v6790_v26  ;;  %1846 = vmatpush2.msra.mxu1 %v6793_v28 }
 0x54a   :  { %1778 = vmatprep.subr.mxu0 %v6796_v31  ;;  %1847 = vmatprep.subr.mxu1 %v6802_v36 }
 0x54b   :  { %1779 = vmatpush2.msra.mxu0 %v6805_v38  ;;  %1848 = vmatpush2.msra.mxu1 %v6808_v11 }
 0x54c   :  { %1780 = vmatprep.subr.mxu0 %v6811_v63  ;;  %1849 = vmatprep.subr.mxu1 %v6814_v29 }
 0x54d   :  { %1781 = vmatpush2.msra.mxu0 %v6817_v48  ;;  %1850 = vmatpush2.msra.mxu1 %v6820_v39  ;;  %v6848_v39 = vld [vmem:[#allocation4 + $0x250] sm:$0xff] }
 0x54e   :  { %1782 = vmatprep.subr.mxu0 %v6823_v50  ;;  %1851 = vmatprep.subr.mxu1 %v6829_v16  ;;  %v6844_v50 = vld [vmem:[#allocation4 + $0x220] sm:$0xff]  ;;  %v1722_v16 = vsel %vm64_vm0, %v1721_v56, %v1717_v58  ;;  %10245 = vst [vmem:[#allocation29_spill] sm:$0xff] %v6848_v39  ;;  %v6863_v56 = vld [vmem:[#allocation4 + $0x218] sm:$0xff]  ;;  %v6866_v58 = vld [vmem:[#allocation4 + $0x210] sm:$0xff] }
 0x54f   :  { %1783 = vmatpush2.msra.mxu0 %v6832_v47  ;;  %1852 = vmatpush2.msra.mxu1 %v6835_v7  ;;  %10244 = vst [vmem:[#allocation22_spill] sm:$0xff] %v6844_v50  ;;  %v6851_v47 = vld [vmem:[#allocation4 + $0x208] sm:$0xff]  ;;  %v6854_v7 = vld [vmem:[#allocation4 + $0x238] sm:$0xff]  ;;  %10250 = vst [vmem:[#allocation34_spill] sm:$0xff] %v6863_v56 }
 0x550   :  { %1784 = vmatprep.subr.mxu0 %v6838_v32  ;;  %1853 = vmatprep.subr.mxu1 %v6841_v34  ;;  %10246 = vst [vmem:[#allocation30_spill] sm:$0xff] %v6851_v47  ;;  %10247 = vst [vmem:[#allocation31_spill] sm:$0xff] %v6854_v7  ;;  %v6857_v32 = vld [vmem:[#allocation4 + $0x200] sm:$0xff]  ;;  %v6860_v34 = vld [vmem:[#allocation4 + $0x230] sm:$0xff] }
 0x551   :  { %1785 = vmatpush2.msra.mxu0 %v6844_v50  ;;  %1854 = vmatpush2.msra.mxu1 %v6848_v39  ;;  %10248 = vst [vmem:[#allocation32_spill] sm:$0xff] %v6857_v32  ;;  %10249 = vst [vmem:[#allocation33_spill] sm:$0xff] %v6860_v34 }
 0x552   :  { %1786 = vmatprep.subr.mxu0 %v6851_v47  ;;  %1855 = vmatprep.subr.mxu1 %v6854_v7  ;;  %10251 = vst [vmem:[#allocation35_spill] sm:$0xff] %v6866_v58  ;;  %v6869_v47 = vld [vmem:[#allocation4 + $0x5e8] sm:$0xff]  ;;  %v6872_v7 = vld [vmem:[#allocation4 + $0x5e0] sm:$0xff] }
 0x553   :  { %1787 = vmatpush2.msra.mxu0 %v6857_v32  ;;  %1856 = vmatpush2.msra.mxu1 %v6860_v34  ;;  %10252 = vst [vmem:[#allocation36_spill] sm:$0xff] %v6869_v47  ;;  %10253 = vst [vmem:[#allocation37_spill] sm:$0xff] %v6872_v7  ;;  %v6875_v32 = vld [vmem:[#allocation4 + $0x5f8] sm:$0xff]  ;;  %v6878_v34 = vld [vmem:[#allocation4 + $0x5c8] sm:$0xff] }
 0x554   :  { %1789 = vmatmul.mubr.f32.vlgmr.msra.gmra.mxu0 %v1722_v16  ;;  %1857 = vmatprep.subr.mxu1 %v6863_v56  ;;  %10254 = vst [vmem:[#allocation38_spill] sm:$0xff] %v6875_v32  ;;  %10255 = vst [vmem:[#allocation39_spill] sm:$0xff] %v6878_v34  ;;  %v6881_v56 = vld [vmem:[#allocation4 + $0x5f0] sm:$0xff] }
 0x555   :  { %1858 = vmatpush2.msra.mxu1 %v6866_v58  ;;  %1888 = vmatprep.subr.mxu0 %v6869_v47  ;;  %10256 = vst [vmem:[#allocation40_spill] sm:$0xff] %v6881_v56  ;;  %v6884_v58 = vld [vmem:[#allocation4 + $0x5c0] sm:$0xff] }
 0x556   :  { %1860 = vmatmul.mubr.f32.vlgmr.msra.gmra.mxu1 %v1722_v16  ;;  %1889 = vmatpush1.msra.mxu0 %v6872_v7  ;;  %10257 = vst [vmem:[#allocation41_spill] sm:$0xff] %v6884_v58  ;;  %v6887_v16 = vld [vmem:[#allocation4 + $0x5d8] sm:$0xff]  ;;  %v6890_v7 = vld [vmem:[#allocation4 + $0x5a8] sm:$0xff] }
 0x557   :  { %1959 = vmatprep.subr.mxu1 %v6875_v32  ;;  %1890 = vmatprep.subr.mxu0 %v6878_v34  ;;  %10258 = vst [vmem:[#allocation42_spill] sm:$0xff] %v6887_v16  ;;  %10259 = vst [vmem:[#allocation43_spill] sm:$0xff] %v6890_v7  ;;  %v6893_v32 = vld [vmem:[#allocation4 + $0x5d0] sm:$0xff]  ;;  %v6896_v34 = vld [vmem:[#allocation4 + $0x5a0] sm:$0xff] }
 0x558   :  { %1960 = vmatpush1.msra.mxu1 %v6881_v56  ;;  %1891 = vmatpush1.msra.mxu0 %v6884_v58  ;;  %10260 = vst [vmem:[#allocation44_spill] sm:$0xff] %v6893_v32  ;;  %10261 = vst [vmem:[#allocation45_spill] sm:$0xff] %v6896_v34  ;;  %v6899_v56 = vld [vmem:[#allocation4 + $0x5b8] sm:$0xff]  ;;  %v6902_v58 = vld [vmem:[#allocation4 + $0x588] sm:$0xff] }
 0x559   :  { %1961 = vmatprep.subr.mxu1 %v6887_v16  ;;  %1892 = vmatprep.subr.mxu0 %v6890_v7  ;;  %10262 = vst [vmem:[#allocation46_spill] sm:$0xff] %v6899_v56  ;;  %10263 = vst [vmem:[#allocation47_spill] sm:$0xff] %v6902_v58  ;;  %v6905_v16 = vld [vmem:[#allocation4 + $0x5b0] sm:$0xff]  ;;  %v6908_v7 = vld [vmem:[#allocation4 + $0x580] sm:$0xff] }
 0x55a   :  { %1962 = vmatpush1.msra.mxu1 %v6893_v32  ;;  %1893 = vmatpush1.msra.mxu0 %v6896_v34  ;;  %10264 = vst [vmem:[#allocation48_spill] sm:$0xff] %v6905_v16  ;;  %10265 = vst [vmem:[#allocation49_spill] sm:$0xff] %v6908_v7  ;;  %v6911_v32 = vld [vmem:[#allocation4 + $0x598] sm:$0xff]  ;;  %v6914_v34 = vld [vmem:[#allocation4 + $0x568] sm:$0xff] }
 0x55b   :  { %1963 = vmatprep.subr.mxu1 %v6899_v56  ;;  %1894 = vmatprep.subr.mxu0 %v6902_v58  ;;  %10266 = vst [vmem:[#allocation50_spill] sm:$0xff] %v6911_v32  ;;  %10267 = vst [vmem:[#allocation51_spill] sm:$0xff] %v6914_v34  ;;  %v6917_v56 = vld [vmem:[#allocation4 + $0x590] sm:$0xff]  ;;  %v6920_v58 = vld [vmem:[#allocation4 + $0x560] sm:$0xff] }
 0x55c   :  { %1964 = vmatpush1.msra.mxu1 %v6905_v16  ;;  %1895 = vmatpush1.msra.mxu0 %v6908_v7  ;;  %10268 = vst [vmem:[#allocation52_spill] sm:$0xff] %v6917_v56  ;;  %10269 = vst [vmem:[#allocation53_spill] sm:$0xff] %v6920_v58  ;;  %v6923_v16 = vld [vmem:[#allocation4 + $0x578] sm:$0xff]  ;;  %v6926_v7 = vld [vmem:[#allocation4 + $0x548] sm:$0xff] }
 0x55d   :  { %1965 = vmatprep.subr.mxu1 %v6911_v32  ;;  %1896 = vmatprep.subr.mxu0 %v6914_v34  ;;  %10270 = vst [vmem:[#allocation54_spill] sm:$0xff] %v6923_v16  ;;  %10271 = vst [vmem:[#allocation55_spill] sm:$0xff] %v6926_v7  ;;  %v6929_v32 = vld [vmem:[#allocation4 + $0x570] sm:$0xff]  ;;  %v6932_v34 = vld [vmem:[#allocation4 + $0x540] sm:$0xff] }
 0x55e   :  { %1966 = vmatpush1.msra.mxu1 %v6917_v56  ;;  %1897 = vmatpush1.msra.mxu0 %v6920_v58  ;;  %10272 = vst [vmem:[#allocation56_spill] sm:$0xff] %v6929_v32  ;;  %10273 = vst [vmem:[#allocation57_spill] sm:$0xff] %v6932_v34  ;;  %v6935_v56 = vld [vmem:[#allocation4 + $0x558] sm:$0xff]  ;;  %v6938_v58 = vld [vmem:[#allocation4 + $0x528] sm:$0xff] }
 0x55f   :  { %1967 = vmatprep.subr.mxu1 %v6923_v16  ;;  %1898 = vmatprep.subr.mxu0 %v6926_v7  ;;  %10274 = vst [vmem:[#allocation58_spill] sm:$0xff] %v6935_v56  ;;  %10275 = vst [vmem:[#allocation59_spill] sm:$0xff] %v6938_v58  ;;  %v6941_v16 = vld [vmem:[#allocation4 + $0x550] sm:$0xff]  ;;  %v6944_v7 = vld [vmem:[#allocation4 + $0x520] sm:$0xff] }
 0x560   :  { %1968 = vmatpush1.msra.mxu1 %v6929_v32  ;;  %1899 = vmatpush1.msra.mxu0 %v6932_v34  ;;  %10276 = vst [vmem:[#allocation60_spill] sm:$0xff] %v6941_v16  ;;  %10277 = vst [vmem:[#allocation61_spill] sm:$0xff] %v6944_v7  ;;  %v6947_v32 = vld [vmem:[#allocation4 + $0x538] sm:$0xff]  ;;  %v6950_v34 = vld [vmem:[#allocation4 + $0x508] sm:$0xff] }
 0x561   :  { %1969 = vmatprep.subr.mxu1 %v6935_v56  ;;  %1900 = vmatprep.subr.mxu0 %v6938_v58  ;;  %10278 = vst [vmem:[#allocation62_spill] sm:$0xff] %v6947_v32  ;;  %10279 = vst [vmem:[#allocation63_spill] sm:$0xff] %v6950_v34  ;;  %v6953_v56 = vld [vmem:[#allocation4 + $0x530] sm:$0xff]  ;;  %v6956_v58 = vld [vmem:[#allocation4 + $0x500] sm:$0xff] }
 0x562   :  { %1970 = vmatpush1.msra.mxu1 %v6941_v16  ;;  %1901 = vmatpush1.msra.mxu0 %v6944_v7  ;;  %10280 = vst [vmem:[#allocation64_spill] sm:$0xff] %v6953_v56  ;;  %10281 = vst [vmem:[#allocation65_spill] sm:$0xff] %v6956_v58  ;;  %v6959_v16 = vld [vmem:[#allocation4 + $0x518] sm:$0xff]  ;;  %v6962_v7 = vld [vmem:[#allocation4 + $0x4e8] sm:$0xff] }
 0x563   :  { %1971 = vmatprep.subr.mxu1 %v6947_v32  ;;  %1902 = vmatprep.subr.mxu0 %v6950_v34  ;;  %10282 = vst [vmem:[#allocation66_spill] sm:$0xff] %v6959_v16  ;;  %10283 = vst [vmem:[#allocation67_spill] sm:$0xff] %v6962_v7  ;;  %v6965_v32 = vld [vmem:[#allocation4 + $0x510] sm:$0xff]  ;;  %v6968_v34 = vld [vmem:[#allocation4 + $0x4e0] sm:$0xff] }
 0x564   :  { %1972 = vmatpush1.msra.mxu1 %v6953_v56  ;;  %1903 = vmatpush1.msra.mxu0 %v6956_v58  ;;  %10284 = vst [vmem:[#allocation68_spill] sm:$0xff] %v6965_v32  ;;  %10285 = vst [vmem:[#allocation69_spill] sm:$0xff] %v6968_v34  ;;  %v6971_v56 = vld [vmem:[#allocation4 + $0x4f8] sm:$0xff]  ;;  %v6974_v58 = vld [vmem:[#allocation4 + $0x4c8] sm:$0xff] }
 0x565   :  { %1973 = vmatprep.subr.mxu1 %v6959_v16  ;;  %1904 = vmatprep.subr.mxu0 %v6962_v7  ;;  %10286 = vst [vmem:[#allocation70_spill] sm:$0xff] %v6971_v56  ;;  %10287 = vst [vmem:[#allocation71_spill] sm:$0xff] %v6974_v58  ;;  %v6977_v16 = vld [vmem:[#allocation4 + $0x4f0] sm:$0xff]  ;;  %v6980_v7 = vld [vmem:[#allocation4 + $0x4c0] sm:$0xff] }
 0x566   :  { %1974 = vmatpush1.msra.mxu1 %v6965_v32  ;;  %1905 = vmatpush1.msra.mxu0 %v6968_v34  ;;  %10288 = vst [vmem:[#allocation72_spill] sm:$0xff] %v6977_v16  ;;  %10289 = vst [vmem:[#allocation73_spill] sm:$0xff] %v6980_v7  ;;  %v6983_v32 = vld [vmem:[#allocation4 + $0x4d8] sm:$0xff]  ;;  %v6986_v34 = vld [vmem:[#allocation4 + $0x4a8] sm:$0xff] }
 0x567   :  { %1975 = vmatprep.subr.mxu1 %v6971_v56  ;;  %1906 = vmatprep.subr.mxu0 %v6974_v58  ;;  %10290 = vst [vmem:[#allocation74_spill] sm:$0xff] %v6983_v32  ;;  %10291 = vst [vmem:[#allocation75_spill] sm:$0xff] %v6986_v34  ;;  %v6989_v56 = vld [vmem:[#allocation4 + $0x4d0] sm:$0xff]  ;;  %v6992_v58 = vld [vmem:[#allocation4 + $0x4a0] sm:$0xff] }
 0x568   :  { %1976 = vmatpush1.msra.mxu1 %v6977_v16  ;;  %1907 = vmatpush1.msra.mxu0 %v6980_v7  ;;  %10292 = vst [vmem:[#allocation76_spill] sm:$0xff] %v6989_v56  ;;  %10293 = vst [vmem:[#allocation77_spill] sm:$0xff] %v6992_v58  ;;  %v6995_v16 = vld [vmem:[#allocation4 + $0x4b8] sm:$0xff]  ;;  %v6998_v7 = vld [vmem:[#allocation4 + $0x488] sm:$0xff] }
 0x569   :  { %1977 = vmatprep.subr.mxu1 %v6983_v32  ;;  %1908 = vmatprep.subr.mxu0 %v6986_v34  ;;  %10294 = vst [vmem:[#allocation78_spill] sm:$0xff] %v6995_v16  ;;  %10295 = vst [vmem:[#allocation79_spill] sm:$0xff] %v6998_v7  ;;  %v7001_v32 = vld [vmem:[#allocation4 + $0x4b0] sm:$0xff]  ;;  %v7004_v34 = vld [vmem:[#allocation4 + $0x480] sm:$0xff] }
 0x56a   :  { %1978 = vmatpush1.msra.mxu1 %v6989_v56  ;;  %1909 = vmatpush1.msra.mxu0 %v6992_v58  ;;  %10296 = vst [vmem:[#allocation80_spill] sm:$0xff] %v7001_v32  ;;  %10297 = vst [vmem:[#allocation81_spill] sm:$0xff] %v7004_v34  ;;  %v7007_v56 = vld [vmem:[#allocation4 + $0x498] sm:$0xff]  ;;  %v7010_v58 = vld [vmem:[#allocation4 + $0x468] sm:$0xff] }
 0x56b   :  { %1979 = vmatprep.subr.mxu1 %v6995_v16  ;;  %1910 = vmatprep.subr.mxu0 %v6998_v7  ;;  %10298 = vst [vmem:[#allocation82_spill] sm:$0xff] %v7007_v56  ;;  %10299 = vst [vmem:[#allocation83_spill] sm:$0xff] %v7010_v58  ;;  %v7013_v16 = vld [vmem:[#allocation4 + $0x490] sm:$0xff]  ;;  %v7016_v7 = vld [vmem:[#allocation4 + $0x460] sm:$0xff] }
 0x56c   :  { %1980 = vmatpush1.msra.mxu1 %v7001_v32  ;;  %1911 = vmatpush1.msra.mxu0 %v7004_v34  ;;  %10300 = vst [vmem:[#allocation84_spill] sm:$0xff] %v7013_v16  ;;  %10301 = vst [vmem:[#allocation85_spill] sm:$0xff] %v7016_v7  ;;  %v7019_v32 = vld [vmem:[#allocation4 + $0x478] sm:$0xff]  ;;  %v7022_v34 = vld [vmem:[#allocation4 + $0x448] sm:$0xff] }
 0x56d   :  { %1981 = vmatprep.subr.mxu1 %v7007_v56  ;;  %1912 = vmatprep.subr.mxu0 %v7010_v58  ;;  %10302 = vst [vmem:[#allocation86_spill] sm:$0xff] %v7019_v32  ;;  %10303 = vst [vmem:[#allocation87_spill] sm:$0xff] %v7022_v34  ;;  %v7025_v56 = vld [vmem:[#allocation4 + $0x470] sm:$0xff]  ;;  %v7028_v58 = vld [vmem:[#allocation4 + $0x440] sm:$0xff] }
 0x56e   :  { %1982 = vmatpush1.msra.mxu1 %v7013_v16  ;;  %1913 = vmatpush1.msra.mxu0 %v7016_v7  ;;  %10304 = vst [vmem:[#allocation88_spill] sm:$0xff] %v7025_v56  ;;  %10305 = vst [vmem:[#allocation89_spill] sm:$0xff] %v7028_v58  ;;  %v7031_v16 = vld [vmem:[#allocation4 + $0x458] sm:$0xff]  ;;  %v7034_v7 = vld [vmem:[#allocation4 + $0x428] sm:$0xff] }
 0x56f   :  { %1983 = vmatprep.subr.mxu1 %v7019_v32  ;;  %1914 = vmatprep.subr.mxu0 %v7022_v34  ;;  %10306 = vst [vmem:[#allocation90_spill] sm:$0xff] %v7031_v16  ;;  %10307 = vst [vmem:[#allocation91_spill] sm:$0xff] %v7034_v7  ;;  %v7037_v32 = vld [vmem:[#allocation4 + $0x450] sm:$0xff]  ;;  %v7040_v34 = vld [vmem:[#allocation4 + $0x420] sm:$0xff] }
 0x570   :  { %1984 = vmatpush1.msra.mxu1 %v7025_v56  ;;  %1915 = vmatpush1.msra.mxu0 %v7028_v58  ;;  %10308 = vst [vmem:[#allocation92_spill] sm:$0xff] %v7037_v32  ;;  %10309 = vst [vmem:[#allocation93_spill] sm:$0xff] %v7040_v34  ;;  %v7043_v56 = vld [vmem:[#allocation4 + $0x438] sm:$0xff]  ;;  %v7046_v58 = vld [vmem:[#allocation4 + $0x408] sm:$0xff] }
 0x571   :  { %1985 = vmatprep.subr.mxu1 %v7031_v16  ;;  %1916 = vmatprep.subr.mxu0 %v7034_v7  ;;  %10310 = vst [vmem:[#allocation94_spill] sm:$0xff] %v7043_v56  ;;  %10311 = vst [vmem:[#allocation95_spill] sm:$0xff] %v7046_v58  ;;  %v7049_v16 = vld [vmem:[#allocation4 + $0x430] sm:$0xff]  ;;  %v7052_v7 = vld [vmem:[#allocation4 + $0x400] sm:$0xff] }
 0x572   :  { %1986 = vmatpush1.msra.mxu1 %v7037_v32  ;;  %1917 = vmatpush1.msra.mxu0 %v7040_v34  ;;  %10312 = vst [vmem:[#allocation96_spill] sm:$0xff] %v7049_v16  ;;  %10313 = vst [vmem:[#allocation97_spill] sm:$0xff] %v7052_v7  ;;  %v7055_v32 = vld [vmem:[#allocation4 + $0x418] sm:$0xff]  ;;  %v7058_v34 = vld [vmem:[#allocation4 + $0x7e8] sm:$0xff] }
 0x573   :  { %1987 = vmatprep.subr.mxu1 %v7043_v56  ;;  %1918 = vmatprep.subr.mxu0 %v7046_v58  ;;  %10314 = vst [vmem:[#allocation98_spill] sm:$0xff] %v7055_v32  ;;  %10315 = vst [vmem:[#allocation99_spill] sm:$0xff] %v7058_v34  ;;  %v7061_v56 = vld [vmem:[#allocation4 + $0x410] sm:$0xff]  ;;  %v7064_v58 = vld [vmem:[#allocation4 + $0x7e0] sm:$0xff] }
 0x574   :  { %1988 = vmatpush1.msra.mxu1 %v7049_v16  ;;  %1919 = vmatpush1.msra.mxu0 %v7052_v7  ;;  %10316 = vst [vmem:[#allocation100_spill] sm:$0xff] %v7061_v56  ;;  %10317 = vst [vmem:[#allocation101_spill] sm:$0xff] %v7064_v58  ;;  %v7067_v16 = vld [vmem:[#allocation4 + $0x7f8] sm:$0xff]  ;;  %v7070_v7 = vld [vmem:[#allocation4 + $0x7c8] sm:$0xff] }
 0x575   :  { %1989 = vmatprep.subr.mxu1 %v7055_v32  ;;  %1920 = vmatprep.subr.mxu0 %v7058_v34  ;;  %10318 = vst [vmem:[#allocation102_spill] sm:$0xff] %v7067_v16  ;;  %10319 = vst [vmem:[#allocation103_spill] sm:$0xff] %v7070_v7  ;;  %v7073_v32 = vld [vmem:[#allocation4 + $0x7f0] sm:$0xff]  ;;  %v7076_v34 = vld [vmem:[#allocation4 + $0x7c0] sm:$0xff] }
 0x576   :  { %1990 = vmatpush1.msra.mxu1 %v7061_v56  ;;  %1921 = vmatpush2.msra.mxu0 %v7064_v58  ;;  %10320 = vst [vmem:[#allocation104_spill] sm:$0xff] %v7073_v32  ;;  %10321 = vst [vmem:[#allocation105_spill] sm:$0xff] %v7076_v34  ;;  %v7079_v56 = vld [vmem:[#allocation4 + $0x7d8] sm:$0xff]  ;;  %v7082_v58 = vld [vmem:[#allocation4 + $0x7a8] sm:$0xff] }
 0x577   :  { %1991 = vmatprep.subr.mxu1 %v7067_v16  ;;  %1922 = vmatprep.subr.mxu0 %v7070_v7  ;;  %10322 = vst [vmem:[#allocation106_spill] sm:$0xff] %v7079_v56  ;;  %10323 = vst [vmem:[#allocation107_spill] sm:$0xff] %v7082_v58  ;;  %v7085_v16 = vld [vmem:[#allocation4 + $0x7d0] sm:$0xff]  ;;  %v7088_v7 = vld [vmem:[#allocation4 + $0x7a0] sm:$0xff] }
 0x578   :  { %1992 = vmatpush2.msra.mxu1 %v7073_v32  ;;  %1923 = vmatpush2.msra.mxu0 %v7076_v34  ;;  %10324 = vst [vmem:[#allocation108_spill] sm:$0xff] %v7085_v16  ;;  %10325 = vst [vmem:[#allocation109_spill] sm:$0xff] %v7088_v7  ;;  %v7091_v32 = vld [vmem:[#allocation4 + $0x7b8] sm:$0xff]  ;;  %v7094_v34 = vld [vmem:[#allocation4 + $0x788] sm:$0xff] }
 0x579   :  { %1993 = vmatprep.subr.mxu1 %v7079_v56  ;;  %1924 = vmatprep.subr.mxu0 %v7082_v58  ;;  %10326 = vst [vmem:[#allocation110_spill] sm:$0xff] %v7091_v32  ;;  %10327 = vst [vmem:[#allocation111_spill] sm:$0xff] %v7094_v34  ;;  %v7097_v56 = vld [vmem:[#allocation4 + $0x7b0] sm:$0xff]  ;;  %v7100_v58 = vld [vmem:[#allocation4 + $0x780] sm:$0xff] }
 0x57a   :  { %1994 = vmatpush2.msra.mxu1 %v7085_v16  ;;  %1925 = vmatpush2.msra.mxu0 %v7088_v7  ;;  %10328 = vst [vmem:[#allocation112_spill] sm:$0xff] %v7097_v56  ;;  %10329 = vst [vmem:[#allocation113_spill] sm:$0xff] %v7100_v58  ;;  %v7103_v16 = vld [vmem:[#allocation4 + $0x798] sm:$0xff]  ;;  %v7106_v7 = vld [vmem:[#allocation4 + $0x768] sm:$0xff] }
 0x57b   :  { %1995 = vmatprep.subr.mxu1 %v7091_v32  ;;  %1926 = vmatprep.subr.mxu0 %v7094_v34  ;;  %10330 = vst [vmem:[#allocation114_spill] sm:$0xff] %v7103_v16  ;;  %10331 = vst [vmem:[#allocation115_spill] sm:$0xff] %v7106_v7  ;;  %v7109_v32 = vld [vmem:[#allocation4 + $0x790] sm:$0xff]  ;;  %v7112_v34 = vld [vmem:[#allocation4 + $0x760] sm:$0xff] }
 0x57c   :  { %1996 = vmatpush2.msra.mxu1 %v7097_v56  ;;  %1927 = vmatpush2.msra.mxu0 %v7100_v58  ;;  %10332 = vst [vmem:[#allocation116_spill] sm:$0xff] %v7109_v32  ;;  %10333 = vst [vmem:[#allocation117_spill] sm:$0xff] %v7112_v34  ;;  %v7115_v56 = vld [vmem:[#allocation4 + $0x778] sm:$0xff]  ;;  %v7118_v58 = vld [vmem:[#allocation4 + $0x748] sm:$0xff] }
 0x57d   :  { %1997 = vmatprep.subr.mxu1 %v7103_v16  ;;  %1928 = vmatprep.subr.mxu0 %v7106_v7  ;;  %10334 = vst [vmem:[#allocation118_spill] sm:$0xff] %v7115_v56  ;;  %10335 = vst [vmem:[#allocation119_spill] sm:$0xff] %v7118_v58  ;;  %v7121_v16 = vld [vmem:[#allocation4 + $0x770] sm:$0xff]  ;;  %v7124_v7 = vld [vmem:[#allocation4 + $0x740] sm:$0xff] }
 0x57e   :  { %1998 = vmatpush2.msra.mxu1 %v7109_v32  ;;  %1929 = vmatpush2.msra.mxu0 %v7112_v34  ;;  %10336 = vst [vmem:[#allocation120_spill] sm:$0xff] %v7121_v16  ;;  %10337 = vst [vmem:[#allocation121_spill] sm:$0xff] %v7124_v7  ;;  %v7127_v32 = vld [vmem:[#allocation4 + $0x758] sm:$0xff]  ;;  %v7130_v34 = vld [vmem:[#allocation4 + $0x728] sm:$0xff] }
 0x57f   :  { %1999 = vmatprep.subr.mxu1 %v7115_v56  ;;  %1930 = vmatprep.subr.mxu0 %v7118_v58  ;;  %10338 = vst [vmem:[#allocation122_spill] sm:$0xff] %v7127_v32  ;;  %10339 = vst [vmem:[#allocation123_spill] sm:$0xff] %v7130_v34  ;;  %v7133_v56 = vld [vmem:[#allocation4 + $0x750] sm:$0xff]  ;;  %v7136_v58 = vld [vmem:[#allocation4 + $0x720] sm:$0xff] }
 0x580   :  { %2000 = vmatpush2.msra.mxu1 %v7121_v16  ;;  %1931 = vmatpush2.msra.mxu0 %v7124_v7  ;;  %10340 = vst [vmem:[#allocation124_spill] sm:$0xff] %v7133_v56  ;;  %10341 = vst [vmem:[#allocation125_spill] sm:$0xff] %v7136_v58  ;;  %v7139_v16 = vld [vmem:[#allocation4 + $0x738] sm:$0xff]  ;;  %v7142_v7 = vld [vmem:[#allocation4 + $0x708] sm:$0xff] }
 0x581   :  { %2001 = vmatprep.subr.mxu1 %v7127_v32  ;;  %1932 = vmatprep.subr.mxu0 %v7130_v34  ;;  %10342 = vst [vmem:[#allocation126_spill] sm:$0xff] %v7139_v16  ;;  %10343 = vst [vmem:[#allocation127_spill] sm:$0xff] %v7142_v7  ;;  %v7145_v32 = vld [vmem:[#allocation4 + $0x730] sm:$0xff]  ;;  %v7148_v34 = vld [vmem:[#allocation4 + $0x700] sm:$0xff] }
 0x582   :  { %2002 = vmatpush2.msra.mxu1 %v7133_v56  ;;  %1933 = vmatpush2.msra.mxu0 %v7136_v58  ;;  %10344 = vst [vmem:[#allocation128_spill] sm:$0xff] %v7145_v32  ;;  %10345 = vst [vmem:[#allocation129_spill] sm:$0xff] %v7148_v34  ;;  %v7151_v56 = vld [vmem:[#allocation4 + $0x718] sm:$0xff]  ;;  %v7154_v58 = vld [vmem:[#allocation4 + $0x6e8] sm:$0xff] }
 0x583   :  { %2003 = vmatprep.subr.mxu1 %v7139_v16  ;;  %1934 = vmatprep.subr.mxu0 %v7142_v7  ;;  %10346 = vst [vmem:[#allocation130_spill] sm:$0xff] %v7151_v56  ;;  %10347 = vst [vmem:[#allocation131_spill] sm:$0xff] %v7154_v58  ;;  %v7157_v16 = vld [vmem:[#allocation4 + $0x710] sm:$0xff]  ;;  %v7160_v7 = vld [vmem:[#allocation4 + $0x6e0] sm:$0xff] }
 0x584   :  { %2004 = vmatpush2.msra.mxu1 %v7145_v32  ;;  %1935 = vmatpush2.msra.mxu0 %v7148_v34  ;;  %10348 = vst [vmem:[#allocation132_spill] sm:$0xff] %v7157_v16  ;;  %10349 = vst [vmem:[#allocation133_spill] sm:$0xff] %v7160_v7  ;;  %v7163_v32 = vld [vmem:[#allocation4 + $0x6f8] sm:$0xff]  ;;  %v7166_v34 = vld [vmem:[#allocation4 + $0x6c8] sm:$0xff] }
 0x585   :  { %2005 = vmatprep.subr.mxu1 %v7151_v56  ;;  %1936 = vmatprep.subr.mxu0 %v7154_v58  ;;  %10350 = vst [vmem:[#allocation134_spill] sm:$0xff] %v7163_v32  ;;  %10351 = vst [vmem:[#allocation135_spill] sm:$0xff] %v7166_v34  ;;  %v7169_v56 = vld [vmem:[#allocation4 + $0x6f0] sm:$0xff]  ;;  %v7172_v58 = vld [vmem:[#allocation4 + $0x6c0] sm:$0xff] }
 0x586   :  { %2006 = vmatpush2.msra.mxu1 %v7157_v16  ;;  %1937 = vmatpush2.msra.mxu0 %v7160_v7  ;;  %10352 = vst [vmem:[#allocation136_spill] sm:$0xff] %v7169_v56  ;;  %10353 = vst [vmem:[#allocation137_spill] sm:$0xff] %v7172_v58  ;;  %v7175_v16 = vld [vmem:[#allocation4 + $0x6d8] sm:$0xff]  ;;  %v7178_v7 = vld [vmem:[#allocation4 + $0x6a8] sm:$0xff] }
 0x587   :  { %2007 = vmatprep.subr.mxu1 %v7163_v32  ;;  %1938 = vmatprep.subr.mxu0 %v7166_v34  ;;  %10354 = vst [vmem:[#allocation138_spill] sm:$0xff] %v7175_v16  ;;  %10355 = vst [vmem:[#allocation139_spill] sm:$0xff] %v7178_v7  ;;  %v7181_v32 = vld [vmem:[#allocation4 + $0x6d0] sm:$0xff]  ;;  %v7184_v34 = vld [vmem:[#allocation4 + $0x6a0] sm:$0xff] }
 0x588   :  { %2008 = vmatpush2.msra.mxu1 %v7169_v56  ;;  %1939 = vmatpush2.msra.mxu0 %v7172_v58  ;;  %10356 = vst [vmem:[#allocation140_spill] sm:$0xff] %v7181_v32  ;;  %10357 = vst [vmem:[#allocation141_spill] sm:$0xff] %v7184_v34  ;;  %v7187_v56 = vld [vmem:[#allocation4 + $0x6b8] sm:$0xff]  ;;  %v7190_v58 = vld [vmem:[#allocation4 + $0x688] sm:$0xff] }
 0x589   :  { %2009 = vmatprep.subr.mxu1 %v7175_v16  ;;  %1940 = vmatprep.subr.mxu0 %v7178_v7  ;;  %10358 = vst [vmem:[#allocation142_spill] sm:$0xff] %v7187_v56  ;;  %10359 = vst [vmem:[#allocation143_spill] sm:$0xff] %v7190_v58  ;;  %v7193_v16 = vld [vmem:[#allocation4 + $0x6b0] sm:$0xff]  ;;  %v7196_v7 = vld [vmem:[#allocation4 + $0x680] sm:$0xff] }
 0x58a   :  { %2010 = vmatpush2.msra.mxu1 %v7181_v32  ;;  %1941 = vmatpush2.msra.mxu0 %v7184_v34  ;;  %10360 = vst [vmem:[#allocation144_spill] sm:$0xff] %v7193_v16  ;;  %10361 = vst [vmem:[#allocation145_spill] sm:$0xff] %v7196_v7  ;;  %v7199_v32 = vld [vmem:[#allocation4 + $0x698] sm:$0xff]  ;;  %v7202_v34 = vld [vmem:[#allocation4 + $0x668] sm:$0xff] }
 0x58b   :  { %2011 = vmatprep.subr.mxu1 %v7187_v56  ;;  %1942 = vmatprep.subr.mxu0 %v7190_v58  ;;  %10362 = vst [vmem:[#allocation146_spill] sm:$0xff] %v7199_v32  ;;  %10363 = vst [vmem:[#allocation147_spill] sm:$0xff] %v7202_v34  ;;  %v7205_v56 = vld [vmem:[#allocation4 + $0x690] sm:$0xff]  ;;  %v7208_v58 = vld [vmem:[#allocation4 + $0x660] sm:$0xff] }
 0x58c   :  { %2012 = vmatpush2.msra.mxu1 %v7193_v16  ;;  %1943 = vmatpush2.msra.mxu0 %v7196_v7  ;;  %10364 = vst [vmem:[#allocation148_spill] sm:$0xff] %v7205_v56  ;;  %10365 = vst [vmem:[#allocation149_spill] sm:$0xff] %v7208_v58  ;;  %v7211_v16 = vld [vmem:[#allocation4 + $0x678] sm:$0xff]  ;;  %v7214_v7 = vld [vmem:[#allocation4 + $0x648] sm:$0xff] }
 0x58d   :  { %2013 = vmatprep.subr.mxu1 %v7199_v32  ;;  %1944 = vmatprep.subr.mxu0 %v7202_v34  ;;  %10366 = vst [vmem:[#allocation151_spill] sm:$0xff] %v7211_v16  ;;  %10367 = vst [vmem:[#allocation150_spill] sm:$0xff] %v7214_v7  ;;  %v7217_v32 = vld [vmem:[#allocation4 + $0x670] sm:$0xff]  ;;  %v7220_v34 = vld [vmem:[#allocation4 + $0x640] sm:$0xff] }
 0x58e   :  { %2014 = vmatpush2.msra.mxu1 %v7205_v56  ;;  %1945 = vmatpush2.msra.mxu0 %v7208_v58  ;;  %10368 = vst [vmem:[#allocation152_spill] sm:$0xff] %v7217_v32  ;;  %10369 = vst [vmem:[#allocation153_spill] sm:$0xff] %v7220_v34  ;;  %v7223_v56 = vld [vmem:[#allocation4 + $0x658] sm:$0xff]  ;;  %v7226_v58 = vld [vmem:[#allocation4 + $0x628] sm:$0xff] }
 0x58f   :  { %2015 = vmatprep.subr.mxu1 %v7211_v16  ;;  %1946 = vmatprep.subr.mxu0 %v7214_v7  ;;  %10370 = vst [vmem:[#allocation154_spill] sm:$0xff] %v7223_v56  ;;  %10371 = vst [vmem:[#allocation155_spill] sm:$0xff] %v7226_v58  ;;  %v7229_v16 = vld [vmem:[#allocation4 + $0x650] sm:$0xff]  ;;  %v7232_v7 = vld [vmem:[#allocation4 + $0x620] sm:$0xff] }
 0x590   :  { %2016 = vmatpush2.msra.mxu1 %v7217_v32  ;;  %1947 = vmatpush2.msra.mxu0 %v7220_v34  ;;  %10372 = vst [vmem:[#allocation156_spill] sm:$0xff] %v7229_v16  ;;  %10373 = vst [vmem:[#allocation157_spill] sm:$0xff] %v7232_v7  ;;  %v7235_v32 = vld [vmem:[#allocation4 + $0x638] sm:$0xff]  ;;  %v7238_v34 = vld [vmem:[#allocation4 + $0x608] sm:$0xff] }
 0x591   :  { %2017 = vmatprep.subr.mxu1 %v7223_v56  ;;  %1948 = vmatprep.subr.mxu0 %v7226_v58  ;;  %10374 = vst [vmem:[#allocation158_spill] sm:$0xff] %v7235_v32  ;;  %10375 = vst [vmem:[#allocation159_spill] sm:$0xff] %v7238_v34  ;;  %v7241_v56 = vld [vmem:[#allocation4 + $0x630] sm:$0xff]  ;;  %v7244_v58 = vld [vmem:[#allocation4 + $0x600] sm:$0xff] }
 0x592   :  { %2018 = vmatpush2.msra.mxu1 %v7229_v16  ;;  %1949 = vmatpush2.msra.mxu0 %v7232_v7  ;;  %10376 = vst [vmem:[#allocation160_spill] sm:$0xff] %v7241_v56  ;;  %10377 = vst [vmem:[#allocation161_spill] sm:$0xff] %v7244_v58  ;;  %v7247_v16 = vld [vmem:[#allocation4 + $0x618] sm:$0xff]  ;;  %v7250_v7 = vld [vmem:[#allocation4 + $0x1e8] sm:$0xff] }
 0x593   :  { %2019 = vmatprep.subr.mxu1 %v7235_v32  ;;  %1950 = vmatprep.subr.mxu0 %v7238_v34  ;;  %10378 = vst [vmem:[#allocation162_spill] sm:$0xff] %v7247_v16  ;;  %10379 = vst [vmem:[#allocation163_spill] sm:$0xff] %v7250_v7  ;;  %v7253_v32 = vld [vmem:[#allocation4 + $0x610] sm:$0xff] }
 0x594   :  { %2020 = vmatpush2.msra.mxu1 %v7241_v56  ;;  %1951 = vmatpush2.msra.mxu0 %v7244_v58  ;;  %10380 = vst [vmem:[#allocation164_spill] sm:$0xff] %v7253_v32 }
 0x595   :  { %2021 = vmatprep.subr.mxu1 %v7247_v16  ;;  %2063 = vmatprep.subr.mxu0 %v7250_v7 }
 0x596   :  { %2022 = vmatpush2.msra.mxu1 %v7253_v32 }
 0x597   :  { %2134 = vmatprep.subr.mxu1 %v6588_v33 }
 0x5d4   :  { %v1615_v34 = vpop.f32.mrf.mxu0  ;;  %v1686_v7 = vpop.f32.mrf.mxu1 }
 0x5d5   :  { %v1616_v56 = vadd.f32 %v1615_v34, %v5476_v53  ;;  %v1687_v38 = vadd.f32 %v1686_v7, %v5490_v30 }
 0x5d6   :  { %v1617_v39 = vpop.f32.mrf.mxu0  ;;  %v1688_v63 = vpop.f32.mrf.mxu1 }
 0x5d7   :  { %v3228_v47 = vmul.f32 -1.442695, %v1616_v56  ;;  %v1618_v58 = vadd.f32 %v1617_v39, %v10185_v40  ;;  %v1689_v32 = vadd.f32 %v1688_v63, %v10186_v15 }
 0x5d9   :  { %3381 = vpow2.f32 %v3228_v47  ;;  %v3229_v50 = vmul.f32 -1.442695, %v1618_v58 }
 0x5db   :  { %3383 = vpow2.f32 %v3229_v50 }
 0x5e6   :  { %v3382_v16 = vpop.eup %3381 }
 0x5e7   :  { %v1694_v48 = vadd.f32 1.0, %v3382_v16 }
 0x5e8   :  { %v3384_v29 = vpop.eup %3383 }
 0x5e9   :  { %3385 = vrcp.f32 %v1694_v48  ;;  %v1700_v11 = vadd.f32 1.0, %v3384_v29  ;;  %v10381_v29 = vsub.f32 1.0, %v6610_v25 }
 0x5eb   :  { %3387 = vrcp.f32 %v1700_v11  ;;  %v1711_v63 = vmul.f32 %v10381_v29, %v6600_v37 }
 0x5f6   :  { %v3386_v33 = vpop.eup %3385 }
 0x5f7   :  { %v1703_v34 = vmul.f32 %v3386_v33, %v1689_v32 }
 0x5f8   :  { %v3388_v47 = vpop.eup %3387 }
 0x5f9   :  { %v1704_v56 = vadd.f32 %v1703_v34, %v1687_v38  ;;  %v1706_v39 = vsub.f32 1.0, %v3388_v47  ;;  %v1708_v16 = vmul.f32 %v3388_v47, %v6600_v37 }
 0x5fb   :  { %3389 = vtanh.f32 %v1704_v56 }
 0x608   :  { %v3390_v58 = vpop.eup %3389 }
 0x609   :  { %v1707_v50 = vmul.f32 %v3390_v58, %v1706_v39 }
 0x60b   :  { %v1709_v48 = vadd.f32 %v1708_v16, %v1707_v50 }
 0x60d   :  { %v1710_v40 = vmul.f32 %v6610_v25, %v1709_v48 }
 0x60f   :  { %v7266_v15 = vadd.f32 %v1711_v63, %v1710_v40 }
 0x611   :  { %1952 = vmatprep.mubr.f32.mxu0 %v7266_v15  ;;  %2023 = vmatprep.mubr.f32.mxu1 %v7266_v15 }
 0x614   :  { %v1790_v38 = vpop.f32.mrf.mxu0 }
 0x615   :  { %v1791_v11 = vadd.f32 %v1790_v38, %v9788_v46  ;;  %v7276_v38 = vsel %vm1713_vm7, 1.0, %v9592_v55 }
 0x616   :  { %v1792_v32 = vpop.f32.mrf.mxu0  ;;  %v1861_v37 = vpop.f32.mrf.mxu1 }
 0x617   :  { %v3231_v7 = vmul.f32 -1.442695, %v1791_v11  ;;  %v1793_v33 = vadd.f32 %v1792_v32, %v9789_v51  ;;  %v1862_v16 = vadd.f32 %v1861_v37, %v9790_v23 }
 0x618   :  { %v1863_v25 = vpop.f32.mrf.mxu1 }
 0x619   :  { %3391 = vpow2.f32 %v3231_v7  ;;  %v3232_v34 = vmul.f32 -1.442695, %v1793_v33  ;;  %v1864_v58 = vadd.f32 %v1863_v25, %v5039_v1  ;;  %v7288_v25 = vld [vmem:[#allocation4 + $0x1e0] sm:$0xff] }
 0x61b   :  { %3393 = vpow2.f32 %v3232_v34  ;;  %v9255_v34 = vsub.f32 1.0, %v7276_v38 }
 0x61d   :  { %v1886_v37 = vmul.f32 %v9255_v34, %v6618_v41  ;;  %v7338_v34 = vld [vmem:[#allocation4 + $0x148] sm:$0xff] }
 0x61e   :  { %10387 = vst [vmem:[#allocation170_spill] sm:$0xff] %v7338_v34 }
 0x626   :  { %v3392_v56 = vpop.eup %3391 }
 0x627   :  { %v1869_v47 = vadd.f32 1.0, %v3392_v56 }
 0x628   :  { %v3394_v40 = vpop.eup %3393 }
 0x629   :  { %3395 = vrcp.f32 %v1869_v47  ;;  %v1875_v39 = vadd.f32 1.0, %v3394_v40 }
 0x62b   :  { %3397 = vrcp.f32 %v1875_v39  ;;  %v7292_v39 = vld [vmem:[#allocation4 + $0x1c8] sm:$0xff] }
 0x636   :  { %v3396_v50 = vpop.eup %3395 }
 0x637   :  { %v1878_v48 = vmul.f32 %v3396_v50, %v1864_v58  ;;  %v7296_v58 = vld [vmem:[#allocation4 + $0x1c0] sm:$0xff]  ;;  %v7302_v50 = vld [vmem:[#allocation4 + $0x1a8] sm:$0xff] }
 0x638   :  { %v3398_v63 = vpop.eup %3397 }
 0x639   :  { %v1879_v29 = vadd.f32 %v1878_v48, %v1862_v16  ;;  %v1881_v11 = vsub.f32 1.0, %v3398_v63  ;;  %v1883_v32 = vmul.f32 %v3398_v63, %v6618_v41  ;;  %v7299_v41 = vld [vmem:[#allocation4 + $0x1f0] sm:$0xff]  ;;  %v7305_v16 = vld [vmem:[#allocation4 + $0x1d8] sm:$0xff]  ;;  %v7308_v48 = vld [vmem:[#allocation4 + $0x1a0] sm:$0xff] }
 0x63a   :  { %v7314_v63 = vld [vmem:[#allocation4 + $0x188] sm:$0xff] }
 0x63b   :  { %3399 = vtanh.f32 %v1879_v29  ;;  %v7311_v29 = vld [vmem:[#allocation4 + $0x1d0] sm:$0xff] }
 0x648   :  { %v3400_v7 = vpop.eup %3399 }
 0x649   :  { %v1882_v33 = vmul.f32 %v3400_v7, %v1881_v11  ;;  %v7317_v11 = vld [vmem:[#allocation4 + $0x1b8] sm:$0xff]  ;;  %v7320_v7 = vld [vmem:[#allocation4 + $0x180] sm:$0xff] }
 0x64b   :  { %v1884_v56 = vadd.f32 %v1883_v32, %v1882_v33  ;;  %v7323_v32 = vld [vmem:[#allocation4 + $0x1b0] sm:$0xff]  ;;  %v7326_v33 = vld [vmem:[#allocation4 + $0x168] sm:$0xff] }
 0x64c   :  { %10382 = vst [vmem:[#allocation165_spill] sm:$0xff] %v7323_v32  ;;  %10383 = vst [vmem:[#allocation166_spill] sm:$0xff] %v7326_v33 }
 0x64d   :  { %v1885_v47 = vmul.f32 %v7276_v38, %v1884_v56  ;;  %v7329_v56 = vld [vmem:[#allocation4 + $0x198] sm:$0xff] }
 0x64e   :  { %10384 = vst [vmem:[#allocation167_spill] sm:$0xff] %v7329_v56 }
 0x64f   :  { %v7284_v40 = vadd.f32 %v1886_v37, %v1885_v47  ;;  %v7332_v47 = vld [vmem:[#allocation4 + $0x160] sm:$0xff]  ;;  %v7335_v37 = vld [vmem:[#allocation4 + $0x190] sm:$0xff] }
 0x650   :  { %10385 = vst [vmem:[#allocation168_spill] sm:$0xff] %v7332_v47  ;;  %10386 = vst [vmem:[#allocation169_spill] sm:$0xff] %v7335_v37 }
 0x651   :  { %1953 = vmatmul.mubr.f32.vlgmr.msra.gmra.mxu0 %v7284_v40  ;;  %2024 = vmatmul.mubr.f32.vlgmr.msra.gmra.mxu1 %v7284_v40 }
 0x652   :  { %2064 = vmatpush1.msra.mxu0 %v7288_v25  ;;  %2127 = vmatprep.mubr.f32.mxu0 %v7284_v40 }
 0x653   :  { %2065 = vmatprep.subr.mxu0 %v7292_v39  ;;  %2198 = vmatprep.mubr.f32.mxu1 %v7284_v40 }
 0x654   :  { %2066 = vmatpush1.msra.mxu0 %v7296_v58  ;;  %2135 = vmatpush1.msra.mxu1 %v7299_v41 }
 0x655   :  { %2067 = vmatprep.subr.mxu0 %v7302_v50  ;;  %2136 = vmatprep.subr.mxu1 %v7305_v16 }
 0x656   :  { %2068 = vmatpush1.msra.mxu0 %v7308_v48  ;;  %2137 = vmatpush1.msra.mxu1 %v7311_v29 }
 0x657   :  { %2069 = vmatprep.subr.mxu0 %v7314_v63  ;;  %2138 = vmatprep.subr.mxu1 %v7317_v11 }
 0x658   :  { %2070 = vmatpush1.msra.mxu0 %v7320_v7  ;;  %2139 = vmatpush1.msra.mxu1 %v7323_v32  ;;  %v7341_v32 = vld [vmem:[#allocation4 + $0x178] sm:$0xff] }
 0x659   :  { %2071 = vmatprep.subr.mxu0 %v7326_v33  ;;  %2140 = vmatprep.subr.mxu1 %v7329_v56  ;;  %10388 = vst [vmem:[#allocation171_spill] sm:$0xff] %v7341_v32  ;;  %v7344_v33 = vld [vmem:[#allocation4 + $0x140] sm:$0xff]  ;;  %v7347_v56 = vld [vmem:[#allocation4 + $0x170] sm:$0xff] }
 0x65a   :  { %2072 = vmatpush1.msra.mxu0 %v7332_v47  ;;  %2141 = vmatpush1.msra.mxu1 %v7335_v37  ;;  %10389 = vst [vmem:[#allocation172_spill] sm:$0xff] %v7344_v33  ;;  %10390 = vst [vmem:[#allocation173_spill] sm:$0xff] %v7347_v56  ;;  %v7350_v47 = vld [vmem:[#allocation4 + $0x128] sm:$0xff]  ;;  %v7353_v37 = vld [vmem:[#allocation4 + $0x158] sm:$0xff] }
 0x65b   :  { %2073 = vmatprep.subr.mxu0 %v7338_v34  ;;  %2142 = vmatprep.subr.mxu1 %v7341_v32  ;;  %10391 = vst [vmem:[#allocation174_spill] sm:$0xff] %v7350_v47  ;;  %10392 = vst [vmem:[#allocation175_spill] sm:$0xff] %v7353_v37  ;;  %v7356_v34 = vld [vmem:[#allocation4 + $0x120] sm:$0xff]  ;;  %v7359_v32 = vld [vmem:[#allocation4 + $0x150] sm:$0xff] }
 0x65c   :  { %2074 = vmatpush1.msra.mxu0 %v7344_v33  ;;  %2143 = vmatpush1.msra.mxu1 %v7347_v56  ;;  %10393 = vst [vmem:[#allocation176_spill] sm:$0xff] %v7356_v34  ;;  %10394 = vst [vmem:[#allocation177_spill] sm:$0xff] %v7359_v32  ;;  %v7362_v33 = vld [vmem:[#allocation4 + $0x108] sm:$0xff]  ;;  %v7365_v56 = vld [vmem:[#allocation4 + $0x138] sm:$0xff] }
 0x65d   :  { %2075 = vmatprep.subr.mxu0 %v7350_v47  ;;  %2144 = vmatprep.subr.mxu1 %v7353_v37  ;;  %10395 = vst [vmem:[#allocation178_spill] sm:$0xff] %v7362_v33  ;;  %10396 = vst [vmem:[#allocation179_spill] sm:$0xff] %v7365_v56  ;;  %v7368_v47 = vld [vmem:[#allocation4 + $0x100] sm:$0xff]  ;;  %v7371_v37 = vld [vmem:[#allocation4 + $0x130] sm:$0xff] }
 0x65e   :  { %2076 = vmatpush1.msra.mxu0 %v7356_v34  ;;  %2145 = vmatpush1.msra.mxu1 %v7359_v32  ;;  %10397 = vst [vmem:[#allocation180_spill] sm:$0xff] %v7368_v47  ;;  %10398 = vst [vmem:[#allocation181_spill] sm:$0xff] %v7371_v37  ;;  %v7374_v34 = vld [vmem:[#allocation4 + $0xe8] sm:$0xff]  ;;  %v7377_v32 = vld [vmem:[#allocation4 + $0x118] sm:$0xff] }
 0x65f   :  { %2077 = vmatprep.subr.mxu0 %v7362_v33  ;;  %2146 = vmatprep.subr.mxu1 %v7365_v56  ;;  %10399 = vst [vmem:[#allocation182_spill] sm:$0xff] %v7374_v34  ;;  %10400 = vst [vmem:[#allocation183_spill] sm:$0xff] %v7377_v32  ;;  %v7380_v33 = vld [vmem:[#allocation4 + $0xe0] sm:$0xff]  ;;  %v7383_v56 = vld [vmem:[#allocation4 + $0x110] sm:$0xff] }
 0x660   :  { %2078 = vmatpush1.msra.mxu0 %v7368_v47  ;;  %2147 = vmatpush1.msra.mxu1 %v7371_v37  ;;  %10401 = vst [vmem:[#allocation184_spill] sm:$0xff] %v7380_v33  ;;  %10402 = vst [vmem:[#allocation185_spill] sm:$0xff] %v7383_v56  ;;  %v7386_v47 = vld [vmem:[#allocation4 + $0xc8] sm:$0xff]  ;;  %v7389_v37 = vld [vmem:[#allocation4 + $0xf8] sm:$0xff] }
 0x661   :  { %2079 = vmatprep.subr.mxu0 %v7374_v34  ;;  %2148 = vmatprep.subr.mxu1 %v7377_v32  ;;  %10403 = vst [vmem:[#allocation186_spill] sm:$0xff] %v7386_v47  ;;  %10404 = vst [vmem:[#allocation187_spill] sm:$0xff] %v7389_v37  ;;  %v7392_v34 = vld [vmem:[#allocation4 + $0xc0] sm:$0xff]  ;;  %v7395_v32 = vld [vmem:[#allocation4 + $0xf0] sm:$0xff] }
 0x662   :  { %2080 = vmatpush1.msra.mxu0 %v7380_v33  ;;  %2149 = vmatpush1.msra.mxu1 %v7383_v56  ;;  %10405 = vst [vmem:[#allocation188_spill] sm:$0xff] %v7392_v34  ;;  %10406 = vst [vmem:[#allocation189_spill] sm:$0xff] %v7395_v32  ;;  %v7398_v33 = vld [vmem:[#allocation4 + $0xa8] sm:$0xff]  ;;  %v7401_v56 = vld [vmem:[#allocation4 + $0xd8] sm:$0xff] }
 0x663   :  { %2081 = vmatprep.subr.mxu0 %v7386_v47  ;;  %2150 = vmatprep.subr.mxu1 %v7389_v37  ;;  %10407 = vst [vmem:[#allocation190_spill] sm:$0xff] %v7398_v33  ;;  %10408 = vst [vmem:[#allocation191_spill] sm:$0xff] %v7401_v56  ;;  %v7404_v47 = vld [vmem:[#allocation4 + $0xa0] sm:$0xff]  ;;  %v7407_v37 = vld [vmem:[#allocation4 + $0xd0] sm:$0xff] }
 0x664   :  { %2082 = vmatpush1.msra.mxu0 %v7392_v34  ;;  %2151 = vmatpush1.msra.mxu1 %v7395_v32  ;;  %10409 = vst [vmem:[#allocation192_spill] sm:$0xff] %v7404_v47  ;;  %10410 = vst [vmem:[#allocation193_spill] sm:$0xff] %v7407_v37  ;;  %v7410_v34 = vld [vmem:[#allocation4 + $0x88] sm:$0xff]  ;;  %v7413_v32 = vld [vmem:[#allocation4 + $0xb8] sm:$0xff] }
 0x665   :  { %2083 = vmatprep.subr.mxu0 %v7398_v33  ;;  %2152 = vmatprep.subr.mxu1 %v7401_v56  ;;  %10411 = vst [vmem:[#allocation194_spill] sm:$0xff] %v7410_v34  ;;  %10412 = vst [vmem:[#allocation195_spill] sm:$0xff] %v7413_v32  ;;  %v7416_v33 = vld [vmem:[#allocation4 + $0x80] sm:$0xff]  ;;  %v7419_v56 = vld [vmem:[#allocation4 + $0xb0] sm:$0xff] }
 0x666   :  { %2084 = vmatpush1.msra.mxu0 %v7404_v47  ;;  %2153 = vmatpush1.msra.mxu1 %v7407_v37  ;;  %10413 = vst [vmem:[#allocation196_spill] sm:$0xff] %v7416_v33  ;;  %10414 = vst [vmem:[#allocation197_spill] sm:$0xff] %v7419_v56  ;;  %v7422_v47 = vld [vmem:[#allocation4 + $0x68] sm:$0xff]  ;;  %v7425_v37 = vld [vmem:[#allocation4 + $0x98] sm:$0xff] }
 0x667   :  { %2085 = vmatprep.subr.mxu0 %v7410_v34  ;;  %2154 = vmatprep.subr.mxu1 %v7413_v32  ;;  %10415 = vst [vmem:[#allocation198_spill] sm:$0xff] %v7422_v47  ;;  %10416 = vst [vmem:[#allocation199_spill] sm:$0xff] %v7425_v37  ;;  %v7428_v34 = vld [vmem:[#allocation4 + $0x60] sm:$0xff]  ;;  %v7431_v32 = vld [vmem:[#allocation4 + $0x90] sm:$0xff] }
 0x668   :  { %2086 = vmatpush1.msra.mxu0 %v7416_v33  ;;  %2155 = vmatpush1.msra.mxu1 %v7419_v56  ;;  %10417 = vst [vmem:[#allocation200_spill] sm:$0xff] %v7428_v34  ;;  %10418 = vst [vmem:[#allocation201_spill] sm:$0xff] %v7431_v32  ;;  %v7434_v33 = vld [vmem:[#allocation4 + $0x48] sm:$0xff]  ;;  %v7437_v56 = vld [vmem:[#allocation4 + $0x78] sm:$0xff] }
 0x669   :  { %2087 = vmatprep.subr.mxu0 %v7422_v47  ;;  %2156 = vmatprep.subr.mxu1 %v7425_v37  ;;  %10419 = vst [vmem:[#allocation202_spill] sm:$0xff] %v7434_v33  ;;  %10420 = vst [vmem:[#allocation203_spill] sm:$0xff] %v7437_v56  ;;  %v7440_v47 = vld [vmem:[#allocation4 + $0x40] sm:$0xff]  ;;  %v7443_v37 = vld [vmem:[#allocation4 + $0x70] sm:$0xff] }
 0x66a   :  { %2088 = vmatpush1.msra.mxu0 %v7428_v34  ;;  %2157 = vmatpush1.msra.mxu1 %v7431_v32  ;;  %10421 = vst [vmem:[#allocation204_spill] sm:$0xff] %v7440_v47  ;;  %10422 = vst [vmem:[#allocation205_spill] sm:$0xff] %v7443_v37  ;;  %v7446_v34 = vld [vmem:[#allocation4 + $0x28] sm:$0xff]  ;;  %v7449_v32 = vld [vmem:[#allocation4 + $0x58] sm:$0xff] }
 0x66b   :  { %2089 = vmatprep.subr.mxu0 %v7434_v33  ;;  %2158 = vmatprep.subr.mxu1 %v7437_v56  ;;  %10423 = vst [vmem:[#allocation206_spill] sm:$0xff] %v7449_v32  ;;  %v7452_v33 = vld [vmem:[#allocation4 + $0x20] sm:$0xff]  ;;  %v7455_v56 = vld [vmem:[#allocation4 + $0x50] sm:$0xff] }
 0x66c   :  { %2090 = vmatpush1.msra.mxu0 %v7440_v47  ;;  %2159 = vmatpush1.msra.mxu1 %v7443_v37  ;;  %10424 = vst [vmem:[#allocation207_spill] sm:$0xff] %v7452_v33  ;;  %v7458_v47 = vld [vmem:[#allocation4 + $0x8] sm:$0xff]  ;;  %v7462_v37 = vld [vmem:[#allocation4] sm:$0xff] }
 0x66d   :  { %2091 = vmatprep.subr.mxu0 %v7446_v34  ;;  %2160 = vmatprep.subr.mxu1 %v7449_v32  ;;  %10425 = vst [vmem:[#allocation208_spill] sm:$0xff] %v7458_v47  ;;  %v7466_v32 = vld [vmem:[#allocation4 + $0x3e8] sm:$0xff] }
 0x66e   :  { %2092 = vmatpush1.msra.mxu0 %v7452_v33  ;;  %2161 = vmatpush1.msra.mxu1 %v7455_v56  ;;  %v7470_v33 = vld [vmem:[#allocation4 + $0x3e0] sm:$0xff] }
 0x66f   :  { %2093 = vmatprep.subr.mxu0 %v7458_v47  ;;  %2162 = vmatprep.subr.mxu1 %v6681_v44  ;;  %v7474_v47 = vld [vmem:[#allocation4 + $0x3c8] sm:$0xff]  ;;  %v7478_v44 = vld [vmem:[#allocation4 + $0x3c0] sm:$0xff] }
 0x670   :  { %2094 = vmatpush1.msra.mxu0 %v7462_v37  ;;  %2163 = vmatpush1.msra.mxu1 %v6685_v62  ;;  %v7482_v62 = vld [vmem:[#allocation4 + $0x3a8] sm:$0xff] }
 0x671   :  { %2095 = vmatprep.subr.mxu0 %v7466_v32  ;;  %2164 = vmatprep.subr.mxu1 %v6689_v35  ;;  %v7486_v35 = vld [vmem:[#allocation4 + $0x3a0] sm:$0xff] }
 0x672   :  { %2096 = vmatpush2.msra.mxu0 %v7470_v33  ;;  %2165 = vmatpush1.msra.mxu1 %v6693_v3  ;;  %v7490_v3 = vld [vmem:[#allocation4 + $0x388] sm:$0xff] }
 0x673   :  { %2097 = vmatprep.subr.mxu0 %v7474_v47  ;;  %2166 = vmatprep.subr.mxu1 %v6697_v52  ;;  %v7494_v52 = vld [vmem:[#allocation4 + $0x380] sm:$0xff] }
 0x674   :  { %2098 = vmatpush2.msra.mxu0 %v7478_v44  ;;  %2167 = vmatpush2.msra.mxu1 %v6701_v43  ;;  %v7498_v43 = vld [vmem:[#allocation4 + $0x368] sm:$0xff] }
 0x675   :  { %2099 = vmatprep.subr.mxu0 %v7482_v62  ;;  %2168 = vmatprep.subr.mxu1 %v6705_v42  ;;  %v7502_v42 = vld [vmem:[#allocation4 + $0x360] sm:$0xff] }
 0x676   :  { %2100 = vmatpush2.msra.mxu0 %v7486_v35  ;;  %2169 = vmatpush2.msra.mxu1 %v6709_v49  ;;  %v7506_v49 = vld [vmem:[#allocation4 + $0x348] sm:$0xff] }
 0x677   :  { %2101 = vmatprep.subr.mxu0 %v7490_v3  ;;  %2170 = vmatprep.subr.mxu1 %v6713_v60  ;;  %v7510_v60 = vld [vmem:[#allocation4 + $0x340] sm:$0xff] }
 0x678   :  { %2102 = vmatpush2.msra.mxu0 %v7494_v52  ;;  %2171 = vmatpush2.msra.mxu1 %v6717_v54  ;;  %v2057_v54 = vld [vmem:[%s8696_s1 + $0xd] sm:$0x1] }
 0x679   :  { %2103 = vmatprep.subr.mxu0 %v7498_v43  ;;  %2172 = vmatprep.subr.mxu1 %v6721_v0  ;;  %v10426_v0 = vld [vmem:[#allocation21_spill] sm:$0xff] }
 0x67a   :  { %2104 = vmatpush2.msra.mxu0 %v7502_v42  ;;  %2173 = vmatpush2.msra.mxu1 %v6725_v61  ;;  %v10427_v61 = vld [vmem:[#allocation15_spill] sm:$0xff] }
 0x67b   :  { %2105 = vmatprep.subr.mxu0 %v7506_v49  ;;  %2174 = vmatprep.subr.mxu1 %v6729_v59  ;;  %v10428_v59 = vld [vmem:[#allocation23_spill] sm:$0xff] }
 0x67c   :  { %2106 = vmatpush2.msra.mxu0 %v7510_v60  ;;  %2175 = vmatpush2.msra.mxu1 %v6733_v2  ;;  %v10429_v2 = vld [vmem:[#allocation16_spill] sm:$0xff] }
 0x67d   :  { %2107 = vmatprep.subr.mxu0 %v6736_v13  ;;  %2176 = vmatprep.subr.mxu1 %v6739_v9  ;;  %v10430_v13 = vld [vmem:[#allocation24_spill] sm:$0xff]  ;;  %v2060_v9 = vrot.slane %v2057_v54, 7  ;;  %v10449_v54 = vld [vmem:[#allocation39_spill] sm:$0xff] }
 0x67e   :  { %2108 = vmatpush2.msra.mxu0 %v6742_v4  ;;  %2177 = vmatpush2.msra.mxu1 %v6745_v57  ;;  %v10431_v4 = vld [vmem:[#allocation25_spill] sm:$0xff]  ;;  %v10432_v57 = vld [vmem:[#allocation26_spill] sm:$0xff] }
 0x67f   :  { %2109 = vmatprep.subr.mxu0 %v6748_v14  ;;  %2178 = vmatprep.subr.mxu1 %v6751_v6  ;;  %v2056_v14 = vld [vmem:[%s8696_s1 + $0x5] sm:$0x1]  ;;  %v10433_v6 = vld [vmem:[#allocation17_spill] sm:$0xff] }
 0x680   :  { %2110 = vmatpush2.msra.mxu0 %v6754_v8  ;;  %2179 = vmatpush2.msra.mxu1 %v6757_v10  ;;  %v10434_v8 = vld [vmem:[#allocation18_spill] sm:$0xff]  ;;  %v10435_v10 = vld [vmem:[#allocation27_spill] sm:$0xff] }
 0x681   :  { %2111 = vmatprep.subr.mxu0 %v6760_v27  ;;  %2180 = vmatprep.subr.mxu1 %v6763_v45  ;;  %v10436_v27 = vld [vmem:[#allocation20_spill] sm:$0xff] }
 0x682   :  { %2112 = vmatpush2.msra.mxu0 %v6766_v12  ;;  %2181 = vmatpush2.msra.mxu1 %v6769_v17  ;;  %v10437_v45 = vld [vmem:[#allocation28_spill] sm:$0xff]  ;;  %v10438_v12 = vld [vmem:[#allocation22_spill] sm:$0xff]  ;;  %v2061_v17 = vsel %vm64_vm0, %v2060_v9, %v2056_v14  ;;  %v10455_v9 = vld [vmem:[#allocation45_spill] sm:$0xff] }
 0x683   :  { %2113 = vmatprep.subr.mxu0 %v6772_v18  ;;  %2182 = vmatprep.subr.mxu1 %v6775_v19  ;;  %v10439_v18 = vld [vmem:[#allocation29_spill] sm:$0xff]  ;;  %v10440_v19 = vld [vmem:[#allocation30_spill] sm:$0xff]  ;;  %v10458_v14 = vld [vmem:[#allocation48_spill] sm:$0xff] }
 0x684   :  { %2114 = vmatpush2.msra.mxu0 %v6778_v21  ;;  %2183 = vmatpush2.msra.mxu1 %v6781_v20  ;;  %v10441_v21 = vld [vmem:[#allocation31_spill] sm:$0xff]  ;;  %v10442_v20 = vld [vmem:[#allocation32_spill] sm:$0xff] }
 0x685   :  { %2115 = vmatprep.subr.mxu0 %v6784_v22  ;;  %2184 = vmatprep.subr.mxu1 %v6787_v24  ;;  %v10443_v22 = vld [vmem:[#allocation33_spill] sm:$0xff]  ;;  %v10444_v24 = vld [vmem:[#allocation34_spill] sm:$0xff] }
 0x686   :  { %2116 = vmatpush2.msra.mxu0 %v6790_v26  ;;  %2185 = vmatpush2.msra.mxu1 %v6793_v28  ;;  %v10445_v26 = vld [vmem:[#allocation35_spill] sm:$0xff]  ;;  %v10446_v28 = vld [vmem:[#allocation36_spill] sm:$0xff] }
 0x687   :  { %2117 = vmatprep.subr.mxu0 %v6796_v31  ;;  %2186 = vmatprep.subr.mxu1 %v6802_v36  ;;  %v10447_v31 = vld [vmem:[#allocation37_spill] sm:$0xff]  ;;  %v10448_v36 = vld [vmem:[#allocation38_spill] sm:$0xff] }
 0x688   :  { %2118 = vmatpush2.msra.mxu0 %v10426_v0  ;;  %2187 = vmatpush2.msra.mxu1 %v10427_v61  ;;  %v10450_v0 = vld [vmem:[#allocation40_spill] sm:$0xff]  ;;  %v10451_v61 = vld [vmem:[#allocation41_spill] sm:$0xff] }
 0x689   :  { %2119 = vmatprep.subr.mxu0 %v10428_v59  ;;  %2188 = vmatprep.subr.mxu1 %v10429_v2  ;;  %v10452_v59 = vld [vmem:[#allocation42_spill] sm:$0xff]  ;;  %v10453_v2 = vld [vmem:[#allocation43_spill] sm:$0xff] }
 0x68a   :  { %2120 = vmatpush2.msra.mxu0 %v10430_v13  ;;  %2189 = vmatpush2.msra.mxu1 %v10431_v4  ;;  %v10454_v13 = vld [vmem:[#allocation44_spill] sm:$0xff]  ;;  %v10456_v4 = vld [vmem:[#allocation46_spill] sm:$0xff] }
 0x68b   :  { %2121 = vmatprep.subr.mxu0 %v10432_v57  ;;  %2190 = vmatprep.subr.mxu1 %v10433_v6  ;;  %v10457_v57 = vld [vmem:[#allocation47_spill] sm:$0xff]  ;;  %v10459_v6 = vld [vmem:[#allocation49_spill] sm:$0xff] }
 0x68c   :  { %2122 = vmatpush2.msra.mxu0 %v10434_v8  ;;  %2191 = vmatpush2.msra.mxu1 %v10435_v10  ;;  %v10460_v8 = vld [vmem:[#allocation50_spill] sm:$0xff]  ;;  %v10461_v10 = vld [vmem:[#allocation51_spill] sm:$0xff] }
 0x68d   :  { %2123 = vmatprep.subr.mxu0 %v10436_v27  ;;  %2192 = vmatprep.subr.mxu1 %v10437_v45  ;;  %v10462_v27 = vld [vmem:[#allocation52_spill] sm:$0xff]  ;;  %v10463_v45 = vld [vmem:[#allocation53_spill] sm:$0xff] }
 0x68e   :  { %2124 = vmatpush2.msra.mxu0 %v10438_v12  ;;  %2193 = vmatpush2.msra.mxu1 %v10439_v18  ;;  %v10464_v12 = vld [vmem:[#allocation54_spill] sm:$0xff]  ;;  %v10466_v18 = vld [vmem:[#allocation56_spill] sm:$0xff] }
 0x68f   :  { %2125 = vmatprep.subr.mxu0 %v10440_v19  ;;  %2194 = vmatprep.subr.mxu1 %v10441_v21  ;;  %v10467_v19 = vld [vmem:[#allocation57_spill] sm:$0xff]  ;;  %v10468_v21 = vld [vmem:[#allocation58_spill] sm:$0xff] }
 0x690   :  { %2126 = vmatpush2.msra.mxu0 %v10442_v20  ;;  %2195 = vmatpush2.msra.mxu1 %v10443_v22  ;;  %v10469_v20 = vld [vmem:[#allocation59_spill] sm:$0xff]  ;;  %v10470_v22 = vld [vmem:[#allocation60_spill] sm:$0xff] }
 0x691   :  { %2128 = vmatmul.mubr.f32.vlgmr.msra.gmra.mxu0 %v2061_v17  ;;  %2196 = vmatprep.subr.mxu1 %v10444_v24  ;;  %v10471_v24 = vld [vmem:[#allocation61_spill] sm:$0xff] }
 0x692   :  { %2197 = vmatpush2.msra.mxu1 %v10445_v26  ;;  %2227 = vmatprep.subr.mxu0 %v10446_v28  ;;  %v10472_v26 = vld [vmem:[#allocation62_spill] sm:$0xff]  ;;  %v10473_v28 = vld [vmem:[#allocation63_spill] sm:$0xff] }
 0x693   :  { %2199 = vmatmul.mubr.f32.vlgmr.msra.gmra.mxu1 %v2061_v17  ;;  %2228 = vmatpush1.msra.mxu0 %v10447_v31  ;;  %v10465_v17 = vld [vmem:[#allocation55_spill] sm:$0xff]  ;;  %v10474_v31 = vld [vmem:[#allocation64_spill] sm:$0xff] }
 0x694   :  { %2298 = vmatprep.subr.mxu1 %v10448_v36  ;;  %2229 = vmatprep.subr.mxu0 %v10449_v54  ;;  %v10475_v36 = vld [vmem:[#allocation65_spill] sm:$0xff]  ;;  %v10476_v54 = vld [vmem:[#allocation66_spill] sm:$0xff] }
 0x695   :  { %2299 = vmatpush1.msra.mxu1 %v10450_v0  ;;  %2230 = vmatpush1.msra.mxu0 %v10451_v61  ;;  %v10477_v0 = vld [vmem:[#allocation67_spill] sm:$0xff]  ;;  %v10478_v61 = vld [vmem:[#allocation68_spill] sm:$0xff] }
 0x696   :  { %2300 = vmatprep.subr.mxu1 %v10452_v59  ;;  %2231 = vmatprep.subr.mxu0 %v10453_v2  ;;  %v10479_v59 = vld [vmem:[#allocation69_spill] sm:$0xff]  ;;  %v10480_v2 = vld [vmem:[#allocation70_spill] sm:$0xff] }
 0x697   :  { %2301 = vmatpush1.msra.mxu1 %v10454_v13  ;;  %2232 = vmatpush1.msra.mxu0 %v10455_v9  ;;  %v10481_v13 = vld [vmem:[#allocation71_spill] sm:$0xff]  ;;  %v10482_v9 = vld [vmem:[#allocation72_spill] sm:$0xff] }
 0x698   :  { %2302 = vmatprep.subr.mxu1 %v10456_v4  ;;  %2233 = vmatprep.subr.mxu0 %v10457_v57  ;;  %v10483_v4 = vld [vmem:[#allocation73_spill] sm:$0xff]  ;;  %v10484_v57 = vld [vmem:[#allocation74_spill] sm:$0xff] }
 0x699   :  { %2303 = vmatpush1.msra.mxu1 %v10458_v14  ;;  %2234 = vmatpush1.msra.mxu0 %v10459_v6  ;;  %v10485_v14 = vld [vmem:[#allocation75_spill] sm:$0xff]  ;;  %v10486_v6 = vld [vmem:[#allocation76_spill] sm:$0xff] }
 0x69a   :  { %2304 = vmatprep.subr.mxu1 %v10460_v8  ;;  %2235 = vmatprep.subr.mxu0 %v10461_v10  ;;  %v10487_v8 = vld [vmem:[#allocation77_spill] sm:$0xff]  ;;  %v10488_v10 = vld [vmem:[#allocation78_spill] sm:$0xff] }
 0x69b   :  { %2305 = vmatpush1.msra.mxu1 %v10462_v27  ;;  %2236 = vmatpush1.msra.mxu0 %v10463_v45  ;;  %v10489_v27 = vld [vmem:[#allocation79_spill] sm:$0xff]  ;;  %v10490_v45 = vld [vmem:[#allocation80_spill] sm:$0xff] }
 0x69c   :  { %2306 = vmatprep.subr.mxu1 %v10464_v12  ;;  %2237 = vmatprep.subr.mxu0 %v10465_v17  ;;  %v10491_v12 = vld [vmem:[#allocation81_spill] sm:$0xff]  ;;  %v10492_v17 = vld [vmem:[#allocation82_spill] sm:$0xff] }
 0x69d   :  { %2307 = vmatpush1.msra.mxu1 %v10466_v18  ;;  %2238 = vmatpush1.msra.mxu0 %v10467_v19  ;;  %v10493_v18 = vld [vmem:[#allocation83_spill] sm:$0xff]  ;;  %v10494_v19 = vld [vmem:[#allocation84_spill] sm:$0xff] }
 0x69e   :  { %2308 = vmatprep.subr.mxu1 %v10468_v21  ;;  %2239 = vmatprep.subr.mxu0 %v10469_v20  ;;  %v10495_v21 = vld [vmem:[#allocation85_spill] sm:$0xff]  ;;  %v10496_v20 = vld [vmem:[#allocation86_spill] sm:$0xff] }
 0x69f   :  { %2309 = vmatpush1.msra.mxu1 %v10470_v22  ;;  %2240 = vmatpush1.msra.mxu0 %v10471_v24  ;;  %v10497_v22 = vld [vmem:[#allocation87_spill] sm:$0xff]  ;;  %v10498_v24 = vld [vmem:[#allocation88_spill] sm:$0xff] }
 0x6a0   :  { %2310 = vmatprep.subr.mxu1 %v10472_v26  ;;  %2241 = vmatprep.subr.mxu0 %v10473_v28  ;;  %v10499_v26 = vld [vmem:[#allocation89_spill] sm:$0xff]  ;;  %v10500_v28 = vld [vmem:[#allocation90_spill] sm:$0xff] }
 0x6a1   :  { %2311 = vmatpush1.msra.mxu1 %v10474_v31  ;;  %2242 = vmatpush1.msra.mxu0 %v10475_v36  ;;  %v10501_v31 = vld [vmem:[#allocation91_spill] sm:$0xff]  ;;  %v10502_v36 = vld [vmem:[#allocation92_spill] sm:$0xff] }
 0x6a2   :  { %2312 = vmatprep.subr.mxu1 %v10476_v54  ;;  %2243 = vmatprep.subr.mxu0 %v10477_v0  ;;  %v10503_v54 = vld [vmem:[#allocation93_spill] sm:$0xff]  ;;  %v10504_v0 = vld [vmem:[#allocation94_spill] sm:$0xff] }
 0x6a3   :  { %2313 = vmatpush1.msra.mxu1 %v10478_v61  ;;  %2244 = vmatpush1.msra.mxu0 %v10479_v59  ;;  %v10505_v61 = vld [vmem:[#allocation95_spill] sm:$0xff]  ;;  %v10506_v59 = vld [vmem:[#allocation96_spill] sm:$0xff] }
 0x6a4   :  { %2314 = vmatprep.subr.mxu1 %v10480_v2  ;;  %2245 = vmatprep.subr.mxu0 %v10481_v13  ;;  %v10507_v2 = vld [vmem:[#allocation97_spill] sm:$0xff]  ;;  %v10508_v13 = vld [vmem:[#allocation98_spill] sm:$0xff] }
 0x6a5   :  { %2315 = vmatpush1.msra.mxu1 %v10482_v9  ;;  %2246 = vmatpush1.msra.mxu0 %v10483_v4  ;;  %v10509_v9 = vld [vmem:[#allocation99_spill] sm:$0xff]  ;;  %v10510_v4 = vld [vmem:[#allocation100_spill] sm:$0xff] }
 0x6a6   :  { %2316 = vmatprep.subr.mxu1 %v10484_v57  ;;  %2247 = vmatprep.subr.mxu0 %v10485_v14  ;;  %v10511_v57 = vld [vmem:[#allocation101_spill] sm:$0xff]  ;;  %v10512_v14 = vld [vmem:[#allocation102_spill] sm:$0xff] }
 0x6a7   :  { %2317 = vmatpush1.msra.mxu1 %v10486_v6  ;;  %2248 = vmatpush1.msra.mxu0 %v10487_v8  ;;  %v10513_v6 = vld [vmem:[#allocation103_spill] sm:$0xff]  ;;  %v10514_v8 = vld [vmem:[#allocation104_spill] sm:$0xff] }
 0x6a8   :  { %2318 = vmatprep.subr.mxu1 %v10488_v10  ;;  %2249 = vmatprep.subr.mxu0 %v10489_v27  ;;  %v10515_v10 = vld [vmem:[#allocation105_spill] sm:$0xff]  ;;  %v10516_v27 = vld [vmem:[#allocation106_spill] sm:$0xff] }
 0x6a9   :  { %2319 = vmatpush1.msra.mxu1 %v10490_v45  ;;  %2250 = vmatpush1.msra.mxu0 %v10491_v12  ;;  %v10517_v45 = vld [vmem:[#allocation107_spill] sm:$0xff]  ;;  %v10518_v12 = vld [vmem:[#allocation108_spill] sm:$0xff] }
 0x6aa   :  { %2320 = vmatprep.subr.mxu1 %v10492_v17  ;;  %2251 = vmatprep.subr.mxu0 %v10493_v18  ;;  %v10519_v17 = vld [vmem:[#allocation109_spill] sm:$0xff]  ;;  %v10520_v18 = vld [vmem:[#allocation110_spill] sm:$0xff] }
 0x6ab   :  { %2321 = vmatpush1.msra.mxu1 %v10494_v19  ;;  %2252 = vmatpush1.msra.mxu0 %v10495_v21  ;;  %v10521_v19 = vld [vmem:[#allocation111_spill] sm:$0xff]  ;;  %v10522_v21 = vld [vmem:[#allocation112_spill] sm:$0xff] }
 0x6ac   :  { %2322 = vmatprep.subr.mxu1 %v10496_v20  ;;  %2253 = vmatprep.subr.mxu0 %v10497_v22  ;;  %v10523_v20 = vld [vmem:[#allocation113_spill] sm:$0xff]  ;;  %v10524_v22 = vld [vmem:[#allocation114_spill] sm:$0xff] }
 0x6ad   :  { %2323 = vmatpush1.msra.mxu1 %v10498_v24  ;;  %2254 = vmatpush1.msra.mxu0 %v10499_v26  ;;  %v10525_v24 = vld [vmem:[#allocation115_spill] sm:$0xff]  ;;  %v10526_v26 = vld [vmem:[#allocation116_spill] sm:$0xff] }
 0x6ae   :  { %2324 = vmatprep.subr.mxu1 %v10500_v28  ;;  %2255 = vmatprep.subr.mxu0 %v10501_v31  ;;  %v10527_v28 = vld [vmem:[#allocation117_spill] sm:$0xff]  ;;  %v10528_v31 = vld [vmem:[#allocation118_spill] sm:$0xff] }
 0x6af   :  { %2325 = vmatpush1.msra.mxu1 %v10502_v36  ;;  %2256 = vmatpush1.msra.mxu0 %v10503_v54  ;;  %v10529_v36 = vld [vmem:[#allocation119_spill] sm:$0xff]  ;;  %v10530_v54 = vld [vmem:[#allocation120_spill] sm:$0xff] }
 0x6b0   :  { %2326 = vmatprep.subr.mxu1 %v10504_v0  ;;  %2257 = vmatprep.subr.mxu0 %v10505_v61  ;;  %v10531_v0 = vld [vmem:[#allocation121_spill] sm:$0xff]  ;;  %v10532_v61 = vld [vmem:[#allocation122_spill] sm:$0xff] }
 0x6b1   :  { %2327 = vmatpush1.msra.mxu1 %v10506_v59  ;;  %2258 = vmatpush1.msra.mxu0 %v10507_v2  ;;  %v10533_v59 = vld [vmem:[#allocation123_spill] sm:$0xff]  ;;  %v10534_v2 = vld [vmem:[#allocation124_spill] sm:$0xff] }
 0x6b2   :  { %2328 = vmatprep.subr.mxu1 %v10508_v13  ;;  %2259 = vmatprep.subr.mxu0 %v10509_v9  ;;  %v10535_v13 = vld [vmem:[#allocation125_spill] sm:$0xff]  ;;  %v10536_v9 = vld [vmem:[#allocation126_spill] sm:$0xff] }
 0x6b3   :  { %2329 = vmatpush1.msra.mxu1 %v10510_v4  ;;  %2260 = vmatpush2.msra.mxu0 %v10511_v57  ;;  %v10537_v4 = vld [vmem:[#allocation127_spill] sm:$0xff]  ;;  %v10538_v57 = vld [vmem:[#allocation128_spill] sm:$0xff] }
 0x6b4   :  { %2330 = vmatprep.subr.mxu1 %v10512_v14  ;;  %2261 = vmatprep.subr.mxu0 %v10513_v6  ;;  %v10539_v14 = vld [vmem:[#allocation129_spill] sm:$0xff]  ;;  %v10540_v6 = vld [vmem:[#allocation130_spill] sm:$0xff] }
 0x6b5   :  { %2331 = vmatpush2.msra.mxu1 %v10514_v8  ;;  %2262 = vmatpush2.msra.mxu0 %v10515_v10  ;;  %v10541_v8 = vld [vmem:[#allocation131_spill] sm:$0xff]  ;;  %v10542_v10 = vld [vmem:[#allocation132_spill] sm:$0xff] }
 0x6b6   :  { %2332 = vmatprep.subr.mxu1 %v10516_v27  ;;  %2263 = vmatprep.subr.mxu0 %v10517_v45  ;;  %v10543_v27 = vld [vmem:[#allocation133_spill] sm:$0xff]  ;;  %v10544_v45 = vld [vmem:[#allocation134_spill] sm:$0xff] }
 0x6b7   :  { %2333 = vmatpush2.msra.mxu1 %v10518_v12  ;;  %2264 = vmatpush2.msra.mxu0 %v10519_v17  ;;  %v10545_v12 = vld [vmem:[#allocation135_spill] sm:$0xff]  ;;  %v10546_v17 = vld [vmem:[#allocation136_spill] sm:$0xff] }
 0x6b8   :  { %2334 = vmatprep.subr.mxu1 %v10520_v18  ;;  %2265 = vmatprep.subr.mxu0 %v10521_v19  ;;  %v10547_v18 = vld [vmem:[#allocation137_spill] sm:$0xff]  ;;  %v10548_v19 = vld [vmem:[#allocation138_spill] sm:$0xff] }
 0x6b9   :  { %2335 = vmatpush2.msra.mxu1 %v10522_v21  ;;  %2266 = vmatpush2.msra.mxu0 %v10523_v20  ;;  %v10549_v21 = vld [vmem:[#allocation139_spill] sm:$0xff]  ;;  %v10550_v20 = vld [vmem:[#allocation140_spill] sm:$0xff] }
 0x6ba   :  { %2336 = vmatprep.subr.mxu1 %v10524_v22  ;;  %2267 = vmatprep.subr.mxu0 %v10525_v24  ;;  %v10551_v22 = vld [vmem:[#allocation141_spill] sm:$0xff]  ;;  %v10552_v24 = vld [vmem:[#allocation142_spill] sm:$0xff] }
 0x6bb   :  { %2337 = vmatpush2.msra.mxu1 %v10526_v26  ;;  %2268 = vmatpush2.msra.mxu0 %v10527_v28  ;;  %v10553_v26 = vld [vmem:[#allocation143_spill] sm:$0xff]  ;;  %v10554_v28 = vld [vmem:[#allocation144_spill] sm:$0xff] }
 0x6bc   :  { %2338 = vmatprep.subr.mxu1 %v10528_v31  ;;  %2269 = vmatprep.subr.mxu0 %v10529_v36  ;;  %v10555_v31 = vld [vmem:[#allocation145_spill] sm:$0xff]  ;;  %v10556_v36 = vld [vmem:[#allocation146_spill] sm:$0xff] }
 0x6bd   :  { %2339 = vmatpush2.msra.mxu1 %v10530_v54  ;;  %2270 = vmatpush2.msra.mxu0 %v10531_v0  ;;  %v10557_v54 = vld [vmem:[#allocation147_spill] sm:$0xff]  ;;  %v10558_v0 = vld [vmem:[#allocation148_spill] sm:$0xff] }
 0x6be   :  { %2340 = vmatprep.subr.mxu1 %v10532_v61  ;;  %2271 = vmatprep.subr.mxu0 %v10533_v59  ;;  %v10559_v61 = vld [vmem:[#allocation149_spill] sm:$0xff]  ;;  %v10560_v59 = vld [vmem:[#allocation151_spill] sm:$0xff] }
 0x6bf   :  { %2341 = vmatpush2.msra.mxu1 %v10534_v2  ;;  %2272 = vmatpush2.msra.mxu0 %v10535_v13  ;;  %v10561_v2 = vld [vmem:[#allocation150_spill] sm:$0xff]  ;;  %v10562_v13 = vld [vmem:[#allocation152_spill] sm:$0xff] }
 0x6c0   :  { %2342 = vmatprep.subr.mxu1 %v10536_v9  ;;  %2273 = vmatprep.subr.mxu0 %v10537_v4  ;;  %v10563_v9 = vld [vmem:[#allocation153_spill] sm:$0xff]  ;;  %v10564_v4 = vld [vmem:[#allocation154_spill] sm:$0xff] }
 0x6c1   :  { %2343 = vmatpush2.msra.mxu1 %v10538_v57  ;;  %2274 = vmatpush2.msra.mxu0 %v10539_v14  ;;  %v10565_v57 = vld [vmem:[#allocation155_spill] sm:$0xff]  ;;  %v10566_v14 = vld [vmem:[#allocation156_spill] sm:$0xff] }
 0x6c2   :  { %2344 = vmatprep.subr.mxu1 %v10540_v6  ;;  %2275 = vmatprep.subr.mxu0 %v10541_v8  ;;  %v10567_v6 = vld [vmem:[#allocation157_spill] sm:$0xff]  ;;  %v10568_v8 = vld [vmem:[#allocation158_spill] sm:$0xff] }
 0x6c3   :  { %2345 = vmatpush2.msra.mxu1 %v10542_v10  ;;  %2276 = vmatpush2.msra.mxu0 %v10543_v27  ;;  %v10569_v10 = vld [vmem:[#allocation159_spill] sm:$0xff]  ;;  %v10570_v27 = vld [vmem:[#allocation160_spill] sm:$0xff] }
 0x6c4   :  { %2346 = vmatprep.subr.mxu1 %v10544_v45  ;;  %2277 = vmatprep.subr.mxu0 %v10545_v12  ;;  %v10571_v45 = vld [vmem:[#allocation161_spill] sm:$0xff]  ;;  %v10572_v12 = vld [vmem:[#allocation162_spill] sm:$0xff] }
 0x6c5   :  { %2347 = vmatpush2.msra.mxu1 %v10546_v17  ;;  %2278 = vmatpush2.msra.mxu0 %v10547_v18  ;;  %v10573_v17 = vld [vmem:[#allocation163_spill] sm:$0xff]  ;;  %v10574_v18 = vld [vmem:[#allocation164_spill] sm:$0xff] }
 0x6c6   :  { %2348 = vmatprep.subr.mxu1 %v10548_v19  ;;  %2279 = vmatprep.subr.mxu0 %v10549_v21  ;;  %v7692_v19 = vld [vmem:[#allocation4 + $0x1f8] sm:$0xff] }
 0x6c7   :  { %2349 = vmatpush2.msra.mxu1 %v10550_v20  ;;  %2280 = vmatpush2.msra.mxu0 %v10551_v22 }
 0x6c8   :  { %2350 = vmatprep.subr.mxu1 %v10552_v24  ;;  %2281 = vmatprep.subr.mxu0 %v10553_v26  ;;  %v10575_v26 = vld [vmem:[#allocation19_spill] sm:$0xff] }
 0x6c9   :  { %2351 = vmatpush2.msra.mxu1 %v10554_v28  ;;  %2282 = vmatpush2.msra.mxu0 %v10555_v31 }
 0x6ca   :  { %2352 = vmatprep.subr.mxu1 %v10556_v36  ;;  %2283 = vmatprep.subr.mxu0 %v10557_v54 }
 0x6cb   :  { %2353 = vmatpush2.msra.mxu1 %v10558_v0  ;;  %2284 = vmatpush2.msra.mxu0 %v10559_v61 }
 0x6cc   :  { %2354 = vmatprep.subr.mxu1 %v10560_v59  ;;  %2285 = vmatprep.subr.mxu0 %v10561_v2 }
 0x6cd   :  { %2355 = vmatpush2.msra.mxu1 %v10562_v13  ;;  %2286 = vmatpush2.msra.mxu0 %v10563_v9  ;;  %v10576_v13 = vld [vmem:[#allocation14_spill] sm:$0xff] }
 0x6ce   :  { %2356 = vmatprep.subr.mxu1 %v10564_v4  ;;  %2287 = vmatprep.subr.mxu0 %v10565_v57 }
 0x6cf   :  { %2357 = vmatpush2.msra.mxu1 %v10566_v14  ;;  %2288 = vmatpush2.msra.mxu0 %v10567_v6 }
 0x6d0   :  { %2358 = vmatprep.subr.mxu1 %v10568_v8  ;;  %2289 = vmatprep.subr.mxu0 %v10569_v10 }
 0x6d1   :  { %2359 = vmatpush2.msra.mxu1 %v10570_v27  ;;  %2290 = vmatpush2.msra.mxu0 %v10571_v45 }
 0x6d2   :  { %2360 = vmatprep.subr.mxu1 %v10572_v12  ;;  %2402 = vmatprep.subr.mxu0 %v10573_v17 }
 0x6d3   :  { %2361 = vmatpush2.msra.mxu1 %v10574_v18 }
 0x6d4   :  { %2473 = vmatprep.subr.mxu1 %v7692_v19 }
 0x711   :  { %v1954_v21 = vpop.f32.mrf.mxu0  ;;  %v2025_v0 = vpop.f32.mrf.mxu1 }
 0x712   :  { %v1955_v20 = vadd.f32 %v1954_v21, %v5476_v53  ;;  %v2026_v57 = vadd.f32 %v2025_v0, %v5490_v30  ;;  %v10577_v21 = vsub.f32 1.0, %v7276_v38 }
 0x713   :  { %v1956_v24 = vpop.f32.mrf.mxu0  ;;  %v2027_v59 = vpop.f32.mrf.mxu1 }
 0x714   :  { %v3233_v22 = vmul.f32 -1.442695, %v1955_v20  ;;  %v1957_v28 = vadd.f32 %v1956_v24, %v10575_v26  ;;  %v2028_v9 = vadd.f32 %v2027_v59, %v10576_v13  ;;  %v2050_v20 = vmul.f32 %v10577_v21, %v7266_v15 }
 0x716   :  { %3401 = vpow2.f32 %v3233_v22  ;;  %v3234_v31 = vmul.f32 -1.442695, %v1957_v28 }
 0x718   :  { %3403 = vpow2.f32 %v3234_v31 }
 0x723   :  { %v3402_v36 = vpop.eup %3401 }
 0x724   :  { %v2033_v54 = vadd.f32 1.0, %v3402_v36 }
 0x725   :  { %v3404_v61 = vpop.eup %3403 }
 0x726   :  { %3405 = vrcp.f32 %v2033_v54  ;;  %v2039_v2 = vadd.f32 1.0, %v3404_v61 }
 0x728   :  { %3407 = vrcp.f32 %v2039_v2 }
 0x733   :  { %v3406_v4 = vpop.eup %3405 }
 0x734   :  { %v2042_v14 = vmul.f32 %v3406_v4, %v2028_v9 }
 0x735   :  { %v3408_v8 = vpop.eup %3407 }
 0x736   :  { %v2043_v6 = vadd.f32 %v2042_v14, %v2026_v57  ;;  %v2045_v10 = vsub.f32 1.0, %v3408_v8  ;;  %v2047_v12 = vmul.f32 %v3408_v8, %v7266_v15 }
 0x738   :  { %3409 = vtanh.f32 %v2043_v6 }
 0x745   :  { %v3410_v27 = vpop.eup %3409 }
 0x746   :  { %v2046_v45 = vmul.f32 %v3410_v27, %v2045_v10  ;;  %v7714_v27 = vsel %vm2052_vm8, 1.0, %v9592_v55 }
 0x747   :  { %v9300_v21 = vsub.f32 1.0, %v7714_v27 }
 0x748   :  { %v2048_v17 = vadd.f32 %v2047_v12, %v2046_v45 }
 0x74a   :  { %v2049_v18 = vmul.f32 %v7276_v38, %v2048_v17 }
 0x74c   :  { %v7704_v22 = vadd.f32 %v2050_v20, %v2049_v18 }
 0x74e   :  { %2291 = vmatprep.mubr.f32.mxu0 %v7704_v22  ;;  %2362 = vmatprep.mubr.f32.mxu1 %v7704_v22 }
 0x751   :  { %v2129_v24 = vpop.f32.mrf.mxu0 }
 0x752   :  { %v2130_v28 = vadd.f32 %v2129_v24, %v9788_v46 }
 0x753   :  { %v2131_v36 = vpop.f32.mrf.mxu0  ;;  %v2200_v15 = vpop.f32.mrf.mxu1 }
 0x754   :  { %v3236_v31 = vmul.f32 -1.442695, %v2130_v28  ;;  %v2132_v54 = vadd.f32 %v2131_v36, %v9789_v51  ;;  %v2201_v14 = vadd.f32 %v2200_v15, %v9790_v23  ;;  %v2225_v28 = vmul.f32 %v9300_v21, %v7284_v40  ;;  %v10590_v36 = vld [vmem:[#allocation177_spill] sm:$0xff]  ;;  %v10595_v15 = vld [vmem:[#allocation182_spill] sm:$0xff] }
 0x755   :  { %v2202_v2 = vpop.f32.mrf.mxu1  ;;  %v7945_v21 = vld [vmem:[#allocation4 + $0x258] sm:$0xff] }
 0x756   :  { %3411 = vpow2.f32 %v3236_v31  ;;  %v3237_v0 = vmul.f32 -1.442695, %v2132_v54  ;;  %v2203_v4 = vadd.f32 %v2202_v2, %v5039_v1  ;;  %v10591_v54 = vld [vmem:[#allocation178_spill] sm:$0xff]  ;;  %v10597_v2 = vld [vmem:[#allocation184_spill] sm:$0xff]  ;;  %10633 = vst [vmem:[#allocation28_spill] sm:$0xff] %v7945_v21 }
 0x758   :  { %3413 = vpow2.f32 %v3237_v0  ;;  %v10592_v0 = vld [vmem:[#allocation179_spill] sm:$0xff] }
 0x763   :  { %v3412_v61 = vpop.eup %3411 }
 0x764   :  { %v2208_v59 = vadd.f32 1.0, %v3412_v61  ;;  %v10593_v61 = vld [vmem:[#allocation180_spill] sm:$0xff] }
 0x765   :  { %v3414_v38 = vpop.eup %3413 }
 0x766   :  { %3415 = vrcp.f32 %v2208_v59  ;;  %v2214_v9 = vadd.f32 1.0, %v3414_v38  ;;  %v10594_v59 = vld [vmem:[#allocation181_spill] sm:$0xff]  ;;  %v10596_v38 = vld [vmem:[#allocation183_spill] sm:$0xff] }
 0x768   :  { %3417 = vrcp.f32 %v2214_v9  ;;  %v10598_v9 = vld [vmem:[#allocation185_spill] sm:$0xff] }
 0x773   :  { %v3416_v57 = vpop.eup %3415 }
 0x774   :  { %v2217_v6 = vmul.f32 %v3416_v57, %v2203_v4  ;;  %v10599_v4 = vld [vmem:[#allocation186_spill] sm:$0xff]  ;;  %v10600_v57 = vld [vmem:[#allocation187_spill] sm:$0xff] }
 0x775   :  { %v3418_v10 = vpop.eup %3417 }
 0x776   :  { %v2218_v8 = vadd.f32 %v2217_v6, %v2201_v14  ;;  %v2220_v45 = vsub.f32 1.0, %v3418_v10  ;;  %v2222_v17 = vmul.f32 %v3418_v10, %v7284_v40  ;;  %v10578_v40 = vld [vmem:[#allocation165_spill] sm:$0xff]  ;;  %v10601_v14 = vld [vmem:[#allocation188_spill] sm:$0xff]  ;;  %v10604_v10 = vld [vmem:[#allocation191_spill] sm:$0xff] }
 0x777   :  { %v10602_v6 = vld [vmem:[#allocation189_spill] sm:$0xff] }
 0x778   :  { %3419 = vtanh.f32 %v2218_v8  ;;  %v10603_v8 = vld [vmem:[#allocation190_spill] sm:$0xff] }
 0x785   :  { %v3420_v12 = vpop.eup %3419 }
 0x786   :  { %v2221_v18 = vmul.f32 %v3420_v12, %v2220_v45  ;;  %v10605_v45 = vld [vmem:[#allocation192_spill] sm:$0xff]  ;;  %v10606_v12 = vld [vmem:[#allocation193_spill] sm:$0xff] }
 0x788   :  { %v2223_v20 = vadd.f32 %v2222_v17, %v2221_v18  ;;  %v10607_v17 = vld [vmem:[#allocation194_spill] sm:$0xff]  ;;  %v10608_v18 = vld [vmem:[#allocation195_spill] sm:$0xff] }
 0x78a   :  { %v2224_v24 = vmul.f32 %v7714_v27, %v2223_v20  ;;  %v10609_v20 = vld [vmem:[#allocation196_spill] sm:$0xff] }
 0x78c   :  { %v7722_v31 = vadd.f32 %v2225_v28, %v2224_v24  ;;  %v10610_v24 = vld [vmem:[#allocation197_spill] sm:$0xff]  ;;  %v10611_v28 = vld [vmem:[#allocation198_spill] sm:$0xff] }
 0x78e   :  { %2292 = vmatmul.mubr.f32.vlgmr.msra.gmra.mxu0 %v7722_v31  ;;  %2363 = vmatmul.mubr.f32.vlgmr.msra.gmra.mxu1 %v7722_v31 }
 0x78f   :  { %2403 = vmatpush1.msra.mxu0 %v7288_v25  ;;  %2466 = vmatprep.mubr.f32.mxu0 %v7722_v31  ;;  %v10579_v25 = vld [vmem:[#allocation166_spill] sm:$0xff] }
 0x790   :  { %2404 = vmatprep.subr.mxu0 %v7292_v39  ;;  %2537 = vmatprep.mubr.f32.mxu1 %v7722_v31  ;;  %v10580_v39 = vld [vmem:[#allocation167_spill] sm:$0xff] }
 0x791   :  { %2405 = vmatpush1.msra.mxu0 %v7296_v58  ;;  %2474 = vmatpush1.msra.mxu1 %v7299_v41  ;;  %v10581_v58 = vld [vmem:[#allocation168_spill] sm:$0xff]  ;;  %v10582_v41 = vld [vmem:[#allocation169_spill] sm:$0xff] }
 0x792   :  { %2406 = vmatprep.subr.mxu0 %v7302_v50  ;;  %2475 = vmatprep.subr.mxu1 %v7305_v16  ;;  %v10583_v50 = vld [vmem:[#allocation170_spill] sm:$0xff]  ;;  %v10584_v16 = vld [vmem:[#allocation171_spill] sm:$0xff] }
 0x793   :  { %2407 = vmatpush1.msra.mxu0 %v7308_v48  ;;  %2476 = vmatpush1.msra.mxu1 %v7311_v29  ;;  %v10585_v48 = vld [vmem:[#allocation172_spill] sm:$0xff]  ;;  %v10586_v29 = vld [vmem:[#allocation173_spill] sm:$0xff] }
 0x794   :  { %2408 = vmatprep.subr.mxu0 %v7314_v63  ;;  %2477 = vmatprep.subr.mxu1 %v7317_v11  ;;  %v10587_v63 = vld [vmem:[#allocation174_spill] sm:$0xff]  ;;  %v10588_v11 = vld [vmem:[#allocation175_spill] sm:$0xff] }
 0x795   :  { %2409 = vmatpush1.msra.mxu0 %v7320_v7  ;;  %2478 = vmatpush1.msra.mxu1 %v10578_v40  ;;  %v10589_v7 = vld [vmem:[#allocation176_spill] sm:$0xff]  ;;  %v10612_v40 = vld [vmem:[#allocation199_spill] sm:$0xff] }
 0x796   :  { %2410 = vmatprep.subr.mxu0 %v10579_v25  ;;  %2479 = vmatprep.subr.mxu1 %v10580_v39  ;;  %v10613_v25 = vld [vmem:[#allocation200_spill] sm:$0xff]  ;;  %v10614_v39 = vld [vmem:[#allocation201_spill] sm:$0xff] }
 0x797   :  { %2411 = vmatpush1.msra.mxu0 %v10581_v58  ;;  %2480 = vmatpush1.msra.mxu1 %v10582_v41  ;;  %v10615_v58 = vld [vmem:[#allocation202_spill] sm:$0xff]  ;;  %v10616_v41 = vld [vmem:[#allocation203_spill] sm:$0xff] }
 0x798   :  { %2412 = vmatprep.subr.mxu0 %v10583_v50  ;;  %2481 = vmatprep.subr.mxu1 %v10584_v16  ;;  %v10617_v50 = vld [vmem:[#allocation204_spill] sm:$0xff]  ;;  %v10618_v16 = vld [vmem:[#allocation205_spill] sm:$0xff] }
 0x799   :  { %2413 = vmatpush1.msra.mxu0 %v10585_v48  ;;  %2482 = vmatpush1.msra.mxu1 %v10586_v29  ;;  %v10619_v48 = vld [vmem:[#allocation206_spill] sm:$0xff]  ;;  %v10620_v29 = vld [vmem:[#allocation207_spill] sm:$0xff] }
 0x79a   :  { %2414 = vmatprep.subr.mxu0 %v10587_v63  ;;  %2483 = vmatprep.subr.mxu1 %v10588_v11  ;;  %v10621_v63 = vld [vmem:[#allocation208_spill] sm:$0xff] }
 0x79b   :  { %2415 = vmatpush1.msra.mxu0 %v10589_v7  ;;  %2484 = vmatpush1.msra.mxu1 %v10590_v36  ;;  %v7785_v11 = vld [vmem:[#allocation4 + $0x38] sm:$0xff]  ;;  %v7789_v7 = vld [vmem:[#allocation4 + $0x30] sm:$0xff] }
 0x79c   :  { %2416 = vmatprep.subr.mxu0 %v10591_v54  ;;  %2485 = vmatprep.subr.mxu1 %v10592_v0  ;;  %v7801_v36 = vld [vmem:[#allocation4 + $0x3f8] sm:$0xff]  ;;  %v7846_v54 = vld [vmem:[#allocation4 + $0x320] sm:$0xff] }
 0x79d   :  { %2417 = vmatpush1.msra.mxu0 %v10593_v61  ;;  %2486 = vmatpush1.msra.mxu1 %v10594_v59  ;;  %v7855_v0 = vld [vmem:[#allocation4 + $0x338] sm:$0xff]  ;;  %v7858_v61 = vld [vmem:[#allocation4 + $0x300] sm:$0xff]  ;;  %v7861_v59 = vld [vmem:[#allocation4 + $0x330] sm:$0xff] }
 0x79e   :  { %2418 = vmatprep.subr.mxu0 %v10595_v15  ;;  %2487 = vmatprep.subr.mxu1 %v10596_v38  ;;  %v7864_v15 = vld [vmem:[#allocation4 + $0x2e8] sm:$0xff]  ;;  %v7867_v38 = vld [vmem:[#allocation4 + $0x318] sm:$0xff] }
 0x79f   :  { %2419 = vmatpush1.msra.mxu0 %v10597_v2  ;;  %2488 = vmatpush1.msra.mxu1 %v10598_v9  ;;  %v7870_v2 = vld [vmem:[#allocation4 + $0x2e0] sm:$0xff]  ;;  %v7873_v9 = vld [vmem:[#allocation4 + $0x310] sm:$0xff] }
 0x7a0   :  { %2420 = vmatprep.subr.mxu0 %v10599_v4  ;;  %2489 = vmatprep.subr.mxu1 %v10600_v57  ;;  %v7876_v4 = vld [vmem:[#allocation4 + $0x2c8] sm:$0xff]  ;;  %v7879_v57 = vld [vmem:[#allocation4 + $0x2f8] sm:$0xff] }
 0x7a1   :  { %2421 = vmatpush1.msra.mxu0 %v10601_v14  ;;  %2490 = vmatpush1.msra.mxu1 %v10602_v6  ;;  %v7882_v14 = vld [vmem:[#allocation4 + $0x2c0] sm:$0xff]  ;;  %v7885_v6 = vld [vmem:[#allocation4 + $0x2f0] sm:$0xff] }
 0x7a2   :  { %2422 = vmatprep.subr.mxu0 %v10603_v8  ;;  %2491 = vmatprep.subr.mxu1 %v10604_v10  ;;  %v7888_v8 = vld [vmem:[#allocation4 + $0x2a8] sm:$0xff]  ;;  %v7891_v10 = vld [vmem:[#allocation4 + $0x2d8] sm:$0xff] }
 0x7a3   :  { %2423 = vmatpush1.msra.mxu0 %v10605_v45  ;;  %2492 = vmatpush1.msra.mxu1 %v10606_v12  ;;  %v7894_v45 = vld [vmem:[#allocation4 + $0x2a0] sm:$0xff]  ;;  %v7897_v12 = vld [vmem:[#allocation4 + $0x2d0] sm:$0xff] }
 0x7a4   :  { %2424 = vmatprep.subr.mxu0 %v10607_v17  ;;  %2493 = vmatprep.subr.mxu1 %v10608_v18  ;;  %v7900_v17 = vld [vmem:[#allocation4 + $0x288] sm:$0xff] }
 0x7a5   :  { %2425 = vmatpush1.msra.mxu0 %v10609_v20  ;;  %2494 = vmatpush1.msra.mxu1 %v10610_v24  ;;  %v2396_v18 = vld [vmem:[%s8696_s1 + $0xe] sm:$0x1]  ;;  %v7906_v20 = vld [vmem:[#allocation4 + $0x2b8] sm:$0xff]  ;;  %v7909_v24 = vld [vmem:[#allocation4 + $0x280] sm:$0xff] }
 0x7a6   :  { %2426 = vmatprep.subr.mxu0 %v10611_v28  ;;  %2495 = vmatprep.subr.mxu1 %v10612_v40  ;;  %10622 = vst [vmem:[#allocation21_spill] sm:$0xff] %v7909_v24  ;;  %v7912_v28 = vld [vmem:[#allocation4 + $0x2b0] sm:$0xff]  ;;  %v7915_v40 = vld [vmem:[#allocation4 + $0x268] sm:$0xff] }
 0x7a7   :  { %2427 = vmatpush1.msra.mxu0 %v10613_v25  ;;  %2496 = vmatpush1.msra.mxu1 %v10614_v39  ;;  %10623 = vst [vmem:[#allocation15_spill] sm:$0xff] %v7912_v28  ;;  %10624 = vst [vmem:[#allocation23_spill] sm:$0xff] %v7915_v40  ;;  %v7918_v25 = vld [vmem:[#allocation4 + $0x298] sm:$0xff]  ;;  %v7921_v39 = vld [vmem:[#allocation4 + $0x260] sm:$0xff] }
 0x7a8   :  { %2428 = vmatprep.subr.mxu0 %v10615_v58  ;;  %2497 = vmatprep.subr.mxu1 %v10616_v41  ;;  %10625 = vst [vmem:[#allocation16_spill] sm:$0xff] %v7918_v25  ;;  %10626 = vst [vmem:[#allocation24_spill] sm:$0xff] %v7921_v39  ;;  %v2399_v58 = vrot.slane %v2396_v18, 7  ;;  %v7924_v41 = vld [vmem:[#allocation4 + $0x290] sm:$0xff]  ;;  %v7942_v18 = vld [vmem:[#allocation4 + $0x228] sm:$0xff] }
 0x7a9   :  { %2429 = vmatpush1.msra.mxu0 %v10617_v50  ;;  %2498 = vmatpush1.msra.mxu1 %v10618_v16  ;;  %10627 = vst [vmem:[#allocation25_spill] sm:$0xff] %v7924_v41  ;;  %v7927_v50 = vld [vmem:[#allocation4 + $0x248] sm:$0xff]  ;;  %v2395_v16 = vld [vmem:[%s8696_s1 + $0x6] sm:$0x1]  ;;  %10632 = vst [vmem:[#allocation20_spill] sm:$0xff] %v7942_v18 }
 0x7aa   :  { %2430 = vmatprep.subr.mxu0 %v7446_v34  ;;  %2499 = vmatprep.subr.mxu1 %v10619_v48  ;;  %v7793_v34 = vld [vmem:[#allocation4 + $0x18] sm:$0xff]  ;;  %10628 = vst [vmem:[#allocation26_spill] sm:$0xff] %v7927_v50 }
 0x7ab   :  { %2431 = vmatpush1.msra.mxu0 %v10620_v29  ;;  %2500 = vmatpush1.msra.mxu1 %v7455_v56  ;;  %v7797_v56 = vld [vmem:[#allocation4 + $0x10] sm:$0xff]  ;;  %v7933_v48 = vld [vmem:[#allocation4 + $0x278] sm:$0xff]  ;;  %v7936_v29 = vld [vmem:[#allocation4 + $0x240] sm:$0xff] }
 0x7ac   :  { %2432 = vmatprep.subr.mxu0 %v10621_v63  ;;  %2501 = vmatprep.subr.mxu1 %v7785_v11  ;;  %10629 = vst [vmem:[#allocation17_spill] sm:$0xff] %v7933_v48  ;;  %10630 = vst [vmem:[#allocation18_spill] sm:$0xff] %v7936_v29  ;;  %v7939_v63 = vld [vmem:[#allocation4 + $0x270] sm:$0xff] }
 0x7ad   :  { %2433 = vmatpush1.msra.mxu0 %v7462_v37  ;;  %2502 = vmatpush1.msra.mxu1 %v7789_v7  ;;  %v7805_v37 = vld [vmem:[#allocation4 + $0x3f0] sm:$0xff]  ;;  %10631 = vst [vmem:[#allocation27_spill] sm:$0xff] %v7939_v63 }
 0x7ae   :  { %2434 = vmatprep.subr.mxu0 %v7466_v32  ;;  %2503 = vmatprep.subr.mxu1 %v7793_v34  ;;  %v7809_v32 = vld [vmem:[#allocation4 + $0x3d8] sm:$0xff] }
 0x7af   :  { %2435 = vmatpush2.msra.mxu0 %v7470_v33  ;;  %2504 = vmatpush1.msra.mxu1 %v7797_v56  ;;  %v7813_v33 = vld [vmem:[#allocation4 + $0x3d0] sm:$0xff] }
 0x7b0   :  { %2436 = vmatprep.subr.mxu0 %v7474_v47  ;;  %2505 = vmatprep.subr.mxu1 %v7801_v36  ;;  %v7817_v47 = vld [vmem:[#allocation4 + $0x3b8] sm:$0xff] }
 0x7b1   :  { %2437 = vmatpush2.msra.mxu0 %v7478_v44  ;;  %2506 = vmatpush2.msra.mxu1 %v7805_v37  ;;  %v7821_v44 = vld [vmem:[#allocation4 + $0x3b0] sm:$0xff] }
 0x7b2   :  { %2438 = vmatprep.subr.mxu0 %v7482_v62  ;;  %2507 = vmatprep.subr.mxu1 %v7809_v32  ;;  %v7825_v62 = vld [vmem:[#allocation4 + $0x398] sm:$0xff] }
 0x7b3   :  { %2439 = vmatpush2.msra.mxu0 %v7486_v35  ;;  %2508 = vmatpush2.msra.mxu1 %v7813_v33  ;;  %v7829_v35 = vld [vmem:[#allocation4 + $0x390] sm:$0xff] }
 0x7b4   :  { %2440 = vmatprep.subr.mxu0 %v7490_v3  ;;  %2509 = vmatprep.subr.mxu1 %v7817_v47  ;;  %v7833_v3 = vld [vmem:[#allocation4 + $0x378] sm:$0xff] }
 0x7b5   :  { %2441 = vmatpush2.msra.mxu0 %v7494_v52  ;;  %2510 = vmatpush2.msra.mxu1 %v7821_v44  ;;  %v7837_v52 = vld [vmem:[#allocation4 + $0x370] sm:$0xff] }
 0x7b6   :  { %2442 = vmatprep.subr.mxu0 %v7498_v43  ;;  %2511 = vmatprep.subr.mxu1 %v7825_v62  ;;  %v7840_v43 = vld [vmem:[#allocation4 + $0x328] sm:$0xff] }
 0x7b7   :  { %2443 = vmatpush2.msra.mxu0 %v7502_v42  ;;  %2512 = vmatpush2.msra.mxu1 %v7829_v35  ;;  %v7843_v42 = vld [vmem:[#allocation4 + $0x358] sm:$0xff] }
 0x7b8   :  { %2444 = vmatprep.subr.mxu0 %v7506_v49  ;;  %2513 = vmatprep.subr.mxu1 %v7833_v3  ;;  %v7849_v49 = vld [vmem:[#allocation4 + $0x350] sm:$0xff] }
 0x7b9   :  { %2445 = vmatpush2.msra.mxu0 %v7510_v60  ;;  %2514 = vmatpush2.msra.mxu1 %v7837_v52  ;;  %v7852_v60 = vld [vmem:[#allocation4 + $0x308] sm:$0xff] }
 0x7ba   :  { %2446 = vmatprep.subr.mxu0 %v7840_v43  ;;  %2515 = vmatprep.subr.mxu1 %v7843_v42 }
 0x7bb   :  { %2447 = vmatpush2.msra.mxu0 %v7846_v54  ;;  %2516 = vmatpush2.msra.mxu1 %v7849_v49 }
 0x7bc   :  { %2448 = vmatprep.subr.mxu0 %v7852_v60  ;;  %2517 = vmatprep.subr.mxu1 %v7855_v0 }
 0x7bd   :  { %2449 = vmatpush2.msra.mxu0 %v7858_v61  ;;  %2518 = vmatpush2.msra.mxu1 %v7861_v59 }
 0x7be   :  { %2450 = vmatprep.subr.mxu0 %v7864_v15  ;;  %2519 = vmatprep.subr.mxu1 %v7867_v38 }
 0x7bf   :  { %2451 = vmatpush2.msra.mxu0 %v7870_v2  ;;  %2520 = vmatpush2.msra.mxu1 %v7873_v9 }
 0x7c0   :  { %2452 = vmatprep.subr.mxu0 %v7876_v4  ;;  %2521 = vmatprep.subr.mxu1 %v7879_v57 }
 0x7c1   :  { %2453 = vmatpush2.msra.mxu0 %v7882_v14  ;;  %2522 = vmatpush2.msra.mxu1 %v7885_v6 }
 0x7c2   :  { %2454 = vmatprep.subr.mxu0 %v7888_v8  ;;  %2523 = vmatprep.subr.mxu1 %v7891_v10 }
 0x7c3   :  { %2455 = vmatpush2.msra.mxu0 %v7894_v45  ;;  %2524 = vmatpush2.msra.mxu1 %v7897_v12 }
 0x7c4   :  { %2456 = vmatprep.subr.mxu0 %v7900_v17  ;;  %2525 = vmatprep.subr.mxu1 %v7906_v20 }
 0x7c5   :  { %2457 = vmatpush2.msra.mxu0 %v7909_v24  ;;  %2526 = vmatpush2.msra.mxu1 %v7912_v28 }
 0x7c6   :  { %2458 = vmatprep.subr.mxu0 %v7915_v40  ;;  %2527 = vmatprep.subr.mxu1 %v7918_v25 }
 0x7c7   :  { %2459 = vmatpush2.msra.mxu0 %v7921_v39  ;;  %2528 = vmatpush2.msra.mxu1 %v7924_v41  ;;  %v7952_v41 = vld [vmem:[#allocation4 + $0x250] sm:$0xff] }
 0x7c8   :  { %2460 = vmatprep.subr.mxu0 %v7927_v50  ;;  %2529 = vmatprep.subr.mxu1 %v7933_v48  ;;  %v7948_v50 = vld [vmem:[#allocation4 + $0x220] sm:$0xff]  ;;  %v2400_v48 = vsel %vm64_vm0, %v2399_v58, %v2395_v16  ;;  %10635 = vst [vmem:[#allocation29_spill] sm:$0xff] %v7952_v41  ;;  %v7967_v58 = vld [vmem:[#allocation4 + $0x218] sm:$0xff]  ;;  %v7970_v16 = vld [vmem:[#allocation4 + $0x210] sm:$0xff] }
 0x7c9   :  { %2461 = vmatpush2.msra.mxu0 %v7936_v29  ;;  %2530 = vmatpush2.msra.mxu1 %v7939_v63  ;;  %10634 = vst [vmem:[#allocation22_spill] sm:$0xff] %v7948_v50  ;;  %v7955_v29 = vld [vmem:[#allocation4 + $0x208] sm:$0xff]  ;;  %v7958_v63 = vld [vmem:[#allocation4 + $0x238] sm:$0xff]  ;;  %10640 = vst [vmem:[#allocation34_spill] sm:$0xff] %v7967_v58 }
 0x7ca   :  { %2462 = vmatprep.subr.mxu0 %v7942_v18  ;;  %2531 = vmatprep.subr.mxu1 %v7945_v21  ;;  %10636 = vst [vmem:[#allocation30_spill] sm:$0xff] %v7955_v29  ;;  %10637 = vst [vmem:[#allocation31_spill] sm:$0xff] %v7958_v63  ;;  %v7961_v18 = vld [vmem:[#allocation4 + $0x200] sm:$0xff]  ;;  %v7964_v21 = vld [vmem:[#allocation4 + $0x230] sm:$0xff] }
 0x7cb   :  { %2463 = vmatpush2.msra.mxu0 %v7948_v50  ;;  %2532 = vmatpush2.msra.mxu1 %v7952_v41  ;;  %10638 = vst [vmem:[#allocation32_spill] sm:$0xff] %v7961_v18  ;;  %10639 = vst [vmem:[#allocation33_spill] sm:$0xff] %v7964_v21 }
 0x7cc   :  { %2464 = vmatprep.subr.mxu0 %v7955_v29  ;;  %2533 = vmatprep.subr.mxu1 %v7958_v63  ;;  %10641 = vst [vmem:[#allocation35_spill] sm:$0xff] %v7970_v16  ;;  %v7973_v29 = vld [vmem:[#allocation4 + $0x5e8] sm:$0xff]  ;;  %v7976_v63 = vld [vmem:[#allocation4 + $0x5e0] sm:$0xff] }
 0x7cd   :  { %2465 = vmatpush2.msra.mxu0 %v7961_v18  ;;  %2534 = vmatpush2.msra.mxu1 %v7964_v21  ;;  %10642 = vst [vmem:[#allocation36_spill] sm:$0xff] %v7973_v29  ;;  %10643 = vst [vmem:[#allocation37_spill] sm:$0xff] %v7976_v63  ;;  %v7979_v18 = vld [vmem:[#allocation4 + $0x5f8] sm:$0xff]  ;;  %v7982_v21 = vld [vmem:[#allocation4 + $0x5c8] sm:$0xff] }
 0x7ce   :  { %2467 = vmatmul.mubr.f32.vlgmr.msra.gmra.mxu0 %v2400_v48  ;;  %2535 = vmatprep.subr.mxu1 %v7967_v58  ;;  %10644 = vst [vmem:[#allocation38_spill] sm:$0xff] %v7979_v18  ;;  %10645 = vst [vmem:[#allocation39_spill] sm:$0xff] %v7982_v21  ;;  %v7985_v58 = vld [vmem:[#allocation4 + $0x5f0] sm:$0xff] }
 0x7cf   :  { %2536 = vmatpush2.msra.mxu1 %v7970_v16  ;;  %2566 = vmatprep.subr.mxu0 %v7973_v29  ;;  %10646 = vst [vmem:[#allocation40_spill] sm:$0xff] %v7985_v58  ;;  %v7988_v16 = vld [vmem:[#allocation4 + $0x5c0] sm:$0xff]  ;;  %v8354_v29 = vld [vmem:[#allocation4 + $0x610] sm:$0xff] }
 0x7d0   :  { %2538 = vmatmul.mubr.f32.vlgmr.msra.gmra.mxu1 %v2400_v48  ;;  %2567 = vmatpush1.msra.mxu0 %v7976_v63  ;;  %10647 = vst [vmem:[#allocation41_spill] sm:$0xff] %v7988_v16  ;;  %v7991_v48 = vld [vmem:[#allocation4 + $0x5d8] sm:$0xff]  ;;  %v7994_v63 = vld [vmem:[#allocation4 + $0x5a8] sm:$0xff]  ;;  %10769 = vst [vmem:[#allocation163_spill] sm:$0xff] %v8354_v29 }
 0x7d1   :  { %2637 = vmatprep.subr.mxu1 %v7979_v18  ;;  %2568 = vmatprep.subr.mxu0 %v7982_v21  ;;  %10648 = vst [vmem:[#allocation42_spill] sm:$0xff] %v7991_v48  ;;  %10649 = vst [vmem:[#allocation43_spill] sm:$0xff] %v7994_v63  ;;  %v7997_v18 = vld [vmem:[#allocation4 + $0x5d0] sm:$0xff]  ;;  %v8000_v21 = vld [vmem:[#allocation4 + $0x5a0] sm:$0xff] }
 0x7d2   :  { %2638 = vmatpush1.msra.mxu1 %v7985_v58  ;;  %2569 = vmatpush1.msra.mxu0 %v7988_v16  ;;  %10650 = vst [vmem:[#allocation44_spill] sm:$0xff] %v7997_v18  ;;  %10651 = vst [vmem:[#allocation45_spill] sm:$0xff] %v8000_v21  ;;  %v8003_v58 = vld [vmem:[#allocation4 + $0x5b8] sm:$0xff]  ;;  %v8006_v16 = vld [vmem:[#allocation4 + $0x588] sm:$0xff] }
 0x7d3   :  { %2639 = vmatprep.subr.mxu1 %v7991_v48  ;;  %2570 = vmatprep.subr.mxu0 %v7994_v63  ;;  %10652 = vst [vmem:[#allocation46_spill] sm:$0xff] %v8003_v58  ;;  %10653 = vst [vmem:[#allocation47_spill] sm:$0xff] %v8006_v16  ;;  %v8009_v48 = vld [vmem:[#allocation4 + $0x5b0] sm:$0xff]  ;;  %v8012_v63 = vld [vmem:[#allocation4 + $0x580] sm:$0xff] }
 0x7d4   :  { %2640 = vmatpush1.msra.mxu1 %v7997_v18  ;;  %2571 = vmatpush1.msra.mxu0 %v8000_v21  ;;  %10654 = vst [vmem:[#allocation48_spill] sm:$0xff] %v8009_v48  ;;  %10655 = vst [vmem:[#allocation49_spill] sm:$0xff] %v8012_v63  ;;  %v8015_v18 = vld [vmem:[#allocation4 + $0x598] sm:$0xff]  ;;  %v8018_v21 = vld [vmem:[#allocation4 + $0x568] sm:$0xff] }
 0x7d5   :  { %2641 = vmatprep.subr.mxu1 %v8003_v58  ;;  %2572 = vmatprep.subr.mxu0 %v8006_v16  ;;  %10656 = vst [vmem:[#allocation50_spill] sm:$0xff] %v8015_v18  ;;  %10657 = vst [vmem:[#allocation51_spill] sm:$0xff] %v8018_v21  ;;  %v8021_v58 = vld [vmem:[#allocation4 + $0x590] sm:$0xff]  ;;  %v8024_v16 = vld [vmem:[#allocation4 + $0x560] sm:$0xff] }
 0x7d6   :  { %2642 = vmatpush1.msra.mxu1 %v8009_v48  ;;  %2573 = vmatpush1.msra.mxu0 %v8012_v63  ;;  %10658 = vst [vmem:[#allocation52_spill] sm:$0xff] %v8021_v58  ;;  %10659 = vst [vmem:[#allocation53_spill] sm:$0xff] %v8024_v16  ;;  %v8027_v48 = vld [vmem:[#allocation4 + $0x578] sm:$0xff]  ;;  %v8030_v63 = vld [vmem:[#allocation4 + $0x548] sm:$0xff] }
 0x7d7   :  { %2643 = vmatprep.subr.mxu1 %v8015_v18  ;;  %2574 = vmatprep.subr.mxu0 %v8018_v21  ;;  %10660 = vst [vmem:[#allocation54_spill] sm:$0xff] %v8027_v48  ;;  %10661 = vst [vmem:[#allocation55_spill] sm:$0xff] %v8030_v63  ;;  %v8033_v18 = vld [vmem:[#allocation4 + $0x570] sm:$0xff]  ;;  %v8036_v21 = vld [vmem:[#allocation4 + $0x540] sm:$0xff] }
 0x7d8   :  { %2644 = vmatpush1.msra.mxu1 %v8021_v58  ;;  %2575 = vmatpush1.msra.mxu0 %v8024_v16  ;;  %10662 = vst [vmem:[#allocation56_spill] sm:$0xff] %v8033_v18  ;;  %10663 = vst [vmem:[#allocation57_spill] sm:$0xff] %v8036_v21  ;;  %v8039_v58 = vld [vmem:[#allocation4 + $0x558] sm:$0xff]  ;;  %v8042_v16 = vld [vmem:[#allocation4 + $0x528] sm:$0xff] }
 0x7d9   :  { %2645 = vmatprep.subr.mxu1 %v8027_v48  ;;  %2576 = vmatprep.subr.mxu0 %v8030_v63  ;;  %10664 = vst [vmem:[#allocation58_spill] sm:$0xff] %v8039_v58  ;;  %10665 = vst [vmem:[#allocation59_spill] sm:$0xff] %v8042_v16  ;;  %v8045_v48 = vld [vmem:[#allocation4 + $0x550] sm:$0xff]  ;;  %v8048_v63 = vld [vmem:[#allocation4 + $0x520] sm:$0xff] }
 0x7da   :  { %2646 = vmatpush1.msra.mxu1 %v8033_v18  ;;  %2577 = vmatpush1.msra.mxu0 %v8036_v21  ;;  %10666 = vst [vmem:[#allocation60_spill] sm:$0xff] %v8045_v48  ;;  %10667 = vst [vmem:[#allocation61_spill] sm:$0xff] %v8048_v63  ;;  %v8051_v18 = vld [vmem:[#allocation4 + $0x538] sm:$0xff]  ;;  %v8054_v21 = vld [vmem:[#allocation4 + $0x508] sm:$0xff] }
 0x7db   :  { %2647 = vmatprep.subr.mxu1 %v8039_v58  ;;  %2578 = vmatprep.subr.mxu0 %v8042_v16  ;;  %10668 = vst [vmem:[#allocation62_spill] sm:$0xff] %v8051_v18  ;;  %10669 = vst [vmem:[#allocation63_spill] sm:$0xff] %v8054_v21  ;;  %v8057_v58 = vld [vmem:[#allocation4 + $0x530] sm:$0xff]  ;;  %v8060_v16 = vld [vmem:[#allocation4 + $0x500] sm:$0xff] }
 0x7dc   :  { %2648 = vmatpush1.msra.mxu1 %v8045_v48  ;;  %2579 = vmatpush1.msra.mxu0 %v8048_v63  ;;  %10670 = vst [vmem:[#allocation64_spill] sm:$0xff] %v8057_v58  ;;  %10671 = vst [vmem:[#allocation65_spill] sm:$0xff] %v8060_v16  ;;  %v8063_v48 = vld [vmem:[#allocation4 + $0x518] sm:$0xff]  ;;  %v8066_v63 = vld [vmem:[#allocation4 + $0x4e8] sm:$0xff] }
 0x7dd   :  { %2649 = vmatprep.subr.mxu1 %v8051_v18  ;;  %2580 = vmatprep.subr.mxu0 %v8054_v21  ;;  %10672 = vst [vmem:[#allocation66_spill] sm:$0xff] %v8063_v48  ;;  %10673 = vst [vmem:[#allocation67_spill] sm:$0xff] %v8066_v63  ;;  %v8069_v18 = vld [vmem:[#allocation4 + $0x510] sm:$0xff]  ;;  %v8072_v21 = vld [vmem:[#allocation4 + $0x4e0] sm:$0xff] }
 0x7de   :  { %2650 = vmatpush1.msra.mxu1 %v8057_v58  ;;  %2581 = vmatpush1.msra.mxu0 %v8060_v16  ;;  %10674 = vst [vmem:[#allocation68_spill] sm:$0xff] %v8069_v18  ;;  %10675 = vst [vmem:[#allocation69_spill] sm:$0xff] %v8072_v21  ;;  %v8075_v58 = vld [vmem:[#allocation4 + $0x4f8] sm:$0xff]  ;;  %v8078_v16 = vld [vmem:[#allocation4 + $0x4c8] sm:$0xff] }
 0x7df   :  { %2651 = vmatprep.subr.mxu1 %v8063_v48  ;;  %2582 = vmatprep.subr.mxu0 %v8066_v63  ;;  %10676 = vst [vmem:[#allocation70_spill] sm:$0xff] %v8075_v58  ;;  %10677 = vst [vmem:[#allocation71_spill] sm:$0xff] %v8078_v16  ;;  %v8081_v48 = vld [vmem:[#allocation4 + $0x4f0] sm:$0xff]  ;;  %v8084_v63 = vld [vmem:[#allocation4 + $0x4c0] sm:$0xff] }
 0x7e0   :  { %2652 = vmatpush1.msra.mxu1 %v8069_v18  ;;  %2583 = vmatpush1.msra.mxu0 %v8072_v21  ;;  %10678 = vst [vmem:[#allocation72_spill] sm:$0xff] %v8081_v48  ;;  %10679 = vst [vmem:[#allocation73_spill] sm:$0xff] %v8084_v63  ;;  %v8087_v18 = vld [vmem:[#allocation4 + $0x4d8] sm:$0xff]  ;;  %v8090_v21 = vld [vmem:[#allocation4 + $0x4a8] sm:$0xff] }
 0x7e1   :  { %2653 = vmatprep.subr.mxu1 %v8075_v58  ;;  %2584 = vmatprep.subr.mxu0 %v8078_v16  ;;  %10680 = vst [vmem:[#allocation74_spill] sm:$0xff] %v8087_v18  ;;  %10681 = vst [vmem:[#allocation75_spill] sm:$0xff] %v8090_v21  ;;  %v8093_v58 = vld [vmem:[#allocation4 + $0x4d0] sm:$0xff]  ;;  %v8096_v16 = vld [vmem:[#allocation4 + $0x4a0] sm:$0xff] }
 0x7e2   :  { %2654 = vmatpush1.msra.mxu1 %v8081_v48  ;;  %2585 = vmatpush1.msra.mxu0 %v8084_v63  ;;  %10682 = vst [vmem:[#allocation76_spill] sm:$0xff] %v8093_v58  ;;  %10683 = vst [vmem:[#allocation77_spill] sm:$0xff] %v8096_v16  ;;  %v8099_v48 = vld [vmem:[#allocation4 + $0x4b8] sm:$0xff]  ;;  %v8102_v63 = vld [vmem:[#allocation4 + $0x488] sm:$0xff] }
 0x7e3   :  { %2655 = vmatprep.subr.mxu1 %v8087_v18  ;;  %2586 = vmatprep.subr.mxu0 %v8090_v21  ;;  %10684 = vst [vmem:[#allocation78_spill] sm:$0xff] %v8099_v48  ;;  %10685 = vst [vmem:[#allocation79_spill] sm:$0xff] %v8102_v63  ;;  %v8105_v18 = vld [vmem:[#allocation4 + $0x4b0] sm:$0xff]  ;;  %v8108_v21 = vld [vmem:[#allocation4 + $0x480] sm:$0xff] }
 0x7e4   :  { %2656 = vmatpush1.msra.mxu1 %v8093_v58  ;;  %2587 = vmatpush1.msra.mxu0 %v8096_v16  ;;  %10686 = vst [vmem:[#allocation80_spill] sm:$0xff] %v8105_v18  ;;  %10687 = vst [vmem:[#allocation81_spill] sm:$0xff] %v8108_v21  ;;  %v8111_v58 = vld [vmem:[#allocation4 + $0x498] sm:$0xff]  ;;  %v8114_v16 = vld [vmem:[#allocation4 + $0x468] sm:$0xff] }
 0x7e5   :  { %2657 = vmatprep.subr.mxu1 %v8099_v48  ;;  %2588 = vmatprep.subr.mxu0 %v8102_v63  ;;  %10688 = vst [vmem:[#allocation82_spill] sm:$0xff] %v8111_v58  ;;  %10689 = vst [vmem:[#allocation83_spill] sm:$0xff] %v8114_v16  ;;  %v8117_v48 = vld [vmem:[#allocation4 + $0x490] sm:$0xff]  ;;  %v8120_v63 = vld [vmem:[#allocation4 + $0x460] sm:$0xff] }
 0x7e6   :  { %2658 = vmatpush1.msra.mxu1 %v8105_v18  ;;  %2589 = vmatpush1.msra.mxu0 %v8108_v21  ;;  %10690 = vst [vmem:[#allocation84_spill] sm:$0xff] %v8117_v48  ;;  %10691 = vst [vmem:[#allocation85_spill] sm:$0xff] %v8120_v63  ;;  %v8123_v18 = vld [vmem:[#allocation4 + $0x478] sm:$0xff]  ;;  %v8126_v21 = vld [vmem:[#allocation4 + $0x448] sm:$0xff] }
 0x7e7   :  { %2659 = vmatprep.subr.mxu1 %v8111_v58  ;;  %2590 = vmatprep.subr.mxu0 %v8114_v16  ;;  %10692 = vst [vmem:[#allocation86_spill] sm:$0xff] %v8123_v18  ;;  %10693 = vst [vmem:[#allocation87_spill] sm:$0xff] %v8126_v21  ;;  %v8129_v58 = vld [vmem:[#allocation4 + $0x470] sm:$0xff]  ;;  %v8132_v16 = vld [vmem:[#allocation4 + $0x440] sm:$0xff] }
 0x7e8   :  { %2660 = vmatpush1.msra.mxu1 %v8117_v48  ;;  %2591 = vmatpush1.msra.mxu0 %v8120_v63  ;;  %10694 = vst [vmem:[#allocation88_spill] sm:$0xff] %v8129_v58  ;;  %10695 = vst [vmem:[#allocation89_spill] sm:$0xff] %v8132_v16  ;;  %v8135_v48 = vld [vmem:[#allocation4 + $0x458] sm:$0xff]  ;;  %v8138_v63 = vld [vmem:[#allocation4 + $0x428] sm:$0xff] }
 0x7e9   :  { %2661 = vmatprep.subr.mxu1 %v8123_v18  ;;  %2592 = vmatprep.subr.mxu0 %v8126_v21  ;;  %10696 = vst [vmem:[#allocation90_spill] sm:$0xff] %v8135_v48  ;;  %10697 = vst [vmem:[#allocation91_spill] sm:$0xff] %v8138_v63  ;;  %v8141_v18 = vld [vmem:[#allocation4 + $0x450] sm:$0xff]  ;;  %v8144_v21 = vld [vmem:[#allocation4 + $0x420] sm:$0xff] }
 0x7ea   :  { %2662 = vmatpush1.msra.mxu1 %v8129_v58  ;;  %2593 = vmatpush1.msra.mxu0 %v8132_v16  ;;  %10698 = vst [vmem:[#allocation92_spill] sm:$0xff] %v8141_v18  ;;  %10699 = vst [vmem:[#allocation93_spill] sm:$0xff] %v8144_v21  ;;  %v8147_v58 = vld [vmem:[#allocation4 + $0x438] sm:$0xff]  ;;  %v8150_v16 = vld [vmem:[#allocation4 + $0x408] sm:$0xff] }
 0x7eb   :  { %2663 = vmatprep.subr.mxu1 %v8135_v48  ;;  %2594 = vmatprep.subr.mxu0 %v8138_v63  ;;  %10700 = vst [vmem:[#allocation94_spill] sm:$0xff] %v8147_v58  ;;  %10701 = vst [vmem:[#allocation95_spill] sm:$0xff] %v8150_v16  ;;  %v8153_v48 = vld [vmem:[#allocation4 + $0x430] sm:$0xff]  ;;  %v8156_v63 = vld [vmem:[#allocation4 + $0x400] sm:$0xff] }
 0x7ec   :  { %2664 = vmatpush1.msra.mxu1 %v8141_v18  ;;  %2595 = vmatpush1.msra.mxu0 %v8144_v21  ;;  %10702 = vst [vmem:[#allocation96_spill] sm:$0xff] %v8153_v48  ;;  %10703 = vst [vmem:[#allocation97_spill] sm:$0xff] %v8156_v63  ;;  %v8159_v18 = vld [vmem:[#allocation4 + $0x418] sm:$0xff]  ;;  %v8162_v21 = vld [vmem:[#allocation4 + $0x7e8] sm:$0xff] }
 0x7ed   :  { %2665 = vmatprep.subr.mxu1 %v8147_v58  ;;  %2596 = vmatprep.subr.mxu0 %v8150_v16  ;;  %10704 = vst [vmem:[#allocation98_spill] sm:$0xff] %v8159_v18  ;;  %10705 = vst [vmem:[#allocation99_spill] sm:$0xff] %v8162_v21  ;;  %v8165_v58 = vld [vmem:[#allocation4 + $0x410] sm:$0xff]  ;;  %v8168_v16 = vld [vmem:[#allocation4 + $0x7e0] sm:$0xff] }
 0x7ee   :  { %2666 = vmatpush1.msra.mxu1 %v8153_v48  ;;  %2597 = vmatpush1.msra.mxu0 %v8156_v63  ;;  %10706 = vst [vmem:[#allocation100_spill] sm:$0xff] %v8165_v58  ;;  %10707 = vst [vmem:[#allocation101_spill] sm:$0xff] %v8168_v16  ;;  %v8171_v48 = vld [vmem:[#allocation4 + $0x7f8] sm:$0xff]  ;;  %v8174_v63 = vld [vmem:[#allocation4 + $0x7c8] sm:$0xff] }
 0x7ef   :  { %2667 = vmatprep.subr.mxu1 %v8159_v18  ;;  %2598 = vmatprep.subr.mxu0 %v8162_v21  ;;  %10708 = vst [vmem:[#allocation102_spill] sm:$0xff] %v8171_v48  ;;  %10709 = vst [vmem:[#allocation103_spill] sm:$0xff] %v8174_v63  ;;  %v8177_v18 = vld [vmem:[#allocation4 + $0x7f0] sm:$0xff]  ;;  %v8180_v21 = vld [vmem:[#allocation4 + $0x7c0] sm:$0xff] }
 0x7f0   :  { %2668 = vmatpush1.msra.mxu1 %v8165_v58  ;;  %2599 = vmatpush2.msra.mxu0 %v8168_v16  ;;  %10710 = vst [vmem:[#allocation104_spill] sm:$0xff] %v8177_v18  ;;  %10711 = vst [vmem:[#allocation105_spill] sm:$0xff] %v8180_v21  ;;  %v8183_v58 = vld [vmem:[#allocation4 + $0x7d8] sm:$0xff]  ;;  %v8186_v16 = vld [vmem:[#allocation4 + $0x7a8] sm:$0xff] }
 0x7f1   :  { %2669 = vmatprep.subr.mxu1 %v8171_v48  ;;  %2600 = vmatprep.subr.mxu0 %v8174_v63  ;;  %10712 = vst [vmem:[#allocation106_spill] sm:$0xff] %v8183_v58  ;;  %10713 = vst [vmem:[#allocation107_spill] sm:$0xff] %v8186_v16  ;;  %v8189_v48 = vld [vmem:[#allocation4 + $0x7d0] sm:$0xff]  ;;  %v8192_v63 = vld [vmem:[#allocation4 + $0x7a0] sm:$0xff] }
 0x7f2   :  { %2670 = vmatpush2.msra.mxu1 %v8177_v18  ;;  %2601 = vmatpush2.msra.mxu0 %v8180_v21  ;;  %10714 = vst [vmem:[#allocation108_spill] sm:$0xff] %v8189_v48  ;;  %10715 = vst [vmem:[#allocation109_spill] sm:$0xff] %v8192_v63  ;;  %v8195_v18 = vld [vmem:[#allocation4 + $0x7b8] sm:$0xff]  ;;  %v8198_v21 = vld [vmem:[#allocation4 + $0x788] sm:$0xff] }
 0x7f3   :  { %2671 = vmatprep.subr.mxu1 %v8183_v58  ;;  %2602 = vmatprep.subr.mxu0 %v8186_v16  ;;  %10716 = vst [vmem:[#allocation110_spill] sm:$0xff] %v8195_v18  ;;  %10717 = vst [vmem:[#allocation111_spill] sm:$0xff] %v8198_v21  ;;  %v8201_v58 = vld [vmem:[#allocation4 + $0x7b0] sm:$0xff]  ;;  %v8204_v16 = vld [vmem:[#allocation4 + $0x780] sm:$0xff] }
 0x7f4   :  { %2672 = vmatpush2.msra.mxu1 %v8189_v48  ;;  %2603 = vmatpush2.msra.mxu0 %v8192_v63  ;;  %10718 = vst [vmem:[#allocation112_spill] sm:$0xff] %v8201_v58  ;;  %10719 = vst [vmem:[#allocation113_spill] sm:$0xff] %v8204_v16  ;;  %v8207_v48 = vld [vmem:[#allocation4 + $0x798] sm:$0xff]  ;;  %v8210_v63 = vld [vmem:[#allocation4 + $0x768] sm:$0xff] }
 0x7f5   :  { %2673 = vmatprep.subr.mxu1 %v8195_v18  ;;  %2604 = vmatprep.subr.mxu0 %v8198_v21  ;;  %10720 = vst [vmem:[#allocation114_spill] sm:$0xff] %v8207_v48  ;;  %10721 = vst [vmem:[#allocation115_spill] sm:$0xff] %v8210_v63  ;;  %v8213_v18 = vld [vmem:[#allocation4 + $0x790] sm:$0xff]  ;;  %v8216_v21 = vld [vmem:[#allocation4 + $0x760] sm:$0xff] }
 0x7f6   :  { %2674 = vmatpush2.msra.mxu1 %v8201_v58  ;;  %2605 = vmatpush2.msra.mxu0 %v8204_v16  ;;  %10722 = vst [vmem:[#allocation116_spill] sm:$0xff] %v8213_v18  ;;  %10723 = vst [vmem:[#allocation117_spill] sm:$0xff] %v8216_v21  ;;  %v8219_v58 = vld [vmem:[#allocation4 + $0x778] sm:$0xff]  ;;  %v8222_v16 = vld [vmem:[#allocation4 + $0x748] sm:$0xff] }
 0x7f7   :  { %2675 = vmatprep.subr.mxu1 %v8207_v48  ;;  %2606 = vmatprep.subr.mxu0 %v8210_v63  ;;  %10724 = vst [vmem:[#allocation118_spill] sm:$0xff] %v8219_v58  ;;  %10725 = vst [vmem:[#allocation119_spill] sm:$0xff] %v8222_v16  ;;  %v8225_v48 = vld [vmem:[#allocation4 + $0x770] sm:$0xff]  ;;  %v8228_v63 = vld [vmem:[#allocation4 + $0x740] sm:$0xff] }
 0x7f8   :  { %2676 = vmatpush2.msra.mxu1 %v8213_v18  ;;  %2607 = vmatpush2.msra.mxu0 %v8216_v21  ;;  %10726 = vst [vmem:[#allocation120_spill] sm:$0xff] %v8225_v48  ;;  %10727 = vst [vmem:[#allocation121_spill] sm:$0xff] %v8228_v63  ;;  %v8231_v18 = vld [vmem:[#allocation4 + $0x758] sm:$0xff]  ;;  %v8234_v21 = vld [vmem:[#allocation4 + $0x728] sm:$0xff] }
 0x7f9   :  { %2677 = vmatprep.subr.mxu1 %v8219_v58  ;;  %2608 = vmatprep.subr.mxu0 %v8222_v16  ;;  %10728 = vst [vmem:[#allocation122_spill] sm:$0xff] %v8231_v18  ;;  %10729 = vst [vmem:[#allocation123_spill] sm:$0xff] %v8234_v21  ;;  %v8237_v58 = vld [vmem:[#allocation4 + $0x750] sm:$0xff]  ;;  %v8240_v16 = vld [vmem:[#allocation4 + $0x720] sm:$0xff] }
 0x7fa   :  { %2678 = vmatpush2.msra.mxu1 %v8225_v48  ;;  %2609 = vmatpush2.msra.mxu0 %v8228_v63  ;;  %10730 = vst [vmem:[#allocation124_spill] sm:$0xff] %v8237_v58  ;;  %10731 = vst [vmem:[#allocation125_spill] sm:$0xff] %v8240_v16  ;;  %v8243_v48 = vld [vmem:[#allocation4 + $0x738] sm:$0xff]  ;;  %v8246_v63 = vld [vmem:[#allocation4 + $0x708] sm:$0xff] }
 0x7fb   :  { %2679 = vmatprep.subr.mxu1 %v8231_v18  ;;  %2610 = vmatprep.subr.mxu0 %v8234_v21  ;;  %10732 = vst [vmem:[#allocation126_spill] sm:$0xff] %v8243_v48  ;;  %10733 = vst [vmem:[#allocation127_spill] sm:$0xff] %v8246_v63  ;;  %v8249_v18 = vld [vmem:[#allocation4 + $0x730] sm:$0xff]  ;;  %v8252_v21 = vld [vmem:[#allocation4 + $0x700] sm:$0xff] }
 0x7fc   :  { %2680 = vmatpush2.msra.mxu1 %v8237_v58  ;;  %2611 = vmatpush2.msra.mxu0 %v8240_v16  ;;  %10734 = vst [vmem:[#allocation128_spill] sm:$0xff] %v8249_v18  ;;  %10735 = vst [vmem:[#allocation129_spill] sm:$0xff] %v8252_v21  ;;  %v8255_v58 = vld [vmem:[#allocation4 + $0x718] sm:$0xff]  ;;  %v8258_v16 = vld [vmem:[#allocation4 + $0x6e8] sm:$0xff] }
 0x7fd   :  { %2681 = vmatprep.subr.mxu1 %v8243_v48  ;;  %2612 = vmatprep.subr.mxu0 %v8246_v63  ;;  %10736 = vst [vmem:[#allocation130_spill] sm:$0xff] %v8255_v58  ;;  %10737 = vst [vmem:[#allocation131_spill] sm:$0xff] %v8258_v16  ;;  %v8261_v48 = vld [vmem:[#allocation4 + $0x710] sm:$0xff]  ;;  %v8264_v63 = vld [vmem:[#allocation4 + $0x6e0] sm:$0xff] }
 0x7fe   :  { %2682 = vmatpush2.msra.mxu1 %v8249_v18  ;;  %2613 = vmatpush2.msra.mxu0 %v8252_v21  ;;  %10738 = vst [vmem:[#allocation132_spill] sm:$0xff] %v8261_v48  ;;  %10739 = vst [vmem:[#allocation133_spill] sm:$0xff] %v8264_v63  ;;  %v8267_v18 = vld [vmem:[#allocation4 + $0x6f8] sm:$0xff]  ;;  %v8270_v21 = vld [vmem:[#allocation4 + $0x6c8] sm:$0xff] }
 0x7ff   :  { %2683 = vmatprep.subr.mxu1 %v8255_v58  ;;  %2614 = vmatprep.subr.mxu0 %v8258_v16  ;;  %10740 = vst [vmem:[#allocation134_spill] sm:$0xff] %v8267_v18  ;;  %10741 = vst [vmem:[#allocation135_spill] sm:$0xff] %v8270_v21  ;;  %v8273_v58 = vld [vmem:[#allocation4 + $0x6f0] sm:$0xff]  ;;  %v8276_v16 = vld [vmem:[#allocation4 + $0x6c0] sm:$0xff] }
 0x800   :  { %2684 = vmatpush2.msra.mxu1 %v8261_v48  ;;  %2615 = vmatpush2.msra.mxu0 %v8264_v63  ;;  %10742 = vst [vmem:[#allocation136_spill] sm:$0xff] %v8273_v58  ;;  %10743 = vst [vmem:[#allocation137_spill] sm:$0xff] %v8276_v16  ;;  %v8279_v48 = vld [vmem:[#allocation4 + $0x6d8] sm:$0xff]  ;;  %v8282_v63 = vld [vmem:[#allocation4 + $0x6a8] sm:$0xff] }
 0x801   :  { %2685 = vmatprep.subr.mxu1 %v8267_v18  ;;  %2616 = vmatprep.subr.mxu0 %v8270_v21  ;;  %10744 = vst [vmem:[#allocation138_spill] sm:$0xff] %v8279_v48  ;;  %10745 = vst [vmem:[#allocation139_spill] sm:$0xff] %v8282_v63  ;;  %v8285_v18 = vld [vmem:[#allocation4 + $0x6d0] sm:$0xff]  ;;  %v8288_v21 = vld [vmem:[#allocation4 + $0x6a0] sm:$0xff] }
 0x802   :  { %2686 = vmatpush2.msra.mxu1 %v8273_v58  ;;  %2617 = vmatpush2.msra.mxu0 %v8276_v16  ;;  %10746 = vst [vmem:[#allocation140_spill] sm:$0xff] %v8285_v18  ;;  %10747 = vst [vmem:[#allocation141_spill] sm:$0xff] %v8288_v21  ;;  %v8291_v58 = vld [vmem:[#allocation4 + $0x6b8] sm:$0xff]  ;;  %v8294_v16 = vld [vmem:[#allocation4 + $0x688] sm:$0xff] }
 0x803   :  { %2687 = vmatprep.subr.mxu1 %v8279_v48  ;;  %2618 = vmatprep.subr.mxu0 %v8282_v63  ;;  %10748 = vst [vmem:[#allocation142_spill] sm:$0xff] %v8291_v58  ;;  %10749 = vst [vmem:[#allocation143_spill] sm:$0xff] %v8294_v16  ;;  %v8297_v48 = vld [vmem:[#allocation4 + $0x6b0] sm:$0xff]  ;;  %v8300_v63 = vld [vmem:[#allocation4 + $0x680] sm:$0xff] }
 0x804   :  { %2688 = vmatpush2.msra.mxu1 %v8285_v18  ;;  %2619 = vmatpush2.msra.mxu0 %v8288_v21  ;;  %10750 = vst [vmem:[#allocation144_spill] sm:$0xff] %v8297_v48  ;;  %10751 = vst [vmem:[#allocation145_spill] sm:$0xff] %v8300_v63  ;;  %v8303_v18 = vld [vmem:[#allocation4 + $0x698] sm:$0xff]  ;;  %v8306_v21 = vld [vmem:[#allocation4 + $0x668] sm:$0xff] }
 0x805   :  { %2689 = vmatprep.subr.mxu1 %v8291_v58  ;;  %2620 = vmatprep.subr.mxu0 %v8294_v16  ;;  %10752 = vst [vmem:[#allocation146_spill] sm:$0xff] %v8303_v18  ;;  %10753 = vst [vmem:[#allocation147_spill] sm:$0xff] %v8306_v21  ;;  %v8309_v58 = vld [vmem:[#allocation4 + $0x690] sm:$0xff]  ;;  %v8312_v16 = vld [vmem:[#allocation4 + $0x660] sm:$0xff] }
 0x806   :  { %2690 = vmatpush2.msra.mxu1 %v8297_v48  ;;  %2621 = vmatpush2.msra.mxu0 %v8300_v63  ;;  %10754 = vst [vmem:[#allocation148_spill] sm:$0xff] %v8309_v58  ;;  %10755 = vst [vmem:[#allocation149_spill] sm:$0xff] %v8312_v16  ;;  %v8315_v48 = vld [vmem:[#allocation4 + $0x678] sm:$0xff]  ;;  %v8318_v63 = vld [vmem:[#allocation4 + $0x648] sm:$0xff] }
 0x807   :  { %2691 = vmatprep.subr.mxu1 %v8303_v18  ;;  %2622 = vmatprep.subr.mxu0 %v8306_v21  ;;  %10756 = vst [vmem:[#allocation151_spill] sm:$0xff] %v8315_v48  ;;  %10757 = vst [vmem:[#allocation150_spill] sm:$0xff] %v8318_v63  ;;  %v8321_v18 = vld [vmem:[#allocation4 + $0x670] sm:$0xff]  ;;  %v8324_v21 = vld [vmem:[#allocation4 + $0x640] sm:$0xff] }
 0x808   :  { %2692 = vmatpush2.msra.mxu1 %v8309_v58  ;;  %2623 = vmatpush2.msra.mxu0 %v8312_v16  ;;  %10758 = vst [vmem:[#allocation152_spill] sm:$0xff] %v8321_v18  ;;  %10759 = vst [vmem:[#allocation153_spill] sm:$0xff] %v8324_v21  ;;  %v8327_v58 = vld [vmem:[#allocation4 + $0x658] sm:$0xff]  ;;  %v8330_v16 = vld [vmem:[#allocation4 + $0x628] sm:$0xff] }
 0x809   :  { %2693 = vmatprep.subr.mxu1 %v8315_v48  ;;  %2624 = vmatprep.subr.mxu0 %v8318_v63  ;;  %10760 = vst [vmem:[#allocation154_spill] sm:$0xff] %v8327_v58  ;;  %10761 = vst [vmem:[#allocation155_spill] sm:$0xff] %v8330_v16  ;;  %v8333_v48 = vld [vmem:[#allocation4 + $0x650] sm:$0xff]  ;;  %v8336_v63 = vld [vmem:[#allocation4 + $0x620] sm:$0xff] }
 0x80a   :  { %2694 = vmatpush2.msra.mxu1 %v8321_v18  ;;  %2625 = vmatpush2.msra.mxu0 %v8324_v21  ;;  %10762 = vst [vmem:[#allocation156_spill] sm:$0xff] %v8333_v48  ;;  %10763 = vst [vmem:[#allocation157_spill] sm:$0xff] %v8336_v63  ;;  %v8339_v18 = vld [vmem:[#allocation4 + $0x638] sm:$0xff]  ;;  %v8342_v21 = vld [vmem:[#allocation4 + $0x608] sm:$0xff] }
 0x80b   :  { %2695 = vmatprep.subr.mxu1 %v8327_v58  ;;  %2626 = vmatprep.subr.mxu0 %v8330_v16  ;;  %10764 = vst [vmem:[#allocation158_spill] sm:$0xff] %v8339_v18  ;;  %10765 = vst [vmem:[#allocation159_spill] sm:$0xff] %v8342_v21  ;;  %v8345_v58 = vld [vmem:[#allocation4 + $0x630] sm:$0xff]  ;;  %v8348_v16 = vld [vmem:[#allocation4 + $0x600] sm:$0xff] }
 0x80c   :  { %2696 = vmatpush2.msra.mxu1 %v8333_v48  ;;  %2627 = vmatpush2.msra.mxu0 %v8336_v63  ;;  %10766 = vst [vmem:[#allocation160_spill] sm:$0xff] %v8345_v58  ;;  %10767 = vst [vmem:[#allocation161_spill] sm:$0xff] %v8348_v16  ;;  %v8351_v48 = vld [vmem:[#allocation4 + $0x618] sm:$0xff]  ;;  %v4242_v63 = vld [vmem:[#allocation4 + $0x1e8] sm:$0xff] }
 0x80d   :  { %2697 = vmatprep.subr.mxu1 %v8339_v18  ;;  %2628 = vmatprep.subr.mxu0 %v8342_v21  ;;  %10768 = vst [vmem:[#allocation162_spill] sm:$0xff] %v8351_v48 }
 0x80e   :  { %2698 = vmatpush2.msra.mxu1 %v8345_v58  ;;  %2629 = vmatpush2.msra.mxu0 %v8348_v16 }
 0x80f   :  { %2699 = vmatprep.subr.mxu1 %v8351_v48  ;;  %2741 = vmatprep.subr.mxu0 %v4242_v63 }
 0x810   :  { %2700 = vmatpush2.msra.mxu1 %v8354_v29 }
 0x811   :  { %2812 = vmatprep.subr.mxu1 %v7692_v19 }
 0x84e   :  { %v2293_v21 = vpop.f32.mrf.mxu0  ;;  %v2364_v63 = vpop.f32.mrf.mxu1 }
 0x84f   :  { %v2294_v18 = vadd.f32 %v2293_v21, %v5476_v53  ;;  %v2365_v24 = vadd.f32 %v2364_v63, %v5490_v30 }
 0x850   :  { %v2295_v41 = vpop.f32.mrf.mxu0  ;;  %v2366_v40 = vpop.f32.mrf.mxu1 }
 0x851   :  { %v3238_v58 = vmul.f32 -1.442695, %v2294_v18  ;;  %v2296_v16 = vadd.f32 %v2295_v41, %v10575_v26  ;;  %v2367_v29 = vadd.f32 %v2366_v40, %v10576_v13 }
 0x853   :  { %3421 = vpow2.f32 %v3238_v58  ;;  %v3239_v50 = vmul.f32 -1.442695, %v2296_v16 }
 0x855   :  { %3423 = vpow2.f32 %v3239_v50 }
 0x860   :  { %v3422_v39 = vpop.eup %3421 }
 0x861   :  { %v2372_v48 = vadd.f32 1.0, %v3422_v39 }
 0x862   :  { %v3424_v25 = vpop.eup %3423 }
 0x863   :  { %3425 = vrcp.f32 %v2372_v48  ;;  %v2378_v28 = vadd.f32 1.0, %v3424_v25  ;;  %v10770_v25 = vsub.f32 1.0, %v7714_v27 }
 0x865   :  { %3427 = vrcp.f32 %v2378_v28  ;;  %v2389_v40 = vmul.f32 %v10770_v25, %v7704_v22 }
 0x870   :  { %v3426_v19 = vpop.eup %3425 }
 0x871   :  { %v2381_v21 = vmul.f32 %v3426_v19, %v2367_v29 }
 0x872   :  { %v3428_v58 = vpop.eup %3427 }
 0x873   :  { %v2382_v18 = vadd.f32 %v2381_v21, %v2365_v24  ;;  %v2384_v41 = vsub.f32 1.0, %v3428_v58  ;;  %v2386_v39 = vmul.f32 %v3428_v58, %v7704_v22 }
 0x875   :  { %3429 = vtanh.f32 %v2382_v18 }
 0x882   :  { %v3430_v16 = vpop.eup %3429 }
 0x883   :  { %v2385_v50 = vmul.f32 %v3430_v16, %v2384_v41 }
 0x885   :  { %v2387_v48 = vadd.f32 %v2386_v39, %v2385_v50 }
 0x887   :  { %v2388_v26 = vmul.f32 %v7714_v27, %v2387_v48 }
 0x889   :  { %v8367_v13 = vadd.f32 %v2389_v40, %v2388_v26 }
 0x88b   :  { %2630 = vmatprep.mubr.f32.mxu0 %v8367_v13  ;;  %2701 = vmatprep.mubr.f32.mxu1 %v8367_v13 }
 0x88e   :  { %v2468_v24 = vpop.f32.mrf.mxu0 }
 0x88f   :  { %v2469_v28 = vadd.f32 %v2468_v24, %v9788_v46  ;;  %v8377_v24 = vsel %vm2391_vm9, 1.0, %v9592_v55 }
 0x890   :  { %v2470_v63 = vpop.f32.mrf.mxu0  ;;  %v2539_v22 = vpop.f32.mrf.mxu1 }
 0x891   :  { %v3241_v29 = vmul.f32 -1.442695, %v2469_v28  ;;  %v2471_v19 = vadd.f32 %v2470_v63, %v9789_v51  ;;  %v2540_v39 = vadd.f32 %v2539_v22, %v9790_v23 }
 0x892   :  { %v2541_v27 = vpop.f32.mrf.mxu1 }
 0x893   :  { %3431 = vpow2.f32 %v3241_v29  ;;  %v3242_v21 = vmul.f32 -1.442695, %v2471_v19  ;;  %v2542_v16 = vadd.f32 %v2541_v27, %v5039_v1  ;;  %v4244_v27 = vld [vmem:[#allocation4 + $0x1e0] sm:$0xff] }
 0x895   :  { %3433 = vpow2.f32 %v3242_v21  ;;  %v2394_v21 = vsub.f32 1.0, %v8377_v24 }
 0x897   :  { %v2564_v22 = vmul.f32 %v2394_v21, %v7722_v31 }
 0x8a0   :  { %v3432_v18 = vpop.eup %3431 }
 0x8a1   :  { %v2547_v58 = vadd.f32 1.0, %v3432_v18 }
 0x8a2   :  { %v3434_v26 = vpop.eup %3433 }
 0x8a3   :  { %3435 = vrcp.f32 %v2547_v58  ;;  %v2553_v41 = vadd.f32 1.0, %v3434_v26 }
 0x8a5   :  { %3437 = vrcp.f32 %v2553_v41  ;;  %v4245_v41 = vld [vmem:[#allocation4 + $0x1c8] sm:$0xff] }
 0x8b0   :  { %v3436_v50 = vpop.eup %3435 }
 0x8b1   :  { %v2556_v48 = vmul.f32 %v3436_v50, %v2542_v16  ;;  %v4246_v16 = vld [vmem:[#allocation4 + $0x1c0] sm:$0xff]  ;;  %v4247_v50 = vld [vmem:[#allocation4 + $0x1f0] sm:$0xff] }
 0x8b2   :  { %v3438_v40 = vpop.eup %3437 }
 0x8b3   :  { %v2557_v25 = vadd.f32 %v2556_v48, %v2540_v39  ;;  %v2559_v28 = vsub.f32 1.0, %v3438_v40  ;;  %v2561_v63 = vmul.f32 %v3438_v40, %v7722_v31  ;;  %v4248_v39 = vld [vmem:[#allocation4 + $0x1a8] sm:$0xff]  ;;  %v4249_v31 = vld [vmem:[#allocation4 + $0x1d8] sm:$0xff]  ;;  %v4250_v48 = vld [vmem:[#allocation4 + $0x1a0] sm:$0xff] }
 0x8b4   :  { %v4252_v40 = vld [vmem:[#allocation4 + $0x188] sm:$0xff] }
 0x8b5   :  { %3439 = vtanh.f32 %v2557_v25  ;;  %v4251_v25 = vld [vmem:[#allocation4 + $0x1d0] sm:$0xff] }
 0x8c2   :  { %v3440_v29 = vpop.eup %3439 }
 0x8c3   :  { %v2560_v19 = vmul.f32 %v3440_v29, %v2559_v28  ;;  %v4253_v28 = vld [vmem:[#allocation4 + $0x1b8] sm:$0xff]  ;;  %v4254_v29 = vld [vmem:[#allocation4 + $0x180] sm:$0xff] }
 0x8c5   :  { %v2562_v18 = vadd.f32 %v2561_v63, %v2560_v19  ;;  %v4255_v63 = vld [vmem:[#allocation4 + $0x1b0] sm:$0xff]  ;;  %v4256_v19 = vld [vmem:[#allocation4 + $0x168] sm:$0xff] }
 0x8c7   :  { %v2563_v58 = vmul.f32 %v8377_v24, %v2562_v18  ;;  %v4257_v18 = vld [vmem:[#allocation4 + $0x198] sm:$0xff] }
 0x8c9   :  { %v8385_v26 = vadd.f32 %v2564_v22, %v2563_v58  ;;  %v4258_v58 = vld [vmem:[#allocation4 + $0x160] sm:$0xff]  ;;  %v4259_v22 = vld [vmem:[#allocation4 + $0x190] sm:$0xff] }
 0x8cb   :  { %2631 = vmatmul.mubr.f32.vlgmr.msra.gmra.mxu0 %v8385_v26  ;;  %2702 = vmatmul.mubr.f32.vlgmr.msra.gmra.mxu1 %v8385_v26 }
 0x8cc   :  { %2742 = vmatpush1.msra.mxu0 %v4244_v27  ;;  %2805 = vmatprep.mubr.f32.mxu0 %v8385_v26  ;;  %v4260_v27 = vld [vmem:[#allocation4 + $0x148] sm:$0xff] }
 0x8cd   :  { %2743 = vmatprep.subr.mxu0 %v4245_v41  ;;  %2876 = vmatprep.mubr.f32.mxu1 %v8385_v26  ;;  %v4261_v41 = vld [vmem:[#allocation4 + $0x178] sm:$0xff] }
 0x8ce   :  { %2744 = vmatpush1.msra.mxu0 %v4246_v16  ;;  %2813 = vmatpush1.msra.mxu1 %v4247_v50  ;;  %v4262_v16 = vld [vmem:[#allocation4 + $0x140] sm:$0xff]  ;;  %v4263_v50 = vld [vmem:[#allocation4 + $0x170] sm:$0xff] }
 0x8cf   :  { %2745 = vmatprep.subr.mxu0 %v4248_v39  ;;  %2814 = vmatprep.subr.mxu1 %v4249_v31  ;;  %v4264_v39 = vld [vmem:[#allocation4 + $0x128] sm:$0xff]  ;;  %v4265_v31 = vld [vmem:[#allocation4 + $0x158] sm:$0xff] }
 0x8d0   :  { %2746 = vmatpush1.msra.mxu0 %v4250_v48  ;;  %2815 = vmatpush1.msra.mxu1 %v4251_v25  ;;  %v4266_v48 = vld [vmem:[#allocation4 + $0x120] sm:$0xff]  ;;  %v4267_v25 = vld [vmem:[#allocation4 + $0x150] sm:$0xff] }
 0x8d1   :  { %2747 = vmatprep.subr.mxu0 %v4252_v40  ;;  %2816 = vmatprep.subr.mxu1 %v4253_v28  ;;  %v4268_v40 = vld [vmem:[#allocation4 + $0x108] sm:$0xff]  ;;  %v4269_v28 = vld [vmem:[#allocation4 + $0x138] sm:$0xff] }
 0x8d2   :  { %2748 = vmatpush1.msra.mxu0 %v4254_v29  ;;  %2817 = vmatpush1.msra.mxu1 %v4255_v63  ;;  %v4270_v29 = vld [vmem:[#allocation4 + $0x100] sm:$0xff]  ;;  %v4271_v63 = vld [vmem:[#allocation4 + $0x130] sm:$0xff] }
 0x8d3   :  { %2749 = vmatprep.subr.mxu0 %v4256_v19  ;;  %2818 = vmatprep.subr.mxu1 %v4257_v18  ;;  %v4272_v19 = vld [vmem:[#allocation4 + $0xe8] sm:$0xff]  ;;  %v4273_v18 = vld [vmem:[#allocation4 + $0x118] sm:$0xff] }
 0x8d4   :  { %2750 = vmatpush1.msra.mxu0 %v4258_v58  ;;  %2819 = vmatpush1.msra.mxu1 %v4259_v22  ;;  %v4274_v58 = vld [vmem:[#allocation4 + $0xe0] sm:$0xff]  ;;  %v4275_v22 = vld [vmem:[#allocation4 + $0x110] sm:$0xff] }
 0x8d5   :  { %2751 = vmatprep.subr.mxu0 %v4260_v27  ;;  %2820 = vmatprep.subr.mxu1 %v4261_v41  ;;  %v4276_v27 = vld [vmem:[#allocation4 + $0xc8] sm:$0xff]  ;;  %v4277_v41 = vld [vmem:[#allocation4 + $0xf8] sm:$0xff] }
 0x8d6   :  { %2752 = vmatpush1.msra.mxu0 %v4262_v16  ;;  %2821 = vmatpush1.msra.mxu1 %v4263_v50  ;;  %v4278_v16 = vld [vmem:[#allocation4 + $0xc0] sm:$0xff]  ;;  %v4279_v50 = vld [vmem:[#allocation4 + $0xf0] sm:$0xff] }
 0x8d7   :  { %2753 = vmatprep.subr.mxu0 %v4264_v39  ;;  %2822 = vmatprep.subr.mxu1 %v4265_v31  ;;  %v4280_v39 = vld [vmem:[#allocation4 + $0xa8] sm:$0xff]  ;;  %v4281_v31 = vld [vmem:[#allocation4 + $0xd8] sm:$0xff] }
 0x8d8   :  { %2754 = vmatpush1.msra.mxu0 %v4266_v48  ;;  %2823 = vmatpush1.msra.mxu1 %v4267_v25  ;;  %v4282_v48 = vld [vmem:[#allocation4 + $0xa0] sm:$0xff]  ;;  %v4283_v25 = vld [vmem:[#allocation4 + $0xd0] sm:$0xff] }
 0x8d9   :  { %2755 = vmatprep.subr.mxu0 %v4268_v40  ;;  %2824 = vmatprep.subr.mxu1 %v4269_v28  ;;  %v4284_v40 = vld [vmem:[#allocation4 + $0x88] sm:$0xff]  ;;  %v4285_v28 = vld [vmem:[#allocation4 + $0xb8] sm:$0xff] }
 0x8da   :  { %2756 = vmatpush1.msra.mxu0 %v4270_v29  ;;  %2825 = vmatpush1.msra.mxu1 %v4271_v63  ;;  %v4286_v29 = vld [vmem:[#allocation4 + $0x80] sm:$0xff]  ;;  %v4287_v63 = vld [vmem:[#allocation4 + $0xb0] sm:$0xff] }
 0x8db   :  { %2757 = vmatprep.subr.mxu0 %v4272_v19  ;;  %2826 = vmatprep.subr.mxu1 %v4273_v18  ;;  %v4288_v19 = vld [vmem:[#allocation4 + $0x68] sm:$0xff]  ;;  %v4289_v18 = vld [vmem:[#allocation4 + $0x98] sm:$0xff] }
 0x8dc   :  { %2758 = vmatpush1.msra.mxu0 %v4274_v58  ;;  %2827 = vmatpush1.msra.mxu1 %v4275_v22  ;;  %v4290_v58 = vld [vmem:[#allocation4 + $0x60] sm:$0xff]  ;;  %v4291_v22 = vld [vmem:[#allocation4 + $0x90] sm:$0xff] }
 0x8dd   :  { %2759 = vmatprep.subr.mxu0 %v4276_v27  ;;  %2828 = vmatprep.subr.mxu1 %v4277_v41  ;;  %v4292_v27 = vld [vmem:[#allocation4 + $0x48] sm:$0xff]  ;;  %v4293_v41 = vld [vmem:[#allocation4 + $0x78] sm:$0xff] }
 0x8de   :  { %2760 = vmatpush1.msra.mxu0 %v4278_v16  ;;  %2829 = vmatpush1.msra.mxu1 %v4279_v50  ;;  %v4294_v16 = vld [vmem:[#allocation4 + $0x40] sm:$0xff]  ;;  %v4295_v50 = vld [vmem:[#allocation4 + $0x70] sm:$0xff] }
 0x8df   :  { %2761 = vmatprep.subr.mxu0 %v4280_v39  ;;  %2830 = vmatprep.subr.mxu1 %v4281_v31  ;;  %v4296_v39 = vld [vmem:[#allocation4 + $0x28] sm:$0xff]  ;;  %v4297_v31 = vld [vmem:[#allocation4 + $0x58] sm:$0xff] }
 0x8e0   :  { %2762 = vmatpush1.msra.mxu0 %v4282_v48  ;;  %2831 = vmatpush1.msra.mxu1 %v4283_v25  ;;  %v4298_v48 = vld [vmem:[#allocation4 + $0x20] sm:$0xff]  ;;  %v4299_v25 = vld [vmem:[#allocation4 + $0x50] sm:$0xff] }
 0x8e1   :  { %2763 = vmatprep.subr.mxu0 %v4284_v40  ;;  %2832 = vmatprep.subr.mxu1 %v4285_v28  ;;  %v4300_v40 = vld [vmem:[#allocation4 + $0x8] sm:$0xff]  ;;  %v4301_v28 = vld [vmem:[#allocation4] sm:$0xff] }
 0x8e2   :  { %2764 = vmatpush1.msra.mxu0 %v4286_v29  ;;  %2833 = vmatpush1.msra.mxu1 %v4287_v63  ;;  %v4302_v29 = vld [vmem:[#allocation4 + $0x3e8] sm:$0xff]  ;;  %v4303_v63 = vld [vmem:[#allocation4 + $0x3e0] sm:$0xff] }
 0x8e3   :  { %2765 = vmatprep.subr.mxu0 %v4288_v19  ;;  %2834 = vmatprep.subr.mxu1 %v4289_v18  ;;  %v4304_v19 = vld [vmem:[#allocation4 + $0x3c8] sm:$0xff]  ;;  %v4305_v18 = vld [vmem:[#allocation4 + $0x3c0] sm:$0xff] }
 0x8e4   :  { %2766 = vmatpush1.msra.mxu0 %v4290_v58  ;;  %2835 = vmatpush1.msra.mxu1 %v4291_v22  ;;  %v10795_v58 = vld [vmem:[#allocation39_spill] sm:$0xff]  ;;  %v10796_v22 = vld [vmem:[#allocation42_spill] sm:$0xff] }
 0x8e5   :  { %2767 = vmatprep.subr.mxu0 %v4292_v27  ;;  %2836 = vmatprep.subr.mxu1 %v4293_v41  ;;  %v10797_v27 = vld [vmem:[#allocation41_spill] sm:$0xff]  ;;  %v10798_v41 = vld [vmem:[#allocation44_spill] sm:$0xff] }
 0x8e6   :  { %2768 = vmatpush1.msra.mxu0 %v4294_v16  ;;  %2837 = vmatpush1.msra.mxu1 %v4295_v50  ;;  %v10799_v16 = vld [vmem:[#allocation43_spill] sm:$0xff]  ;;  %v10800_v50 = vld [vmem:[#allocation46_spill] sm:$0xff] }
 0x8e7   :  { %2769 = vmatprep.subr.mxu0 %v4296_v39  ;;  %2838 = vmatprep.subr.mxu1 %v4297_v31  ;;  %v10801_v39 = vld [vmem:[#allocation45_spill] sm:$0xff]  ;;  %v10802_v31 = vld [vmem:[#allocation48_spill] sm:$0xff] }
 0x8e8   :  { %2770 = vmatpush1.msra.mxu0 %v4298_v48  ;;  %2839 = vmatpush1.msra.mxu1 %v4299_v25  ;;  %v10803_v48 = vld [vmem:[#allocation47_spill] sm:$0xff]  ;;  %v10804_v25 = vld [vmem:[#allocation50_spill] sm:$0xff] }
 0x8e9   :  { %2771 = vmatprep.subr.mxu0 %v4300_v40  ;;  %2840 = vmatprep.subr.mxu1 %v7785_v11  ;;  %v4306_v11 = vld [vmem:[#allocation4 + $0x3a8] sm:$0xff]  ;;  %v10805_v40 = vld [vmem:[#allocation49_spill] sm:$0xff] }
 0x8ea   :  { %2772 = vmatpush1.msra.mxu0 %v4301_v28  ;;  %2841 = vmatpush1.msra.mxu1 %v7789_v7  ;;  %v4307_v7 = vld [vmem:[#allocation4 + $0x3a0] sm:$0xff]  ;;  %v10806_v28 = vld [vmem:[#allocation52_spill] sm:$0xff] }
 0x8eb   :  { %2773 = vmatprep.subr.mxu0 %v4302_v29  ;;  %2842 = vmatprep.subr.mxu1 %v7793_v34  ;;  %v4308_v34 = vld [vmem:[#allocation4 + $0x388] sm:$0xff] }
 0x8ec   :  { %2774 = vmatpush2.msra.mxu0 %v4303_v63  ;;  %2843 = vmatpush1.msra.mxu1 %v7797_v56  ;;  %v4309_v56 = vld [vmem:[#allocation4 + $0x380] sm:$0xff]  ;;  %v10807_v29 = vld [vmem:[#allocation51_spill] sm:$0xff] }
 0x8ed   :  { %2775 = vmatprep.subr.mxu0 %v4304_v19  ;;  %2844 = vmatprep.subr.mxu1 %v7801_v36  ;;  %v4310_v36 = vld [vmem:[#allocation4 + $0x368] sm:$0xff]  ;;  %v10809_v19 = vld [vmem:[#allocation53_spill] sm:$0xff] }
 0x8ee   :  { %2776 = vmatpush2.msra.mxu0 %v4305_v18  ;;  %2845 = vmatpush2.msra.mxu1 %v7805_v37  ;;  %v4311_v37 = vld [vmem:[#allocation4 + $0x360] sm:$0xff]  ;;  %v10810_v18 = vld [vmem:[#allocation56_spill] sm:$0xff] }
 0x8ef   :  { %2777 = vmatprep.subr.mxu0 %v4306_v11  ;;  %2846 = vmatprep.subr.mxu1 %v7809_v32  ;;  %v4312_v32 = vld [vmem:[#allocation4 + $0x348] sm:$0xff] }
 0x8f0   :  { %2778 = vmatpush2.msra.mxu0 %v4307_v7  ;;  %2847 = vmatpush2.msra.mxu1 %v7813_v33  ;;  %v4313_v33 = vld [vmem:[#allocation4 + $0x340] sm:$0xff]  ;;  %v10811_v11 = vld [vmem:[#allocation55_spill] sm:$0xff] }
 0x8f1   :  { %2779 = vmatprep.subr.mxu0 %v4308_v34  ;;  %2848 = vmatprep.subr.mxu1 %v7817_v47  ;;  %v2735_v47 = vld [vmem:[%s8696_s1 + $0xf] sm:$0x1]  ;;  %v10808_v63 = vld [vmem:[#allocation54_spill] sm:$0xff]  ;;  %v10813_v34 = vld [vmem:[#allocation57_spill] sm:$0xff] }
 0x8f2   :  { %2780 = vmatpush2.msra.mxu0 %v4309_v56  ;;  %2849 = vmatpush2.msra.mxu1 %v7821_v44  ;;  %v10771_v44 = vld [vmem:[#allocation21_spill] sm:$0xff]  ;;  %v10812_v7 = vld [vmem:[#allocation58_spill] sm:$0xff]  ;;  %v10814_v56 = vld [vmem:[#allocation60_spill] sm:$0xff] }
 0x8f3   :  { %2781 = vmatprep.subr.mxu0 %v4310_v36  ;;  %2850 = vmatprep.subr.mxu1 %v7825_v62  ;;  %v10772_v62 = vld [vmem:[#allocation15_spill] sm:$0xff] }
 0x8f4   :  { %2782 = vmatpush2.msra.mxu0 %v4311_v37  ;;  %2851 = vmatpush2.msra.mxu1 %v7829_v35  ;;  %v10773_v35 = vld [vmem:[#allocation23_spill] sm:$0xff]  ;;  %v10816_v37 = vld [vmem:[#allocation62_spill] sm:$0xff] }
 0x8f5   :  { %2783 = vmatprep.subr.mxu0 %v4312_v32  ;;  %2852 = vmatprep.subr.mxu1 %v7833_v3  ;;  %v10774_v3 = vld [vmem:[#allocation16_spill] sm:$0xff]  ;;  %v10815_v36 = vld [vmem:[#allocation59_spill] sm:$0xff]  ;;  %v10817_v32 = vld [vmem:[#allocation61_spill] sm:$0xff] }
 0x8f6   :  { %2784 = vmatpush2.msra.mxu0 %v4313_v33  ;;  %2853 = vmatpush2.msra.mxu1 %v7837_v52  ;;  %v10775_v52 = vld [vmem:[#allocation24_spill] sm:$0xff] }
 0x8f7   :  { %2785 = vmatprep.subr.mxu0 %v7840_v43  ;;  %2854 = vmatprep.subr.mxu1 %v7843_v42  ;;  %v2738_v43 = vrot.slane %v2735_v47, 7  ;;  %v10776_v42 = vld [vmem:[#allocation25_spill] sm:$0xff]  ;;  %v10818_v33 = vld [vmem:[#allocation64_spill] sm:$0xff]  ;;  %v10819_v47 = vld [vmem:[#allocation63_spill] sm:$0xff] }
 0x8f8   :  { %2786 = vmatpush2.msra.mxu0 %v7846_v54  ;;  %2855 = vmatpush2.msra.mxu1 %v7849_v49  ;;  %v10777_v54 = vld [vmem:[#allocation26_spill] sm:$0xff] }
 0x8f9   :  { %2787 = vmatprep.subr.mxu0 %v7852_v60  ;;  %2856 = vmatprep.subr.mxu1 %v7855_v0  ;;  %v2734_v49 = vld [vmem:[%s8696_s1 + $0x7] sm:$0x1]  ;;  %v10778_v60 = vld [vmem:[#allocation17_spill] sm:$0xff] }
 0x8fa   :  { %2788 = vmatpush2.msra.mxu0 %v7858_v61  ;;  %2857 = vmatpush2.msra.mxu1 %v7861_v59  ;;  %v10779_v0 = vld [vmem:[#allocation18_spill] sm:$0xff]  ;;  %v10780_v61 = vld [vmem:[#allocation27_spill] sm:$0xff]  ;;  %v10781_v59 = vld [vmem:[#allocation20_spill] sm:$0xff] }
 0x8fb   :  { %2789 = vmatprep.subr.mxu0 %v7864_v15  ;;  %2858 = vmatprep.subr.mxu1 %v7867_v38  ;;  %v10782_v15 = vld [vmem:[#allocation28_spill] sm:$0xff]  ;;  %v10783_v38 = vld [vmem:[#allocation22_spill] sm:$0xff] }
 0x8fc   :  { %2790 = vmatpush2.msra.mxu0 %v7870_v2  ;;  %2859 = vmatpush2.msra.mxu1 %v7873_v9  ;;  %v2739_v2 = vsel %vm64_vm0, %v2738_v43, %v2734_v49  ;;  %v10784_v9 = vld [vmem:[#allocation29_spill] sm:$0xff]  ;;  %v10828_v49 = vld [vmem:[#allocation74_spill] sm:$0xff] }
 0x8fd   :  { %2791 = vmatprep.subr.mxu0 %v7876_v4  ;;  %2860 = vmatprep.subr.mxu1 %v7879_v57  ;;  %v10785_v4 = vld [vmem:[#allocation30_spill] sm:$0xff]  ;;  %v10786_v57 = vld [vmem:[#allocation31_spill] sm:$0xff]  ;;  %v10825_v43 = vld [vmem:[#allocation69_spill] sm:$0xff] }
 0x8fe   :  { %2792 = vmatpush2.msra.mxu0 %v7882_v14  ;;  %2861 = vmatpush2.msra.mxu1 %v7885_v6  ;;  %v10787_v14 = vld [vmem:[#allocation32_spill] sm:$0xff]  ;;  %v10788_v6 = vld [vmem:[#allocation33_spill] sm:$0xff] }
 0x8ff   :  { %2793 = vmatprep.subr.mxu0 %v7888_v8  ;;  %2862 = vmatprep.subr.mxu1 %v7891_v10  ;;  %v10789_v8 = vld [vmem:[#allocation34_spill] sm:$0xff]  ;;  %v10790_v10 = vld [vmem:[#allocation35_spill] sm:$0xff] }
 0x900   :  { %2794 = vmatpush2.msra.mxu0 %v7894_v45  ;;  %2863 = vmatpush2.msra.mxu1 %v7897_v12  ;;  %v10791_v45 = vld [vmem:[#allocation36_spill] sm:$0xff]  ;;  %v10792_v12 = vld [vmem:[#allocation38_spill] sm:$0xff] }
 0x901   :  { %2795 = vmatprep.subr.mxu0 %v7900_v17  ;;  %2864 = vmatprep.subr.mxu1 %v7906_v20  ;;  %v10793_v17 = vld [vmem:[#allocation37_spill] sm:$0xff]  ;;  %v10794_v20 = vld [vmem:[#allocation40_spill] sm:$0xff] }
 0x902   :  { %2796 = vmatpush2.msra.mxu0 %v10771_v44  ;;  %2865 = vmatpush2.msra.mxu1 %v10772_v62  ;;  %v10820_v44 = vld [vmem:[#allocation66_spill] sm:$0xff]  ;;  %v10821_v62 = vld [vmem:[#allocation65_spill] sm:$0xff] }
 0x903   :  { %2797 = vmatprep.subr.mxu0 %v10773_v35  ;;  %2866 = vmatprep.subr.mxu1 %v10774_v3  ;;  %v10822_v35 = vld [vmem:[#allocation68_spill] sm:$0xff]  ;;  %v10823_v3 = vld [vmem:[#allocation67_spill] sm:$0xff] }
 0x904   :  { %2798 = vmatpush2.msra.mxu0 %v10775_v52  ;;  %2867 = vmatpush2.msra.mxu1 %v10776_v42  ;;  %v10824_v52 = vld [vmem:[#allocation70_spill] sm:$0xff]  ;;  %v10826_v42 = vld [vmem:[#allocation72_spill] sm:$0xff] }
 0x905   :  { %2799 = vmatprep.subr.mxu0 %v10777_v54  ;;  %2868 = vmatprep.subr.mxu1 %v10778_v60  ;;  %v10827_v54 = vld [vmem:[#allocation71_spill] sm:$0xff]  ;;  %v10829_v60 = vld [vmem:[#allocation73_spill] sm:$0xff] }
 0x906   :  { %2800 = vmatpush2.msra.mxu0 %v10779_v0  ;;  %2869 = vmatpush2.msra.mxu1 %v10780_v61  ;;  %v10830_v0 = vld [vmem:[#allocation76_spill] sm:$0xff]  ;;  %v10831_v61 = vld [vmem:[#allocation75_spill] sm:$0xff] }
 0x907   :  { %2801 = vmatprep.subr.mxu0 %v10781_v59  ;;  %2870 = vmatprep.subr.mxu1 %v10782_v15  ;;  %v10832_v59 = vld [vmem:[#allocation78_spill] sm:$0xff]  ;;  %v10833_v15 = vld [vmem:[#allocation77_spill] sm:$0xff] }
 0x908   :  { %2802 = vmatpush2.msra.mxu0 %v10783_v38  ;;  %2871 = vmatpush2.msra.mxu1 %v10784_v9  ;;  %v10834_v38 = vld [vmem:[#allocation80_spill] sm:$0xff]  ;;  %v10836_v9 = vld [vmem:[#allocation82_spill] sm:$0xff] }
 0x909   :  { %2803 = vmatprep.subr.mxu0 %v10785_v4  ;;  %2872 = vmatprep.subr.mxu1 %v10786_v57  ;;  %v10837_v4 = vld [vmem:[#allocation81_spill] sm:$0xff]  ;;  %v10838_v57 = vld [vmem:[#allocation84_spill] sm:$0xff] }
 0x90a   :  { %2804 = vmatpush2.msra.mxu0 %v10787_v14  ;;  %2873 = vmatpush2.msra.mxu1 %v10788_v6  ;;  %v10839_v14 = vld [vmem:[#allocation83_spill] sm:$0xff]  ;;  %v10840_v6 = vld [vmem:[#allocation86_spill] sm:$0xff] }
 0x90b   :  { %2806 = vmatmul.mubr.f32.vlgmr.msra.gmra.mxu0 %v2739_v2  ;;  %2874 = vmatprep.subr.mxu1 %v10789_v8  ;;  %v10841_v8 = vld [vmem:[#allocation85_spill] sm:$0xff] }
 0x90c   :  { %2875 = vmatpush2.msra.mxu1 %v10790_v10  ;;  %2905 = vmatprep.subr.mxu0 %v10791_v45  ;;  %v10842_v10 = vld [vmem:[#allocation88_spill] sm:$0xff]  ;;  %v10843_v45 = vld [vmem:[#allocation87_spill] sm:$0xff] }
 0x90d   :  { %2877 = vmatmul.mubr.f32.vlgmr.msra.gmra.mxu1 %v2739_v2  ;;  %2976 = vmatprep.subr.mxu1 %v10792_v12  ;;  %v10835_v2 = vld [vmem:[#allocation79_spill] sm:$0xff]  ;;  %v10844_v12 = vld [vmem:[#allocation90_spill] sm:$0xff] }
 0x90e   :  { %2906 = vmatpush1.msra.mxu0 %v10793_v17  ;;  %2977 = vmatpush1.msra.mxu1 %v10794_v20  ;;  %v10845_v17 = vld [vmem:[#allocation89_spill] sm:$0xff]  ;;  %v10846_v20 = vld [vmem:[#allocation92_spill] sm:$0xff] }
 0x90f   :  { %2907 = vmatprep.subr.mxu0 %v10795_v58  ;;  %2978 = vmatprep.subr.mxu1 %v10796_v22  ;;  %v10847_v58 = vld [vmem:[#allocation91_spill] sm:$0xff]  ;;  %v10848_v22 = vld [vmem:[#allocation94_spill] sm:$0xff] }
 0x910   :  { %2908 = vmatpush1.msra.mxu0 %v10797_v27  ;;  %2979 = vmatpush1.msra.mxu1 %v10798_v41  ;;  %v10849_v27 = vld [vmem:[#allocation93_spill] sm:$0xff]  ;;  %v10850_v41 = vld [vmem:[#allocation96_spill] sm:$0xff] }
 0x911   :  { %2909 = vmatprep.subr.mxu0 %v10799_v16  ;;  %2980 = vmatprep.subr.mxu1 %v10800_v50  ;;  %v10851_v16 = vld [vmem:[#allocation95_spill] sm:$0xff]  ;;  %v10852_v50 = vld [vmem:[#allocation98_spill] sm:$0xff] }
 0x912   :  { %2910 = vmatpush1.msra.mxu0 %v10801_v39  ;;  %2981 = vmatpush1.msra.mxu1 %v10802_v31  ;;  %v10853_v39 = vld [vmem:[#allocation97_spill] sm:$0xff]  ;;  %v10854_v31 = vld [vmem:[#allocation100_spill] sm:$0xff] }
 0x913   :  { %2911 = vmatprep.subr.mxu0 %v10803_v48  ;;  %2982 = vmatprep.subr.mxu1 %v10804_v25  ;;  %v10855_v48 = vld [vmem:[#allocation99_spill] sm:$0xff]  ;;  %v10856_v25 = vld [vmem:[#allocation102_spill] sm:$0xff] }
 0x914   :  { %2912 = vmatpush1.msra.mxu0 %v10805_v40  ;;  %2983 = vmatpush1.msra.mxu1 %v10806_v28  ;;  %v10857_v40 = vld [vmem:[#allocation101_spill] sm:$0xff]  ;;  %v10858_v28 = vld [vmem:[#allocation104_spill] sm:$0xff] }
 0x915   :  { %2913 = vmatprep.subr.mxu0 %v10807_v29  ;;  %2984 = vmatprep.subr.mxu1 %v10808_v63  ;;  %v10859_v29 = vld [vmem:[#allocation103_spill] sm:$0xff]  ;;  %v10860_v63 = vld [vmem:[#allocation106_spill] sm:$0xff] }
 0x916   :  { %2914 = vmatpush1.msra.mxu0 %v10809_v19  ;;  %2985 = vmatpush1.msra.mxu1 %v10810_v18  ;;  %v10861_v19 = vld [vmem:[#allocation105_spill] sm:$0xff]  ;;  %v10862_v18 = vld [vmem:[#allocation108_spill] sm:$0xff] }
 0x917   :  { %2915 = vmatprep.subr.mxu0 %v10811_v11  ;;  %2986 = vmatprep.subr.mxu1 %v10812_v7  ;;  %v10863_v11 = vld [vmem:[#allocation107_spill] sm:$0xff]  ;;  %v10864_v7 = vld [vmem:[#allocation110_spill] sm:$0xff] }
 0x918   :  { %2916 = vmatpush1.msra.mxu0 %v10813_v34  ;;  %2987 = vmatpush1.msra.mxu1 %v10814_v56  ;;  %v10865_v34 = vld [vmem:[#allocation109_spill] sm:$0xff]  ;;  %v10866_v56 = vld [vmem:[#allocation112_spill] sm:$0xff] }
 0x919   :  { %2917 = vmatprep.subr.mxu0 %v10815_v36  ;;  %2988 = vmatprep.subr.mxu1 %v10816_v37  ;;  %v10867_v36 = vld [vmem:[#allocation111_spill] sm:$0xff]  ;;  %v10868_v37 = vld [vmem:[#allocation114_spill] sm:$0xff] }
 0x91a   :  { %2918 = vmatpush1.msra.mxu0 %v10817_v32  ;;  %2989 = vmatpush1.msra.mxu1 %v10818_v33  ;;  %v10869_v32 = vld [vmem:[#allocation113_spill] sm:$0xff]  ;;  %v10870_v33 = vld [vmem:[#allocation116_spill] sm:$0xff] }
 0x91b   :  { %2919 = vmatprep.subr.mxu0 %v10819_v47  ;;  %2990 = vmatprep.subr.mxu1 %v10820_v44  ;;  %v10871_v47 = vld [vmem:[#allocation115_spill] sm:$0xff]  ;;  %v10872_v44 = vld [vmem:[#allocation118_spill] sm:$0xff] }
 0x91c   :  { %2920 = vmatpush1.msra.mxu0 %v10821_v62  ;;  %2991 = vmatpush1.msra.mxu1 %v10822_v35  ;;  %v10873_v62 = vld [vmem:[#allocation117_spill] sm:$0xff]  ;;  %v10874_v35 = vld [vmem:[#allocation120_spill] sm:$0xff] }
 0x91d   :  { %2921 = vmatprep.subr.mxu0 %v10823_v3  ;;  %2992 = vmatprep.subr.mxu1 %v10824_v52  ;;  %v10875_v3 = vld [vmem:[#allocation119_spill] sm:$0xff]  ;;  %v10876_v52 = vld [vmem:[#allocation122_spill] sm:$0xff] }
 0x91e   :  { %2922 = vmatpush1.msra.mxu0 %v10825_v43  ;;  %2993 = vmatpush1.msra.mxu1 %v10826_v42  ;;  %v10877_v43 = vld [vmem:[#allocation121_spill] sm:$0xff]  ;;  %v10878_v42 = vld [vmem:[#allocation124_spill] sm:$0xff] }
 0x91f   :  { %2923 = vmatprep.subr.mxu0 %v10827_v54  ;;  %2994 = vmatprep.subr.mxu1 %v10828_v49  ;;  %v10879_v54 = vld [vmem:[#allocation123_spill] sm:$0xff]  ;;  %v10880_v49 = vld [vmem:[#allocation126_spill] sm:$0xff] }
 0x920   :  { %2924 = vmatpush1.msra.mxu0 %v10829_v60  ;;  %2995 = vmatpush1.msra.mxu1 %v10830_v0  ;;  %v10881_v60 = vld [vmem:[#allocation125_spill] sm:$0xff]  ;;  %v10882_v0 = vld [vmem:[#allocation128_spill] sm:$0xff] }
 0x921   :  { %2925 = vmatprep.subr.mxu0 %v10831_v61  ;;  %2996 = vmatprep.subr.mxu1 %v10832_v59  ;;  %v10883_v61 = vld [vmem:[#allocation127_spill] sm:$0xff]  ;;  %v10884_v59 = vld [vmem:[#allocation130_spill] sm:$0xff] }
 0x922   :  { %2926 = vmatpush1.msra.mxu0 %v10833_v15  ;;  %2997 = vmatpush1.msra.mxu1 %v10834_v38  ;;  %v10885_v15 = vld [vmem:[#allocation129_spill] sm:$0xff]  ;;  %v10886_v38 = vld [vmem:[#allocation132_spill] sm:$0xff] }
 0x923   :  { %2927 = vmatprep.subr.mxu0 %v10835_v2  ;;  %2998 = vmatprep.subr.mxu1 %v10836_v9  ;;  %v10887_v2 = vld [vmem:[#allocation131_spill] sm:$0xff]  ;;  %v10888_v9 = vld [vmem:[#allocation134_spill] sm:$0xff] }
 0x924   :  { %2928 = vmatpush1.msra.mxu0 %v10837_v4  ;;  %2999 = vmatpush1.msra.mxu1 %v10838_v57  ;;  %v10889_v4 = vld [vmem:[#allocation133_spill] sm:$0xff]  ;;  %v10890_v57 = vld [vmem:[#allocation136_spill] sm:$0xff] }
 0x925   :  { %2929 = vmatprep.subr.mxu0 %v10839_v14  ;;  %3000 = vmatprep.subr.mxu1 %v10840_v6  ;;  %v10891_v14 = vld [vmem:[#allocation135_spill] sm:$0xff]  ;;  %v10892_v6 = vld [vmem:[#allocation138_spill] sm:$0xff] }
 0x926   :  { %2930 = vmatpush1.msra.mxu0 %v10841_v8  ;;  %3001 = vmatpush1.msra.mxu1 %v10842_v10  ;;  %v10893_v8 = vld [vmem:[#allocation137_spill] sm:$0xff]  ;;  %v10894_v10 = vld [vmem:[#allocation140_spill] sm:$0xff] }
 0x927   :  { %2931 = vmatprep.subr.mxu0 %v10843_v45  ;;  %3002 = vmatprep.subr.mxu1 %v10844_v12  ;;  %v10895_v45 = vld [vmem:[#allocation139_spill] sm:$0xff]  ;;  %v10896_v12 = vld [vmem:[#allocation142_spill] sm:$0xff] }
 0x928   :  { %2932 = vmatpush1.msra.mxu0 %v10845_v17  ;;  %3003 = vmatpush1.msra.mxu1 %v10846_v20  ;;  %v10897_v17 = vld [vmem:[#allocation141_spill] sm:$0xff]  ;;  %v10898_v20 = vld [vmem:[#allocation144_spill] sm:$0xff] }
 0x929   :  { %2933 = vmatprep.subr.mxu0 %v10847_v58  ;;  %3004 = vmatprep.subr.mxu1 %v10848_v22  ;;  %v10899_v58 = vld [vmem:[#allocation143_spill] sm:$0xff]  ;;  %v10900_v22 = vld [vmem:[#allocation146_spill] sm:$0xff] }
 0x92a   :  { %2934 = vmatpush1.msra.mxu0 %v10849_v27  ;;  %3005 = vmatpush1.msra.mxu1 %v10850_v41  ;;  %v10901_v27 = vld [vmem:[#allocation145_spill] sm:$0xff]  ;;  %v10902_v41 = vld [vmem:[#allocation148_spill] sm:$0xff] }
 0x92b   :  { %2935 = vmatprep.subr.mxu0 %v10851_v16  ;;  %3006 = vmatprep.subr.mxu1 %v10852_v50  ;;  %v10903_v16 = vld [vmem:[#allocation147_spill] sm:$0xff] }
 0x92c   :  { %2936 = vmatpush1.msra.mxu0 %v10853_v39  ;;  %3007 = vmatpush1.msra.mxu1 %v10854_v31  ;;  %v10904_v50 = vld [vmem:[#allocation151_spill] sm:$0xff]  ;;  %v10905_v39 = vld [vmem:[#allocation149_spill] sm:$0xff]  ;;  %v10906_v31 = vld [vmem:[#allocation152_spill] sm:$0xff] }
 0x92d   :  { %2937 = vmatprep.subr.mxu0 %v10855_v48  ;;  %3008 = vmatprep.subr.mxu1 %v10856_v25  ;;  %v10907_v48 = vld [vmem:[#allocation150_spill] sm:$0xff] }
 0x92e   :  { %2938 = vmatpush2.msra.mxu0 %v10857_v40  ;;  %3009 = vmatpush2.msra.mxu1 %v10858_v28  ;;  %v10908_v25 = vld [vmem:[#allocation154_spill] sm:$0xff]  ;;  %v10909_v40 = vld [vmem:[#allocation153_spill] sm:$0xff]  ;;  %v10910_v28 = vld [vmem:[#allocation156_spill] sm:$0xff] }
 0x92f   :  { %2939 = vmatprep.subr.mxu0 %v10859_v29  ;;  %3010 = vmatprep.subr.mxu1 %v10860_v63  ;;  %v10911_v29 = vld [vmem:[#allocation155_spill] sm:$0xff]  ;;  %v10912_v63 = vld [vmem:[#allocation158_spill] sm:$0xff] }
 0x930   :  { %2940 = vmatpush2.msra.mxu0 %v10861_v19  ;;  %3011 = vmatpush2.msra.mxu1 %v10862_v18  ;;  %v10913_v19 = vld [vmem:[#allocation157_spill] sm:$0xff]  ;;  %v10914_v18 = vld [vmem:[#allocation160_spill] sm:$0xff] }
 0x931   :  { %2941 = vmatprep.subr.mxu0 %v10863_v11  ;;  %3012 = vmatprep.subr.mxu1 %v10864_v7  ;;  %v10915_v11 = vld [vmem:[#allocation159_spill] sm:$0xff]  ;;  %v10916_v7 = vld [vmem:[#allocation162_spill] sm:$0xff] }
 0x932   :  { %2942 = vmatpush2.msra.mxu0 %v10865_v34  ;;  %3013 = vmatpush2.msra.mxu1 %v10866_v56  ;;  %v10917_v34 = vld [vmem:[#allocation161_spill] sm:$0xff]  ;;  %v10918_v56 = vld [vmem:[#allocation163_spill] sm:$0xff] }
 0x933   :  { %2943 = vmatprep.subr.mxu0 %v10867_v36  ;;  %3014 = vmatprep.subr.mxu1 %v10868_v37 }
 0x934   :  { %2944 = vmatpush2.msra.mxu0 %v10869_v32  ;;  %3015 = vmatpush2.msra.mxu1 %v10870_v33 }
 0x935   :  { %2945 = vmatprep.subr.mxu0 %v10871_v47  ;;  %3016 = vmatprep.subr.mxu1 %v10872_v44  ;;  %v10919_v47 = vld [vmem:[#allocation19_spill] sm:$0xff] }
 0x936   :  { %2946 = vmatpush2.msra.mxu0 %v10873_v62  ;;  %3017 = vmatpush2.msra.mxu1 %v10874_v35 }
 0x937   :  { %2947 = vmatprep.subr.mxu0 %v10875_v3  ;;  %3018 = vmatprep.subr.mxu1 %v10876_v52 }
 0x938   :  { %2948 = vmatpush2.msra.mxu0 %v10877_v43  ;;  %3019 = vmatpush2.msra.mxu1 %v10878_v42 }
 0x939   :  { %2949 = vmatprep.subr.mxu0 %v10879_v54  ;;  %3020 = vmatprep.subr.mxu1 %v10880_v49  ;;  %v10920_v49 = vld [vmem:[#allocation14_spill] sm:$0xff] }
 0x93a   :  { %2950 = vmatpush2.msra.mxu0 %v10881_v60  ;;  %3021 = vmatpush2.msra.mxu1 %v10882_v0 }
 0x93b   :  { %2951 = vmatprep.subr.mxu0 %v10883_v61  ;;  %3022 = vmatprep.subr.mxu1 %v10884_v59 }
 0x93c   :  { %2952 = vmatpush2.msra.mxu0 %v10885_v15  ;;  %3023 = vmatpush2.msra.mxu1 %v10886_v38 }
 0x93d   :  { %2953 = vmatprep.subr.mxu0 %v10887_v2  ;;  %3024 = vmatprep.subr.mxu1 %v10888_v9 }
 0x93e   :  { %2954 = vmatpush2.msra.mxu0 %v10889_v4  ;;  %3025 = vmatpush2.msra.mxu1 %v10890_v57 }
 0x93f   :  { %2955 = vmatprep.subr.mxu0 %v10891_v14  ;;  %3026 = vmatprep.subr.mxu1 %v10892_v6 }
 0x940   :  { %2956 = vmatpush2.msra.mxu0 %v10893_v8  ;;  %3027 = vmatpush2.msra.mxu1 %v10894_v10  ;;  %v2728_v8 = vmul.f32 %v2394_v21, %v8367_v13 }
 0x941   :  { %2957 = vmatprep.subr.mxu0 %v10895_v45  ;;  %3028 = vmatprep.subr.mxu1 %v10896_v12 }
 0x942   :  { %2958 = vmatpush2.msra.mxu0 %v10897_v17  ;;  %3029 = vmatpush2.msra.mxu1 %v10898_v20 }
 0x943   :  { %2959 = vmatprep.subr.mxu0 %v10899_v58  ;;  %3030 = vmatprep.subr.mxu1 %v10900_v22 }
 0x944   :  { %2960 = vmatpush2.msra.mxu0 %v10901_v27  ;;  %3031 = vmatpush2.msra.mxu1 %v10902_v41 }
 0x945   :  { %2961 = vmatprep.subr.mxu0 %v10903_v16  ;;  %3032 = vmatprep.subr.mxu1 %v10904_v50 }
 0x946   :  { %2962 = vmatpush2.msra.mxu0 %v10905_v39  ;;  %3033 = vmatpush2.msra.mxu1 %v10906_v31 }
 0x947   :  { %2963 = vmatprep.subr.mxu0 %v10907_v48  ;;  %3034 = vmatprep.subr.mxu1 %v10908_v25  ;;  %v8602_v25 = vsel %vm2730_vm10, 1.0, %v9592_v55 }
 0x948   :  { %2964 = vmatpush2.msra.mxu0 %v10909_v40  ;;  %3035 = vmatpush2.msra.mxu1 %v10910_v28 }
 0x949   :  { %2965 = vmatprep.subr.mxu0 %v10911_v29  ;;  %3036 = vmatprep.subr.mxu1 %v10912_v63  ;;  %v2733_v29 = vsub.f32 1.0, %v8602_v25 }
 0x94a   :  { %2966 = vmatpush2.msra.mxu0 %v10913_v19  ;;  %3037 = vmatpush2.msra.mxu1 %v10914_v18 }
 0x94b   :  { %2967 = vmatprep.subr.mxu0 %v10915_v11  ;;  %3038 = vmatprep.subr.mxu1 %v10916_v7  ;;  %v3083_v7 = vld [vmem:[%s8699_s4 + $0x70] sm:$0xff] }
 0x94c   :  { %2968 = vmatpush2.msra.mxu0 %v10917_v34  ;;  %3039 = vmatpush2.msra.mxu1 %v10918_v56  ;;  %v3081_v34 = vld [vmem:[%s8699_s4 + $0x60] sm:$0xff]  ;;  %v3080_v56 = vld [vmem:[%s8699_s4 + $0x58] sm:$0xff] }
 0x94d   :  { %3268 = vmatprep.subr.mxu0 %v9592_v55 }
 0x98b   :  { %v2632_v36 = vpop.f32.mrf.mxu0  ;;  %v2703_v52 = vpop.f32.mrf.mxu1 }
 0x98c   :  { %v2633_v37 = vadd.f32 %v2632_v36, %v5476_v53  ;;  %v2704_v61 = vadd.f32 %v2703_v52, %v5490_v30  ;;  %v3079_v36 = vld [vmem:[%s8699_s4 + $0x50] sm:$0xff] }
 0x98d   :  { %v2634_v33 = vpop.f32.mrf.mxu0  ;;  %v2705_v42 = vpop.f32.mrf.mxu1  ;;  %v3071_v52 = vld [vmem:[%s8699_s4 + $0x10] sm:$0xff] }
 0x98e   :  { %v3243_v32 = vmul.f32 -1.442695, %v2633_v37  ;;  %v2635_v44 = vadd.f32 %v2634_v33, %v10919_v47  ;;  %v2706_v60 = vadd.f32 %v2705_v42, %v10920_v49  ;;  %v3078_v37 = vld [vmem:[%s8699_s4 + $0x48] sm:$0xff]  ;;  %v3076_v33 = vld [vmem:[%s8699_s4 + $0x38] sm:$0xff]  ;;  %v3069_v42 = vld [vmem:[%s8699_s4] sm:$0xff] }
 0x990   :  { %3441 = vpow2.f32 %v3243_v32  ;;  %v3244_v62 = vmul.f32 -1.442695, %v2635_v44  ;;  %v3077_v32 = vld [vmem:[%s8699_s4 + $0x40] sm:$0xff]  ;;  %v3075_v44 = vld [vmem:[%s8699_s4 + $0x30] sm:$0xff] }
 0x992   :  { %3443 = vpow2.f32 %v3244_v62  ;;  %v3074_v62 = vld [vmem:[%s8699_s4 + $0x28] sm:$0xff] }
 0x99d   :  { %v3442_v35 = vpop.eup %3441 }
 0x99e   :  { %v2711_v3 = vadd.f32 1.0, %v3442_v35  ;;  %v3073_v35 = vld [vmem:[%s8699_s4 + $0x20] sm:$0xff] }
 0x99f   :  { %v3444_v43 = vpop.eup %3443 }
 0x9a0   :  { %3445 = vrcp.f32 %v2711_v3  ;;  %v2717_v54 = vadd.f32 1.0, %v3444_v43  ;;  %v3072_v3 = vld [vmem:[%s8699_s4 + $0x18] sm:$0xff]  ;;  %v3070_v43 = vld [vmem:[%s8699_s4 + $0x8] sm:$0xff] }
 0x9a2   :  { %3447 = vrcp.f32 %v2717_v54 }
 0x9ad   :  { %v3446_v0 = vpop.eup %3445 }
 0x9ae   :  { %v2720_v59 = vmul.f32 %v3446_v0, %v2706_v60 }
 0x9af   :  { %v3448_v38 = vpop.eup %3447 }
 0x9b0   :  { %v2721_v15 = vadd.f32 %v2720_v59, %v2704_v61  ;;  %v2723_v2 = vsub.f32 1.0, %v3448_v38  ;;  %v2725_v57 = vmul.f32 %v3448_v38, %v8367_v13 }
 0x9b2   :  { %3449 = vtanh.f32 %v2721_v15 }
 0x9bf   :  { %v3450_v9 = vpop.eup %3449 }
 0x9c0   :  { %v2724_v4 = vmul.f32 %v3450_v9, %v2723_v2 }
 0x9c2   :  { %v2726_v14 = vadd.f32 %v2725_v57, %v2724_v4 }
 0x9c4   :  { %v2727_v6 = vmul.f32 %v8377_v24, %v2726_v14 }
 0x9c6   :  { %v8592_v10 = vadd.f32 %v2728_v8, %v2727_v6 }
 0x9c8   :  { %2969 = vmatprep.mubr.f32.mxu0 %v8592_v10  ;;  %3040 = vmatprep.mubr.f32.mxu1 %v8592_v10 }
 0x9cb   :  { %v2807_v45 = vpop.f32.mrf.mxu0 }
 0x9cc   :  { %v2808_v12 = vadd.f32 %v2807_v45, %v9788_v46 }
 0x9cd   :  { %v2809_v20 = vpop.f32.mrf.mxu0  ;;  %v2878_v13 = vpop.f32.mrf.mxu1 }
 0x9ce   :  { %v3246_v17 = vmul.f32 -1.442695, %v2808_v12  ;;  %v2810_v58 = vadd.f32 %v2809_v20, %v9789_v51  ;;  %v2879_v46 = vadd.f32 %v2878_v13, %v9790_v23  ;;  %v2903_v23 = vmul.f32 %v2733_v29, %v8385_v26 }
 0x9cf   :  { %v2880_v21 = vpop.f32.mrf.mxu1 }
 0x9d0   :  { %3451 = vpow2.f32 %v3246_v17  ;;  %v3247_v22 = vmul.f32 -1.442695, %v2810_v58  ;;  %v2881_v50 = vadd.f32 %v2880_v21, %v5039_v1 }
 0x9d2   :  { %3453 = vpow2.f32 %v3247_v22 }
 0x9dd   :  { %v3452_v27 = vpop.eup %3451 }
 0x9de   :  { %v2886_v41 = vadd.f32 1.0, %v3452_v27 }
 0x9df   :  { %v3454_v24 = vpop.eup %3453 }
 0x9e0   :  { %3455 = vrcp.f32 %v2886_v41  ;;  %v2892_v16 = vadd.f32 1.0, %v3454_v24 }
 0x9e2   :  { %3457 = vrcp.f32 %v2892_v16 }
 0x9ed   :  { %v3456_v39 = vpop.eup %3455 }
 0x9ee   :  { %v2895_v31 = vmul.f32 %v3456_v39, %v2881_v50 }
 0x9ef   :  { %v3458_v51 = vpop.eup %3457 }
 0x9f0   :  { %v2896_v48 = vadd.f32 %v2895_v31, %v2879_v46  ;;  %v2898_v40 = vsub.f32 1.0, %v3458_v51  ;;  %v2900_v1 = vmul.f32 %v3458_v51, %v8385_v26  ;;  %v3082_v26 = vld [vmem:[%s8699_s4 + $0x68] sm:$0xff] }
 0x9f2   :  { %3459 = vtanh.f32 %v2896_v48 }
 0x9ff   :  { %v3460_v28 = vpop.eup %3459 }
 0xa00   :  { %v2899_v63 = vmul.f32 %v3460_v28, %v2898_v40 }
 0xa02   :  { %v2901_v19 = vadd.f32 %v2900_v1, %v2899_v63 }
 0xa04   :  { %v2902_v18 = vmul.f32 %v8602_v25, %v2901_v19 }
 0xa06   :  { %v2904_v11 = vadd.f32 %v2903_v23, %v2902_v18 }
 0xa08   :  { %2970 = vmatmul.mubr.f32.vlgmr.msra.gmra.mxu0 %v2904_v11  ;;  %3041 = vmatmul.mubr.f32.vlgmr.msra.gmra.mxu1 %v2904_v11 }
 0xa09   :  { %3269 = vmatpush3.msra.mxu0 %v3084_v5  ;;  %3300 = vmatprep.mubr.msk.f32.mxu0 %vm4399_vm11, %v9592_v55 }
 0xa0a   :  { %3270 = vmatprep.subr.mxu0 %v9592_v55 }
 0xa0b   :  { %3271 = vmatpush3.msra.mxu0 %v3083_v7 }
 0xa0c   :  { %3272 = vmatprep.subr.mxu0 %v9592_v55 }
 0xa0d   :  { %3273 = vmatpush3.msra.mxu0 %v3082_v26 }
 0xa0e   :  { %3274 = vmatprep.subr.mxu0 %v9592_v55 }
 0xa0f   :  { %3275 = vmatpush3.msra.mxu0 %v3081_v34 }
 0xa10   :  { %3276 = vmatprep.subr.mxu0 %v9592_v55 }
 0xa11   :  { %3277 = vmatpush3.msra.mxu0 %v3080_v56 }
 0xa12   :  { %3278 = vmatprep.subr.mxu0 %v9592_v55 }
 0xa13   :  { %3279 = vmatpush3.msra.mxu0 %v3079_v36 }
 0xa14   :  { %3280 = vmatprep.subr.mxu0 %v9592_v55 }
 0xa15   :  { %3281 = vmatpush3.msra.mxu0 %v3078_v37 }
 0xa16   :  { %3282 = vmatprep.subr.mxu0 %v9592_v55 }
 0xa17   :  { %3283 = vmatpush3.msra.mxu0 %v3077_v32 }
 0xa18   :  { %3284 = vmatprep.subr.mxu0 %v9592_v55 }
 0xa19   :  { %3285 = vmatpush3.msra.mxu0 %v3076_v33 }
 0xa1a   :  { %3286 = vmatprep.subr.mxu0 %v9592_v55 }
 0xa1b   :  { %3287 = vmatpush3.msra.mxu0 %v3075_v44 }
 0xa1c   :  { %3288 = vmatprep.subr.mxu0 %v9592_v55 }
 0xa1d   :  { %3289 = vmatpush3.msra.mxu0 %v3074_v62 }
 0xa1e   :  { %3290 = vmatprep.subr.mxu0 %v9592_v55 }
 0xa1f   :  { %3291 = vmatpush3.msra.mxu0 %v3073_v35 }
 0xa20   :  { %3292 = vmatprep.subr.mxu0 %v9592_v55 }
 0xa21   :  { %3293 = vmatpush3.msra.mxu0 %v3072_v3 }
 0xa22   :  { %3294 = vmatprep.subr.mxu0 %v9592_v55 }
 0xa23   :  { %3295 = vmatpush3.msra.mxu0 %v3071_v52 }
 0xa24   :  { %3296 = vmatprep.subr.mxu0 %v9592_v55 }
 0xa25   :  { %3297 = vmatpush3.msra.mxu0 %v3070_v43 }
 0xa26   :  { %3298 = vmatprep.subr.mxu0 %v9592_v55 }
 0xa27   :  { %3299 = vmatpush3.msra.mxu0 %v3069_v42 }
 0xac8   :  { %v2971_v54 = vpop.f32.mrf.mxu0  ;;  %v3042_v9 = vpop.f32.mrf.mxu1 }
 0xac9   :  { %v2972_v60 = vadd.f32 %v2971_v54, %v5476_v53  ;;  %v3043_v8 = vadd.f32 %v3042_v9, %v5490_v30  ;;  %v3250_v30 = vld [vmem:[%s8700_s5] ss:$0 sm:$0xff] }
 0xaca   :  { %v2973_v61 = vpop.f32.mrf.mxu0  ;;  %v3044_v57 = vpop.f32.mrf.mxu1 }
 0xacb   :  { %v3248_v0 = vmul.f32 -1.442695, %v2972_v60  ;;  %v2974_v59 = vadd.f32 %v2973_v61, %v10919_v47  ;;  %v3045_v55 = vadd.f32 %v3044_v57, %v10920_v49  ;;  %v3067_v49 = vmul.f32 %v2733_v29, %v8592_v10 }
 0xacd   :  { %3461 = vpow2.f32 %v3248_v0  ;;  %v3249_v15 = vmul.f32 -1.442695, %v2974_v59 }
 0xacf   :  { %3463 = vpow2.f32 %v3249_v15 }
 0xada   :  { %v3462_v38 = vpop.eup %3461 }
 0xadb   :  { %v3050_v2 = vadd.f32 1.0, %v3462_v38 }
 0xadc   :  { %v3464_v4 = vpop.eup %3463 }
 0xadd   :  { %3465 = vrcp.f32 %v3050_v2  ;;  %v3056_v14 = vadd.f32 1.0, %v3464_v4 }
 0xadf   :  { %3467 = vrcp.f32 %v3056_v14 }
 0xaea   :  { %v3466_v6 = vpop.eup %3465 }
 0xaeb   :  { %v3059_v53 = vmul.f32 %v3466_v6, %v3045_v55 }
 0xaec   :  { %v3468_v12 = vpop.eup %3467 }
 0xaed   :  { %v3060_v45 = vadd.f32 %v3059_v53, %v3043_v8  ;;  %v3062_v47 = vsub.f32 1.0, %v3468_v12  ;;  %v3064_v58 = vmul.f32 %v3468_v12, %v8592_v10 }
 0xaef   :  { %3469 = vtanh.f32 %v3060_v45 }
 0xafc   :  { %v3470_v17 = vpop.eup %3469 }
 0xafd   :  { %v3063_v20 = vmul.f32 %v3470_v17, %v3062_v47 }
 0xaff   :  { %v3065_v22 = vadd.f32 %v3064_v58, %v3063_v20 }
 0xb01   :  { %v3066_v27 = vmul.f32 %v8602_v25, %v3065_v22 }
 0xb03   :  { %v3068_v41 = vadd.f32 %v3067_v49, %v3066_v27 }
 0xb05   :  { %3301 = vmatmul.mubr.f32.vlgmr.msra.gmra.mxu0 %v3068_v41  ;;  %3178 = vst.msk [vmem:[#allocation8] sm:$0x3] %vm3177_vm12, %v3068_v41 }
 0xbc5   :  { %v3158_v13 = vpop.f32.mrf.mxu0 }
 0xbc6   :  { %v3159_v24 = vadd.f32 %v3250_v30, %v3158_v13 }
 0xbc7   :  { %v3302_v21 = vpop.f32.mrf.mxu0 }
 0xbc8   :  { %v3163_v16 = vsel %vm3162_vm13, %v3159_v24, -inf }
 0xbc9   :  { %3164 = vmax.xlane.f32.xlu0 %v3163_v16 }
 0xc52   :  { %v3165_v50 = vpop.xlane.xlu0 %3164 }
 0xc53   :  { %v3166_v39 = vsub.f32 %v3159_v24, %v3165_v50 }
 0xc55   :  { %v3167_v46 = vmul.f32 1.442695, %v3166_v39 }
 0xc57   :  { %3471 = vpow2.f32 %v3167_v46 }
 0xc64   :  { %v3472_v10 = vpop.eup %3471 }
 0xc65   :  { %v3169_v31 = vsel %vm3162_vm13, %v3472_v10, 0.0 }
 0xc66   :  { %3170 = vadd.xlane.f32.xlu0 %v3169_v31 }
 0xc67   :  { %4357 = shalt.err (!%p4354_p0)
}
 0xc68   :  { %3198 = dma.vmem_to_hbm [thread:$0]  %s3196_s28, 32, %s8702_s7, [#allocation9]  }
 0xc69   :  { %s4401_s0 = smov [#allocation7]  }
 0xc6a   :  { %s3185_s8 = sshll.u32 %s4401_s0, 4  ;;  %s3186_s8 = int_to_ptr.vmem [resolvable:$true] %s3185_s8 }
 0xc6b   :  { %s4366_s9 = scalar_lea.vmem %s3186_s8, 32  ;;  %p4371_p2 = scmp.lt.s32.totalorder %s3186_s8, %s3186_s8 }
 0xc6c   :  { %p4367_p1 = scmp.ne.s32.totalorder %s3186_s8, %s4366_s9  ;;  %p4372_p3 = scmp.lt.s32.totalorder %s4366_s9, %s4366_s9 }
 0xc6e   :  { %p4373_p4 = por %p4372_p3, %p4371_p2 }
 0xc70   :  { %p4374_p5 = pnand %p4373_p4, %p4367_p1 }
 0xcef   :  { %v3171_v48 = vpop.xlane.xlu0 %3170 }
 0xcf0   :  { %3473 = vlog2.f32 %v3171_v48 }
 0xcfd   :  { %v3474_v51 = vpop.eup %3473 }
 0xcfe   :  { %v3173_v25 = vmul.f32 0.6931472, %v3474_v51 }
 0xd00   :  { %v3174_v40 = vadd.f32 %v3173_v25, %v3165_v50 }
 0xd02   :  { %v3175_v28 = vsub.f32 %v3159_v24, %v3174_v40 }
 0xd04   :  { %3176 = vst.msk [vmem:[#allocation7] sm:$0x3] %vm3162_vm13, %v3175_v28 }
 0xd05   :  { %4377 = shalt.err (!%p4374_p5)
}
 0xd06   :  { %3188 = dma.vmem_to_hbm [thread:$0]  %s3186_s8, 32, %s8701_s6, [#allocation6]  }
 0xd07   :  { %4390 = dma.done.wait [#allocation6], 32  }
 0xd08   :  { %4391 = vsyncadd [#allocation6], 4294967264 }
 0xd09   :  { %4392 = dma.done.wait [#allocation9], 32  }
 0xd0a   :  { %4393 = vsyncadd [#allocation9], 4294967264 }
 0xd0b   :  { %3205 = vsyncpa [#allocation5], 1 }
 0xd0c   :  { %3206 = vsyncpa [#allocation6], 1 }
 0xd0d   :  { %3207 = vsyncpa [#allocation9], 1 }

</bundles_post_ra>
